<compile_context>
chip_gen: v7x
topology: tpu7x:2x2x1
jax: 0.10.0
libtpu: 0.0.40
codegen_flags: <defaults>
</compile_context>

<pallas_src>
import functools
import math

import jax
import jax.numpy as jnp
from jax import lax
from jax.experimental import pallas as pl
from jax.experimental.pallas import tpu as pltpu

D_MODEL = 256          # forced by `x = x.view(-1, 256)` in the reference forward
GAT_HEADS = 2          # nhead (GATv2Conv heads)
MHA_HEADS = 2          # nn.MultiheadAttention(..., num_heads=2) is hard-coded
NUM_LAYERS = 2
EDGE_ATTR_DIM = 6
INPUT_DIM = 16
MAX_LEN = 1000

HC = GAT_HEADS * D_MODEL            # 512 (concat GAT output width)
HEAD_DIM = D_MODEL // MHA_HEADS     # 128 (MHA head dim)
EDGE_PAD_DIM = 8                    # edge_attr feature dim padded 6 -> 8 (sublane aligned)


def _round_up(x, m):
    return (x + m - 1) // m * m


# --------------------------- in-kernel helpers -----------------------------

def _layernorm(x, g, b):
    mu = jnp.mean(x, axis=-1, keepdims=True)
    var = jnp.mean((x - mu) ** 2, axis=-1, keepdims=True)
    return (x - mu) * lax.rsqrt(var + 1e-5) * g + b


def _erf(x):
    # Abramowitz & Stegun 7.1.26 polynomial erf (|err| <= 1.5e-7): matches exact-erf GELU
    # within f32 tolerance and uses only exp / mul / where (VPU/EUP friendly).
    a1, a2, a3, a4, a5 = 0.254829592, -0.284496736, 1.421413741, -1.453152027, 1.061405429
    p = 0.3275911
    sgn = jnp.where(x >= 0, 1.0, -1.0)
    z = jnp.abs(x)
    t = 1.0 / (1.0 + p * z)
    poly = ((((a5 * t + a4) * t + a3) * t + a2) * t + a1) * t
    return sgn * (1.0 - poly * jnp.exp(-z * z))


def _gelu(x):
    # PyTorch nn.GELU default (erf form).
    return 0.5 * x * (1.0 + _erf(x * (1.0 / math.sqrt(2.0))))


# ------------------------------ fused kernel -------------------------------

def _fused_forward_kernel(
        # graph tensors (resident for all layers)
        x_ref, pe_ref, ea_ref, src_ref, dstc_ref, dstr_ref,
        # input-embedding params
        w_in_ref, b_in_ref, g_in_ref, beta_in_ref,
        # per-layer params (layer slice selected by the grid index)
        wlr_ref, blr_ref, we_ref, att_ref, wt_ref, bt_ref,
        wqkv_ref, bqkv_ref, wo_ref, bo_ref,
        # epilogue params
        g_pre_ref, b_pre_ref, wg_ref, bg_ref,
        wc1_ref, bc1_ref, gc_ref, bcg_ref,
        wr1_ref, br1_ref, grn_ref, brn_ref,
        wr2_ref, br2_ref, wc2_ref, bc2_ref,
        # output
        o_ref,
        # scratch: node features carried layer -> layer (VMEM resident)
        h_ref,
        *, n_real):
    layer = pl.program_id(0)
    n_pad = h_ref.shape[0]
    e_pad = ea_ref.shape[0]
    c = D_MODEL
    hd = HEAD_DIM

    row_ok = lax.broadcasted_iota(jnp.int32, (n_pad, 1), 0) < n_real

    # ---- prologue (layer 0 only): input embedding + LayerNorm + positional encoding ----
    @pl.when(layer == 0)
    def _():
        emb = (jnp.dot(x_ref[...], w_in_ref[...], preferred_element_type=jnp.float32)
               + b_in_ref[...])
        emb = _layernorm(emb, g_in_ref[...], beta_in_ref[...])
        # TODO(synk): LearnedPositionalEncoding source not provided; using "add learned
        # per-position embedding" (dropout = identity at inference).
        h_ref[...] = emb + pe_ref[...]          # x.view(-1, 256) is a no-op here

    h = h_ref[...]                                                     # (N, 256) residual

    # ---- GATv2Conv(add_self_loops=False, concat=True, edge_dim=6) ----
    # fused lin_l | lin_r projection: one (256, 1024) MXU pass
    glr = jnp.dot(h, wlr_ref[...], preferred_element_type=jnp.float32) + blr_ref[...]
    gl = glr[:, :HC]                                                   # (N, H*C) lin_l(x)
    gr = glr[:, HC:]                                                   # (N, H*C) lin_r(x)
    ee = jnp.dot(ea_ref[...], we_ref[...], preferred_element_type=jnp.float32)  # (E, H*C)

    # in-kernel edge gathers via one-hot MXU matmuls (padded edges have id -1 -> zero rows)
    node_lane = lax.broadcasted_iota(jnp.int32, (e_pad, n_pad), 1)
    onehot_src = (node_lane == src_ref[...]).astype(jnp.float32)       # (E, N)
    onehot_dst = (node_lane == dstc_ref[...]).astype(jnp.float32)      # (E, N)
    gl_src = jnp.dot(onehot_src, gl, preferred_element_type=jnp.float32)   # (E, H*C)
    gr_dst = jnp.dot(onehot_dst, gr, preferred_element_type=jnp.float32)   # (E, H*C)

    msg = gl_src + gr_dst + ee
    msg = jnp.where(msg > 0, msg, 0.2 * msg)                           # LeakyReLU(0.2)

    # target-incidence mask (N, E) built from on-chip dst indices
    node_sub = lax.broadcasted_iota(jnp.int32, (n_pad, e_pad), 0)
    inc = (node_sub == dstr_ref[...]).astype(jnp.float32)              # (N, E)

    att = att_ref[...]                                                 # (1, H*C)
    head_outs = []
    for hh in range(GAT_HEADS):
        m_h = msg[:, hh * c:(hh + 1) * c]                              # (E, C) lane-dense
        att_h = att[:, hh * c:(hh + 1) * c]                            # (1, C)
        logit = lax.dot_general(att_h, m_h, (((1,), (1,)), ((), ())),
                                preferred_element_type=jnp.float32)    # (1, E)
        lm = jnp.where(inc > 0, logit, -1e30)                          # (N, E)
        mx = jnp.max(lm, axis=-1, keepdims=True)
        p = jnp.exp(lm - mx) * inc
        alpha = p / (jnp.sum(p, axis=-1, keepdims=True) + 1e-16)       # PyG softmax eps
        head_outs.append(jnp.dot(alpha, gl_src[:, hh * c:(hh + 1) * c],
                                 preferred_element_type=jnp.float32))  # (N, C)
    gat_out = jnp.concatenate(head_outs, axis=1)                       # (N, H*C)

    # gat_transform (Linear(H*C->256)+ReLU); GATv2 output bias pre-folded into bt
    h2 = jnp.dot(gat_out, wt_ref[...], preferred_element_type=jnp.float32) + bt_ref[...]
    h2 = jnp.maximum(h2, 0.0)                                          # (N, 256)

    # ---- CrossAttentionLayer: 2-head self-attention (fused QKV) + residual ----
    qkv = jnp.dot(h2, wqkv_ref[...], preferred_element_type=jnp.float32) + bqkv_ref[...]
    key_ok = lax.broadcasted_iota(jnp.int32, (n_pad, n_pad), 1) < n_real
    scale = 1.0 / math.sqrt(hd)
    ctxs = []
    for hh in range(MHA_HEADS):
        q = qkv[:, hh * hd:(hh + 1) * hd]
        k = qkv[:, D_MODEL + hh * hd:D_MODEL + (hh + 1) * hd]
        v = qkv[:, 2 * D_MODEL + hh * hd:2 * D_MODEL + (hh + 1) * hd]
        s = lax.dot_general(q, k, (((1,), (1,)), ((), ())),
                            preferred_element_type=jnp.float32) * scale
        s = jnp.where(key_ok, s, -1e30)                                # mask padded keys
        smx = jnp.max(s, axis=-1, keepdims=True)
        ps = jnp.exp(s - smx)
        ps = ps / jnp.sum(ps, axis=-1, keepdims=True)
        ctxs.append(jnp.dot(ps, v, preferred_element_type=jnp.float32))  # (N, hd)
    ctx = jnp.concatenate(ctxs, axis=1)                                # (N, 256)
    attn_out = jnp.dot(ctx, wo_ref[...], preferred_element_type=jnp.float32) + bo_ref[...]

    # residual; zero padded node rows so garbage never propagates to the next layer
    h_ref[...] = jnp.where(row_ok, attn_out + h, 0.0)

    # ---- epilogue (last layer only): pre-pool LN + attention pooling + classifier ----
    @pl.when(layer == pl.num_programs(0) - 1)
    def _():
        hn = _layernorm(h_ref[...], g_pre_ref[...], b_pre_ref[...])    # (N, 256)
        # TODO(synk): GlobalAttentionPooling source not provided; using gate_nn=Linear(d,1),
        # softmax over nodes, weighted sum (single graph since batch=None).
        gate = jnp.sum(hn * wg_ref[...], axis=-1, keepdims=True) + bg_ref[...]   # (N, 1)
        gate = jnp.where(row_ok, gate, -1e30)                          # mask padded nodes
        gmx = jnp.max(gate, axis=0, keepdims=True)
        ge = jnp.exp(gate - gmx)
        a = ge / jnp.sum(ge, axis=0, keepdims=True)
        pooled = jnp.sum(a * hn, axis=0, keepdims=True)                # (1, 256)

        # classifier: Linear -> LayerNorm -> GELU -> ResidualBlockv2 -> (Dropout) -> Linear
        cc = jnp.dot(pooled, wc1_ref[...], preferred_element_type=jnp.float32) + bc1_ref[...]
        cc = _layernorm(cc, gc_ref[...], bcg_ref[...])
        cc = _gelu(cc)
        # TODO(synk): ResidualBlockv2 source not provided; using Linear->LN->GELU->Linear + skip.
        r = jnp.dot(cc, wr1_ref[...], preferred_element_type=jnp.float32) + br1_ref[...]
        r = _layernorm(r, grn_ref[...], brn_ref[...])
        r = _gelu(r)
        r = jnp.dot(r, wr2_ref[...], preferred_element_type=jnp.float32) + br2_ref[...]
        cc = cc + r
        o_ref[...] = jnp.sum(cc * wc2_ref[...], axis=-1, keepdims=True) + bc2_ref[...]  # (1,1)


# ------------------------------ parameters ---------------------------------

def _linear_params(key, fan_in, fan_out):
    kw, kb = jax.random.split(key)
    lim = 1.0 / math.sqrt(fan_in)
    w = jax.random.uniform(kw, (fan_in, fan_out), jnp.float32, -lim, lim)
    b = jax.random.uniform(kb, (fan_out,), jnp.float32, -lim, lim)
    return w, b


def init_params(key):
    keys = iter(jax.random.split(key, 64))
    p = {}
    w, b = _linear_params(next(keys), INPUT_DIM, D_MODEL)
    p["W_in"], p["b_in"] = w, b.reshape(1, -1)
    p["ln_in_g"] = jnp.ones((1, D_MODEL), jnp.float32)
    p["ln_in_b"] = jnp.zeros((1, D_MODEL), jnp.float32)
    p["pe"] = jax.random.normal(next(keys), (MAX_LEN, D_MODEL), jnp.float32) * 0.02

    stacks = {k: [] for k in ("Wlr", "blr", "We", "att", "Wt", "bt",
                              "Wqkv", "bqkv", "Wo", "bo")}
    for _ in range(NUM_LAYERS):
        wl, bl = _linear_params(next(keys), D_MODEL, HC)
        wr, br = _linear_params(next(keys), D_MODEL, HC)
        stacks["Wlr"].append(jnp.concatenate([wl, wr], axis=1))        # fused lin_l | lin_r
        stacks["blr"].append(jnp.concatenate([bl, br]).reshape(1, -1))
        we, _ = _linear_params(next(keys), EDGE_ATTR_DIM, HC)          # lin_edge (bias=False)
        stacks["We"].append(
            jnp.zeros((EDGE_PAD_DIM, HC), jnp.float32).at[:EDGE_ATTR_DIM].set(we))
        stacks["att"].append(
            jax.random.uniform(next(keys), (1, HC), jnp.float32, -1.0, 1.0)
            * math.sqrt(6.0 / (D_MODEL + 1)))
        gat_bias = jnp.zeros((1, HC), jnp.float32)                     # GATv2Conv bias (zeros)
        wt, bt = _linear_params(next(keys), HC, D_MODEL)
        stacks["Wt"].append(wt)
        # exact fold: gat_transform(gat_out + gat_bias) -> bt_eff = bt + gat_bias @ Wt
        stacks["bt"].append(bt.reshape(1, -1) + gat_bias @ wt)
        wq, bq = _linear_params(next(keys), D_MODEL, D_MODEL)
        wk, bk = _linear_params(next(keys), D_MODEL, D_MODEL)
        wv, bv = _linear_params(next(keys), D_MODEL, D_MODEL)
        stacks["Wqkv"].append(jnp.concatenate([wq, wk, wv], axis=1))   # fused in_proj
        stacks["bqkv"].append(jnp.concatenate([bq, bk, bv]).reshape(1, -1))
        wo, bo = _linear_params(next(keys), D_MODEL, D_MODEL)
        stacks["Wo"].append(wo)
        stacks["bo"].append(bo.reshape(1, -1))
    for k, v in stacks.items():
        p[k] = jnp.stack(v, axis=0)                                    # (NUM_LAYERS, ...)

    p["ln_pre_g"] = jnp.ones((1, D_MODEL), jnp.float32)
    p["ln_pre_b"] = jnp.zeros((1, D_MODEL), jnp.float32)
    wg, bg = _linear_params(next(keys), D_MODEL, 1)
    p["Wg_row"] = wg.reshape(1, D_MODEL)
    p["bg"] = bg.reshape(1, 1)

    wc1, bc1 = _linear_params(next(keys), D_MODEL, 128)
    p["Wc1"], p["bc1"] = wc1, bc1.reshape(1, -1)
    p["ln_c_g"] = jnp.ones((1, 128), jnp.float32)
    p["ln_c_b"] = jnp.zeros((1, 128), jnp.float32)
    wr1, br1 = _linear_params(next(keys), 128, 128)
    p["Wr1"], p["br1"] = wr1, br1.reshape(1, -1)
    p["ln_r_g"] = jnp.ones((1, 128), jnp.float32)
    p["ln_r_b"] = jnp.zeros((1, 128), jnp.float32)
    wr2, br2 = _linear_params(next(keys), 128, 128)
    p["Wr2"], p["br2"] = wr2, br2.reshape(1, -1)
    wc2, bc2 = _linear_params(next(keys), 128, 1)
    p["Wc2_row"] = wc2.reshape(1, 128)
    p["bc2"] = bc2.reshape(1, 1)
    return p


# -------------------------------- forward ----------------------------------

def gat_transformer_forward(params, x, edge_index, edge_attr):
    n = int(x.shape[0])
    e = int(edge_attr.shape[0])
    n_pad = max(_round_up(n, 8), 8)          # sublane-aligned node count
    e_pad = max(_round_up(e, 128), 128)      # lane-aligned edge count

    # one-time zero padding so every kernel block is (8,128)-tile friendly
    x_p = jnp.zeros((n_pad, INPUT_DIM), jnp.float32).at[:n].set(x)
    pe_p = jnp.zeros((n_pad, D_MODEL), jnp.float32).at[:n].set(params["pe"][:n])
    ea_p = jnp.zeros((e_pad, EDGE_PAD_DIM), jnp.float32).at[:e, :EDGE_ATTR_DIM].set(edge_attr)
    src = edge_index[0].astype(jnp.int32)
    dst = edge_index[1].astype(jnp.int32)
    pad_ids = jnp.full((e_pad,), -1, jnp.int32)         # -1 never matches a node -> masked
    src_col = pad_ids.at[:e].set(src).reshape(e_pad, 1)
    dst_full = pad_ids.at[:e].set(dst)
    dst_col = dst_full.reshape(e_pad, 1)
    dst_row = dst_full.reshape(1, e_pad)

    graph_args = (x_p, pe_p, ea_p, src_col, dst_col, dst_row)
    embed_args = (params["W_in"], params["b_in"], params["ln_in_g"], params["ln_in_b"])
    layer_args = (params["Wlr"], params["blr"], params["We"], params["att"],
                  params["Wt"], params["bt"], params["Wqkv"], params["bqkv"],
                  params["Wo"], params["bo"])
    epi_args = (params["ln_pre_g"], params["ln_pre_b"], params["Wg_row"], params["bg"],
                params["Wc1"], params["bc1"], params["ln_c_g"], params["ln_c_b"],
                params["Wr1"], params["br1"], params["ln_r_g"], params["ln_r_b"],
                params["Wr2"], params["br2"], params["Wc2_row"], params["bc2"])

    def full_spec(a):                    # whole array, DMA'd once (constant block index)
        nd = a.ndim

        def imap(l):
            return (0,) * nd
        return pl.BlockSpec(tuple(a.shape), imap)

    def layer_spec(a):                   # per-layer slice, double-buffered across the grid
        nd = a.ndim

        def imap(l):
            return (l,) + (0,) * (nd - 1)
        return pl.BlockSpec((None,) + tuple(a.shape[1:]), imap)

    in_specs = ([full_spec(a) for a in graph_args + embed_args]
                + [layer_spec(a) for a in layer_args]
                + [full_spec(a) for a in epi_args])

    out = pl.pallas_call(
        functools.partial(_fused_forward_kernel, n_real=n),
        grid=(NUM_LAYERS,),
        out_shape=jax.ShapeDtypeStruct((1, 1), jnp.float32),
        in_specs=in_specs,
        out_specs=pl.BlockSpec((1, 1), lambda l: (0, 0)),
        scratch_shapes=[pltpu.VMEM((n_pad, D_MODEL), jnp.float32)],   # resident node features
        compiler_params=pltpu.CompilerParams(
            dimension_semantics=("arbitrary",),                       # h carried layer->layer
            vmem_limit_bytes=32 * 1024 * 1024),
    )(*(graph_args + embed_args + layer_args + epi_args))
    return out


if __name__ == "__main__":
    key = jax.random.PRNGKey(0)
    kx, ks, kd, ke, kp = jax.random.split(key, 5)
    num_nodes, num_edges = 8, 16
    x = jax.random.normal(kx, (num_nodes, INPUT_DIM), jnp.float32)
    src = jax.random.randint(ks, (num_edges,), 0, num_nodes, dtype=jnp.int32)
    dst = jax.random.randint(kd, (num_edges,), 0, num_nodes, dtype=jnp.int32)
    edge_index = jnp.stack([src, dst], axis=0)
    edge_attr = jax.random.normal(ke, (num_edges, EDGE_ATTR_DIM), jnp.float32)

    params = init_params(kp)
    fwd = jax.jit(gat_transformer_forward)
    out = fwd(params, x, edge_index, edge_attr)
    jax.block_until_ready(out)
    assert out.shape == (1, 1)
    assert bool(jnp.all(jnp.isfinite(out)))
    print("KERNEL_OK")
</pallas_src>

<mosaic_0001>
module attributes {stable_mosaic.version = 11 : i64} {
  func.func @_fused_forward_kernel(%arg0: i32, %arg1: memref<8x16xf32, #tpu.memory_space<vmem>>, %arg2: memref<8x256xf32, #tpu.memory_space<vmem>>, %arg3: memref<128x8xf32, #tpu.memory_space<vmem>>, %arg4: memref<128x1xi32, #tpu.memory_space<vmem>>, %arg5: memref<128x1xi32, #tpu.memory_space<vmem>>, %arg6: memref<1x128xi32, #tpu.memory_space<vmem>>, %arg7: memref<16x256xf32, #tpu.memory_space<vmem>>, %arg8: memref<1x256xf32, #tpu.memory_space<vmem>>, %arg9: memref<1x256xf32, #tpu.memory_space<vmem>>, %arg10: memref<1x256xf32, #tpu.memory_space<vmem>>, %arg11: memref<1x256x1024xf32, #tpu.memory_space<vmem>>, %arg12: memref<1x1x1024xf32, #tpu.memory_space<vmem>>, %arg13: memref<1x8x512xf32, #tpu.memory_space<vmem>>, %arg14: memref<1x1x512xf32, #tpu.memory_space<vmem>>, %arg15: memref<1x512x256xf32, #tpu.memory_space<vmem>>, %arg16: memref<1x1x256xf32, #tpu.memory_space<vmem>>, %arg17: memref<1x256x768xf32, #tpu.memory_space<vmem>>, %arg18: memref<1x1x768xf32, #tpu.memory_space<vmem>>, %arg19: memref<1x256x256xf32, #tpu.memory_space<vmem>>, %arg20: memref<1x1x256xf32, #tpu.memory_space<vmem>>, %arg21: memref<1x256xf32, #tpu.memory_space<vmem>>, %arg22: memref<1x256xf32, #tpu.memory_space<vmem>>, %arg23: memref<1x256xf32, #tpu.memory_space<vmem>>, %arg24: memref<1x1xf32, #tpu.memory_space<vmem>>, %arg25: memref<256x128xf32, #tpu.memory_space<vmem>>, %arg26: memref<1x128xf32, #tpu.memory_space<vmem>>, %arg27: memref<1x128xf32, #tpu.memory_space<vmem>>, %arg28: memref<1x128xf32, #tpu.memory_space<vmem>>, %arg29: memref<128x128xf32, #tpu.memory_space<vmem>>, %arg30: memref<1x128xf32, #tpu.memory_space<vmem>>, %arg31: memref<1x128xf32, #tpu.memory_space<vmem>>, %arg32: memref<1x128xf32, #tpu.memory_space<vmem>>, %arg33: memref<128x128xf32, #tpu.memory_space<vmem>>, %arg34: memref<1x128xf32, #tpu.memory_space<vmem>>, %arg35: memref<1x128xf32, #tpu.memory_space<vmem>>, %arg36: memref<1x1xf32, #tpu.memory_space<vmem>>, %arg37: memref<1x1xf32, #tpu.memory_space<vmem>>, %arg38: memref<8x256xf32, #tpu.memory_space<vmem>>) attributes {dimension_semantics = [#tpu.dimension_semantics<arbitrary>], iteration_bounds = array<i64: 2>, scalar_prefetch = 0 : i64, scratch_operands = 1 : i64, tpu.core_type = #tpu.core_type<tc>, window_params = [{pipeline_mode = #tpu.pipeline_mode<synchronous>, transform_indices = @transform_0, window_bounds = array<i64: 8, 16>}, {pipeline_mode = #tpu.pipeline_mode<synchronous>, transform_indices = @transform_1, window_bounds = array<i64: 8, 256>}, {pipeline_mode = #tpu.pipeline_mode<synchronous>, transform_indices = @transform_2, window_bounds = array<i64: 128, 8>}, {pipeline_mode = #tpu.pipeline_mode<synchronous>, transform_indices = @transform_3, window_bounds = array<i64: 128, 1>}, {pipeline_mode = #tpu.pipeline_mode<synchronous>, transform_indices = @transform_4, window_bounds = array<i64: 128, 1>}, {pipeline_mode = #tpu.pipeline_mode<synchronous>, transform_indices = @transform_5, window_bounds = array<i64: 1, 128>}, {pipeline_mode = #tpu.pipeline_mode<synchronous>, transform_indices = @transform_6, window_bounds = array<i64: 16, 256>}, {pipeline_mode = #tpu.pipeline_mode<synchronous>, transform_indices = @transform_7, window_bounds = array<i64: 1, 256>}, {pipeline_mode = #tpu.pipeline_mode<synchronous>, transform_indices = @transform_8, window_bounds = array<i64: 1, 256>}, {pipeline_mode = #tpu.pipeline_mode<synchronous>, transform_indices = @transform_9, window_bounds = array<i64: 1, 256>}, {transform_indices = @transform_10, window_bounds = array<i64: 1, 256, 1024>}, {transform_indices = @transform_11, window_bounds = array<i64: 1, 1, 1024>}, {transform_indices = @transform_12, window_bounds = array<i64: 1, 8, 512>}, {transform_indices = @transform_13, window_bounds = array<i64: 1, 1, 512>}, {transform_indices = @transform_14, window_bounds = array<i64: 1, 512, 256>}, {transform_indices = @transform_15, window_bounds = array<i64: 1, 1, 256>}, {transform_indices = @transform_16, window_bounds = array<i64: 1, 256, 768>}, {transform_indices = @transform_17, window_bounds = array<i64: 1, 1, 768>}, {transform_indices = @transform_18, window_bounds = array<i64: 1, 256, 256>}, {transform_indices = @transform_19, window_bounds = array<i64: 1, 1, 256>}, {pipeline_mode = #tpu.pipeline_mode<synchronous>, transform_indices = @transform_20, window_bounds = array<i64: 1, 256>}, {pipeline_mode = #tpu.pipeline_mode<synchronous>, transform_indices = @transform_21, window_bounds = array<i64: 1, 256>}, {pipeline_mode = #tpu.pipeline_mode<synchronous>, transform_indices = @transform_22, window_bounds = array<i64: 1, 256>}, {pipeline_mode = #tpu.pipeline_mode<synchronous>, transform_indices = @transform_23, window_bounds = array<i64: 1, 1>}, {pipeline_mode = #tpu.pipeline_mode<synchronous>, transform_indices = @transform_24, window_bounds = array<i64: 256, 128>}, {pipeline_mode = #tpu.pipeline_mode<synchronous>, transform_indices = @transform_25, window_bounds = array<i64: 1, 128>}, {pipeline_mode = #tpu.pipeline_mode<synchronous>, transform_indices = @transform_26, window_bounds = array<i64: 1, 128>}, {pipeline_mode = #tpu.pipeline_mode<synchronous>, transform_indices = @transform_27, window_bounds = array<i64: 1, 128>}, {pipeline_mode = #tpu.pipeline_mode<synchronous>, transform_indices = @transform_28, window_bounds = array<i64: 128, 128>}, {pipeline_mode = #tpu.pipeline_mode<synchronous>, transform_indices = @transform_29, window_bounds = array<i64: 1, 128>}, {pipeline_mode = #tpu.pipeline_mode<synchronous>, transform_indices = @transform_30, window_bounds = array<i64: 1, 128>}, {pipeline_mode = #tpu.pipeline_mode<synchronous>, transform_indices = @transform_31, window_bounds = array<i64: 1, 128>}, {pipeline_mode = #tpu.pipeline_mode<synchronous>, transform_indices = @transform_32, window_bounds = array<i64: 128, 128>}, {pipeline_mode = #tpu.pipeline_mode<synchronous>, transform_indices = @transform_33, window_bounds = array<i64: 1, 128>}, {pipeline_mode = #tpu.pipeline_mode<synchronous>, transform_indices = @transform_34, window_bounds = array<i64: 1, 128>}, {pipeline_mode = #tpu.pipeline_mode<synchronous>, transform_indices = @transform_35, window_bounds = array<i64: 1, 1>}, {pipeline_mode = #tpu.pipeline_mode<synchronous>, transform_indices = @transform_36, window_bounds = array<i64: 1, 1>}]} {
    %0 = tpu.iota {dimensions = array<i32: 0>} : vector<8x1xi32>
    %c8_i32 = arith.constant 8 : i32
    %1 = vector.broadcast %c8_i32 : i32 to vector<8x1xi32>
    %2 = arith.cmpi slt, %0, %1 : vector<8x1xi32>
    %c0_i32 = arith.constant 0 : i32
    %3 = arith.cmpi eq, %arg0, %c0_i32 : i32
    %4 = arith.extui %3 : i1 to i32
    %c0_i32_0 = arith.constant 0 : i32
    %5 = arith.cmpi ne, %4, %c0_i32_0 : i32
    scf.if %5 {
      %c0_80 = arith.constant 0 : index
      %c0_81 = arith.constant 0 : index
      %167 = vector.load %arg1[%c0_80, %c0_81] : memref<8x16xf32, #tpu.memory_space<vmem>>, vector<8x16xf32>
      %c0_82 = arith.constant 0 : index
      %c0_83 = arith.constant 0 : index
      %168 = vector.load %arg7[%c0_82, %c0_83] : memref<16x256xf32, #tpu.memory_space<vmem>>, vector<16x256xf32>
      %cst_84 = arith.constant dense<0.000000e+00> : vector<8x256xf32>
      %169 = tpu.matmul %167, %168, %cst_84 {dimension_numbers = #tpu.dot_dimension_numbers<[1], [0], [0], [1], [0, 0, 1, 1], [], []>} : vector<8x16xf32>, vector<16x256xf32>, vector<8x256xf32> -> vector<8x256xf32>
      %c0_85 = arith.constant 0 : index
      %c0_86 = arith.constant 0 : index
      %170 = vector.load %arg8[%c0_85, %c0_86] : memref<1x256xf32, #tpu.memory_space<vmem>>, vector<1x256xf32>
      %171 = vector.broadcast %170 : vector<1x256xf32> to vector<8x256xf32>
      %172 = arith.addf %169, %171 : vector<8x256xf32>
      %c0_87 = arith.constant 0 : index
      %c0_88 = arith.constant 0 : index
      %173 = vector.load %arg9[%c0_87, %c0_88] : memref<1x256xf32, #tpu.memory_space<vmem>>, vector<1x256xf32>
      %c0_89 = arith.constant 0 : index
      %c0_90 = arith.constant 0 : index
      %174 = vector.load %arg10[%c0_89, %c0_90] : memref<1x256xf32, #tpu.memory_space<vmem>>, vector<1x256xf32>
      %cst_91 = arith.constant dense<0.000000e+00> : vector<8xf32>
      %175 = vector.multi_reduction <add>, %172, %cst_91 [1] : vector<8x256xf32> to vector<8xf32>
      %176 = vector.shape_cast %175 : vector<8xf32> to vector<8x1xf32>
      %cst_92 = arith.constant 2.560000e+02 : f32
      %177 = vector.broadcast %cst_92 : f32 to vector<8x1xf32>
      %178 = arith.divf %176, %177 : vector<8x1xf32>
      %179 = vector.broadcast %178 : vector<8x1xf32> to vector<8x256xf32>
      %180 = arith.subf %172, %179 : vector<8x256xf32>
      %181 = arith.mulf %180, %180 : vector<8x256xf32>
      %cst_93 = arith.constant dense<0.000000e+00> : vector<8xf32>
      %182 = vector.multi_reduction <add>, %181, %cst_93 [1] : vector<8x256xf32> to vector<8xf32>
      %183 = vector.shape_cast %182 : vector<8xf32> to vector<8x1xf32>
      %cst_94 = arith.constant 2.560000e+02 : f32
      %184 = vector.broadcast %cst_94 : f32 to vector<8x1xf32>
      %185 = arith.divf %183, %184 : vector<8x1xf32>
      %186 = vector.broadcast %178 : vector<8x1xf32> to vector<8x256xf32>
      %187 = arith.subf %172, %186 : vector<8x256xf32>
      %cst_95 = arith.constant 9.99999974E-6 : f32
      %188 = vector.broadcast %cst_95 : f32 to vector<8x1xf32>
      %189 = arith.addf %185, %188 : vector<8x1xf32>
      %190 = math.rsqrt %189 : vector<8x1xf32>
      %191 = vector.broadcast %190 : vector<8x1xf32> to vector<8x256xf32>
      %192 = arith.mulf %187, %191 : vector<8x256xf32>
      %193 = vector.broadcast %173 : vector<1x256xf32> to vector<8x256xf32>
      %194 = arith.mulf %192, %193 : vector<8x256xf32>
      %195 = vector.broadcast %174 : vector<1x256xf32> to vector<8x256xf32>
      %196 = arith.addf %194, %195 : vector<8x256xf32>
      %c0_96 = arith.constant 0 : index
      %c0_97 = arith.constant 0 : index
      %197 = vector.load %arg2[%c0_96, %c0_97] : memref<8x256xf32, #tpu.memory_space<vmem>>, vector<8x256xf32>
      %198 = arith.addf %196, %197 : vector<8x256xf32>
      %c0_98 = arith.constant 0 : index
      %c0_99 = arith.constant 0 : index
      %199 = vector.load %arg38[%c0_98, %c0_99] : memref<8x256xf32, #tpu.memory_space<vmem>>, vector<8x256xf32>
      tpu.vector_store %arg38[%c0_98, %c0_99], %198 {strides = array<i32>} : memref<8x256xf32, #tpu.memory_space<vmem>>, vector<8x256xf32>,
    } else {
    }
    %c0 = arith.constant 0 : index
    %c0_1 = arith.constant 0 : index
    %6 = vector.load %arg38[%c0, %c0_1] : memref<8x256xf32, #tpu.memory_space<vmem>>, vector<8x256xf32>
    %c0_2 = arith.constant 0 : index
    %c0_3 = arith.constant 0 : index
    %c0_4 = arith.constant 0 : index
    %7 = vector.load %arg11[%c0_2, %c0_3, %c0_4] : memref<1x256x1024xf32, #tpu.memory_space<vmem>>, vector<1x256x1024xf32>
    %8 = vector.shape_cast %7 : vector<1x256x1024xf32> to vector<256x1024xf32>
    %cst = arith.constant dense<0.000000e+00> : vector<8x1024xf32>
    %9 = tpu.matmul %6, %8, %cst {dimension_numbers = #tpu.dot_dimension_numbers<[1], [0], [0], [1], [0, 0, 1, 1], [], []>} : vector<8x256xf32>, vector<256x1024xf32>, vector<8x1024xf32> -> vector<8x1024xf32>
    %c0_5 = arith.constant 0 : index
    %c0_6 = arith.constant 0 : index
    %c0_7 = arith.constant 0 : index
    %10 = vector.load %arg12[%c0_5, %c0_6, %c0_7] : memref<1x1x1024xf32, #tpu.memory_space<vmem>>, vector<1x1x1024xf32>
    %11 = vector.shape_cast %10 : vector<1x1x1024xf32> to vector<1x1024xf32>
    %12 = vector.broadcast %11 : vector<1x1024xf32> to vector<8x1024xf32>
    %13 = arith.addf %9, %12 : vector<8x1024xf32>
    %14 = vector.extract_strided_slice %13 {offsets = [0, 0], sizes = [8, 512], strides = [1, 1]} : vector<8x1024xf32> to vector<8x512xf32>
    %15 = vector.extract_strided_slice %13 {offsets = [0, 512], sizes = [8, 512], strides = [1, 1]} : vector<8x1024xf32> to vector<8x512xf32>
    %c0_8 = arith.constant 0 : index
    %c0_9 = arith.constant 0 : index
    %16 = vector.load %arg3[%c0_8, %c0_9] : memref<128x8xf32, #tpu.memory_space<vmem>>, vector<128x8xf32>
    %c0_10 = arith.constant 0 : index
    %c0_11 = arith.constant 0 : index
    %c0_12 = arith.constant 0 : index
    %17 = vector.load %arg13[%c0_10, %c0_11, %c0_12] : memref<1x8x512xf32, #tpu.memory_space<vmem>>, vector<1x8x512xf32>
    %18 = vector.shape_cast %17 : vector<1x8x512xf32> to vector<8x512xf32>
    %cst_13 = arith.constant dense<0.000000e+00> : vector<128x512xf32>
    %19 = tpu.matmul %16, %18, %cst_13 {dimension_numbers = #tpu.dot_dimension_numbers<[1], [0], [0], [1], [0, 0, 1, 1], [], []>} : vector<128x8xf32>, vector<8x512xf32>, vector<128x512xf32> -> vector<128x512xf32>
    %20 = tpu.iota {dimensions = array<i32: 1>} : vector<128x8xi32>
    %c0_14 = arith.constant 0 : index
    %c0_15 = arith.constant 0 : index
    %21 = vector.load %arg4[%c0_14, %c0_15] : memref<128x1xi32, #tpu.memory_space<vmem>>, vector<128x1xi32>
    %22 = vector.broadcast %21 : vector<128x1xi32> to vector<128x8xi32>
    %23 = arith.cmpi eq, %20, %22 : vector<128x8xi32>
    %24 = arith.extui %23 : vector<128x8xi1> to vector<128x8xi32>
    %25 = arith.sitofp %24 : vector<128x8xi32> to vector<128x8xf32>
    %c0_16 = arith.constant 0 : index
    %c0_17 = arith.constant 0 : index
    %26 = vector.load %arg5[%c0_16, %c0_17] : memref<128x1xi32, #tpu.memory_space<vmem>>, vector<128x1xi32>
    %27 = vector.broadcast %26 : vector<128x1xi32> to vector<128x8xi32>
    %28 = arith.cmpi eq, %20, %27 : vector<128x8xi32>
    %29 = arith.extui %28 : vector<128x8xi1> to vector<128x8xi32>
    %30 = arith.sitofp %29 : vector<128x8xi32> to vector<128x8xf32>
    %cst_18 = arith.constant dense<0.000000e+00> : vector<128x512xf32>
    %31 = tpu.matmul %25, %14, %cst_18 {dimension_numbers = #tpu.dot_dimension_numbers<[1], [0], [0], [1], [0, 0, 1, 1], [], []>} : vector<128x8xf32>, vector<8x512xf32>, vector<128x512xf32> -> vector<128x512xf32>
    %cst_19 = arith.constant dense<0.000000e+00> : vector<128x512xf32>
    %32 = tpu.matmul %30, %15, %cst_19 {dimension_numbers = #tpu.dot_dimension_numbers<[1], [0], [0], [1], [0, 0, 1, 1], [], []>} : vector<128x8xf32>, vector<8x512xf32>, vector<128x512xf32> -> vector<128x512xf32>
    %33 = arith.addf %31, %32 : vector<128x512xf32>
    %34 = arith.addf %33, %19 : vector<128x512xf32>
    %cst_20 = arith.constant 0.000000e+00 : f32
    %35 = vector.broadcast %cst_20 : f32 to vector<128x512xf32>
    %36 = arith.cmpf ogt, %34, %35 : vector<128x512xf32>
    %cst_21 = arith.constant 2.000000e-01 : f32
    %37 = vector.broadcast %cst_21 : f32 to vector<128x512xf32>
    %38 = arith.mulf %37, %34 : vector<128x512xf32>
    %39 = arith.select %36, %34, %38 : vector<128x512xi1>, vector<128x512xf32>
    %40 = tpu.iota {dimensions = array<i32: 0>} : vector<8x128xi32>
    %c0_22 = arith.constant 0 : index
    %c0_23 = arith.constant 0 : index
    %41 = vector.load %arg6[%c0_22, %c0_23] : memref<1x128xi32, #tpu.memory_space<vmem>>, vector<1x128xi32>
    %42 = vector.broadcast %41 : vector<1x128xi32> to vector<8x128xi32>
    %43 = arith.cmpi eq, %40, %42 : vector<8x128xi32>
    %44 = arith.extui %43 : vector<8x128xi1> to vector<8x128xi32>
    %45 = arith.sitofp %44 : vector<8x128xi32> to vector<8x128xf32>
    %c0_24 = arith.constant 0 : index
    %c0_25 = arith.constant 0 : index
    %c0_26 = arith.constant 0 : index
    %46 = vector.load %arg14[%c0_24, %c0_25, %c0_26] : memref<1x1x512xf32, #tpu.memory_space<vmem>>, vector<1x1x512xf32>
    %47 = vector.shape_cast %46 : vector<1x1x512xf32> to vector<1x512xf32>
    %48 = vector.extract_strided_slice %39 {offsets = [0, 0], sizes = [128, 256], strides = [1, 1]} : vector<128x512xf32> to vector<128x256xf32>
    %49 = vector.extract_strided_slice %47 {offsets = [0, 0], sizes = [1, 256], strides = [1, 1]} : vector<1x512xf32> to vector<1x256xf32>
    %cst_27 = arith.constant dense<0.000000e+00> : vector<1x128xf32>
    %50 = tpu.matmul %49, %48, %cst_27 {dimension_numbers = #tpu.dot_dimension_numbers<[1], [1], [0], [0], [0, 0, 1, 0], [], []>} : vector<1x256xf32>, vector<128x256xf32>, vector<1x128xf32> -> vector<1x128xf32>
    %cst_28 = arith.constant 0.000000e+00 : f32
    %51 = vector.broadcast %cst_28 : f32 to vector<8x128xf32>
    %52 = arith.cmpf ogt, %45, %51 : vector<8x128xf32>
    %cst_29 = arith.constant -1.000000e+30 : f32
    %53 = vector.shape_cast %50 : vector<1x128xf32> to vector<1x128xf32>
    %54 = vector.broadcast %53 : vector<1x128xf32> to vector<8x128xf32>
    %55 = vector.broadcast %cst_29 : f32 to vector<8x128xf32>
    %56 = arith.select %52, %54, %55 : vector<8x128xi1>, vector<8x128xf32>
    %cst_30 = arith.constant dense<0xFF800000> : vector<8xf32>
    %57 = vector.multi_reduction <maximumf>, %56, %cst_30 [1] : vector<8x128xf32> to vector<8xf32>
    %58 = vector.shape_cast %57 : vector<8xf32> to vector<8x1xf32>
    %59 = vector.broadcast %58 : vector<8x1xf32> to vector<8x128xf32>
    %60 = arith.subf %56, %59 : vector<8x128xf32>
    %61 = math.exp %60 : vector<8x128xf32>
    %62 = arith.mulf %61, %45 : vector<8x128xf32>
    %cst_31 = arith.constant dense<0.000000e+00> : vector<8xf32>
    %63 = vector.multi_reduction <add>, %62, %cst_31 [1] : vector<8x128xf32> to vector<8xf32>
    %64 = vector.shape_cast %63 : vector<8xf32> to vector<8x1xf32>
    %cst_32 = arith.constant 1.000000e-16 : f32
    %65 = vector.broadcast %cst_32 : f32 to vector<8x1xf32>
    %66 = arith.addf %64, %65 : vector<8x1xf32>
    %67 = vector.broadcast %66 : vector<8x1xf32> to vector<8x128xf32>
    %68 = arith.divf %62, %67 : vector<8x128xf32>
    %69 = vector.extract_strided_slice %31 {offsets = [0, 0], sizes = [128, 256], strides = [1, 1]} : vector<128x512xf32> to vector<128x256xf32>
    %cst_33 = arith.constant dense<0.000000e+00> : vector<8x256xf32>
    %70 = tpu.matmul %68, %69, %cst_33 {dimension_numbers = #tpu.dot_dimension_numbers<[1], [0], [0], [1], [0, 0, 1, 1], [], []>} : vector<8x128xf32>, vector<128x256xf32>, vector<8x256xf32> -> vector<8x256xf32>
    %71 = vector.extract_strided_slice %39 {offsets = [0, 256], sizes = [128, 256], strides = [1, 1]} : vector<128x512xf32> to vector<128x256xf32>
    %72 = vector.extract_strided_slice %47 {offsets = [0, 256], sizes = [1, 256], strides = [1, 1]} : vector<1x512xf32> to vector<1x256xf32>
    %cst_34 = arith.constant dense<0.000000e+00> : vector<1x128xf32>
    %73 = tpu.matmul %72, %71, %cst_34 {dimension_numbers = #tpu.dot_dimension_numbers<[1], [1], [0], [0], [0, 0, 1, 0], [], []>} : vector<1x256xf32>, vector<128x256xf32>, vector<1x128xf32> -> vector<1x128xf32>
    %cst_35 = arith.constant 0.000000e+00 : f32
    %74 = vector.broadcast %cst_35 : f32 to vector<8x128xf32>
    %75 = arith.cmpf ogt, %45, %74 : vector<8x128xf32>
    %cst_36 = arith.constant -1.000000e+30 : f32
    %76 = vector.shape_cast %73 : vector<1x128xf32> to vector<1x128xf32>
    %77 = vector.broadcast %76 : vector<1x128xf32> to vector<8x128xf32>
    %78 = vector.broadcast %cst_36 : f32 to vector<8x128xf32>
    %79 = arith.select %75, %77, %78 : vector<8x128xi1>, vector<8x128xf32>
    %cst_37 = arith.constant dense<0xFF800000> : vector<8xf32>
    %80 = vector.multi_reduction <maximumf>, %79, %cst_37 [1] : vector<8x128xf32> to vector<8xf32>
    %81 = vector.shape_cast %80 : vector<8xf32> to vector<8x1xf32>
    %82 = vector.broadcast %81 : vector<8x1xf32> to vector<8x128xf32>
    %83 = arith.subf %79, %82 : vector<8x128xf32>
    %84 = math.exp %83 : vector<8x128xf32>
    %85 = arith.mulf %84, %45 : vector<8x128xf32>
    %cst_38 = arith.constant dense<0.000000e+00> : vector<8xf32>
    %86 = vector.multi_reduction <add>, %85, %cst_38 [1] : vector<8x128xf32> to vector<8xf32>
    %87 = vector.shape_cast %86 : vector<8xf32> to vector<8x1xf32>
    %cst_39 = arith.constant 1.000000e-16 : f32
    %88 = vector.broadcast %cst_39 : f32 to vector<8x1xf32>
    %89 = arith.addf %87, %88 : vector<8x1xf32>
    %90 = vector.broadcast %89 : vector<8x1xf32> to vector<8x128xf32>
    %91 = arith.divf %85, %90 : vector<8x128xf32>
    %92 = vector.extract_strided_slice %31 {offsets = [0, 256], sizes = [128, 256], strides = [1, 1]} : vector<128x512xf32> to vector<128x256xf32>
    %cst_40 = arith.constant dense<0.000000e+00> : vector<8x256xf32>
    %93 = tpu.matmul %91, %92, %cst_40 {dimension_numbers = #tpu.dot_dimension_numbers<[1], [0], [0], [1], [0, 0, 1, 1], [], []>} : vector<8x128xf32>, vector<128x256xf32>, vector<8x256xf32> -> vector<8x256xf32>
    %94 = tpu.concatenate %70, %93 in 1 : vector<8x256xf32>, vector<8x256xf32> -> vector<8x512xf32>
    %c0_41 = arith.constant 0 : index
    %c0_42 = arith.constant 0 : index
    %c0_43 = arith.constant 0 : index
    %95 = vector.load %arg15[%c0_41, %c0_42, %c0_43] : memref<1x512x256xf32, #tpu.memory_space<vmem>>, vector<1x512x256xf32>
    %96 = vector.shape_cast %95 : vector<1x512x256xf32> to vector<512x256xf32>
    %cst_44 = arith.constant dense<0.000000e+00> : vector<8x256xf32>
    %97 = tpu.matmul %94, %96, %cst_44 {dimension_numbers = #tpu.dot_dimension_numbers<[1], [0], [0], [1], [0, 0, 1, 1], [], []>} : vector<8x512xf32>, vector<512x256xf32>, vector<8x256xf32> -> vector<8x256xf32>
    %c0_45 = arith.constant 0 : index
    %c0_46 = arith.constant 0 : index
    %c0_47 = arith.constant 0 : index
    %98 = vector.load %arg16[%c0_45, %c0_46, %c0_47] : memref<1x1x256xf32, #tpu.memory_space<vmem>>, vector<1x1x256xf32>
    %99 = vector.shape_cast %98 : vector<1x1x256xf32> to vector<1x256xf32>
    %100 = vector.broadcast %99 : vector<1x256xf32> to vector<8x256xf32>
    %101 = arith.addf %97, %100 : vector<8x256xf32>
    %cst_48 = arith.constant 0.000000e+00 : f32
    %102 = vector.broadcast %cst_48 : f32 to vector<8x256xf32>
    %103 = arith.maximumf %101, %102 : vector<8x256xf32>
    %c0_49 = arith.constant 0 : index
    %c0_50 = arith.constant 0 : index
    %c0_51 = arith.constant 0 : index
    %104 = vector.load %arg17[%c0_49, %c0_50, %c0_51] : memref<1x256x768xf32, #tpu.memory_space<vmem>>, vector<1x256x768xf32>
    %105 = vector.shape_cast %104 : vector<1x256x768xf32> to vector<256x768xf32>
    %cst_52 = arith.constant dense<0.000000e+00> : vector<8x768xf32>
    %106 = tpu.matmul %103, %105, %cst_52 {dimension_numbers = #tpu.dot_dimension_numbers<[1], [0], [0], [1], [0, 0, 1, 1], [], []>} : vector<8x256xf32>, vector<256x768xf32>, vector<8x768xf32> -> vector<8x768xf32>
    %c0_53 = arith.constant 0 : index
    %c0_54 = arith.constant 0 : index
    %c0_55 = arith.constant 0 : index
    %107 = vector.load %arg18[%c0_53, %c0_54, %c0_55] : memref<1x1x768xf32, #tpu.memory_space<vmem>>, vector<1x1x768xf32>
    %108 = vector.shape_cast %107 : vector<1x1x768xf32> to vector<1x768xf32>
    %109 = vector.broadcast %108 : vector<1x768xf32> to vector<8x768xf32>
    %110 = arith.addf %106, %109 : vector<8x768xf32>
    %111 = tpu.iota {dimensions = array<i32: 1>} : vector<8x8xi32>
    %c8_i32_56 = arith.constant 8 : i32
    %112 = vector.broadcast %c8_i32_56 : i32 to vector<8x8xi32>
    %113 = arith.cmpi slt, %111, %112 : vector<8x8xi32>
    %114 = vector.extract_strided_slice %110 {offsets = [0, 0], sizes = [8, 128], strides = [1, 1]} : vector<8x768xf32> to vector<8x128xf32>
    %115 = vector.extract_strided_slice %110 {offsets = [0, 256], sizes = [8, 128], strides = [1, 1]} : vector<8x768xf32> to vector<8x128xf32>
    %116 = vector.extract_strided_slice %110 {offsets = [0, 512], sizes = [8, 128], strides = [1, 1]} : vector<8x768xf32> to vector<8x128xf32>
    %cst_57 = arith.constant dense<0.000000e+00> : vector<8x8xf32>
    %117 = tpu.matmul %114, %115, %cst_57 {dimension_numbers = #tpu.dot_dimension_numbers<[1], [1], [0], [0], [0, 0, 1, 0], [], []>} : vector<8x128xf32>, vector<8x128xf32>, vector<8x8xf32> -> vector<8x8xf32>
    %cst_58 = arith.constant 0.0883883461 : f32
    %118 = vector.broadcast %cst_58 : f32 to vector<8x8xf32>
    %119 = arith.mulf %117, %118 : vector<8x8xf32>
    %cst_59 = arith.constant -1.000000e+30 : f32
    %120 = vector.broadcast %cst_59 : f32 to vector<8x8xf32>
    %121 = arith.select %113, %119, %120 : vector<8x8xi1>, vector<8x8xf32>
    %cst_60 = arith.constant dense<0xFF800000> : vector<8xf32>
    %122 = vector.multi_reduction <maximumf>, %121, %cst_60 [1] : vector<8x8xf32> to vector<8xf32>
    %123 = vector.shape_cast %122 : vector<8xf32> to vector<8x1xf32>
    %124 = vector.broadcast %123 : vector<8x1xf32> to vector<8x8xf32>
    %125 = arith.subf %121, %124 : vector<8x8xf32>
    %126 = math.exp %125 : vector<8x8xf32>
    %cst_61 = arith.constant dense<0.000000e+00> : vector<8xf32>
    %127 = vector.multi_reduction <add>, %126, %cst_61 [1] : vector<8x8xf32> to vector<8xf32>
    %128 = vector.shape_cast %127 : vector<8xf32> to vector<8x1xf32>
    %129 = vector.broadcast %128 : vector<8x1xf32> to vector<8x8xf32>
    %130 = arith.divf %126, %129 : vector<8x8xf32>
    %cst_62 = arith.constant dense<0.000000e+00> : vector<8x128xf32>
    %131 = tpu.matmul %130, %116, %cst_62 {dimension_numbers = #tpu.dot_dimension_numbers<[1], [0], [0], [1], [0, 0, 1, 1], [], []>} : vector<8x8xf32>, vector<8x128xf32>, vector<8x128xf32> -> vector<8x128xf32>
    %132 = vector.extract_strided_slice %110 {offsets = [0, 128], sizes = [8, 128], strides = [1, 1]} : vector<8x768xf32> to vector<8x128xf32>
    %133 = vector.extract_strided_slice %110 {offsets = [0, 384], sizes = [8, 128], strides = [1, 1]} : vector<8x768xf32> to vector<8x128xf32>
    %134 = vector.extract_strided_slice %110 {offsets = [0, 640], sizes = [8, 128], strides = [1, 1]} : vector<8x768xf32> to vector<8x128xf32>
    %cst_63 = arith.constant dense<0.000000e+00> : vector<8x8xf32>
    %135 = tpu.matmul %132, %133, %cst_63 {dimension_numbers = #tpu.dot_dimension_numbers<[1], [1], [0], [0], [0, 0, 1, 0], [], []>} : vector<8x128xf32>, vector<8x128xf32>, vector<8x8xf32> -> vector<8x8xf32>
    %cst_64 = arith.constant 0.0883883461 : f32
    %136 = vector.broadcast %cst_64 : f32 to vector<8x8xf32>
    %137 = arith.mulf %135, %136 : vector<8x8xf32>
    %cst_65 = arith.constant -1.000000e+30 : f32
    %138 = vector.broadcast %cst_65 : f32 to vector<8x8xf32>
    %139 = arith.select %113, %137, %138 : vector<8x8xi1>, vector<8x8xf32>
    %cst_66 = arith.constant dense<0xFF800000> : vector<8xf32>
    %140 = vector.multi_reduction <maximumf>, %139, %cst_66 [1] : vector<8x8xf32> to vector<8xf32>
    %141 = vector.shape_cast %140 : vector<8xf32> to vector<8x1xf32>
    %142 = vector.broadcast %141 : vector<8x1xf32> to vector<8x8xf32>
    %143 = arith.subf %139, %142 : vector<8x8xf32>
    %144 = math.exp %143 : vector<8x8xf32>
    %cst_67 = arith.constant dense<0.000000e+00> : vector<8xf32>
    %145 = vector.multi_reduction <add>, %144, %cst_67 [1] : vector<8x8xf32> to vector<8xf32>
    %146 = vector.shape_cast %145 : vector<8xf32> to vector<8x1xf32>
    %147 = vector.broadcast %146 : vector<8x1xf32> to vector<8x8xf32>
    %148 = arith.divf %144, %147 : vector<8x8xf32>
    %cst_68 = arith.constant dense<0.000000e+00> : vector<8x128xf32>
    %149 = tpu.matmul %148, %134, %cst_68 {dimension_numbers = #tpu.dot_dimension_numbers<[1], [0], [0], [1], [0, 0, 1, 1], [], []>} : vector<8x8xf32>, vector<8x128xf32>, vector<8x128xf32> -> vector<8x128xf32>
    %150 = tpu.concatenate %131, %149 in 1 : vector<8x128xf32>, vector<8x128xf32> -> vector<8x256xf32>
    %c0_69 = arith.constant 0 : index
    %c0_70 = arith.constant 0 : index
    %c0_71 = arith.constant 0 : index
    %151 = vector.load %arg19[%c0_69, %c0_70, %c0_71] : memref<1x256x256xf32, #tpu.memory_space<vmem>>, vector<1x256x256xf32>
    %152 = vector.shape_cast %151 : vector<1x256x256xf32> to vector<256x256xf32>
    %cst_72 = arith.constant dense<0.000000e+00> : vector<8x256xf32>
    %153 = tpu.matmul %150, %152, %cst_72 {dimension_numbers = #tpu.dot_dimension_numbers<[1], [0], [0], [1], [0, 0, 1, 1], [], []>} : vector<8x256xf32>, vector<256x256xf32>, vector<8x256xf32> -> vector<8x256xf32>
    %c0_73 = arith.constant 0 : index
    %c0_74 = arith.constant 0 : index
    %c0_75 = arith.constant 0 : index
    %154 = vector.load %arg20[%c0_73, %c0_74, %c0_75] : memref<1x1x256xf32, #tpu.memory_space<vmem>>, vector<1x1x256xf32>
    %155 = vector.shape_cast %154 : vector<1x1x256xf32> to vector<1x256xf32>
    %156 = vector.broadcast %155 : vector<1x256xf32> to vector<8x256xf32>
    %157 = arith.addf %153, %156 : vector<8x256xf32>
    %158 = arith.addf %157, %6 : vector<8x256xf32>
    %cst_76 = arith.constant 0.000000e+00 : f32
    %159 = vector.shape_cast %2 : vector<8x1xi1> to vector<8x1xi1>
    %160 = vector.broadcast %159 : vector<8x1xi1> to vector<8x256xi1>
    %161 = vector.broadcast %cst_76 : f32 to vector<8x256xf32>
    %162 = arith.select %160, %158, %161 : vector<8x256xi1>, vector<8x256xf32>
    %c0_77 = arith.constant 0 : index
    %c0_78 = arith.constant 0 : index
    %163 = vector.load %arg38[%c0_77, %c0_78] : memref<8x256xf32, #tpu.memory_space<vmem>>, vector<8x256xf32>
    tpu.vector_store %arg38[%c0_77, %c0_78], %162 {strides = array<i32>} : memref<8x256xf32, #tpu.memory_space<vmem>>, vector<8x256xf32>,
    %c1_i32 = arith.constant 1 : i32
    %164 = arith.cmpi eq, %arg0, %c1_i32 : i32
    %165 = arith.extui %164 : i1 to i32
    %c0_i32_79 = arith.constant 0 : i32
    %166 = arith.cmpi ne, %165, %c0_i32_79 : i32
    scf.if %166 {
      %c0_80 = arith.constant 0 : index
      %c0_81 = arith.constant 0 : index
      %167 = vector.load %arg38[%c0_80, %c0_81] : memref<8x256xf32, #tpu.memory_space<vmem>>, vector<8x256xf32>
      %c0_82 = arith.constant 0 : index
      %c0_83 = arith.constant 0 : index
      %168 = vector.load %arg21[%c0_82, %c0_83] : memref<1x256xf32, #tpu.memory_space<vmem>>, vector<1x256xf32>
      %c0_84 = arith.constant 0 : index
      %c0_85 = arith.constant 0 : index
      %169 = vector.load %arg22[%c0_84, %c0_85] : memref<1x256xf32, #tpu.memory_space<vmem>>, vector<1x256xf32>
      %cst_86 = arith.constant dense<0.000000e+00> : vector<8xf32>
      %170 = vector.multi_reduction <add>, %167, %cst_86 [1] : vector<8x256xf32> to vector<8xf32>
      %171 = vector.shape_cast %170 : vector<8xf32> to vector<8x1xf32>
      %cst_87 = arith.constant 2.560000e+02 : f32
      %172 = vector.broadcast %cst_87 : f32 to vector<8x1xf32>
      %173 = arith.divf %171, %172 : vector<8x1xf32>
      %174 = vector.broadcast %173 : vector<8x1xf32> to vector<8x256xf32>
      %175 = arith.subf %167, %174 : vector<8x256xf32>
      %176 = arith.mulf %175, %175 : vector<8x256xf32>
      %cst_88 = arith.constant dense<0.000000e+00> : vector<8xf32>
      %177 = vector.multi_reduction <add>, %176, %cst_88 [1] : vector<8x256xf32> to vector<8xf32>
      %178 = vector.shape_cast %177 : vector<8xf32> to vector<8x1xf32>
      %cst_89 = arith.constant 2.560000e+02 : f32
      %179 = vector.broadcast %cst_89 : f32 to vector<8x1xf32>
      %180 = arith.divf %178, %179 : vector<8x1xf32>
      %181 = vector.broadcast %173 : vector<8x1xf32> to vector<8x256xf32>
      %182 = arith.subf %167, %181 : vector<8x256xf32>
      %cst_90 = arith.constant 9.99999974E-6 : f32
      %183 = vector.broadcast %cst_90 : f32 to vector<8x1xf32>
      %184 = arith.addf %180, %183 : vector<8x1xf32>
      %185 = math.rsqrt %184 : vector<8x1xf32>
      %186 = vector.broadcast %185 : vector<8x1xf32> to vector<8x256xf32>
      %187 = arith.mulf %182, %186 : vector<8x256xf32>
      %188 = vector.broadcast %168 : vector<1x256xf32> to vector<8x256xf32>
      %189 = arith.mulf %187, %188 : vector<8x256xf32>
      %190 = vector.broadcast %169 : vector<1x256xf32> to vector<8x256xf32>
      %191 = arith.addf %189, %190 : vector<8x256xf32>
      %c0_91 = arith.constant 0 : index
      %c0_92 = arith.constant 0 : index
      %192 = vector.load %arg23[%c0_91, %c0_92] : memref<1x256xf32, #tpu.memory_space<vmem>>, vector<1x256xf32>
      %193 = vector.broadcast %192 : vector<1x256xf32> to vector<8x256xf32>
      %194 = arith.mulf %191, %193 : vector<8x256xf32>
      %cst_93 = arith.constant dense<0.000000e+00> : vector<8xf32>
      %195 = vector.multi_reduction <add>, %194, %cst_93 [1] : vector<8x256xf32> to vector<8xf32>
      %196 = vector.shape_cast %195 : vector<8xf32> to vector<8x1xf32>
      %c0_94 = arith.constant 0 : index
      %c0_95 = arith.constant 0 : index
      %197 = vector.load %arg24[%c0_94, %c0_95] : memref<1x1xf32, #tpu.memory_space<vmem>>, vector<1x1xf32>
      %198 = vector.broadcast %197 : vector<1x1xf32> to vector<8x1xf32>
      %199 = arith.addf %196, %198 : vector<8x1xf32>
      %cst_96 = arith.constant -1.000000e+30 : f32
      %200 = vector.broadcast %cst_96 : f32 to vector<8x1xf32>
      %201 = arith.select %2, %199, %200 : vector<8x1xi1>, vector<8x1xf32>
      %cst_97 = arith.constant dense<0xFF800000> : vector<1xf32>
      %202 = vector.multi_reduction <maximumf>, %201, %cst_97 [0] : vector<8x1xf32> to vector<1xf32>
      %203 = vector.shape_cast %202 : vector<1xf32> to vector<1x1xf32>
      %204 = vector.broadcast %203 : vector<1x1xf32> to vector<8x1xf32>
      %205 = arith.subf %201, %204 : vector<8x1xf32>
      %206 = math.exp %205 : vector<8x1xf32>
      %cst_98 = arith.constant dense<0.000000e+00> : vector<1xf32>
      %207 = vector.multi_reduction <add>, %206, %cst_98 [0] : vector<8x1xf32> to vector<1xf32>
      %208 = vector.shape_cast %207 : vector<1xf32> to vector<1x1xf32>
      %209 = vector.broadcast %208 : vector<1x1xf32> to vector<8x1xf32>
      %210 = arith.divf %206, %209 : vector<8x1xf32>
      %211 = vector.broadcast %210 : vector<8x1xf32> to vector<8x256xf32>
      %212 = arith.mulf %211, %191 : vector<8x256xf32>
      %cst_99 = arith.constant dense<0.000000e+00> : vector<256xf32>
      %213 = vector.multi_reduction <add>, %212, %cst_99 [0] : vector<8x256xf32> to vector<256xf32>
      %214 = vector.shape_cast %213 : vector<256xf32> to vector<1x256xf32>
      %c0_100 = arith.constant 0 : index
      %c0_101 = arith.constant 0 : index
      %215 = vector.load %arg25[%c0_100, %c0_101] : memref<256x128xf32, #tpu.memory_space<vmem>>, vector<256x128xf32>
      %cst_102 = arith.constant dense<0.000000e+00> : vector<1x128xf32>
      %216 = tpu.matmul %214, %215, %cst_102 {dimension_numbers = #tpu.dot_dimension_numbers<[1], [0], [0], [1], [0, 0, 1, 1], [], []>} : vector<1x256xf32>, vector<256x128xf32>, vector<1x128xf32> -> vector<1x128xf32>
      %c0_103 = arith.constant 0 : index
      %c0_104 = arith.constant 0 : index
      %217 = vector.load %arg26[%c0_103, %c0_104] : memref<1x128xf32, #tpu.memory_space<vmem>>, vector<1x128xf32>
      %218 = arith.addf %216, %217 : vector<1x128xf32>
      %c0_105 = arith.constant 0 : index
      %c0_106 = arith.constant 0 : index
      %219 = vector.load %arg27[%c0_105, %c0_106] : memref<1x128xf32, #tpu.memory_space<vmem>>, vector<1x128xf32>
      %c0_107 = arith.constant 0 : index
      %c0_108 = arith.constant 0 : index
      %220 = vector.load %arg28[%c0_107, %c0_108] : memref<1x128xf32, #tpu.memory_space<vmem>>, vector<1x128xf32>
      %cst_109 = arith.constant dense<0.000000e+00> : vector<1xf32>
      %221 = vector.multi_reduction <add>, %218, %cst_109 [1] : vector<1x128xf32> to vector<1xf32>
      %222 = vector.shape_cast %221 : vector<1xf32> to vector<1x1xf32>
      %cst_110 = arith.constant 1.280000e+02 : f32
      %223 = vector.broadcast %cst_110 : f32 to vector<1x1xf32>
      %224 = arith.divf %222, %223 : vector<1x1xf32>
      %225 = vector.broadcast %224 : vector<1x1xf32> to vector<1x128xf32>
      %226 = arith.subf %218, %225 : vector<1x128xf32>
      %227 = arith.mulf %226, %226 : vector<1x128xf32>
      %cst_111 = arith.constant dense<0.000000e+00> : vector<1xf32>
      %228 = vector.multi_reduction <add>, %227, %cst_111 [1] : vector<1x128xf32> to vector<1xf32>
      %229 = vector.shape_cast %228 : vector<1xf32> to vector<1x1xf32>
      %cst_112 = arith.constant 1.280000e+02 : f32
      %230 = vector.broadcast %cst_112 : f32 to vector<1x1xf32>
      %231 = arith.divf %229, %230 : vector<1x1xf32>
      %232 = vector.broadcast %224 : vector<1x1xf32> to vector<1x128xf32>
      %233 = arith.subf %218, %232 : vector<1x128xf32>
      %cst_113 = arith.constant 9.99999974E-6 : f32
      %234 = vector.broadcast %cst_113 : f32 to vector<1x1xf32>
      %235 = arith.addf %231, %234 : vector<1x1xf32>
      %236 = math.rsqrt %235 : vector<1x1xf32>
      %237 = vector.broadcast %236 : vector<1x1xf32> to vector<1x128xf32>
      %238 = arith.mulf %233, %237 : vector<1x128xf32>
      %239 = arith.mulf %238, %219 : vector<1x128xf32>
      %240 = arith.addf %239, %220 : vector<1x128xf32>
      %cst_114 = arith.constant 5.000000e-01 : f32
      %241 = vector.broadcast %cst_114 : f32 to vector<1x128xf32>
      %242 = arith.mulf %241, %240 : vector<1x128xf32>
      %cst_115 = arith.constant 0.707106769 : f32
      %243 = vector.broadcast %cst_115 : f32 to vector<1x128xf32>
      %244 = arith.mulf %240, %243 : vector<1x128xf32>
      %cst_116 = arith.constant 0.000000e+00 : f32
      %245 = vector.broadcast %cst_116 : f32 to vector<1x128xf32>
      %246 = arith.cmpf oge, %244, %245 : vector<1x128xf32>
      %cst_117 = arith.constant 1.000000e+00 : f32
      %cst_118 = arith.constant -1.000000e+00 : f32
      %247 = vector.broadcast %cst_117 : f32 to vector<1x128xf32>
      %248 = vector.broadcast %cst_118 : f32 to vector<1x128xf32>
      %249 = arith.select %246, %247, %248 : vector<1x128xi1>, vector<1x128xf32>
      %250 = math.absf %244 : vector<1x128xf32>
      %cst_119 = arith.constant 0.327591091 : f32
      %251 = vector.broadcast %cst_119 : f32 to vector<1x128xf32>
      %252 = arith.mulf %251, %250 : vector<1x128xf32>
      %cst_120 = arith.constant 1.000000e+00 : f32
      %253 = vector.broadcast %cst_120 : f32 to vector<1x128xf32>
      %254 = arith.addf %253, %252 : vector<1x128xf32>
      %cst_121 = arith.constant 1.000000e+00 : f32
      %255 = vector.broadcast %cst_121 : f32 to vector<1x128xf32>
      %256 = arith.divf %255, %254 : vector<1x128xf32>
      %cst_122 = arith.constant 1.06140542 : f32
      %257 = vector.broadcast %cst_122 : f32 to vector<1x128xf32>
      %258 = arith.mulf %257, %256 : vector<1x128xf32>
      %cst_123 = arith.constant -1.45315206 : f32
      %259 = vector.broadcast %cst_123 : f32 to vector<1x128xf32>
      %260 = arith.addf %258, %259 : vector<1x128xf32>
      %261 = arith.mulf %260, %256 : vector<1x128xf32>
      %cst_124 = arith.constant 1.42141378 : f32
      %262 = vector.broadcast %cst_124 : f32 to vector<1x128xf32>
      %263 = arith.addf %261, %262 : vector<1x128xf32>
      %264 = arith.mulf %263, %256 : vector<1x128xf32>
      %cst_125 = arith.constant -0.284496725 : f32
      %265 = vector.broadcast %cst_125 : f32 to vector<1x128xf32>
      %266 = arith.addf %264, %265 : vector<1x128xf32>
      %267 = arith.mulf %266, %256 : vector<1x128xf32>
      %cst_126 = arith.constant 0.254829586 : f32
      %268 = vector.broadcast %cst_126 : f32 to vector<1x128xf32>
      %269 = arith.addf %267, %268 : vector<1x128xf32>
      %270 = arith.mulf %269, %256 : vector<1x128xf32>
      %cst_127 = arith.constant 0.000000e+00 : f32
      %271 = vector.broadcast %cst_127 : f32 to vector<1x128xf32>
      %272 = arith.subf %271, %250 : vector<1x128xf32>
      %273 = arith.mulf %272, %250 : vector<1x128xf32>
      %274 = math.exp %273 : vector<1x128xf32>
      %275 = arith.mulf %270, %274 : vector<1x128xf32>
      %cst_128 = arith.constant 1.000000e+00 : f32
      %276 = vector.broadcast %cst_128 : f32 to vector<1x128xf32>
      %277 = arith.subf %276, %275 : vector<1x128xf32>
      %278 = arith.mulf %249, %277 : vector<1x128xf32>
      %cst_129 = arith.constant 1.000000e+00 : f32
      %279 = vector.broadcast %cst_129 : f32 to vector<1x128xf32>
      %280 = arith.addf %279, %278 : vector<1x128xf32>
      %281 = arith.mulf %242, %280 : vector<1x128xf32>
      %c0_130 = arith.constant 0 : index
      %c0_131 = arith.constant 0 : index
      %282 = vector.load %arg29[%c0_130, %c0_131] : memref<128x128xf32, #tpu.memory_space<vmem>>, vector<128x128xf32>
      %cst_132 = arith.constant dense<0.000000e+00> : vector<1x128xf32>
      %283 = tpu.matmul %281, %282, %cst_132 {dimension_numbers = #tpu.dot_dimension_numbers<[1], [0], [0], [1], [0, 0, 1, 1], [], []>} : vector<1x128xf32>, vector<128x128xf32>, vector<1x128xf32> -> vector<1x128xf32>
      %c0_133 = arith.constant 0 : index
      %c0_134 = arith.constant 0 : index
      %284 = vector.load %arg30[%c0_133, %c0_134] : memref<1x128xf32, #tpu.memory_space<vmem>>, vector<1x128xf32>
      %285 = arith.addf %283, %284 : vector<1x128xf32>
      %c0_135 = arith.constant 0 : index
      %c0_136 = arith.constant 0 : index
      %286 = vector.load %arg31[%c0_135, %c0_136] : memref<1x128xf32, #tpu.memory_space<vmem>>, vector<1x128xf32>
      %c0_137 = arith.constant 0 : index
      %c0_138 = arith.constant 0 : index
      %287 = vector.load %arg32[%c0_137, %c0_138] : memref<1x128xf32, #tpu.memory_space<vmem>>, vector<1x128xf32>
      %cst_139 = arith.constant dense<0.000000e+00> : vector<1xf32>
      %288 = vector.multi_reduction <add>, %285, %cst_139 [1] : vector<1x128xf32> to vector<1xf32>
      %289 = vector.shape_cast %288 : vector<1xf32> to vector<1x1xf32>
      %cst_140 = arith.constant 1.280000e+02 : f32
      %290 = vector.broadcast %cst_140 : f32 to vector<1x1xf32>
      %291 = arith.divf %289, %290 : vector<1x1xf32>
      %292 = vector.broadcast %291 : vector<1x1xf32> to vector<1x128xf32>
      %293 = arith.subf %285, %292 : vector<1x128xf32>
      %294 = arith.mulf %293, %293 : vector<1x128xf32>
      %cst_141 = arith.constant dense<0.000000e+00> : vector<1xf32>
      %295 = vector.multi_reduction <add>, %294, %cst_141 [1] : vector<1x128xf32> to vector<1xf32>
      %296 = vector.shape_cast %295 : vector<1xf32> to vector<1x1xf32>
      %cst_142 = arith.constant 1.280000e+02 : f32
      %297 = vector.broadcast %cst_142 : f32 to vector<1x1xf32>
      %298 = arith.divf %296, %297 : vector<1x1xf32>
      %299 = vector.broadcast %291 : vector<1x1xf32> to vector<1x128xf32>
      %300 = arith.subf %285, %299 : vector<1x128xf32>
      %cst_143 = arith.constant 9.99999974E-6 : f32
      %301 = vector.broadcast %cst_143 : f32 to vector<1x1xf32>
      %302 = arith.addf %298, %301 : vector<1x1xf32>
      %303 = math.rsqrt %302 : vector<1x1xf32>
      %304 = vector.broadcast %303 : vector<1x1xf32> to vector<1x128xf32>
      %305 = arith.mulf %300, %304 : vector<1x128xf32>
      %306 = arith.mulf %305, %286 : vector<1x128xf32>
      %307 = arith.addf %306, %287 : vector<1x128xf32>
      %cst_144 = arith.constant 5.000000e-01 : f32
      %308 = vector.broadcast %cst_144 : f32 to vector<1x128xf32>
      %309 = arith.mulf %308, %307 : vector<1x128xf32>
      %cst_145 = arith.constant 0.707106769 : f32
      %310 = vector.broadcast %cst_145 : f32 to vector<1x128xf32>
      %311 = arith.mulf %307, %310 : vector<1x128xf32>
      %cst_146 = arith.constant 0.000000e+00 : f32
      %312 = vector.broadcast %cst_146 : f32 to vector<1x128xf32>
      %313 = arith.cmpf oge, %311, %312 : vector<1x128xf32>
      %cst_147 = arith.constant 1.000000e+00 : f32
      %cst_148 = arith.constant -1.000000e+00 : f32
      %314 = vector.broadcast %cst_147 : f32 to vector<1x128xf32>
      %315 = vector.broadcast %cst_148 : f32 to vector<1x128xf32>
      %316 = arith.select %313, %314, %315 : vector<1x128xi1>, vector<1x128xf32>
      %317 = math.absf %311 : vector<1x128xf32>
      %cst_149 = arith.constant 0.327591091 : f32
      %318 = vector.broadcast %cst_149 : f32 to vector<1x128xf32>
      %319 = arith.mulf %318, %317 : vector<1x128xf32>
      %cst_150 = arith.constant 1.000000e+00 : f32
      %320 = vector.broadcast %cst_150 : f32 to vector<1x128xf32>
      %321 = arith.addf %320, %319 : vector<1x128xf32>
      %cst_151 = arith.constant 1.000000e+00 : f32
      %322 = vector.broadcast %cst_151 : f32 to vector<1x128xf32>
      %323 = arith.divf %322, %321 : vector<1x128xf32>
      %cst_152 = arith.constant 1.06140542 : f32
      %324 = vector.broadcast %cst_152 : f32 to vector<1x128xf32>
      %325 = arith.mulf %324, %323 : vector<1x128xf32>
      %cst_153 = arith.constant -1.45315206 : f32
      %326 = vector.broadcast %cst_153 : f32 to vector<1x128xf32>
      %327 = arith.addf %325, %326 : vector<1x128xf32>
      %328 = arith.mulf %327, %323 : vector<1x128xf32>
      %cst_154 = arith.constant 1.42141378 : f32
      %329 = vector.broadcast %cst_154 : f32 to vector<1x128xf32>
      %330 = arith.addf %328, %329 : vector<1x128xf32>
      %331 = arith.mulf %330, %323 : vector<1x128xf32>
      %cst_155 = arith.constant -0.284496725 : f32
      %332 = vector.broadcast %cst_155 : f32 to vector<1x128xf32>
      %333 = arith.addf %331, %332 : vector<1x128xf32>
      %334 = arith.mulf %333, %323 : vector<1x128xf32>
      %cst_156 = arith.constant 0.254829586 : f32
      %335 = vector.broadcast %cst_156 : f32 to vector<1x128xf32>
      %336 = arith.addf %334, %335 : vector<1x128xf32>
      %337 = arith.mulf %336, %323 : vector<1x128xf32>
      %cst_157 = arith.constant 0.000000e+00 : f32
      %338 = vector.broadcast %cst_157 : f32 to vector<1x128xf32>
      %339 = arith.subf %338, %317 : vector<1x128xf32>
      %340 = arith.mulf %339, %317 : vector<1x128xf32>
      %341 = math.exp %340 : vector<1x128xf32>
      %342 = arith.mulf %337, %341 : vector<1x128xf32>
      %cst_158 = arith.constant 1.000000e+00 : f32
      %343 = vector.broadcast %cst_158 : f32 to vector<1x128xf32>
      %344 = arith.subf %343, %342 : vector<1x128xf32>
      %345 = arith.mulf %316, %344 : vector<1x128xf32>
      %cst_159 = arith.constant 1.000000e+00 : f32
      %346 = vector.broadcast %cst_159 : f32 to vector<1x128xf32>
      %347 = arith.addf %346, %345 : vector<1x128xf32>
      %348 = arith.mulf %309, %347 : vector<1x128xf32>
      %c0_160 = arith.constant 0 : index
      %c0_161 = arith.constant 0 : index
      %349 = vector.load %arg33[%c0_160, %c0_161] : memref<128x128xf32, #tpu.memory_space<vmem>>, vector<128x128xf32>
      %cst_162 = arith.constant dense<0.000000e+00> : vector<1x128xf32>
      %350 = tpu.matmul %348, %349, %cst_162 {dimension_numbers = #tpu.dot_dimension_numbers<[1], [0], [0], [1], [0, 0, 1, 1], [], []>} : vector<1x128xf32>, vector<128x128xf32>, vector<1x128xf32> -> vector<1x128xf32>
      %c0_163 = arith.constant 0 : index
      %c0_164 = arith.constant 0 : index
      %351 = vector.load %arg34[%c0_163, %c0_164] : memref<1x128xf32, #tpu.memory_space<vmem>>, vector<1x128xf32>
      %352 = arith.addf %350, %351 : vector<1x128xf32>
      %353 = arith.addf %281, %352 : vector<1x128xf32>
      %c0_165 = arith.constant 0 : index
      %c0_166 = arith.constant 0 : index
      %354 = vector.load %arg35[%c0_165, %c0_166] : memref<1x128xf32, #tpu.memory_space<vmem>>, vector<1x128xf32>
      %355 = arith.mulf %353, %354 : vector<1x128xf32>
      %cst_167 = arith.constant dense<0.000000e+00> : vector<1xf32>
      %356 = vector.multi_reduction <add>, %355, %cst_167 [1] : vector<1x128xf32> to vector<1xf32>
      %357 = vector.shape_cast %356 : vector<1xf32> to vector<1x1xf32>
      %c0_168 = arith.constant 0 : index
      %c0_169 = arith.constant 0 : index
      %358 = vector.load %arg36[%c0_168, %c0_169] : memref<1x1xf32, #tpu.memory_space<vmem>>, vector<1x1xf32>
      %359 = arith.addf %357, %358 : vector<1x1xf32>
      %c0_170 = arith.constant 0 : index
      %c0_171 = arith.constant 0 : index
      %360 = vector.load %arg37[%c0_170, %c0_171] : memref<1x1xf32, #tpu.memory_space<vmem>>, vector<1x1xf32>
      tpu.vector_store %arg37[%c0_170, %c0_171], %359 {strides = array<i32>} : memref<1x1xf32, #tpu.memory_space<vmem>>, vector<1x1xf32>,
    } else {
    }
    return
  }
  func.func @transform_0(%arg0: i32) -> (i32, i32) {
    %c0_i32 = arith.constant 0 : i32
    %c0_i32_0 = arith.constant 0 : i32
    %c0_i32_1 = arith.constant 0 : i32
    return %c0_i32, %c0_i32_0 : i32, i32
  }
  func.func @transform_1(%arg0: i32) -> (i32, i32) {
    %c0_i32 = arith.constant 0 : i32
    %c0_i32_0 = arith.constant 0 : i32
    %c0_i32_1 = arith.constant 0 : i32
    return %c0_i32, %c0_i32_0 : i32, i32
  }
  func.func @transform_2(%arg0: i32) -> (i32, i32) {
    %c0_i32 = arith.constant 0 : i32
    %c0_i32_0 = arith.constant 0 : i32
    %c0_i32_1 = arith.constant 0 : i32
    return %c0_i32, %c0_i32_0 : i32, i32
  }
  func.func @transform_3(%arg0: i32) -> (i32, i32) {
    %c0_i32 = arith.constant 0 : i32
    %c0_i32_0 = arith.constant 0 : i32
    %c0_i32_1 = arith.constant 0 : i32
    return %c0_i32, %c0_i32_0 : i32, i32
  }
  func.func @transform_4(%arg0: i32) -> (i32, i32) {
    %c0_i32 = arith.constant 0 : i32
    %c0_i32_0 = arith.constant 0 : i32
    %c0_i32_1 = arith.constant 0 : i32
    return %c0_i32, %c0_i32_0 : i32, i32
  }
  func.func @transform_5(%arg0: i32) -> (i32, i32) {
    %c0_i32 = arith.constant 0 : i32
    %c0_i32_0 = arith.constant 0 : i32
    %c0_i32_1 = arith.constant 0 : i32
    return %c0_i32, %c0_i32_0 : i32, i32
  }
  func.func @transform_6(%arg0: i32) -> (i32, i32) {
    %c0_i32 = arith.constant 0 : i32
    %c0_i32_0 = arith.constant 0 : i32
    %c0_i32_1 = arith.constant 0 : i32
    return %c0_i32, %c0_i32_0 : i32, i32
  }
  func.func @transform_7(%arg0: i32) -> (i32, i32) {
    %c0_i32 = arith.constant 0 : i32
    %c0_i32_0 = arith.constant 0 : i32
    %c0_i32_1 = arith.constant 0 : i32
    return %c0_i32, %c0_i32_0 : i32, i32
  }
  func.func @transform_8(%arg0: i32) -> (i32, i32) {
    %c0_i32 = arith.constant 0 : i32
    %c0_i32_0 = arith.constant 0 : i32
    %c0_i32_1 = arith.constant 0 : i32
    return %c0_i32, %c0_i32_0 : i32, i32
  }
  func.func @transform_9(%arg0: i32) -> (i32, i32) {
    %c0_i32 = arith.constant 0 : i32
    %c0_i32_0 = arith.constant 0 : i32
    %c0_i32_1 = arith.constant 0 : i32
    return %c0_i32, %c0_i32_0 : i32, i32
  }
  func.func @transform_10(%arg0: i32) -> (i32, i32, i32) {
    %c0_i32 = arith.constant 0 : i32
    %c0_i32_0 = arith.constant 0 : i32
    %c0_i32_1 = arith.constant 0 : i32
    return %arg0, %c0_i32, %c0_i32_0 : i32, i32, i32
  }
  func.func @transform_11(%arg0: i32) -> (i32, i32, i32) {
    %c0_i32 = arith.constant 0 : i32
    %c0_i32_0 = arith.constant 0 : i32
    %c0_i32_1 = arith.constant 0 : i32
    return %arg0, %c0_i32, %c0_i32_0 : i32, i32, i32
  }
  func.func @transform_12(%arg0: i32) -> (i32, i32, i32) {
    %c0_i32 = arith.constant 0 : i32
    %c0_i32_0 = arith.constant 0 : i32
    %c0_i32_1 = arith.constant 0 : i32
    return %arg0, %c0_i32, %c0_i32_0 : i32, i32, i32
  }
  func.func @transform_13(%arg0: i32) -> (i32, i32, i32) {
    %c0_i32 = arith.constant 0 : i32
    %c0_i32_0 = arith.constant 0 : i32
    %c0_i32_1 = arith.constant 0 : i32
    return %arg0, %c0_i32, %c0_i32_0 : i32, i32, i32
  }
  func.func @transform_14(%arg0: i32) -> (i32, i32, i32) {
    %c0_i32 = arith.constant 0 : i32
    %c0_i32_0 = arith.constant 0 : i32
    %c0_i32_1 = arith.constant 0 : i32
    return %arg0, %c0_i32, %c0_i32_0 : i32, i32, i32
  }
  func.func @transform_15(%arg0: i32) -> (i32, i32, i32) {
    %c0_i32 = arith.constant 0 : i32
    %c0_i32_0 = arith.constant 0 : i32
    %c0_i32_1 = arith.constant 0 : i32
    return %arg0, %c0_i32, %c0_i32_0 : i32, i32, i32
  }
  func.func @transform_16(%arg0: i32) -> (i32, i32, i32) {
    %c0_i32 = arith.constant 0 : i32
    %c0_i32_0 = arith.constant 0 : i32
    %c0_i32_1 = arith.constant 0 : i32
    return %arg0, %c0_i32, %c0_i32_0 : i32, i32, i32
  }
  func.func @transform_17(%arg0: i32) -> (i32, i32, i32) {
    %c0_i32 = arith.constant 0 : i32
    %c0_i32_0 = arith.constant 0 : i32
    %c0_i32_1 = arith.constant 0 : i32
    return %arg0, %c0_i32, %c0_i32_0 : i32, i32, i32
  }
  func.func @transform_18(%arg0: i32) -> (i32, i32, i32) {
    %c0_i32 = arith.constant 0 : i32
    %c0_i32_0 = arith.constant 0 : i32
    %c0_i32_1 = arith.constant 0 : i32
    return %arg0, %c0_i32, %c0_i32_0 : i32, i32, i32
  }
  func.func @transform_19(%arg0: i32) -> (i32, i32, i32) {
    %c0_i32 = arith.constant 0 : i32
    %c0_i32_0 = arith.constant 0 : i32
    %c0_i32_1 = arith.constant 0 : i32
    return %arg0, %c0_i32, %c0_i32_0 : i32, i32, i32
  }
  func.func @transform_20(%arg0: i32) -> (i32, i32) {
    %c0_i32 = arith.constant 0 : i32
    %c0_i32_0 = arith.constant 0 : i32
    %c0_i32_1 = arith.constant 0 : i32
    return %c0_i32, %c0_i32_0 : i32, i32
  }
  func.func @transform_21(%arg0: i32) -> (i32, i32) {
    %c0_i32 = arith.constant 0 : i32
    %c0_i32_0 = arith.constant 0 : i32
    %c0_i32_1 = arith.constant 0 : i32
    return %c0_i32, %c0_i32_0 : i32, i32
  }
  func.func @transform_22(%arg0: i32) -> (i32, i32) {
    %c0_i32 = arith.constant 0 : i32
    %c0_i32_0 = arith.constant 0 : i32
    %c0_i32_1 = arith.constant 0 : i32
    return %c0_i32, %c0_i32_0 : i32, i32
  }
  func.func @transform_23(%arg0: i32) -> (i32, i32) {
    %c0_i32 = arith.constant 0 : i32
    %c0_i32_0 = arith.constant 0 : i32
    %c0_i32_1 = arith.constant 0 : i32
    return %c0_i32, %c0_i32_0 : i32, i32
  }
  func.func @transform_24(%arg0: i32) -> (i32, i32) {
    %c0_i32 = arith.constant 0 : i32
    %c0_i32_0 = arith.constant 0 : i32
    %c0_i32_1 = arith.constant 0 : i32
    return %c0_i32, %c0_i32_0 : i32, i32
  }
  func.func @transform_25(%arg0: i32) -> (i32, i32) {
    %c0_i32 = arith.constant 0 : i32
    %c0_i32_0 = arith.constant 0 : i32
    %c0_i32_1 = arith.constant 0 : i32
    return %c0_i32, %c0_i32_0 : i32, i32
  }
  func.func @transform_26(%arg0: i32) -> (i32, i32) {
    %c0_i32 = arith.constant 0 : i32
    %c0_i32_0 = arith.constant 0 : i32
    %c0_i32_1 = arith.constant 0 : i32
    return %c0_i32, %c0_i32_0 : i32, i32
  }
  func.func @transform_27(%arg0: i32) -> (i32, i32) {
    %c0_i32 = arith.constant 0 : i32
    %c0_i32_0 = arith.constant 0 : i32
    %c0_i32_1 = arith.constant 0 : i32
    return %c0_i32, %c0_i32_0 : i32, i32
  }
  func.func @transform_28(%arg0: i32) -> (i32, i32) {
    %c0_i32 = arith.constant 0 : i32
    %c0_i32_0 = arith.constant 0 : i32
    %c0_i32_1 = arith.constant 0 : i32
    return %c0_i32, %c0_i32_0 : i32, i32
  }
  func.func @transform_29(%arg0: i32) -> (i32, i32) {
    %c0_i32 = arith.constant 0 : i32
    %c0_i32_0 = arith.constant 0 : i32
    %c0_i32_1 = arith.constant 0 : i32
    return %c0_i32, %c0_i32_0 : i32, i32
  }
  func.func @transform_30(%arg0: i32) -> (i32, i32) {
    %c0_i32 = arith.constant 0 : i32
    %c0_i32_0 = arith.constant 0 : i32
    %c0_i32_1 = arith.constant 0 : i32
    return %c0_i32, %c0_i32_0 : i32, i32
  }
  func.func @transform_31(%arg0: i32) -> (i32, i32) {
    %c0_i32 = arith.constant 0 : i32
    %c0_i32_0 = arith.constant 0 : i32
    %c0_i32_1 = arith.constant 0 : i32
    return %c0_i32, %c0_i32_0 : i32, i32
  }
  func.func @transform_32(%arg0: i32) -> (i32, i32) {
    %c0_i32 = arith.constant 0 : i32
    %c0_i32_0 = arith.constant 0 : i32
    %c0_i32_1 = arith.constant 0 : i32
    return %c0_i32, %c0_i32_0 : i32, i32
  }
  func.func @transform_33(%arg0: i32) -> (i32, i32) {
    %c0_i32 = arith.constant 0 : i32
    %c0_i32_0 = arith.constant 0 : i32
    %c0_i32_1 = arith.constant 0 : i32
    return %c0_i32, %c0_i32_0 : i32, i32
  }
  func.func @transform_34(%arg0: i32) -> (i32, i32) {
    %c0_i32 = arith.constant 0 : i32
    %c0_i32_0 = arith.constant 0 : i32
    %c0_i32_1 = arith.constant 0 : i32
    return %c0_i32, %c0_i32_0 : i32, i32
  }
  func.func @transform_35(%arg0: i32) -> (i32, i32) {
    %c0_i32 = arith.constant 0 : i32
    %c0_i32_0 = arith.constant 0 : i32
    %c0_i32_1 = arith.constant 0 : i32
    return %c0_i32, %c0_i32_0 : i32, i32
  }
  func.func @transform_36(%arg0: i32) -> (i32, i32) {
    %c0_i32 = arith.constant 0 : i32
    %c0_i32_0 = arith.constant 0 : i32
    %c0_i32_1 = arith.constant 0 : i32
    return %c0_i32, %c0_i32_0 : i32, i32
  }
}

</mosaic_0001>

<bundles_post_ra>
// kernel: gat_transformer_forward.1
= control target key start
LH: loop header
LB: loop body
LE: loop exit
PB: predicated region body
PF: predicated region fallthrough
CT: control target
= control target key end

     0   :  { %s9308_s6 = smov 1   ;;  %s9309_s10 = smov 2   ;;  %s12000_s0 = inlined_call_operand.smem [shape: u32[37], index: -1, kind: input, shape index: {}] }
   0x1   :  { %s9399_s5 = sld [smem:[%s12000_s0]]   ;;  %s9310_s14 = smov 3  }
   0x2   :  { %s9404_s9 = sld [smem:[%s12000_s0 + %s9308_s6]]   ;;  %s9311_s18 = smov 4  }
   0x3   :  { %s9409_s13 = sld [smem:[%s12000_s0 + %s9309_s10]]   ;;  %s9312_s22 = smov 5  }
   0x4   :  { %s9414_s17 = sld [smem:[%s12000_s0 + %s9310_s14]]   ;;  %s9313_s26 = smov 6  }
   0x5   :  { %s9419_s21 = sld [smem:[%s12000_s0 + %s9311_s18]]   ;;  %s9314_s30 = smov 7  }
   0x6   :  { %s9424_s25 = sld [smem:[%s12000_s0 + %s9312_s22]]   ;;  %s9315_s4 = smov 8  }
   0x7   :  { %12128 = sst [smem:[#allocation67_spill]] %s9399_s5  ;;  %s9316_s10 = smov 9  }
   0x8   :  { %12129 = sst [smem:[#allocation68_spill]] %s9404_s9  ;;  %s9317_s15 = smov 10  }
   0x9   :  { %12130 = sst [smem:[#allocation69_spill]] %s9409_s13  ;;  %s9318_s20 = smov 11  }
   0xa   :  { %12131 = sst [smem:[#allocation70_spill]] %s9414_s17  ;;  %s9320_s1 = smov 13  }
   0xb   :  { %12132 = sst [smem:[#allocation71_spill]] %s9419_s21  ;;  %s9321_s7 = smov 14  }
   0xc   :  { %12133 = sst [smem:[#allocation72_spill]] %s9424_s25  ;;  %s9323_s22 = smov 16  }
   0xd   :  { %s9429_s29 = sld [smem:[%s12000_s0 + %s9313_s26]]   ;;  %s9319_s26 = smov 12  }
   0xe   :  { %s9434_s3 = sld [smem:[%s12000_s0 + %s9314_s30]]   ;;  %s9324_s28 = smov 17  }
   0xf   :  { %s9439_s8 = sld [smem:[%s12000_s0 + %s9315_s4]]   ;;  %s9331_s23 = smov 24  }
  0x10   :  { %s9444_s14 = sld [smem:[%s12000_s0 + %s9316_s10]]   ;;  %s9333_s10 = smov 26  }
  0x11   :  { %s9449_s19 = sld [smem:[%s12000_s0 + %s9317_s15]]   ;;  %s9322_s15 = smov 15  }
  0x12   :  { %s9454_s24 = sld [smem:[%s12000_s0 + %s9318_s20]]   ;;  %s9334_s16 = smov 27  }
  0x13   :  { %12134 = sst [smem:[#allocation73_spill]] %s9429_s29 }
  0x14   :  { %12135 = sst [smem:[#allocation74_spill]] %s9434_s3 }
  0x15   :  { %12136 = sst [smem:[#allocation75_spill]] %s9439_s8 }
  0x16   :  { %12137 = sst [smem:[#allocation76_spill]] %s9444_s14 }
  0x17   :  { %12138 = sst [smem:[#allocation77_spill]] %s9449_s19 }
  0x18   :  { %12139 = sst [smem:[#allocation78_spill]] %s9454_s24 }
  0x19   :  { %s9459_s30 = sld [smem:[%s12000_s0 + %s9319_s26]]  }
  0x1a   :  { %s9464_s6 = sld [smem:[%s12000_s0 + %s9320_s1]]   ;;  %s9332_s1 = smov 25  }
  0x1b   :  { %s9469_s12 = sld [smem:[%s12000_s0 + %s9321_s7]]   ;;  %s9325_s7 = smov 18  }
  0x1c   :  { %s9474_s20 = sld [smem:[%s12000_s0 + %s9322_s15]]   ;;  %s9326_s15 = smov 19  }
  0x1d   :  { %s9479_s27 = sld [smem:[%s12000_s0 + %s9323_s22]]   ;;  %s9327_s22 = smov 20  }
  0x1e   :  { %s9484_s4 = sld [smem:[%s12000_s0 + %s9324_s28]]   ;;  %s9328_s28 = smov 21  }
  0x1f   :  { %12140 = sst [smem:[#allocation79_spill]] %s9459_s30 }
  0x20   :  { %12141 = sst [smem:[#allocation80_spill]] %s9464_s6 }
  0x21   :  { %12142 = sst [smem:[#allocation81_spill]] %s9469_s12 }
  0x22   :  { %12143 = sst [smem:[#allocation82_spill]] %s9474_s20 }
  0x23   :  { %12144 = sst [smem:[#allocation83_spill]] %s9479_s27 }
  0x24   :  { %12145 = sst [smem:[#allocation84_spill]] %s9484_s4 }
  0x25   :  { %s9489_s25 = sld [smem:[%s12000_s0 + %s9325_s7]]   ;;  %s9329_s7 = smov 22  }
  0x26   :  { %s9494_s13 = sld [smem:[%s12000_s0 + %s9326_s15]]   ;;  %s9330_s15 = smov 23  }
  0x27   :  { %s9499_s21 = sld [smem:[%s12000_s0 + %s9327_s22]]   ;;  %s9339_s22 = smov 32  }
  0x28   :  { %s9504_s17 = sld [smem:[%s12000_s0 + %s9328_s28]]  }
  0x29   :  { %s9509_s9 = sld [smem:[%s12000_s0 + %s9329_s7]]  }
  0x2a   :  { %s6580_s4 = sld [smem:[%s12000_s0 + %s9330_s15]]  }
  0x2b   :  { %s9522_s20 = sld [smem:[%s12000_s0 + %s9332_s1]]   ;;  %s9336_s1 = smov 29  }
  0x2c   :  { %12146 = sst [smem:[#allocation85_spill]] %s9494_s13 }
  0x2d   :  { %12147 = sst [smem:[#allocation86_spill]] %s9499_s21 }
  0x2e   :  { %12148 = sst [smem:[#allocation87_spill]] %s9504_s17 }
  0x2f   :  { %12149 = sst [smem:[#allocation88_spill]] %s9509_s9 }
  0x30   :  { %s9517_s13 = sld [smem:[%s12000_s0 + %s9331_s23]]   ;;  %s9335_s23 = smov 28   ;;  %v78_v0 = vstv %s6580_s4 }
  0x31   :  { %12151 = sst [smem:[#allocation90_spill]] %s9522_s20  ;;  %79 = vst [vmem:[#allocation3] sm:$0x1] %v78_v0  ;;  %s9340_s4 = smov 33  }
  0x32   :  { %s9527_s6 = sld [smem:[%s12000_s0 + %s9333_s10]]   ;;  %s9337_s10 = smov 30  }
  0x33   :  { %s9532_s24 = sld [smem:[%s12000_s0 + %s9334_s16]]   ;;  %s9338_s16 = smov 31  }
  0x34   :  { %s9542_s17 = sld [smem:[%s12000_s0 + %s9336_s1]]  }
  0x35   :  { %s9547_s15 = sld [smem:[%s12000_s0 + %s9337_s10]]   ;;  %s9341_s10 = smov 34  }
  0x36   :  { %12150 = sst [smem:[#allocation89_spill]] %s9517_s13 }
  0x37   :  { %s9537_s13 = sld [smem:[%s12000_s0 + %s9335_s23]]  }
  0x38   :  { %12152 = sst [smem:[#allocation91_spill]] %s9527_s6  ;;  %s9342_s6 = smov 36  }
  0x39   :  { %12153 = sst [smem:[#allocation92_spill]] %s9532_s24 }
  0x3a   :  { %12155 = sst [smem:[#allocation94_spill]] %s9542_s17 }
  0x3b   :  { %12156 = sst [smem:[#allocation95_spill]] %s9547_s15 }
  0x3c   :  { %s9552_s23 = sld [smem:[%s12000_s0 + %s9338_s16]]  }
  0x3d   :  { %12154 = sst [smem:[#allocation93_spill]] %s9537_s13  ;;  %s9343_s13 = smov 35  }
  0x3e   :  { %s9557_s1 = sld [smem:[%s12000_s0 + %s9339_s22]]  }
  0x3f   :  { %s9562_s7 = sld [smem:[%s12000_s0 + %s9340_s4]]  }
  0x40   :  { %s9567_s14 = sld [smem:[%s12000_s0 + %s9341_s10]]  }
  0x41   :  { %s9572_s3 = sld [smem:[%s12000_s0 + %s9342_s6]]  }
  0x42   :  { %12157 = sst [smem:[#allocation96_spill]] %s9552_s23 }
  0x44   :  { %12158 = sst [smem:[#allocation97_spill]] %s9557_s1 }
  0x45   :  { %12159 = sst [smem:[#allocation98_spill]] %s9562_s7 }
  0x46   :  { %12160 = sst [smem:[#allocation99_spill]] %s9567_s14 }
  0x47   :  { %12161 = sst [smem:[#allocation100_spill]] %s9572_s3 }
  0x48   :  { %s6592_s1 = sld [smem:[%s12000_s0 + %s9343_s13]]  }
  0x4e   :  { %v80_v1 = vstv %s6592_s1 }
  0x4f   :  { %81 = vst [vmem:[#allocation4] sm:$0x1] %v80_v1 }
  0x50   :  { %82 = vsyncpa [#allocation6], 0 }
  0x51   :  { %83 = vsyncpa [#allocation9], 0 }
  0x52   :  { %84 = vsyncpa [#allocation12], 0 }
  0x53   :  { %85 = vsyncpa [#allocation15], 0 }
  0x54   :  { %87 = vsyncpa [#allocation15 + $0x1], 0 }
  0x55   :  { %88 = vsyncpa [#allocation18], 0 }
  0x56   :  { %90 = vsyncpa [#allocation18 + $0x1], 0 }
  0x57   :  { %91 = vsyncpa [#allocation21], 0 }
  0x58   :  { %93 = vsyncpa [#allocation21 + $0x1], 0 }
  0x59   :  { %94 = vsyncpa [#allocation24], 0 }
  0x5a   :  { %96 = vsyncpa [#allocation24 + $0x1], 0 }
  0x5b   :  { %97 = vsyncpa [#allocation27], 0 }
  0x5c   :  { %99 = vsyncpa [#allocation27 + $0x1], 0 }
  0x5d   :  { %100 = vsyncpa [#allocation30], 0 }
  0x5e   :  { %101 = vsyncpa [#allocation33], 0 }
  0x5f   :  { %102 = vsyncpa [#allocation36], 0 }
  0x60   :  { %103 = vsyncpa [#allocation39], 0 }
  0x61   :  { %104 = vsyncpa [#allocation42], 0 }
  0x62   :  { %105 = vsyncpa [#allocation45], 0 }
  0x63   :  { %106 = vsyncpa [#allocation48], 0 }
  0x64   :  { %107 = vsyncpa [#allocation7], 0  ;;  %s9577_s0 = smov 0   ;;  %s9579_s15 = smov 0  }
  0x65   :  { %s9581_s1 = smov 0   ;;  %s9583_s4 = smov 0  }
  0x66 LB: > { %s12162_s14 = sld [smem:[#allocation99_spill]]  ;;  %s12164_s30 = sld [smem:[#allocation79_spill]]  ;;  %s9302_s1 = sphi %s9581_s1, %s12406_s1   ;;  %s9298_s15 = sphi %s9579_s15, %s12408_s15   ;;  %s9294_s0 = sphi %s9577_s0, %s12407_s0   ;;  %s9306_s4 = sphi %s9583_s4, %s12409_s4  }
  0x67   : > { %s12163_s5 = sld [smem:[#allocation67_spill]]  ;;  %s12166_s12 = sld [smem:[#allocation81_spill]] }
  0x68   : > { %s12165_s27 = sld [smem:[#allocation83_spill]]  ;;  %s12167_s29 = sld [smem:[#allocation73_spill]] }
  0x69   : > { %s12168_s24 = sld [smem:[#allocation92_spill]]  ;;  %s12169_s19 = sld [smem:[#allocation77_spill]] }
  0x6a   : > { %s12170_s23 = sld [smem:[#allocation96_spill]]  ;;  %s12171_s21 = sld [smem:[#allocation86_spill]] }
  0x6b   : > { %s12172_s20 = sld [smem:[#allocation90_spill]]  ;;  %s12173_s17 = sld [smem:[#allocation94_spill]] }
  0x6c   : > { %s12174_s9 = sld [smem:[#allocation88_spill]]  ;;  %s12175_s7 = sld [smem:[#allocation98_spill]] }
  0x6d   : > { %s12176_s8 = sld [smem:[#allocation75_spill]]  ;;  %12177 = sst [smem:[#allocation101_spill]] %s9302_s1 }
  0x6e   : > { %s9344_s28 = smov [#allocation8]   ;;  %s9598_s10 = sadd.s32 4294967295, %s9306_s4  }
  0x6f   : > { %s983_s2 = sshll.u32 %s9344_s28, 4  ;;  %p6595_p0 = scmp.ge.s32.totalorder %s9306_s4, 1  ;;  %s9604_s2 = int_to_ptr.vmem [resolvable:$true] %s983_s2 }
  0x70   : > { %p12018_p1 = scmp.eq.s32.totalorder %s9598_s10, 0  ;;  %p945_p2 = scmp.lt.s32.totalorder %s9306_s4, 3 }
  0x71   : > { %s9345_s6 = smov [#allocation11]   ;;  %s9346_s13 = smov [#allocation29]  }
  0x72   : > { %p9606_p4 = pnand %p6595_p0, %p945_p2  ;;  %s1008_s16 = sshll.u32 %s9345_s6, 4  ;;  %s9618_s16 = int_to_ptr.vmem [resolvable:$true] %s1008_s16 }
  0x73   : > { %s1030_s22 = sshll.u32 %s9346_s13, 4  ;;  %s8354_s26 = scalar_lea.hbm %s12167_s29, 512  ;;  %s9620_s22 = int_to_ptr.vmem [resolvable:$true] %s1030_s22 }
  0x74   : > { %s12178_s11 = scalar_select %p9606_p4, 1, 0 }
  0x75   : > { %p8077_p5 = pneg %p9606_p4  ;;  %p8355_p7 = scmp.ne.s32.totalorder %s12167_s29, %s8354_s26 }
  0x76   : > { %p8361_p11 = scmp.lt.u32.totalorder %s8354_s26, %s12167_s29 }
  0x77   : > { %p9614_p6 = pnand %p8077_p5, %p12018_p1 }
  0x79   : > { %s12179_s18 = scalar_select %p9614_p6, 1, 0 }
  0x7a   : > { %p9626_p8 = pneg %p9614_p6 }
  0x7c   : > { %s12180_s28 = scalar_select %p9626_p8, 1, 0 }
  0x7d   : > { %p8357_p9 = pnand %p9626_p8, %p8355_p7 }
  0x7f   : > { %p8358_p10 = pneg %p8357_p9 }
  0x81   : > { %p8363_p12 = pnand %p8361_p11, %p8358_p10 }
  0x83   : > { %8366 = shalt.err (!%p8363_p12)
}
  0x84   : > { %s8367_s6 = scalar_lea.vmem %s9604_s2, 512  ;;  %p8375_p5 = scmp.lt.s32.totalorder %s9604_s2, %s9604_s2 }
  0x85   : > { %p8368_p13 = scmp.ne.s32.totalorder %s9604_s2, %s8367_s6  ;;  %p8376_p3 = scmp.lt.s32.totalorder %s8367_s6, %s8367_s6 }
  0x87   : > { %p8370_p0 = pnand %p8368_p13, %p9626_p8  ;;  %p8377_p1 = por %p8376_p3, %p8375_p5 }
  0x89   : > { %p8371_p2 = pneg %p8370_p0 }
  0x8b   : > { %p8378_p4 = pnand %p8377_p1, %p8371_p2 }
  0x8d   : > { %8381 = shalt.err (!%p8378_p4)
}
  0x8e   : > { %s12021_s13 = smov 256   ;;  %s12023_s26 = smov 16  }
  0x8f   : > { %8083 = dma.hbm_to_vmem [thread:$0]  (!%p9614_p6), %s12167_s29, 512, %s9604_s2, [#allocation9], %s12021_s13, %s12021_s13, %s12023_s26  }
  0x90   : > { %s8382_s3 = scalar_lea.hbm %s12176_s8, 32 }
  0x91   : > { %p8383_p7 = scmp.ne.s32.totalorder %s12176_s8, %s8382_s3  ;;  %p8389_p4 = scmp.lt.u32.totalorder %s8382_s3, %s12176_s8 }
  0x93   : > { %p8385_p3 = pnand %p8383_p7, %p9626_p8 }
  0x95   : > { %p8386_p1 = pneg %p8385_p3 }
  0x97   : > { %p8391_p9 = pnand %p8389_p4, %p8386_p1 }
  0x99   : > { %8394 = shalt.err (!%p8391_p9)
}
  0x9a   : > { %s8395_s6 = scalar_lea.vmem %s9618_s16, 32  ;;  %p8403_p13 = scmp.lt.s32.totalorder %s9618_s16, %s9618_s16 }
  0x9b   : > { %p8396_p10 = scmp.ne.s32.totalorder %s9618_s16, %s8395_s6  ;;  %p8404_p0 = scmp.lt.s32.totalorder %s8395_s6, %s8395_s6 }
  0x9d   : > { %p8398_p11 = pnand %p8396_p10, %p9626_p8  ;;  %p8405_p2 = por %p8404_p0, %p8403_p13 }
  0x9f   : > { %p8399_p12 = pneg %p8398_p11 }
  0xa1   : > { %p8406_p5 = pnand %p8405_p2, %p8399_p12 }
  0xa3   : > { %8409 = shalt.err (!%p8406_p5)
}
  0xa4   : > { %8089 = dma.hbm_to_vmem [thread:$0]  (!%p9614_p6), %s12176_s8, 32, %s9618_s16, [#allocation12]  }
  0xa5   : > { %s8410_s3 = scalar_lea.hbm %s12171_s21, 32 }
  0xa6   : > { %p8411_p7 = scmp.ne.s32.totalorder %s12171_s21, %s8410_s3  ;;  %p8417_p4 = scmp.lt.u32.totalorder %s8410_s3, %s12171_s21 }
  0xa8   : > { %p8413_p3 = pnand %p8411_p7, %p9626_p8 }
  0xaa   : > { %p8414_p1 = pneg %p8413_p3 }
  0xac   : > { %p8419_p9 = pnand %p8417_p4, %p8414_p1 }
  0xae   : > { %8422 = shalt.err (!%p8419_p9)
}
  0xaf   : > { %s8423_s2 = scalar_lea.vmem %s9620_s22, 32  ;;  %p8431_p13 = scmp.lt.s32.totalorder %s9620_s22, %s9620_s22 }
  0xb0   : > { %p8424_p10 = scmp.ne.s32.totalorder %s9620_s22, %s8423_s2  ;;  %p8432_p0 = scmp.lt.s32.totalorder %s8423_s2, %s8423_s2 }
  0xb2   : > { %p8426_p11 = pnand %p8424_p10, %p9626_p8  ;;  %p8433_p2 = por %p8432_p0, %p8431_p13 }
  0xb4   : > { %p8427_p12 = pneg %p8426_p11 }
  0xb6   : > { %p8434_p5 = pnand %p8433_p2, %p8427_p12 }
  0xb8   : > { %8437 = shalt.err (!%p8434_p5)
}
  0xb9   : > { %8095 = dma.hbm_to_vmem [thread:$0]  (!%p9614_p6), %s12171_s21, 32, %s9620_s22, [#allocation30]  }
  0xba   : > { %s9349_s16 = smov [#allocation32]   ;;  %s9350_s3 = smov [#allocation35]  }
  0xbb   : > { %s1052_s6 = sshll.u32 %s9349_s16, 4  ;;  %s1079_s13 = sshll.u32 %s9350_s3, 4  ;;  %s1053_s6 = int_to_ptr.vmem [resolvable:$true] %s1052_s6  ;;  %s1080_s13 = int_to_ptr.vmem [resolvable:$true] %s1079_s13 }
  0xbc   : > { %s8438_s26 = scalar_lea.hbm %s12174_s9, 32 }
  0xbd   : > { %p8439_p7 = scmp.ne.s32.totalorder %s12174_s9, %s8438_s26  ;;  %p8445_p4 = scmp.lt.u32.totalorder %s8438_s26, %s12174_s9 }
  0xbf   : > { %p8441_p3 = pnand %p8439_p7, %p9626_p8 }
  0xc1   : > { %p8442_p1 = pneg %p8441_p3 }
  0xc3   : > { %p8447_p9 = pnand %p8445_p4, %p8442_p1 }
  0xc5   : > { %8450 = shalt.err (!%p8447_p9)
}
  0xc6   : > { %s8451_s2 = scalar_lea.vmem %s1053_s6, 32  ;;  %p8459_p13 = scmp.lt.s32.totalorder %s1053_s6, %s1053_s6 }
  0xc7   : > { %p8452_p10 = scmp.ne.s32.totalorder %s1053_s6, %s8451_s2  ;;  %p8460_p0 = scmp.lt.s32.totalorder %s8451_s2, %s8451_s2 }
  0xc9   : > { %p8454_p11 = pnand %p8452_p10, %p9626_p8  ;;  %p8461_p2 = por %p8460_p0, %p8459_p13 }
  0xcb   : > { %p8455_p12 = pneg %p8454_p11 }
  0xcd   : > { %p8462_p5 = pnand %p8461_p2, %p8455_p12 }
  0xcf   : > { %8465 = shalt.err (!%p8462_p5)
}
  0xd0   : > { %8101 = dma.hbm_to_vmem [thread:$0]  (!%p9614_p6), %s12174_s9, 32, %s1053_s6, [#allocation33]  }
  0xd1   : > { %s8466_s22 = scalar_lea.hbm %s12172_s20, 16 }
  0xd2   : > { %p8467_p7 = scmp.ne.s32.totalorder %s12172_s20, %s8466_s22  ;;  %p8473_p4 = scmp.lt.u32.totalorder %s8466_s22, %s12172_s20 }
  0xd4   : > { %p8469_p3 = pnand %p8467_p7, %p9626_p8 }
  0xd6   : > { %p8470_p1 = pneg %p8469_p3 }
  0xd8   : > { %p8475_p9 = pnand %p8473_p4, %p8470_p1 }
  0xda   : > { %8478 = shalt.err (!%p8475_p9)
}
  0xdb   : > { %s8479_s26 = scalar_lea.vmem %s1080_s13, 16  ;;  %s8486_s16 = scalar_lea.vmem %s1080_s13, 32 }
  0xdc   : > { %p8480_p10 = scmp.ne.s32.totalorder %s1080_s13, %s8479_s26  ;;  %p8487_p13 = scmp.lt.s32.totalorder %s1080_s13, %s1080_s13 }
  0xdd   : > { %p8488_p0 = scmp.lt.s32.totalorder %s8486_s16, %s8479_s26 }
  0xde   : > { %p8482_p11 = pnand %p8480_p10, %p9626_p8 }
  0xdf   : > { %p8489_p2 = por %p8488_p0, %p8487_p13 }
  0xe0   : > { %p8483_p12 = pneg %p8482_p11 }
  0xe2   : > { %p8490_p5 = pnand %p8489_p2, %p8483_p12 }
  0xe4   : > { %8493 = shalt.err (!%p8490_p5)
}
  0xe5   : > { %8107 = dma.hbm_to_vmem [thread:$0]  (!%p9614_p6), %s12172_s20, 16, %s1080_s13, [#allocation36]  }
  0xe6   : > { %s9351_s6 = smov [#allocation38]   ;;  %s9352_s2 = smov [#allocation41]  }
  0xe7   : > { %s1101_s3 = sshll.u32 %s9351_s6, 4  ;;  %s1125_s22 = sshll.u32 %s9352_s2, 4  ;;  %s1102_s3 = int_to_ptr.vmem [resolvable:$true] %s1101_s3  ;;  %s1126_s22 = int_to_ptr.vmem [resolvable:$true] %s1125_s22 }
  0xe8   : > { %s8494_s8 = scalar_lea.hbm %s12168_s24, 16 }
  0xe9   : > { %p8495_p7 = scmp.ne.s32.totalorder %s12168_s24, %s8494_s8  ;;  %p8501_p4 = scmp.lt.u32.totalorder %s8494_s8, %s12168_s24 }
  0xeb   : > { %p8497_p3 = pnand %p8495_p7, %p9626_p8 }
  0xed   : > { %p8498_p1 = pneg %p8497_p3 }
  0xef   : > { %p8503_p9 = pnand %p8501_p4, %p8498_p1 }
  0xf1   : > { %8506 = shalt.err (!%p8503_p9)
}
  0xf2   : > { %s8507_s26 = scalar_lea.vmem %s1102_s3, 16  ;;  %s8514_s13 = scalar_lea.vmem %s1102_s3, 32 }
  0xf3   : > { %p8508_p10 = scmp.ne.s32.totalorder %s1102_s3, %s8507_s26  ;;  %p8515_p13 = scmp.lt.s32.totalorder %s1102_s3, %s1102_s3 }
  0xf4   : > { %p8516_p0 = scmp.lt.s32.totalorder %s8514_s13, %s8507_s26 }
  0xf5   : > { %p8510_p11 = pnand %p8508_p10, %p9626_p8 }
  0xf6   : > { %p8517_p2 = por %p8516_p0, %p8515_p13 }
  0xf7   : > { %p8511_p12 = pneg %p8510_p11 }
  0xf9   : > { %p8518_p5 = pnand %p8517_p2, %p8511_p12 }
  0xfb   : > { %8521 = shalt.err (!%p8518_p5)
}
  0xfc   : > { %8113 = dma.hbm_to_vmem [thread:$0]  (!%p9614_p6), %s12168_s24, 16, %s1102_s3, [#allocation39]  }
  0xfd   : > { %s8522_s8 = scalar_lea.hbm %s12173_s17, 16 }
  0xfe   : > { %p8523_p7 = scmp.ne.s32.totalorder %s12173_s17, %s8522_s8  ;;  %p8529_p4 = scmp.lt.u32.totalorder %s8522_s8, %s12173_s17 }
 0x100   : > { %p8525_p3 = pnand %p8523_p7, %p9626_p8 }
 0x102   : > { %p8526_p1 = pneg %p8525_p3 }
 0x104   : > { %p8531_p9 = pnand %p8529_p4, %p8526_p1 }
 0x106   : > { %8534 = shalt.err (!%p8531_p9)
}
 0x107   : > { %s8535_s16 = scalar_lea.vmem %s1126_s22, 16  ;;  %s8542_s6 = scalar_lea.vmem %s1126_s22, 32 }
 0x108   : > { %p8536_p10 = scmp.ne.s32.totalorder %s1126_s22, %s8535_s16  ;;  %p8543_p13 = scmp.lt.s32.totalorder %s1126_s22, %s1126_s22 }
 0x109   : > { %p8544_p0 = scmp.lt.s32.totalorder %s8542_s6, %s8535_s16 }
 0x10a   : > { %p8538_p11 = pnand %p8536_p10, %p9626_p8 }
 0x10b   : > { %p8545_p2 = por %p8544_p0, %p8543_p13 }
 0x10c   : > { %p8539_p12 = pneg %p8538_p11 }
 0x10e   : > { %p8546_p5 = pnand %p8545_p2, %p8539_p12 }
 0x110   : > { %8549 = shalt.err (!%p8546_p5)
}
 0x111   : > { %8119 = dma.hbm_to_vmem [thread:$0]  (!%p9614_p6), %s12173_s17, 16, %s1126_s22, [#allocation42]  }
 0x112   : > { %s9353_s3 = smov [#allocation44]   ;;  %s9354_s26 = smov [#allocation47]  }
 0x113   : > { %s1147_s2 = sshll.u32 %s9353_s3, 4  ;;  %s1171_s13 = sshll.u32 %s9354_s26, 4  ;;  %s1148_s2 = int_to_ptr.vmem [resolvable:$true] %s1147_s2  ;;  %s1172_s13 = int_to_ptr.vmem [resolvable:$true] %s1171_s13 }
 0x114   : > { %s8550_s8 = scalar_lea.hbm %s12170_s23, 16 }
 0x115   : > { %p8551_p7 = scmp.ne.s32.totalorder %s12170_s23, %s8550_s8  ;;  %p8557_p4 = scmp.lt.u32.totalorder %s8550_s8, %s12170_s23 }
 0x117   : > { %p8553_p3 = pnand %p8551_p7, %p9626_p8 }
 0x119   : > { %p8554_p1 = pneg %p8553_p3 }
 0x11b   : > { %p8559_p9 = pnand %p8557_p4, %p8554_p1 }
 0x11d   : > { %8562 = shalt.err (!%p8559_p9)
}
 0x11e   : > { %s8563_s16 = scalar_lea.vmem %s1148_s2, 16  ;;  %s8570_s22 = scalar_lea.vmem %s1148_s2, 32 }
 0x11f   : > { %p8564_p10 = scmp.ne.s32.totalorder %s1148_s2, %s8563_s16  ;;  %p8571_p13 = scmp.lt.s32.totalorder %s1148_s2, %s1148_s2 }
 0x120   : > { %p8572_p0 = scmp.lt.s32.totalorder %s8570_s22, %s8563_s16 }
 0x121   : > { %p8566_p11 = pnand %p8564_p10, %p9626_p8 }
 0x122   : > { %p8573_p2 = por %p8572_p0, %p8571_p13 }
 0x123   : > { %p8567_p12 = pneg %p8566_p11 }
 0x125   : > { %p8574_p5 = pnand %p8573_p2, %p8567_p12 }
 0x127   : > { %8577 = shalt.err (!%p8574_p5)
}
 0x128   : > { %8125 = dma.hbm_to_vmem [thread:$0]  (!%p9614_p6), %s12170_s23, 16, %s1148_s2, [#allocation45]  }
 0x129   : > { %s8578_s6 = scalar_lea.hbm %s12175_s7, 16 }
 0x12a   : > { %p8579_p7 = scmp.ne.s32.totalorder %s12175_s7, %s8578_s6  ;;  %p8585_p4 = scmp.lt.u32.totalorder %s8578_s6, %s12175_s7 }
 0x12c   : > { %p8581_p3 = pnand %p8579_p7, %p9626_p8 }
 0x12e   : > { %p8582_p1 = pneg %p8581_p3 }
 0x130   : > { %p8587_p9 = pnand %p8585_p4, %p8582_p1 }
 0x132   : > { %8590 = shalt.err (!%p8587_p9)
}
 0x133   : > { %s8591_s3 = scalar_lea.vmem %s1172_s13, 16  ;;  %s8598_s26 = scalar_lea.vmem %s1172_s13, 32 }
 0x134   : > { %p8592_p10 = scmp.ne.s32.totalorder %s1172_s13, %s8591_s3  ;;  %p8599_p13 = scmp.lt.s32.totalorder %s1172_s13, %s1172_s13 }
 0x135   : > { %p8600_p0 = scmp.lt.s32.totalorder %s8598_s26, %s8591_s3 }
 0x136   : > { %p8594_p11 = pnand %p8592_p10, %p9626_p8 }
 0x137   : > { %p8601_p2 = por %p8600_p0, %p8599_p13 }
 0x138   : > { %p8595_p12 = pneg %p8594_p11 }
 0x13a   : > { %p8602_p5 = pnand %p8601_p2, %p8595_p12 }
 0x13c   : > { %8605 = shalt.err (!%p8602_p5)
}
 0x13d   : > { %8131 = dma.hbm_to_vmem [thread:$0]  (!%p9614_p6), %s12175_s7, 16, %s1172_s13, [#allocation48]  }
 0x13e   : > { %s9737_s2 = sadd.s32 1, %s9306_s4   ;;  %s330_s16 = sadd.s32 1, %s9302_s1 }
 0x13f   : > { %s327_s8 = ssub.s32 %s9306_s4, %s9737_s2  ;;  %p337_p3 = scmp.ne.s32.totalorder %s9302_s1, %s9298_s15 }
 0x140   : > { %p328_p7 = scmp.eq.s32.totalorder %s327_s8, 0  ;;  %p338_p1 = scmp.eq.s32.totalorder %s9306_s4, 0 }
 0x141   : > { %p343_p4 = scmp.ne.s32.totalorder %s9298_s15, %s9294_s0  ;;  %p12182_p10 = scmp.eq.s32.totalorder %s9598_s10, 0 }
 0x142   : > { %s9748_s22 = scalar_select %p328_p7, %s9302_s1, %s330_s16  }
 0x143   : > { %p339_p9 = por %p338_p1, %p337_p3  ;;  %p9752_p11 = por %p12182_p10, %p343_p4 }
 0x144   : > { %12181 = sst [smem:[#allocation102_spill]] %s9748_s22  ;;  %p8185_p12 = scmp.lt.s32.totalorder %s9306_s4, 2 }
 0x145   : > { %s12183_s6 = scalar_select %p9752_p11, 1, 0 }
 0x146   : > { %s9758_s13 = sand.u32 1, %s9306_s4   ;;  %s9761_s3 = sand.u32 1, %s9302_s1  }
 0x147   : > { %s6616_s26 = sshll.u32 %s9761_s3, 11  ;;  %s6810_s8 = sshll.u32 %s9306_s4, 15 }
 0x148   : > { %s9766_s0 = scalar_lea.hbm %s12169_s19, %s6810_s8  ;;  %s1200_s16 = scalar_lea.vmem [#allocation14], %s6616_s26 }
 0x149   : > { %s1207_s7 = sshll.u32 %s1200_s16, 4  ;;  %p9768_p13 = pnand %p8185_p12, %p339_p9  ;;  %s9772_s7 = int_to_ptr.vmem [resolvable:$true] %s1207_s7 }
 0x14a   : > { %s8606_s20 = scalar_lea.hbm %s9766_s0, 32768  ;;  %s8611_s26 = scalar_lea.hbm %s12169_s19, 65536 }
 0x14b   : > { %s12184_s9 = scalar_select %p9768_p13, 1, 0 }
 0x14c   : > { %p8607_p0 = scmp.ne.s32.totalorder %s9766_s0, %s8606_s20  ;;  %p9779_p2 = pneg %p9768_p13 }
 0x14d   : > { %p8612_p3 = scmp.lt.u32.totalorder %s9766_s0, %s12169_s19  ;;  %p8613_p1 = scmp.lt.u32.totalorder %s8611_s26, %s8606_s20 }
 0x14e   : > { %s12185_s8 = scalar_select %p9779_p2, 1, 0 }
 0x14f   : > { %p8609_p5 = pnand %p9779_p2, %p8607_p0  ;;  %p8614_p4 = por %p8613_p1, %p8612_p3 }
 0x150   : > { %p8615_p9 = scmp.lt.u32.totalorder %s8606_s20, %s9766_s0 }
 0x151   : > { %p8610_p7 = pneg %p8609_p5 }
 0x152   : > { %p8616_p10 = por %p8615_p9, %p8614_p4 }
 0x154   : > { %p8617_p12 = pnand %p8616_p10, %p8610_p7 }
 0x156   : > { %8620 = shalt.err (!%p8617_p12)
}
 0x157   : > { %s8621_s16 = scalar_lea.vmem %s9772_s7, 32768  ;;  %s9355_s17 = smov [#allocation14]  }
 0x158   : > { %p8622_p11 = scmp.ne.s32.totalorder %s9772_s7, %s8621_s16  ;;  %s8626_s21 = sshll.u32 %s9355_s17, 4  ;;  %s8627_s21 = int_to_ptr.vmem [resolvable:$false] %s8626_s21 }
 0x159   : > { %s8628_s23 = scalar_lea.vmem %s8627_s21, 65536  ;;  %p8629_p0 = scmp.lt.s32.totalorder %s9772_s7, %s8627_s21 }
 0x15a   : > { %p8624_p6 = pnand %p8622_p11, %p9779_p2  ;;  %p8630_p5 = scmp.lt.s32.totalorder %s8628_s23, %s8621_s16 }
 0x15c   : > { %p8625_p8 = pneg %p8624_p6  ;;  %p8631_p3 = por %p8630_p5, %p8629_p0 }
 0x15e   : > { %p8632_p1 = pnand %p8631_p3, %p8625_p8 }
 0x160   : > { %8635 = shalt.err (!%p8632_p1)
}
 0x161   : > { %s9356_s20 = smov 1024   ;;  %s9357_s17 = smov 64  }
 0x162   : > { %s12186_s26 = scalar_lea.sflag [#allocation15], %s9758_s13  ;;  %s6622_s21 = sshll.u32 %s9761_s3, 5 }
 0x163   : > { %8138 = dma.hbm_to_vmem [thread:$0]  (!%p9768_p13), %s9766_s0, 32768, %s9772_s7, %s12186_s26, %s9356_s20, %s9356_s20, %s9357_s17  }
 0x164   : > { %s6812_s23 = sshll.u32 %s9306_s4, 9  ;;  %s1240_s19 = scalar_lea.vmem [#allocation17], %s6622_s21 }
 0x165   : > { %s9803_s16 = scalar_lea.hbm %s12164_s30, %s6812_s23  ;;  %s1248_s24 = sshll.u32 %s1240_s19, 4  ;;  %s1249_s24 = int_to_ptr.vmem [resolvable:$true] %s1248_s24 }
 0x166   : > { %s12043_s29 = scalar_lea.sflag [#allocation18], %s9758_s13  ;;  %s8636_s22 = scalar_lea.hbm %s9803_s16, 512 }
 0x167   : > { %p8637_p6 = scmp.ne.s32.totalorder %s9803_s16, %s8636_s22  ;;  %s8641_s1 = scalar_lea.hbm %s12164_s30, 1024 }
 0x168   : > { %p8642_p7 = scmp.lt.u32.totalorder %s9803_s16, %s12164_s30  ;;  %p8643_p4 = scmp.lt.u32.totalorder %s8641_s1, %s8636_s22 }
 0x169   : > { %p8639_p8 = pnand %p8637_p6, %p9779_p2  ;;  %p8645_p10 = scmp.lt.u32.totalorder %s8636_s22, %s9803_s16 }
 0x16a   : > { %p8644_p9 = por %p8643_p4, %p8642_p7 }
 0x16b   : > { %p8640_p11 = pneg %p8639_p8 }
 0x16c   : > { %p8646_p12 = por %p8645_p10, %p8644_p9 }
 0x16e   : > { %p8647_p0 = pnand %p8646_p12, %p8640_p11 }
 0x170   : > { %8650 = shalt.err (!%p8647_p0)
}
 0x171   : > { %s8651_s7 = scalar_lea.vmem %s1249_s24, 512  ;;  %s9358_s19 = smov [#allocation17]  }
 0x172   : > { %p8652_p5 = scmp.ne.s32.totalorder %s1249_s24, %s8651_s7  ;;  %s8656_s0 = sshll.u32 %s9358_s19, 4  ;;  %s8657_s0 = int_to_ptr.vmem [resolvable:$false] %s8656_s0 }
 0x173   : > { %s8658_s20 = scalar_lea.vmem %s8657_s0, 1024  ;;  %p8659_p6 = scmp.lt.s32.totalorder %s1249_s24, %s8657_s0 }
 0x174   : > { %p8654_p3 = pnand %p8652_p5, %p9779_p2  ;;  %p8660_p8 = scmp.lt.s32.totalorder %s8658_s20, %s8651_s7 }
 0x176   : > { %p8655_p1 = pneg %p8654_p3  ;;  %p8661_p13 = por %p8660_p8, %p8659_p6 }
 0x178   : > { %p8662_p4 = pnand %p8661_p13, %p8655_p1 }
 0x17a   : > { %8665 = shalt.err (!%p8662_p4)
}
 0x17b   : > { %p12187_p7 = scmp.ne.s32.totalorder %s12184_s9, 0  ;;  %s6628_s1 = sshll.u32 %s9761_s3, 10 }
 0x17c   : > { %s6814_s22 = sshll.u32 %s9306_s4, 14  ;;  %s1278_s26 = scalar_lea.vmem [#allocation20], %s6628_s1 }
 0x17d   : > { %8144 = dma.hbm_to_vmem [thread:$0]  (!%p12187_p7), %s9803_s16, 512, %s1249_s24, %s12043_s29  }
 0x17e   : > { %s9824_s17 = scalar_lea.hbm %s12166_s12, %s6814_s22  ;;  %s1285_s21 = sshll.u32 %s1278_s26, 4  ;;  %s9826_s21 = int_to_ptr.vmem [resolvable:$true] %s1285_s21 }
 0x17f   : > { %s7971_s23 = smul.u32 1536, %s9761_s3  ;;  %s12044_s7 = scalar_lea.sflag [#allocation21], %s9758_s13 }
 0x180   : > { %s8666_s19 = scalar_lea.hbm %s9824_s17, 16384  ;;  %s8671_s24 = scalar_lea.hbm %s12166_s12, 32768 }
 0x181   : > { %p8667_p13 = scmp.ne.s32.totalorder %s9824_s17, %s8666_s19  ;;  %p8672_p10 = scmp.lt.u32.totalorder %s9824_s17, %s12166_s12 }
 0x182   : > { %p8673_p12 = scmp.lt.u32.totalorder %s8671_s24, %s8666_s19  ;;  %p8675_p5 = scmp.lt.u32.totalorder %s8666_s19, %s9824_s17 }
 0x183   : > { %p8669_p11 = pnand %p8667_p13, %p9779_p2 }
 0x184   : > { %p8674_p0 = por %p8673_p12, %p8672_p10 }
 0x185   : > { %p8670_p9 = pneg %p8669_p11 }
 0x186   : > { %p8676_p3 = por %p8675_p5, %p8674_p0 }
 0x188   : > { %p8677_p1 = pnand %p8676_p3, %p8670_p9 }
 0x18a   : > { %8680 = shalt.err (!%p8677_p1)
}
 0x18b   : > { %s8681_s16 = scalar_lea.vmem %s9826_s21, 16384  ;;  %s9359_s0 = smov [#allocation20]  }
 0x18c   : > { %p8682_p6 = scmp.ne.s32.totalorder %s9826_s21, %s8681_s16  ;;  %s8686_s20 = sshll.u32 %s9359_s0, 4  ;;  %s8687_s20 = int_to_ptr.vmem [resolvable:$false] %s8686_s20 }
 0x18d   : > { %s8688_s1 = scalar_lea.vmem %s8687_s20, 32768  ;;  %p8689_p13 = scmp.lt.s32.totalorder %s9826_s21, %s8687_s20 }
 0x18e   : > { %p8684_p8 = pnand %p8682_p6, %p9779_p2  ;;  %p8690_p11 = scmp.lt.s32.totalorder %s8688_s1, %s8681_s16 }
 0x190   : > { %p8685_p4 = pneg %p8684_p8  ;;  %p8691_p10 = por %p8690_p11, %p8689_p13 }
 0x192   : > { %p8692_p12 = pnand %p8691_p10, %p8685_p4 }
 0x194   : > { %8695 = shalt.err (!%p8692_p12)
}
 0x195   : > { %s12188_s22 = smov 16   ;;  %s12189_s26 = smov 256  }
 0x196   : > { %8150 = dma.hbm_to_vmem [thread:$0]  (!%p12187_p7), %s9824_s17, 16384, %s9826_s21, %s12044_s7, %s12189_s26, %s12189_s26, %s12188_s22  }
 0x197   : > { %s7972_s19 = smul.u32 24576, %s9306_s4  ;;  %s1318_s24 = scalar_lea.vmem [#allocation23], %s7971_s23 }
 0x198   : > { %s1325_s16 = sshll.u32 %s1318_s24, 4  ;;  %s12052_s20 = scalar_lea.sflag [#allocation24], %s9758_s13  ;;  %s9858_s16 = int_to_ptr.vmem [resolvable:$true] %s1325_s16 }
 0x199   : > { %s9856_s0 = scalar_lea.hbm %s12165_s27, %s7972_s19  ;;  %s8701_s29 = scalar_lea.hbm %s12165_s27, 49152 }
 0x19a   : > { %s8696_s1 = scalar_lea.hbm %s9856_s0, 24576  ;;  %p8702_p3 = scmp.lt.u32.totalorder %s9856_s0, %s12165_s27 }
 0x19b   : > { %p8697_p9 = scmp.ne.s32.totalorder %s9856_s0, %s8696_s1  ;;  %p8703_p1 = scmp.lt.u32.totalorder %s8701_s29, %s8696_s1 }
 0x19c   : > { %p8705_p8 = scmp.lt.u32.totalorder %s8696_s1, %s9856_s0 }
 0x19d   : > { %p8699_p0 = pnand %p8697_p9, %p9779_p2  ;;  %p8704_p6 = por %p8703_p1, %p8702_p3 }
 0x19f   : > { %p8700_p5 = pneg %p8699_p0  ;;  %p8706_p4 = por %p8705_p8, %p8704_p6 }
 0x1a1   : > { %p8707_p13 = pnand %p8706_p4, %p8700_p5 }
 0x1a3   : > { %8710 = shalt.err (!%p8707_p13)
}
 0x1a4   : > { %s8711_s17 = scalar_lea.vmem %s9858_s16, 24576  ;;  %s9360_s21 = smov [#allocation23]  }
 0x1a5   : > { %p8712_p11 = scmp.ne.s32.totalorder %s9858_s16, %s8711_s17  ;;  %s8716_s23 = sshll.u32 %s9360_s21, 4  ;;  %s8717_s23 = int_to_ptr.vmem [resolvable:$false] %s8716_s23 }
 0x1a6   : > { %s8718_s19 = scalar_lea.vmem %s8717_s23, 49152  ;;  %p8719_p9 = scmp.lt.s32.totalorder %s9858_s16, %s8717_s23 }
 0x1a7   : > { %p8714_p10 = pnand %p8712_p11, %p9779_p2  ;;  %p8720_p0 = scmp.lt.s32.totalorder %s8718_s19, %s8711_s17 }
 0x1a9   : > { %p8715_p12 = pneg %p8714_p10  ;;  %p8721_p3 = por %p8720_p0, %p8719_p9 }
 0x1ab   : > { %p8722_p1 = pnand %p8721_p3, %p8715_p12 }
 0x1ad   : > { %8725 = shalt.err (!%p8722_p1)
}
 0x1ae   : > { %s9361_s29 = smov 768   ;;  %s9362_s24 = smov 48  }
 0x1af   : > { %8156 = dma.hbm_to_vmem [thread:$0]  (!%p12187_p7), %s9856_s0, 24576, %s9858_s16, %s12052_s20, %s9361_s29, %s9361_s29, %s9362_s24  }
 0x1b0   : > { %s6636_s1 = sshll.u32 %s9761_s3, 9  ;;  %s6816_s17 = sshll.u32 %s9306_s4, 13 }
 0x1b1   : > { %s9883_s21 = scalar_lea.hbm %s9489_s25, %s6816_s17  ;;  %s1358_s23 = scalar_lea.vmem [#allocation26], %s6636_s1 }
 0x1b2   : > { %s1365_s19 = sshll.u32 %s1358_s23, 4  ;;  %s9363_s7 = smov [#allocation5]   ;;  %s9885_s19 = int_to_ptr.vmem [resolvable:$true] %s1365_s19 }
 0x1b3   : > { %s9887_s12 = sshll.u32 %s9363_s7, 4  ;;  %s12051_s27 = scalar_lea.sflag [#allocation27], %s9758_s13  ;;  %s959_s12 = int_to_ptr.vmem [resolvable:$true] %s9887_s12 }
 0x1b4   : > { %s8726_s30 = scalar_lea.hbm %s9883_s21, 8192  ;;  %s8731_s16 = scalar_lea.hbm %s9489_s25, 16384 }
 0x1b5   : > { %p8727_p5 = scmp.ne.s32.totalorder %s9883_s21, %s8726_s30  ;;  %p8732_p4 = scmp.lt.u32.totalorder %s9883_s21, %s9489_s25 }
 0x1b6   : > { %p8733_p13 = scmp.lt.u32.totalorder %s8731_s16, %s8726_s30  ;;  %p8735_p10 = scmp.lt.u32.totalorder %s8726_s30, %s9883_s21 }
 0x1b7   : > { %p8729_p6 = pnand %p8727_p5, %p9779_p2 }
 0x1b8   : > { %p8734_p11 = por %p8733_p13, %p8732_p4 }
 0x1b9   : > { %p8730_p8 = pneg %p8729_p6 }
 0x1ba   : > { %p8736_p12 = por %p8735_p10, %p8734_p11 }
 0x1bc   : > { %p8737_p9 = pnand %p8736_p12, %p8730_p8 }
 0x1be   : > { %8740 = shalt.err (!%p8737_p9)
}
 0x1bf   : > { %s8741_s7 = scalar_lea.vmem %s9885_s19, 8192  ;;  %s9364_s0 = smov [#allocation26]  }
 0x1c0   : > { %p8742_p0 = scmp.ne.s32.totalorder %s9885_s19, %s8741_s7  ;;  %s8746_s29 = sshll.u32 %s9364_s0, 4  ;;  %s8747_s29 = int_to_ptr.vmem [resolvable:$false] %s8746_s29 }
 0x1c1   : > { %s8748_s24 = scalar_lea.vmem %s8747_s29, 16384  ;;  %p8749_p5 = scmp.lt.s32.totalorder %s9885_s19, %s8747_s29 }
 0x1c2   : > { %p8744_p3 = pnand %p8742_p0, %p9779_p2  ;;  %p8750_p6 = scmp.lt.s32.totalorder %s8748_s24, %s8741_s7 }
 0x1c4   : > { %p8745_p1 = pneg %p8744_p3  ;;  %p8751_p4 = por %p8750_p6, %p8749_p5 }
 0x1c6   : > { %p8752_p13 = pnand %p8751_p4, %p8745_p1 }
 0x1c8   : > { %8755 = shalt.err (!%p8752_p13)
}
 0x1c9   : > { %8162 = dma.hbm_to_vmem [thread:$0]  (!%p12187_p7), %s9883_s21, 8192, %s9885_s19, %s12051_s27, %s12189_s26, %s12189_s26, %s12188_s22  }
 0x1ca   : > { %s8756_s30 = scalar_lea.hbm %s12163_s5, 128  ;;  %p12190_p11 = scmp.ne.s32.totalorder %s12180_s28, 0 }
 0x1cb   : > { %p8757_p8 = scmp.ne.s32.totalorder %s12163_s5, %s8756_s30  ;;  %p8763_p9 = scmp.lt.u32.totalorder %s8756_s30, %s12163_s5 }
 0x1cd   : > { %p8759_p10 = pnand %p8757_p8, %p12190_p11 }
 0x1cf   : > { %p8760_p12 = pneg %p8759_p10 }
 0x1d1   : > { %p8765_p0 = pnand %p8763_p9, %p8760_p12 }
 0x1d3   : > { %8768 = shalt.err (!%p8765_p0)
}
 0x1d4   : > { %s8769_s1 = scalar_lea.vmem %s959_s12, 128  ;;  %p8777_p6 = scmp.lt.s32.totalorder %s959_s12, %s959_s12 }
 0x1d5   : > { %p8770_p3 = scmp.ne.s32.totalorder %s959_s12, %s8769_s1  ;;  %p8778_p4 = scmp.lt.s32.totalorder %s8769_s1, %s8769_s1 }
 0x1d7   : > { %p8772_p1 = pnand %p8770_p3, %p12190_p11  ;;  %p8779_p13 = por %p8778_p4, %p8777_p6 }
 0x1d9   : > { %p8773_p5 = pneg %p8772_p1 }
 0x1db   : > { %p8780_p2 = pnand %p8779_p13, %p8773_p5 }
 0x1dd   : > { %8783 = shalt.err (!%p8780_p2)
}
 0x1de   : > { %p12191_p7 = scmp.ne.s32.totalorder %s12179_s18, 0  ;;  %s12192_s22 = sld [smem:[#allocation74_spill]] }
 0x1df   : > { %s9365_s26 = smov [#allocation10]   ;;  %s9366_s21 = smov [#allocation13]  }
 0x1e0   : > { %8080 = dma.hbm_to_vmem [thread:$0]  (!%p12191_p7), %s12163_s5, 128, %s959_s12, [#allocation6]  }
 0x1e1   : > { %s997_s17 = sshll.u32 %s9365_s26, 4  ;;  %s1019_s23 = sshll.u32 %s9366_s21, 4  ;;  %s998_s17 = int_to_ptr.vmem [resolvable:$true] %s997_s17  ;;  %s1020_s23 = int_to_ptr.vmem [resolvable:$true] %s1019_s23 }
 0x1e4   : > { %s8784_s19 = scalar_lea.hbm %s12192_s22, 32 }
 0x1e5   : > { %p8785_p8 = scmp.ne.s32.totalorder %s12192_s22, %s8784_s19  ;;  %p8791_p9 = scmp.lt.u32.totalorder %s8784_s19, %s12192_s22 }
 0x1e7   : > { %p8787_p10 = pnand %p8785_p8, %p12190_p11 }
 0x1e9   : > { %p8788_p12 = pneg %p8787_p10 }
 0x1eb   : > { %p8793_p2 = pnand %p8791_p9, %p8788_p12 }
 0x1ed   : > { %8796 = shalt.err (!%p8793_p2)
}
 0x1ee   : > { %s8797_s16 = scalar_lea.vmem %s998_s17, 32  ;;  %p8805_p5 = scmp.lt.s32.totalorder %s998_s17, %s998_s17 }
 0x1ef   : > { %p8798_p0 = scmp.ne.s32.totalorder %s998_s17, %s8797_s16  ;;  %p8806_p6 = scmp.lt.s32.totalorder %s8797_s16, %s8797_s16 }
 0x1f1   : > { %p8800_p3 = pnand %p8798_p0, %p12190_p11  ;;  %p8807_p4 = por %p8806_p6, %p8805_p5 }
 0x1f3   : > { %p8801_p1 = pneg %p8800_p3 }
 0x1f5   : > { %p8808_p13 = pnand %p8807_p4, %p8801_p1 }
 0x1f7   : > { %8811 = shalt.err (!%p8808_p13)
}
 0x1f8   : > { %s12193_s12 = sld [smem:[#allocation76_spill]] }
 0x1f9   : > { %8086 = dma.hbm_to_vmem [thread:$0]  (!%p12191_p7), %s12192_s22, 32, %s998_s17, [#allocation9]  }
 0x1fe   : > { %s8812_s7 = scalar_lea.hbm %s12193_s12, 32 }
 0x1ff   : > { %p8813_p8 = scmp.ne.s32.totalorder %s12193_s12, %s8812_s7  ;;  %p8819_p9 = scmp.lt.u32.totalorder %s8812_s7, %s12193_s12 }
 0x201   : > { %p8815_p10 = pnand %p8813_p8, %p12190_p11 }
 0x203   : > { %p8816_p12 = pneg %p8815_p10 }
 0x205   : > { %p8821_p2 = pnand %p8819_p9, %p8816_p12 }
 0x207   : > { %8824 = shalt.err (!%p8821_p2)
}
 0x208   : > { %s8825_s0 = scalar_lea.vmem %s1020_s23, 32  ;;  %p8833_p5 = scmp.lt.s32.totalorder %s1020_s23, %s1020_s23 }
 0x209   : > { %p8826_p0 = scmp.ne.s32.totalorder %s1020_s23, %s8825_s0  ;;  %p8834_p6 = scmp.lt.s32.totalorder %s8825_s0, %s8825_s0 }
 0x20b   : > { %p8828_p3 = pnand %p8826_p0, %p12190_p11  ;;  %p8835_p4 = por %p8834_p6, %p8833_p5 }
 0x20d   : > { %p8829_p1 = pneg %p8828_p3 }
 0x20f   : > { %p8836_p13 = pnand %p8835_p4, %p8829_p1 }
 0x211   : > { %8839 = shalt.err (!%p8836_p13)
}
 0x212   : > { %s12194_s29 = sld [smem:[#allocation87_spill]]  ;;  %s9367_s24 = smov [#allocation31]  }
 0x213   : > { %8092 = dma.hbm_to_vmem [thread:$0]  (!%p12191_p7), %s12193_s12, 32, %s1020_s23, [#allocation12]  }
 0x214   : > { %s1041_s30 = sshll.u32 %s9367_s24, 4  ;;  %s9368_s1 = smov [#allocation34]   ;;  %s1042_s30 = int_to_ptr.vmem [resolvable:$true] %s1041_s30 }
 0x215   : > { %s1065_s26 = sshll.u32 %s9368_s1, 4  ;;  %s1066_s26 = int_to_ptr.vmem [resolvable:$true] %s1065_s26 }
 0x218   : > { %s8840_s17 = scalar_lea.hbm %s12194_s29, 32 }
 0x219   : > { %p8841_p8 = scmp.ne.s32.totalorder %s12194_s29, %s8840_s17  ;;  %p8847_p9 = scmp.lt.u32.totalorder %s8840_s17, %s12194_s29 }
 0x21b   : > { %p8843_p10 = pnand %p8841_p8, %p12190_p11 }
 0x21d   : > { %p8844_p12 = pneg %p8843_p10 }
 0x21f   : > { %p8849_p2 = pnand %p8847_p9, %p8844_p12 }
 0x221   : > { %8852 = shalt.err (!%p8849_p2)
}
 0x222   : > { %s8853_s21 = scalar_lea.vmem %s1042_s30, 32  ;;  %p8861_p5 = scmp.lt.s32.totalorder %s1042_s30, %s1042_s30 }
 0x223   : > { %p8854_p0 = scmp.ne.s32.totalorder %s1042_s30, %s8853_s21  ;;  %p8862_p6 = scmp.lt.s32.totalorder %s8853_s21, %s8853_s21 }
 0x225   : > { %p8856_p3 = pnand %p8854_p0, %p12190_p11  ;;  %p8863_p4 = por %p8862_p6, %p8861_p5 }
 0x227   : > { %p8857_p1 = pneg %p8856_p3 }
 0x229   : > { %p8864_p13 = pnand %p8863_p4, %p8857_p1 }
 0x22b   : > { %8867 = shalt.err (!%p8864_p13)
}
 0x22c   : > { %s12195_s23 = sld [smem:[#allocation89_spill]] }
 0x22d   : > { %8098 = dma.hbm_to_vmem [thread:$0]  (!%p12191_p7), %s12194_s29, 32, %s1042_s30, [#allocation30]  }
 0x232   : > { %s8868_s19 = scalar_lea.hbm %s12195_s23, 4096 }
 0x233   : > { %p8869_p8 = scmp.ne.s32.totalorder %s12195_s23, %s8868_s19  ;;  %p8875_p9 = scmp.lt.u32.totalorder %s8868_s19, %s12195_s23 }
 0x235   : > { %p8871_p10 = pnand %p8869_p8, %p12190_p11 }
 0x237   : > { %p8872_p12 = pneg %p8871_p10 }
 0x239   : > { %p8877_p2 = pnand %p8875_p9, %p8872_p12 }
 0x23b   : > { %8880 = shalt.err (!%p8877_p2)
}
 0x23c   : > { %s8881_s16 = scalar_lea.vmem %s1066_s26, 4096  ;;  %p8889_p5 = scmp.lt.s32.totalorder %s1066_s26, %s1066_s26 }
 0x23d   : > { %p8882_p0 = scmp.ne.s32.totalorder %s1066_s26, %s8881_s16  ;;  %p8890_p6 = scmp.lt.s32.totalorder %s8881_s16, %s8881_s16 }
 0x23f   : > { %p8884_p3 = pnand %p8882_p0, %p12190_p11  ;;  %p8891_p4 = por %p8890_p6, %p8889_p5 }
 0x241   : > { %p8885_p1 = pneg %p8884_p3 }
 0x243   : > { %p8892_p13 = pnand %p8891_p4, %p8885_p1 }
 0x245   : > { %8895 = shalt.err (!%p8892_p13)
}
 0x246   : > { %s9369_s7 = smov 128   ;;  %s12196_s0 = sld [smem:[#allocation91_spill]] }
 0x247   : > { %s9370_s30 = smov 8   ;;  %s9371_s1 = smov [#allocation37]  }
 0x248   : > { %8104 = dma.hbm_to_vmem [thread:$0]  (!%p12191_p7), %s12195_s23, 4096, %s1066_s26, [#allocation33], %s9369_s7, %s9369_s7, %s9370_s30  }
 0x249   : > { %s1090_s17 = sshll.u32 %s9371_s1, 4  ;;  %s9372_s21 = smov [#allocation40]   ;;  %s1091_s17 = int_to_ptr.vmem [resolvable:$true] %s1090_s17 }
 0x24a   : > { %s1111_s19 = sshll.u32 %s9372_s21, 4  ;;  %s1112_s19 = int_to_ptr.vmem [resolvable:$true] %s1111_s19 }
 0x24c   : > { %s12197_s24 = smov %s12196_s0  ;;  %s8896_s16 = scalar_lea.hbm %s12196_s0, 16 }
 0x24d   : > { %p8897_p8 = scmp.ne.s32.totalorder %s12197_s24, %s8896_s16  ;;  %p8903_p9 = scmp.lt.u32.totalorder %s8896_s16, %s12197_s24 }
 0x24f   : > { %p8899_p10 = pnand %p8897_p8, %p12190_p11 }
 0x251   : > { %p8900_p12 = pneg %p8899_p10 }
 0x253   : > { %p8905_p2 = pnand %p8903_p9, %p8900_p12 }
 0x255   : > { %8908 = shalt.err (!%p8905_p2)
}
 0x256   : > { %s8909_s27 = scalar_lea.vmem %s1091_s17, 16  ;;  %s8916_s26 = scalar_lea.vmem %s1091_s17, 32 }
 0x257   : > { %p8910_p0 = scmp.ne.s32.totalorder %s1091_s17, %s8909_s27  ;;  %p8917_p5 = scmp.lt.s32.totalorder %s1091_s17, %s1091_s17 }
 0x258   : > { %p8918_p6 = scmp.lt.s32.totalorder %s8916_s26, %s8909_s27 }
 0x259   : > { %p8912_p3 = pnand %p8910_p0, %p12190_p11 }
 0x25a   : > { %p8919_p4 = por %p8918_p6, %p8917_p5 }
 0x25b   : > { %p8913_p1 = pneg %p8912_p3 }
 0x25d   : > { %p8920_p13 = pnand %p8919_p4, %p8913_p1 }
 0x25f   : > { %8923 = shalt.err (!%p8920_p13)
}
 0x260   : > { %s12198_s0 = sld [smem:[#allocation93_spill]] }
 0x261   : > { %8110 = dma.hbm_to_vmem [thread:$0]  (!%p12191_p7), %s12197_s24, 16, %s1091_s17, [#allocation36]  }
 0x266   : > { %s12199_s21 = smov %s12198_s0  ;;  %s8924_s1 = scalar_lea.hbm %s12198_s0, 2048 }
 0x267   : > { %p8925_p8 = scmp.ne.s32.totalorder %s12199_s21, %s8924_s1  ;;  %p8931_p9 = scmp.lt.u32.totalorder %s8924_s1, %s12199_s21 }
 0x269   : > { %p8927_p10 = pnand %p8925_p8, %p12190_p11 }
 0x26b   : > { %p8928_p12 = pneg %p8927_p10 }
 0x26d   : > { %p8933_p2 = pnand %p8931_p9, %p8928_p12 }
 0x26f   : > { %8936 = shalt.err (!%p8933_p2)
}
 0x270   : > { %s8937_s27 = scalar_lea.vmem %s1112_s19, 2048  ;;  %p8945_p5 = scmp.lt.s32.totalorder %s1112_s19, %s1112_s19 }
 0x271   : > { %p8938_p0 = scmp.ne.s32.totalorder %s1112_s19, %s8937_s27  ;;  %p8946_p6 = scmp.lt.s32.totalorder %s8937_s27, %s8937_s27 }
 0x273   : > { %p8940_p3 = pnand %p8938_p0, %p12190_p11  ;;  %p8947_p4 = por %p8946_p6, %p8945_p5 }
 0x275   : > { %p8941_p1 = pneg %p8940_p3 }
 0x277   : > { %p8948_p13 = pnand %p8947_p4, %p8941_p1 }
 0x279   : > { %8951 = shalt.err (!%p8948_p13)
}
 0x27a   : > { %s12200_s17 = sld [smem:[#allocation95_spill]]  ;;  %s9373_s16 = smov [#allocation43]  }
 0x27b   : > { %8116 = dma.hbm_to_vmem [thread:$0]  (!%p12191_p7), %s12199_s21, 2048, %s1112_s19, [#allocation39], %s9369_s7, %s9369_s7, %s9370_s30  }
 0x27c   : > { %s1136_s26 = sshll.u32 %s9373_s16, 4  ;;  %s9374_s0 = smov [#allocation46]   ;;  %s1137_s26 = int_to_ptr.vmem [resolvable:$true] %s1136_s26 }
 0x27d   : > { %s1157_s1 = sshll.u32 %s9374_s0, 4  ;;  %s1158_s1 = int_to_ptr.vmem [resolvable:$true] %s1157_s1 }
 0x280   : > { %s8952_s27 = scalar_lea.hbm %s12200_s17, 16 }
 0x281   : > { %p8953_p8 = scmp.ne.s32.totalorder %s12200_s17, %s8952_s27  ;;  %p8959_p9 = scmp.lt.u32.totalorder %s8952_s27, %s12200_s17 }
 0x283   : > { %p8955_p10 = pnand %p8953_p8, %p12190_p11 }
 0x285   : > { %p8956_p12 = pneg %p8955_p10 }
 0x287   : > { %p8961_p2 = pnand %p8959_p9, %p8956_p12 }
 0x289   : > { %8964 = shalt.err (!%p8961_p2)
}
 0x28a   : > { %s8965_s20 = scalar_lea.vmem %s1137_s26, 16  ;;  %s8972_s19 = scalar_lea.vmem %s1137_s26, 32 }
 0x28b   : > { %p8966_p0 = scmp.ne.s32.totalorder %s1137_s26, %s8965_s20  ;;  %p8973_p5 = scmp.lt.s32.totalorder %s1137_s26, %s1137_s26 }
 0x28c   : > { %p8974_p6 = scmp.lt.s32.totalorder %s8972_s19, %s8965_s20 }
 0x28d   : > { %p8968_p3 = pnand %p8966_p0, %p12190_p11 }
 0x28e   : > { %p8975_p4 = por %p8974_p6, %p8973_p5 }
 0x28f   : > { %p8969_p1 = pneg %p8968_p3 }
 0x291   : > { %p8976_p13 = pnand %p8975_p4, %p8969_p1 }
 0x293   : > { %8979 = shalt.err (!%p8976_p13)
}
 0x294   : > { %s12201_s16 = sld [smem:[#allocation97_spill]] }
 0x295   : > { %8122 = dma.hbm_to_vmem [thread:$0]  (!%p12191_p7), %s12200_s17, 16, %s1137_s26, [#allocation42]  }
 0x29a   : > { %s8980_s0 = scalar_lea.hbm %s12201_s16, 2048 }
 0x29b   : > { %p8981_p8 = scmp.ne.s32.totalorder %s12201_s16, %s8980_s0  ;;  %p8987_p9 = scmp.lt.u32.totalorder %s8980_s0, %s12201_s16 }
 0x29d   : > { %p8983_p10 = pnand %p8981_p8, %p12190_p11 }
 0x29f   : > { %p8984_p12 = pneg %p8983_p10 }
 0x2a1   : > { %p8989_p2 = pnand %p8987_p9, %p8984_p12 }
 0x2a3   : > { %8992 = shalt.err (!%p8989_p2)
}
 0x2a4   : > { %s8993_s20 = scalar_lea.vmem %s1158_s1, 2048  ;;  %p9001_p5 = scmp.lt.s32.totalorder %s1158_s1, %s1158_s1 }
 0x2a5   : > { %p8994_p0 = scmp.ne.s32.totalorder %s1158_s1, %s8993_s20  ;;  %p9002_p6 = scmp.lt.s32.totalorder %s8993_s20, %s8993_s20 }
 0x2a7   : > { %p8996_p3 = pnand %p8994_p0, %p12190_p11  ;;  %p9003_p4 = por %p9002_p6, %p9001_p5 }
 0x2a9   : > { %p8997_p1 = pneg %p8996_p3 }
 0x2ab   : > { %p9004_p13 = pnand %p9003_p4, %p8997_p1 }
 0x2ad   : > { %9007 = shalt.err (!%p9004_p13)
}
 0x2ae   : > { %8128 = dma.hbm_to_vmem [thread:$0]  (!%p12191_p7), %s12201_s16, 2048, %s1158_s1, [#allocation45], %s9369_s7, %s9369_s7, %s9370_s30  }
 0x2af   : > { %s9375_s26 = smov [#allocation49]   ;;  %s6619_s19 = sshll.u32 %s9761_s3, 3 }
 0x2b0   : > { %s1182_s27 = sshll.u32 %s9375_s26, 4  ;;  %s9008_s0 = scalar_lea.hbm %s12162_s14, 16  ;;  %s1183_s27 = int_to_ptr.vmem [resolvable:$true] %s1182_s27 }
 0x2b1   : > { %p9009_p8 = scmp.ne.s32.totalorder %s12162_s14, %s9008_s0  ;;  %p9015_p9 = scmp.lt.u32.totalorder %s9008_s0, %s12162_s14 }
 0x2b3   : > { %p9011_p10 = pnand %p9009_p8, %p12190_p11 }
 0x2b5   : > { %p9012_p12 = pneg %p9011_p10 }
 0x2b7   : > { %p9017_p2 = pnand %p9015_p9, %p9012_p12 }
 0x2b9   : > { %9020 = shalt.err (!%p9017_p2)
}
 0x2ba   : > { %s9021_s20 = scalar_lea.vmem %s1183_s27, 16  ;;  %s9028_s5 = scalar_lea.vmem %s1183_s27, 32 }
 0x2bb   : > { %p9022_p0 = scmp.ne.s32.totalorder %s1183_s27, %s9021_s20  ;;  %p9029_p5 = scmp.lt.s32.totalorder %s1183_s27, %s1183_s27 }
 0x2bc   : > { %p9030_p6 = scmp.lt.s32.totalorder %s9028_s5, %s9021_s20 }
 0x2bd   : > { %p9024_p3 = pnand %p9022_p0, %p12190_p11 }
 0x2be   : > { %p9031_p4 = por %p9030_p6, %p9029_p5 }
 0x2bf   : > { %p9025_p1 = pneg %p9024_p3 }
 0x2c1   : > { %p9032_p13 = pnand %p9031_p4, %p9025_p1 }
 0x2c3   : > { %9035 = shalt.err (!%p9032_p13)
}
 0x2c4   : > { %s12202_s7 = sld [smem:[#allocation78_spill]]  ;;  %s6811_s30 = sshll.u32 %s9306_s4, 7 }
 0x2c5   : > { %8134 = dma.hbm_to_vmem [thread:$0]  (!%p12191_p7), %s12162_s14, 16, %s1183_s27, [#allocation48]  }
 0x2c6   : > { %s1221_s1 = scalar_lea.vmem [#allocation16], %s6619_s19  ;;  %p12203_p8 = scmp.ne.s32.totalorder %s12185_s8, 0 }
 0x2c7   : > { %s1229_s28 = sshll.u32 %s1221_s1, 4  ;;  %s1230_s28 = int_to_ptr.vmem [resolvable:$true] %s1229_s28 }
 0x2ca   : > { %s1227_s26 = scalar_lea.hbm %s12202_s7, %s6811_s30  ;;  %s9041_s5 = scalar_lea.hbm %s12202_s7, 256 }
 0x2cb   : > { %s9036_s0 = scalar_lea.hbm %s1227_s26, 128  ;;  %p9042_p9 = scmp.lt.u32.totalorder %s1227_s26, %s12202_s7 }
 0x2cc   : > { %p9037_p11 = scmp.ne.s32.totalorder %s1227_s26, %s9036_s0  ;;  %p9043_p2 = scmp.lt.u32.totalorder %s9041_s5, %s9036_s0 }
 0x2cd   : > { %p9045_p3 = scmp.lt.u32.totalorder %s9036_s0, %s1227_s26 }
 0x2ce   : > { %p9039_p10 = pnand %p9037_p11, %p12203_p8  ;;  %p9044_p0 = por %p9043_p2, %p9042_p9 }
 0x2d0   : > { %p9040_p12 = pneg %p9039_p10  ;;  %p9046_p1 = por %p9045_p3, %p9044_p0 }
 0x2d2   : > { %p9047_p5 = pnand %p9046_p1, %p9040_p12 }
 0x2d4   : > { %9050 = shalt.err (!%p9047_p5)
}
 0x2d5   : > { %s9051_s18 = scalar_lea.vmem %s1230_s28, 128  ;;  %s9376_s27 = smov [#allocation16]  }
 0x2d6   : > { %p9052_p7 = scmp.ne.s32.totalorder %s1230_s28, %s9051_s18  ;;  %s9056_s19 = sshll.u32 %s9376_s27, 4  ;;  %s9057_s19 = int_to_ptr.vmem [resolvable:$false] %s9056_s19 }
 0x2d7   : > { %s9058_s20 = scalar_lea.vmem %s9057_s19, 256  ;;  %p9059_p13 = scmp.lt.s32.totalorder %s1230_s28, %s9057_s19 }
 0x2d8   : > { %p9054_p6 = pnand %p9052_p7, %p12203_p8  ;;  %p9060_p11 = scmp.lt.s32.totalorder %s9058_s20, %s9051_s18 }
 0x2da   : > { %p9055_p4 = pneg %p9054_p6  ;;  %p9061_p10 = por %p9060_p11, %p9059_p13 }
 0x2dc   : > { %p9062_p2 = pnand %p9061_p10, %p9055_p4 }
 0x2de   : > { %9065 = shalt.err (!%p9062_p2)
}
 0x2df   : > { %p12204_p9 = scmp.ne.s32.totalorder %s12184_s9, 0  ;;  %s12205_s30 = scalar_lea.sflag [#allocation15], %s9758_s13 }
 0x2e0   : > { %s12206_s1 = sld [smem:[#allocation80_spill]]  ;;  %s6625_s0 = sshll.u32 %s9761_s3, 2 }
 0x2e1   : > { %8141 = dma.hbm_to_vmem [thread:$0]  (!%p12204_p9), %s1227_s26, 128, %s1230_s28, %s12205_s30  }
 0x2e2   : > { %s6813_s27 = sshll.u32 %s9306_s4, 6  ;;  %s1259_s18 = scalar_lea.vmem [#allocation19], %s6625_s0 }
 0x2e3   : > { %s1267_s19 = sshll.u32 %s1259_s18, 4  ;;  %s6631_s20 = sshll.u32 %s9761_s3, 1  ;;  %s1268_s19 = int_to_ptr.vmem [resolvable:$true] %s1267_s19 }
 0x2e6   : > { %s12207_s5 = smov %s12206_s1  ;;  %s10038_s7 = scalar_lea.hbm %s12206_s1, %s6813_s27 }
 0x2e7   : > { %s9066_s12 = scalar_lea.hbm %s10038_s7, 64  ;;  %s9071_s14 = scalar_lea.hbm %s12207_s5, 128 }
 0x2e8   : > { %p9067_p12 = scmp.ne.s32.totalorder %s10038_s7, %s9066_s12  ;;  %p9072_p1 = scmp.lt.u32.totalorder %s10038_s7, %s12207_s5 }
 0x2e9   : > { %p9073_p5 = scmp.lt.u32.totalorder %s9071_s14, %s9066_s12  ;;  %p9075_p6 = scmp.lt.u32.totalorder %s9066_s12, %s10038_s7 }
 0x2ea   : > { %p9069_p0 = pnand %p9067_p12, %p12203_p8 }
 0x2eb   : > { %p9074_p7 = por %p9073_p5, %p9072_p1 }
 0x2ec   : > { %p9070_p3 = pneg %p9069_p0 }
 0x2ed   : > { %p9076_p4 = por %p9075_p6, %p9074_p7 }
 0x2ef   : > { %p9077_p13 = pnand %p9076_p4, %p9070_p3 }
 0x2f1   : > { %9080 = shalt.err (!%p9077_p13)
}
 0x2f2   : > { %s9081_s28 = scalar_lea.vmem %s1268_s19, 64  ;;  %s9377_s26 = smov [#allocation19]  }
 0x2f3   : > { %p9082_p11 = scmp.ne.s32.totalorder %s1268_s19, %s9081_s28  ;;  %s9086_s30 = sshll.u32 %s9377_s26, 4  ;;  %s9087_s30 = int_to_ptr.vmem [resolvable:$false] %s9086_s30 }
 0x2f4   : > { %s9088_s1 = scalar_lea.vmem %s9087_s30, 128  ;;  %p9089_p12 = scmp.lt.s32.totalorder %s1268_s19, %s9087_s30 }
 0x2f5   : > { %p9084_p10 = pnand %p9082_p11, %p12203_p8  ;;  %p9090_p0 = scmp.lt.s32.totalorder %s9088_s1, %s9081_s28 }
 0x2f7   : > { %p9085_p2 = pneg %p9084_p10  ;;  %p9091_p9 = por %p9090_p0, %p9089_p12 }
 0x2f9   : > { %p9092_p1 = pnand %p9091_p9, %p9085_p2 }
 0x2fb   : > { %9095 = shalt.err (!%p9092_p1)
}
 0x2fc   : > { %p12208_p5 = scmp.ne.s32.totalorder %s12184_s9, 0  ;;  %s12209_s14 = scalar_lea.sflag [#allocation18], %s9758_s13 }
 0x2fd   : > { %s12210_s12 = sld [smem:[#allocation82_spill]]  ;;  %s6815_s0 = sshll.u32 %s9306_s4, 5 }
 0x2fe   : > { %8147 = dma.hbm_to_vmem [thread:$0]  (!%p12208_p5), %s10038_s7, 64, %s1268_s19, %s12209_s14  }
 0x2ff   : > { %s1299_s27 = scalar_lea.vmem [#allocation22], %s6631_s20 }
 0x300   : > { %s1307_s18 = sshll.u32 %s1299_s27, 4  ;;  %s1308_s18 = int_to_ptr.vmem [resolvable:$true] %s1307_s18 }
 0x303   : > { %s1305_s28 = scalar_lea.hbm %s12210_s12, %s6815_s0  ;;  %s9101_s30 = scalar_lea.hbm %s12210_s12, 64 }
 0x304   : > { %s9096_s26 = scalar_lea.hbm %s1305_s28, 32  ;;  %p9102_p6 = scmp.lt.u32.totalorder %s1305_s28, %s12210_s12 }
 0x305   : > { %p9097_p9 = scmp.ne.s32.totalorder %s1305_s28, %s9096_s26  ;;  %p9103_p4 = scmp.lt.u32.totalorder %s9101_s30, %s9096_s26 }
 0x306   : > { %p9105_p11 = scmp.lt.u32.totalorder %s9096_s26, %s1305_s28 }
 0x307   : > { %p9099_p3 = pnand %p9097_p9, %p12203_p8  ;;  %p9104_p13 = por %p9103_p4, %p9102_p6 }
 0x309   : > { %p9100_p7 = pneg %p9099_p3  ;;  %p9106_p10 = por %p9105_p11, %p9104_p13 }
 0x30b   : > { %p9107_p2 = pnand %p9106_p10, %p9100_p7 }
 0x30d   : > { %9110 = shalt.err (!%p9107_p2)
}
 0x30e   : > { %s9111_s7 = scalar_lea.vmem %s1308_s18, 32  ;;  %s9378_s19 = smov [#allocation22]  }
 0x30f   : > { %p9112_p12 = scmp.ne.s32.totalorder %s1308_s18, %s9111_s7  ;;  %s9116_s1 = sshll.u32 %s9378_s19, 4  ;;  %s9117_s1 = int_to_ptr.vmem [resolvable:$false] %s9116_s1 }
 0x310   : > { %s9118_s14 = scalar_lea.vmem %s9117_s1, 64  ;;  %p9119_p9 = scmp.lt.s32.totalorder %s1308_s18, %s9117_s1 }
 0x311   : > { %p9114_p0 = pnand %p9112_p12, %p12203_p8  ;;  %p9120_p3 = scmp.lt.s32.totalorder %s9118_s14, %s9111_s7 }
 0x313   : > { %p9115_p1 = pneg %p9114_p0  ;;  %p9121_p5 = por %p9120_p3, %p9119_p9 }
 0x315   : > { %p9122_p4 = pnand %p9121_p5, %p9115_p1 }
 0x317   : > { %9125 = shalt.err (!%p9122_p4)
}
 0x318   : > { %p12211_p6 = scmp.ne.s32.totalorder %s12184_s9, 0  ;;  %s12212_s27 = scalar_lea.sflag [#allocation21], %s9758_s13 }
 0x319   : > { %s12213_s26 = sld [smem:[#allocation85_spill]]  ;;  %s12214_s30 = sld [smem:[#allocation84_spill]] }
 0x31a   : > { %8153 = dma.hbm_to_vmem [thread:$0]  (!%p12211_p6), %s1305_s28, 32, %s1308_s18, %s12212_s27  }
 0x31b   : > { %s7973_s19 = smul.u32 6, %s9761_s3  ;;  %s1379_s14 = scalar_lea.vmem [#allocation28], %s6631_s20 }
 0x31c   : > { %s7974_s1 = smul.u32 96, %s9306_s4  ;;  %s1387_s5 = sshll.u32 %s1379_s14, 4  ;;  %s10084_s5 = int_to_ptr.vmem [resolvable:$true] %s1387_s5 }
 0x31d   : > { %s1339_s16 = scalar_lea.vmem [#allocation25], %s7973_s19 }
 0x31e   : > { %s1347_s17 = sshll.u32 %s1339_s16, 4  ;;  %s1348_s17 = int_to_ptr.vmem [resolvable:$true] %s1347_s17 }
 0x31f   : > { %s10077_s7 = scalar_lea.hbm %s12213_s26, %s6815_s0  ;;  %s10082_s12 = scalar_lea.hbm %s12214_s30, %s7974_s1 }
 0x320   : > { %s9126_s18 = scalar_lea.hbm %s10082_s12, 96  ;;  %s9131_s4 = scalar_lea.hbm %s12214_s30, 192 }
 0x321   : > { %p9127_p5 = scmp.ne.s32.totalorder %s10082_s12, %s9126_s18  ;;  %p9132_p11 = scmp.lt.u32.totalorder %s10082_s12, %s12214_s30 }
 0x322   : > { %p9133_p10 = scmp.lt.u32.totalorder %s9131_s4, %s9126_s18  ;;  %p9135_p12 = scmp.lt.u32.totalorder %s9126_s18, %s10082_s12 }
 0x323   : > { %p9129_p7 = pnand %p9127_p5, %p12203_p8 }
 0x324   : > { %p9134_p2 = por %p9133_p10, %p9132_p11 }
 0x325   : > { %p9130_p13 = pneg %p9129_p7 }
 0x326   : > { %p9136_p0 = por %p9135_p12, %p9134_p2 }
 0x328   : > { %p9137_p1 = pnand %p9136_p0, %p9130_p13 }
 0x32a   : > { %9140 = shalt.err (!%p9137_p1)
}
 0x32b   : > { %s9141_s3 = scalar_lea.vmem %s1348_s17, 96  ;;  %s9379_s16 = smov [#allocation25]  }
 0x32c   : > { %p9142_p9 = scmp.ne.s32.totalorder %s1348_s17, %s9141_s3  ;;  %s9146_s20 = sshll.u32 %s9379_s16, 4  ;;  %s9147_s20 = int_to_ptr.vmem [resolvable:$false] %s9146_s20 }
 0x32d   : > { %s9148_s0 = scalar_lea.vmem %s9147_s20, 192  ;;  %p9149_p5 = scmp.lt.s32.totalorder %s1348_s17, %s9147_s20 }
 0x32e   : > { %p9144_p3 = pnand %p9142_p9, %p12203_p8  ;;  %p9150_p7 = scmp.lt.s32.totalorder %s9148_s0, %s9141_s3 }
 0x330   : > { %p9145_p4 = pneg %p9144_p3  ;;  %p9151_p6 = por %p9150_p7, %p9149_p5 }
 0x332   : > { %p9152_p10 = pnand %p9151_p6, %p9145_p4 }
 0x334   : > { %9155 = shalt.err (!%p9152_p10)
}
 0x335   : > { %p12215_p11 = scmp.ne.s32.totalorder %s12184_s9, 0  ;;  %s12216_s28 = scalar_lea.sflag [#allocation24], %s9758_s13 }
 0x336   : > { %s9156_s27 = scalar_lea.hbm %s10077_s7, 32  ;;  %s9161_s19 = scalar_lea.hbm %s12213_s26, 64 }
 0x337   : > { %8159 = dma.hbm_to_vmem [thread:$0]  (!%p12215_p11), %s10082_s12, 96, %s1348_s17, %s12216_s28  }
 0x338   : > { %p9157_p13 = scmp.ne.s32.totalorder %s10077_s7, %s9156_s27  ;;  %p9162_p6 = scmp.lt.u32.totalorder %s10077_s7, %s12213_s26 }
 0x339   : > { %p9163_p0 = scmp.lt.u32.totalorder %s9161_s19, %s9156_s27  ;;  %p9165_p9 = scmp.lt.u32.totalorder %s9156_s27, %s10077_s7 }
 0x33a   : > { %p9159_p2 = pnand %p9157_p13, %p12203_p8 }
 0x33b   : > { %p9164_p1 = por %p9163_p0, %p9162_p6 }
 0x33c   : > { %p9160_p12 = pneg %p9159_p2 }
 0x33d   : > { %p9166_p3 = por %p9165_p9, %p9164_p1 }
 0x33f   : > { %p9167_p4 = pnand %p9166_p3, %p9160_p12 }
 0x341   : > { %9170 = shalt.err (!%p9167_p4)
}
 0x342   : > { %s9171_s1 = scalar_lea.vmem %s10084_s5, 32  ;;  %s9380_s17 = smov [#allocation28]  }
 0x343   : > { %p9172_p5 = scmp.ne.s32.totalorder %s10084_s5, %s9171_s1  ;;  %s9176_s12 = sshll.u32 %s9380_s17, 4  ;;  %s9177_s12 = int_to_ptr.vmem [resolvable:$false] %s9176_s12 }
 0x344   : > { %s9178_s14 = scalar_lea.vmem %s9177_s12, 64  ;;  %p9179_p13 = scmp.lt.s32.totalorder %s10084_s5, %s9177_s12 }
 0x345   : > { %p9174_p7 = pnand %p9172_p5, %p12203_p8  ;;  %p9180_p2 = scmp.lt.s32.totalorder %s9178_s14, %s9171_s1 }
 0x347   : > { %p9175_p10 = pneg %p9174_p7  ;;  %p9181_p6 = por %p9180_p2, %p9179_p13 }
 0x349   : > { %p9182_p0 = pnand %p9181_p6, %p9175_p10 }
 0x34b   : > { %9185 = shalt.err (!%p9182_p0)
}
 0x34c   : > { %s12217_s18 = scalar_lea.sflag [#allocation27], %s9758_s13  ;;  %p12218_p12 = scmp.ne.s32.totalorder %s12178_s11, 0 }
 0x34d   : > { %8165 = dma.hbm_to_vmem [thread:$0]  (!%p12215_p11), %s10077_s7, 32, %s10084_s5, %s12217_s18  }
 0x34e   : > { %1396 = sbr.rel (%p12218_p12) target bundleno = 7106 (0x1bc2), region = 164 }
 0x355   : > { %p12219_p8 = scmp.eq.s32.totalorder %s9598_s10, 0 }
 0x357   : > { %9229 = dma.done.wait (%p12219_p8), [#allocation6], 128   ;;  %p12220_p1 = pmov %p12219_p8 }
 0x359   : > { %9231 = vsyncadd (%p12220_p1), [#allocation6], 4294967168  ;;  %p12221_p9 = pmov %p12220_p1 }
 0x35a   : > { %p12222_p3 = pmov %p12220_p1 }
 0x35b   : > { %9233 = dma.done.wait (%p12221_p9), [#allocation9], 544  }
 0x35c   : > { %9235 = vsyncadd (%p12222_p3), [#allocation9], 4294966752  ;;  %p12223_p4 = pmov %p12220_p1 }
 0x35d   : > { %p12224_p11 = pmov %p12220_p1 }
 0x35e   : > { %9237 = dma.done.wait (%p12223_p4), [#allocation12], 64  }
 0x35f   : > { %9239 = vsyncadd (%p12224_p11), [#allocation12], 4294967232  ;;  %s10135_s9 = sand.u32 1, %s9598_s10   ;;  %s10138_s11 = sand.u32 1, %s9298_s15  }
 0x360   : > { %s6648_s13 = sshll.u32 %s10138_s11, 11  ;;  %s1419_s8 = scalar_lea.sflag [#allocation15], %s10135_s9 }
 0x361   : > { %s10142_s5 = scalar_lea.vmem [#allocation14], %s6648_s13  ;;  %p12225_p5 = scmp.ne.s32.totalorder %s12183_s6, 0 }
 0x363   : > { %9241 = dma.done.wait (%p12225_p5), %s1419_s8, 32896  }
 0x364   : > { %9243 = vsyncadd (%p12225_p5), %s1419_s8, 4294934400  ;;  %s6649_s7 = sshll.u32 %s10138_s11, 3  ;;  %s6650_s4 = sshll.u32 %s10138_s11, 5 }
 0x365   : > { %s10150_s3 = scalar_lea.vmem [#allocation16], %s6649_s7  ;;  %s1437_s16 = scalar_lea.sflag [#allocation18], %s10135_s9 }
 0x366   : > { %s10153_s20 = scalar_lea.vmem [#allocation17], %s6650_s4 }
 0x367   : > { %9245 = dma.done.wait (%p12225_p5), %s1437_s16, 576  }
 0x368   : > { %9247 = vsyncadd (%p12225_p5), %s1437_s16, 4294966720  ;;  %s6651_s0 = sshll.u32 %s10138_s11, 2  ;;  %s6652_s28 = sshll.u32 %s10138_s11, 10 }
 0x369   : > { %s10161_s27 = scalar_lea.vmem [#allocation19], %s6651_s0  ;;  %s1455_s19 = scalar_lea.sflag [#allocation21], %s10135_s9 }
 0x36a   : > { %s10164_s1 = scalar_lea.vmem [#allocation20], %s6652_s28 }
 0x36b   : > { %9249 = dma.done.wait (%p12225_p5), %s1455_s19, 16416  }
 0x36c   : > { %9251 = vsyncadd (%p12225_p5), %s1455_s19, 4294950880  ;;  %s6653_s17 = sshll.u32 %s10138_s11, 1  ;;  %s7975_s12 = smul.u32 1536, %s10138_s11 }
 0x36d   : > { %s10172_s14 = scalar_lea.vmem [#allocation22], %s6653_s17  ;;  %s1473_s18 = scalar_lea.sflag [#allocation24], %s10135_s9 }
 0x36e   : > { %s10175_s13 = scalar_lea.vmem [#allocation23], %s7975_s12 }
 0x36f   : > { %9253 = dma.done.wait (%p12225_p5), %s1473_s18, 24672  }
 0x370   : > { %9255 = vsyncadd (%p12225_p5), %s1473_s18, 4294942624  ;;  %s7976_s8 = smul.u32 6, %s10138_s11  ;;  %s6654_s7 = sshll.u32 %s10138_s11, 9 }
 0x371   : > { %s1491_s16 = scalar_lea.sflag [#allocation27], %s10135_s9  ;;  %s10186_s0 = scalar_lea.vmem [#allocation26], %s6654_s7 }
 0x372   : > { %s10183_s4 = scalar_lea.vmem [#allocation25], %s7976_s8 }
 0x373   : > { %9257 = dma.done.wait (%p12225_p5), %s1491_s16, 8224  }
 0x374   : > { %9259 = vsyncadd (%p12225_p5), %s1491_s16, 4294959072  ;;  %s10192_s28 = scalar_lea.vmem [#allocation28], %s6653_s17  ;;  %p12226_p7 = pmov %p12220_p1 }
 0x375   : > { %p12227_p10 = pmov %p12220_p1 }
 0x376   : > { %9261 = dma.done.wait (%p12226_p7), [#allocation30], 64  }
 0x377   : > { %9263 = vsyncadd (%p12227_p10), [#allocation30], 4294967232  ;;  %p12228_p13 = pmov %p12220_p1 }
 0x378   : > { %p12229_p2 = pmov %p12220_p1 }
 0x379   : > { %9265 = dma.done.wait (%p12228_p13), [#allocation33], 4128  }
 0x37a   : > { %9267 = vsyncadd (%p12229_p2), [#allocation33], 4294963168  ;;  %p12230_p6 = pmov %p12220_p1 }
 0x37b   : > { %p12231_p0 = pmov %p12220_p1 }
 0x37c   : > { %9269 = dma.done.wait (%p12230_p6), [#allocation36], 32  }
 0x37d   : > { %9271 = vsyncadd (%p12231_p0), [#allocation36], 4294967264  ;;  %p12232_p12 = pmov %p12231_p0 }
 0x37e   : > { %p12233_p8 = pmov %p12231_p0 }
 0x37f   : > { %9273 = dma.done.wait (%p12232_p12), [#allocation39], 2064  }
 0x380   : > { %9275 = vsyncadd (%p12233_p8), [#allocation39], 4294965232  ;;  %p12234_p1 = pmov %p12231_p0 }
 0x381   : > { %p12235_p9 = pmov %p12231_p0 }
 0x382   : > { %9277 = dma.done.wait (%p12234_p1), [#allocation42], 32  }
 0x383   : > { %9279 = vsyncadd (%p12235_p9), [#allocation42], 4294967264  ;;  %p12236_p3 = pmov %p12231_p0 }
 0x384   : > { %p12237_p4 = pmov %p12231_p0 }
 0x385   : > { %9281 = dma.done.wait (%p12236_p3), [#allocation45], 2064  }
 0x386   : > { %9283 = vsyncadd (%p12237_p4), [#allocation45], 4294965232  ;;  %p12238_p11 = pmov %p12231_p0 }
 0x387   : > { %p12239_p5 = pmov %p12231_p0 }
 0x388   : > { %9285 = dma.done.wait (%p12238_p11), [#allocation48], 32  }
 0x389   : > { %9287 = vsyncadd (%p12239_p5), [#allocation48], 4294967264  ;;  %v1688_v2 = vlaneseq  ;;  %p12241_p7 = scmp.ne.s32.totalorder %s9598_s10, 0 }
 0x38a   : > { %v1697_v4 = vld [vmem:[#allocation8 + $0x8] sm:$0xff] (!%p12241_p7)  ;;  %v1699_v5 = vld [vmem:[#allocation8 + $0x18] sm:$0xff] (!%p12241_p7)  ;;  %v1696_v6 = vld [vmem:[#allocation8] sm:$0xff] (!%p12241_p7)  ;;  %v9381_v9 = vmov (!%p12241_p7), 0.0   ;;  %vm1712_vm0 = vcmask (!%p12241_p7), 130048   ;;  %s12242_s6 = sld [smem:[#allocation68_spill]] (!%p12241_p7) }
 0x38b   : > { %v10223_v3 = vshrl.u32 %v1688_v2, 7  ;;  %1694 = sbr.rel (%p12241_p7) target bundleno = 1446 (0x5a6), region = 284  ;;  %v6985_v7 = vpack.c.bf16 (!%p12241_p7), %v1699_v5, %v1697_v4  ;;  %v1698_v8 = vld [vmem:[#allocation8 + $0x10] sm:$0xff] (!%p12241_p7)  ;;  %1780 = vmatprep.mubr.f32.mxu0 (!%p12241_p7), %v9381_v9  ;;  %v1695_v11 = vld [vmem:[#allocation5] sm:$0xff] (!%p12241_p7)  ;;  %v1700_v13 = vld [vmem:[#allocation10] sm:$0x3] (!%p12241_p7) }
 0x38c   : > { %v6987_v10 = vpack.c.bf16 (!%p12241_p7), %v1698_v8, %v1696_v6  ;;  %v1787_v32 = vld [vmem:[#allocation11] sm:$0x3] (!%p12241_p7)  ;;  %v1788_v33 = vld [vmem:[#allocation13] sm:$0x3] (!%p12241_p7) }
 0x38d   : > { %12240 = vst [vmem:[#allocation103_spill] sm:$0xff] %v10223_v3  ;;  %6986 = vmatprep.subr.bf16.mxu0 (!%p12241_p7), %v6985_v7  ;;  %v1704_v12 = vsub.s32 (!%p12241_p7), 0, %v10223_v3  ;;  %v1708_v14 = vsub.s32 (!%p12241_p7), 1, %v10223_v3 }
 0x38e   : > { %6988 = vmatpush1.bf16.msra.mxu0 (!%p12241_p7), %v6987_v10 }
 0x38f   : > { %v1705_v15 = vrot.slane (!%p12241_p7), %v1700_v13, %v1704_v12  ;;  %v1709_v16 = vrot.slane (!%p12241_p7), %v1700_v13, %v1708_v14  ;;  %v1810_v34 = vrot.slane (!%p12241_p7), %v1787_v32, %v1704_v12  ;;  %v1814_v35 = vrot.slane (!%p12241_p7), %v1787_v32, %v1708_v14 }
 0x390   : > { %v1823_v37 = vrot.slane (!%p12241_p7), %v1788_v33, %v1704_v12  ;;  %v1827_v38 = vrot.slane (!%p12241_p7), %v1788_v33, %v1708_v14  ;;  %v1832_v43 = vld [vmem:[%s12242_s6] sm:$0xff] (!%p12241_p7)  ;;  %v1833_v44 = vld [vmem:[%s12242_s6 + $0x8] sm:$0xff] (!%p12241_p7) }
 0x391   : > { %6671 = vmatmul.mubr.msk.f32.vlgmr.msra.gmra.mrb[0].mxu0 (!%p12241_p7), %vm1712_vm0, %v1695_v11 }
 0x464   : > { %v1782_v17 = vpop.f32.mrb[0].mxu0 }
 0x465   : > { %v1783_v18 = vadd.f32 %v1782_v17, %v1705_v15  ;;  %v1784_v19 = vpop.f32.mrb[1].mxu0 }
 0x466   : > { %v1785_v20 = vadd.f32 %v1784_v19, %v1709_v16 }
 0x468   : > { %v1789_v21 = vadd.f32 %v1785_v20, %v1783_v18 }
 0x46a   : > { %1790 = vadd.xlane.f32.xlu0 %v1789_v21 }
 0x4f7   : > { %v1791_v22 = vpop.xlane.xlu0 %1790 }
 0x4f8   : > { %v1793_v23 = vmul.f32 0.00390625, %v1791_v22 }
 0x4fa   : > { %v1794_v24 = vsub.f32 %v1783_v18, %v1793_v23  ;;  %v1795_v25 = vsub.f32 %v1785_v20, %v1793_v23 }
 0x4fc   : > { %v1796_v26 = vmul.f32 %v1794_v24, %v1794_v24  ;;  %v1797_v27 = vmul.f32 %v1795_v25, %v1795_v25 }
 0x4fe   : > { %v1798_v28 = vadd.f32 %v1797_v27, %v1796_v26 }
 0x500   : > { %1799 = vadd.xlane.f32.xlu0 %v1798_v28 }
 0x58d   : > { %v1800_v29 = vpop.xlane.xlu0 %1799 }
 0x58e   : > { %v1801_v30 = vmul.f32 0.00390625, %v1800_v29 }
 0x590   : > { %v1802_v31 = vadd.f32 1e-05, %v1801_v30 }
 0x592   : > { %8312 = vrsqrt.f32 %v1802_v31 }
 0x59c   : > { %v8313_v36 = vpop.eup %8312 }
 0x59d   : > { %v1804_v39 = vmul.f32 %v8313_v36, %v1794_v24  ;;  %v1805_v40 = vmul.f32 %v8313_v36, %v1795_v25 }
 0x59f   : > { %v1817_v41 = vmul.f32 %v1810_v34, %v1804_v39  ;;  %v1818_v42 = vmul.f32 %v1814_v35, %v1805_v40 }
 0x5a1   : > { %v1830_v45 = vadd.f32 %v1823_v37, %v1817_v41  ;;  %v1831_v46 = vadd.f32 %v1827_v38, %v1818_v42 }
 0x5a3   : > { %v1834_v47 = vadd.f32 %v1832_v43, %v1830_v45  ;;  %v1835_v48 = vadd.f32 %v1833_v44, %v1831_v46 }
 0x5a5   : > { %1836 = vst [vmem:[#allocation2] sm:$0xff] %v1834_v47  ;;  %1837 = vst [vmem:[#allocation2 + $0x8] sm:$0xff] %v1835_v48 }
 0x5a6 PF: > { %v1841_v49 = vld [vmem:[%s10142_s5 + $0x8] sm:$0xff]  ;;  %v1843_v51 = vld [vmem:[%s10142_s5 + $0x18] sm:$0xff]  ;;  %v1840_v54 = vld [vmem:[%s10142_s5] sm:$0xff]  ;;  %v9382_v56 = vmov 0   ;;  %s12243_s9 = sld [smem:[#allocation70_spill]]  ;;  %s12244_s11 = sld [smem:[#allocation71_spill]] }
 0x5a7   : > { %v1849_v50 = vld [vmem:[%s10142_s5 + $0x48] sm:$0xff]  ;;  %v1851_v53 = vld [vmem:[%s10142_s5 + $0x58] sm:$0xff]  ;;  %v1848_v55 = vld [vmem:[%s10142_s5 + $0x40] sm:$0xff]  ;;  %8314 = vset.pattern.permute.xlu0 %v9382_v56  ;;  %8315 = vset.pattern.permute.xlu1 %v9382_v56  ;;  %s12245_s19 = sld [smem:[#allocation69_spill]]  ;;  %vm12127_vm1 = vcmask 64512   ;;  %p6804_p10 = scmp.ne.s32.totalorder %s9598_s10, 1 }
 0x5a8   : > { %v6989_v52 = vpack.c.bf16 %v1849_v50, %v1841_v49  ;;  %v7053_v57 = vpack.c.bf16 %v1851_v53, %v1843_v51  ;;  %v6991_v58 = vpack.c.bf16 %v1848_v55, %v1840_v54  ;;  %v1842_v59 = vld [vmem:[%s10142_s5 + $0x10] sm:$0xff]  ;;  %v1857_v61 = vld [vmem:[%s10142_s5 + $0x88] sm:$0xff]  ;;  %v1859_v0 = vld [vmem:[%s10142_s5 + $0x98] sm:$0xff] }
 0x5a9   : > { %v1850_v60 = vld [vmem:[%s10142_s5 + $0x50] sm:$0xff]  ;;  %v1865_v63 = vld [vmem:[%s10142_s5 + $0xc8] sm:$0xff]  ;;  %v1867_v1 = vld [vmem:[%s10142_s5 + $0xd8] sm:$0xff] }
 0x5aa   : > { %6990 = vmatprep.subr.bf16.mxu0 %v6989_v52  ;;  %v7055_v62 = vpack.c.bf16 %v1850_v60, %v1842_v59  ;;  %7054 = vmatprep.subr.bf16.mxu1 %v7053_v57  ;;  %v6993_v4 = vpack.c.bf16 %v1865_v63, %v1857_v61  ;;  %v7057_v5 = vpack.c.bf16 %v1867_v1, %v1859_v0  ;;  %v1856_v6 = vld [vmem:[%s10142_s5 + $0x80] sm:$0xff]  ;;  %v1858_v8 = vld [vmem:[%s10142_s5 + $0x90] sm:$0xff]  ;;  %v1873_v11 = vld [vmem:[%s10142_s5 + $0x108] sm:$0xff] }
 0x5ab   : > { %6992 = vmatpush1.bf16.msra.mxu0 %v6991_v58  ;;  %v1864_v7 = vld [vmem:[%s10142_s5 + $0xc0] sm:$0xff]  ;;  %v1866_v10 = vld [vmem:[%s10142_s5 + $0xd0] sm:$0xff]  ;;  %v1881_v12 = vld [vmem:[%s10142_s5 + $0x148] sm:$0xff] }
 0x5ac   : > { %7056 = vmatpush1.bf16.msra.mxu1 %v7055_v62  ;;  %v6995_v9 = vpack.c.bf16 %v1864_v7, %v1856_v6  ;;  %6994 = vmatprep.subr.bf16.mxu0 %v6993_v4  ;;  %v7059_v13 = vpack.c.bf16 %v1866_v10, %v1858_v8  ;;  %v6997_v14 = vpack.c.bf16 %v1881_v12, %v1873_v11  ;;  %v1875_v15 = vld [vmem:[%s10142_s5 + $0x118] sm:$0xff]  ;;  %v1872_v17 = vld [vmem:[%s10142_s5 + $0x100] sm:$0xff]  ;;  %v1874_v20 = vld [vmem:[%s10142_s5 + $0x110] sm:$0xff] }
 0x5ad   : > { %7058 = vmatprep.subr.bf16.mxu1 %v7057_v5  ;;  %v1883_v16 = vld [vmem:[%s10142_s5 + $0x158] sm:$0xff]  ;;  %v1880_v19 = vld [vmem:[%s10142_s5 + $0x140] sm:$0xff]  ;;  %v1882_v21 = vld [vmem:[%s10142_s5 + $0x150] sm:$0xff] }
 0x5ae   : > { %v7061_v18 = vpack.c.bf16 %v1883_v16, %v1875_v15  ;;  %v6999_v22 = vpack.c.bf16 %v1880_v19, %v1872_v17  ;;  %v1889_v23 = vld [vmem:[%s10142_s5 + $0x188] sm:$0xff]  ;;  %v1891_v25 = vld [vmem:[%s10142_s5 + $0x198] sm:$0xff]  ;;  %v7063_v26 = vpack.c.bf16 %v1882_v21, %v1874_v20  ;;  %v1888_v29 = vld [vmem:[%s10142_s5 + $0x180] sm:$0xff] }
 0x5af   : > { %6996 = vmatpush1.bf16.msra.mxu0 %v6995_v9  ;;  %v1897_v24 = vld [vmem:[%s10142_s5 + $0x1c8] sm:$0xff]  ;;  %v1899_v28 = vld [vmem:[%s10142_s5 + $0x1d8] sm:$0xff]  ;;  %v1896_v30 = vld [vmem:[%s10142_s5 + $0x1c0] sm:$0xff] }
 0x5b0   : > { %7060 = vmatpush1.bf16.msra.mxu1 %v7059_v13  ;;  %6998 = vmatprep.subr.bf16.mxu0 %v6997_v14  ;;  %v7001_v27 = vpack.c.bf16 %v1897_v24, %v1889_v23  ;;  %v7065_v31 = vpack.c.bf16 %v1899_v28, %v1891_v25  ;;  %v1890_v32 = vld [vmem:[%s10142_s5 + $0x190] sm:$0xff]  ;;  %v1905_v34 = vld [vmem:[%s10142_s5 + $0x208] sm:$0xff]  ;;  %v1907_v36 = vld [vmem:[%s10142_s5 + $0x218] sm:$0xff]  ;;  %v7003_v38 = vpack.c.bf16 %v1896_v30, %v1888_v29 }
 0x5b1   : > { %7062 = vmatprep.subr.bf16.mxu1 %v7061_v18  ;;  %v1898_v33 = vld [vmem:[%s10142_s5 + $0x1d0] sm:$0xff]  ;;  %v1913_v35 = vld [vmem:[%s10142_s5 + $0x248] sm:$0xff]  ;;  %v1915_v37 = vld [vmem:[%s10142_s5 + $0x258] sm:$0xff] }
 0x5b2   : > { %v7067_v39 = vpack.c.bf16 %v1898_v33, %v1890_v32  ;;  %v7005_v40 = vpack.c.bf16 %v1913_v35, %v1905_v34  ;;  %v1904_v41 = vld [vmem:[%s10142_s5 + $0x200] sm:$0xff]  ;;  %v1906_v43 = vld [vmem:[%s10142_s5 + $0x210] sm:$0xff]  ;;  %v7069_v44 = vpack.c.bf16 %v1915_v37, %v1907_v36  ;;  %v1921_v46 = vld [vmem:[%s10142_s5 + $0x288] sm:$0xff] }
 0x5b3   : > { %7000 = vmatpush1.bf16.msra.mxu0 %v6999_v22  ;;  %v1912_v42 = vld [vmem:[%s10142_s5 + $0x240] sm:$0xff]  ;;  %v1914_v45 = vld [vmem:[%s10142_s5 + $0x250] sm:$0xff]  ;;  %v1929_v47 = vld [vmem:[%s10142_s5 + $0x2c8] sm:$0xff] }
 0x5b4   : > { %7064 = vmatpush1.bf16.msra.mxu1 %v7063_v26  ;;  %7002 = vmatprep.subr.bf16.mxu0 %v7001_v27  ;;  %v1923_v48 = vld [vmem:[%s10142_s5 + $0x298] sm:$0xff]  ;;  %v7007_v50 = vpack.c.bf16 %v1912_v42, %v1904_v41  ;;  %v7071_v51 = vpack.c.bf16 %v1914_v45, %v1906_v43  ;;  %v7009_v52 = vpack.c.bf16 %v1929_v47, %v1921_v46  ;;  %v1920_v53 = vld [vmem:[%s10142_s5 + $0x280] sm:$0xff]  ;;  %v1922_v55 = vld [vmem:[%s10142_s5 + $0x290] sm:$0xff] }
 0x5b5   : > { %7066 = vmatprep.subr.bf16.mxu1 %v7065_v31  ;;  %v1931_v49 = vld [vmem:[%s10142_s5 + $0x2d8] sm:$0xff]  ;;  %v1928_v54 = vld [vmem:[%s10142_s5 + $0x2c0] sm:$0xff]  ;;  %v1930_v57 = vld [vmem:[%s10142_s5 + $0x2d0] sm:$0xff] }
 0x5b6   : > { %v7073_v56 = vpack.c.bf16 %v1931_v49, %v1923_v48  ;;  %v1937_v58 = vld [vmem:[%s10142_s5 + $0x308] sm:$0xff]  ;;  %v1939_v60 = vld [vmem:[%s10142_s5 + $0x318] sm:$0xff]  ;;  %v7011_v62 = vpack.c.bf16 %v1928_v54, %v1920_v53  ;;  %v7075_v63 = vpack.c.bf16 %v1930_v57, %v1922_v55  ;;  %v1936_v1 = vld [vmem:[%s10142_s5 + $0x300] sm:$0xff] }
 0x5b7   : > { %7004 = vmatpush1.bf16.msra.mxu0 %v7003_v38  ;;  %v1945_v59 = vld [vmem:[%s10142_s5 + $0x348] sm:$0xff]  ;;  %v1947_v61 = vld [vmem:[%s10142_s5 + $0x358] sm:$0xff]  ;;  %v1944_v4 = vld [vmem:[%s10142_s5 + $0x340] sm:$0xff] }
 0x5b8   : > { %7068 = vmatpush1.bf16.msra.mxu1 %v7067_v39  ;;  %7006 = vmatprep.subr.bf16.mxu0 %v7005_v40  ;;  %v7013_v0 = vpack.c.bf16 %v1945_v59, %v1937_v58  ;;  %v1938_v5 = vld [vmem:[%s10142_s5 + $0x310] sm:$0xff]  ;;  %v7077_v6 = vpack.c.bf16 %v1947_v61, %v1939_v60  ;;  %v1953_v8 = vld [vmem:[%s10142_s5 + $0x388] sm:$0xff]  ;;  %v1955_v10 = vld [vmem:[%s10142_s5 + $0x398] sm:$0xff]  ;;  %v7015_v12 = vpack.c.bf16 %v1944_v4, %v1936_v1 }
 0x5b9   : > { %7070 = vmatprep.subr.bf16.mxu1 %v7069_v44  ;;  %v1946_v7 = vld [vmem:[%s10142_s5 + $0x350] sm:$0xff]  ;;  %v1961_v9 = vld [vmem:[%s10142_s5 + $0x3c8] sm:$0xff]  ;;  %v1963_v11 = vld [vmem:[%s10142_s5 + $0x3d8] sm:$0xff] }
 0x5ba   : > { %v7079_v13 = vpack.c.bf16 %v1946_v7, %v1938_v5  ;;  %v7017_v14 = vpack.c.bf16 %v1961_v9, %v1953_v8  ;;  %v1952_v15 = vld [vmem:[%s10142_s5 + $0x380] sm:$0xff]  ;;  %v1954_v17 = vld [vmem:[%s10142_s5 + $0x390] sm:$0xff]  ;;  %v7081_v18 = vpack.c.bf16 %v1963_v11, %v1955_v10  ;;  %v1969_v20 = vld [vmem:[%s10142_s5 + $0x408] sm:$0xff] }
 0x5bb   : > { %7008 = vmatpush1.bf16.msra.mxu0 %v7007_v50  ;;  %v1960_v16 = vld [vmem:[%s10142_s5 + $0x3c0] sm:$0xff]  ;;  %v1962_v19 = vld [vmem:[%s10142_s5 + $0x3d0] sm:$0xff]  ;;  %v1977_v21 = vld [vmem:[%s10142_s5 + $0x448] sm:$0xff] }
 0x5bc   : > { %7072 = vmatpush1.bf16.msra.mxu1 %v7071_v51  ;;  %7010 = vmatprep.subr.bf16.mxu0 %v7009_v52  ;;  %v1971_v22 = vld [vmem:[%s10142_s5 + $0x418] sm:$0xff]  ;;  %v7019_v24 = vpack.c.bf16 %v1960_v16, %v1952_v15  ;;  %v7083_v25 = vpack.c.bf16 %v1962_v19, %v1954_v17  ;;  %v7021_v26 = vpack.c.bf16 %v1977_v21, %v1969_v20  ;;  %v1968_v27 = vld [vmem:[%s10142_s5 + $0x400] sm:$0xff]  ;;  %v1970_v29 = vld [vmem:[%s10142_s5 + $0x410] sm:$0xff] }
 0x5bd   : > { %7074 = vmatprep.subr.bf16.mxu1 %v7073_v56  ;;  %v1979_v23 = vld [vmem:[%s10142_s5 + $0x458] sm:$0xff]  ;;  %v1976_v28 = vld [vmem:[%s10142_s5 + $0x440] sm:$0xff]  ;;  %v1978_v31 = vld [vmem:[%s10142_s5 + $0x450] sm:$0xff] }
 0x5be   : > { %v7085_v30 = vpack.c.bf16 %v1979_v23, %v1971_v22  ;;  %v1985_v32 = vld [vmem:[%s10142_s5 + $0x488] sm:$0xff]  ;;  %v1987_v34 = vld [vmem:[%s10142_s5 + $0x498] sm:$0xff]  ;;  %v7023_v36 = vpack.c.bf16 %v1976_v28, %v1968_v27  ;;  %v7087_v37 = vpack.c.bf16 %v1978_v31, %v1970_v29  ;;  %v1984_v39 = vld [vmem:[%s10142_s5 + $0x480] sm:$0xff] }
 0x5bf   : > { %7012 = vmatpush1.bf16.msra.mxu0 %v7011_v62  ;;  %v1993_v33 = vld [vmem:[%s10142_s5 + $0x4c8] sm:$0xff]  ;;  %v1995_v35 = vld [vmem:[%s10142_s5 + $0x4d8] sm:$0xff]  ;;  %v1992_v40 = vld [vmem:[%s10142_s5 + $0x4c0] sm:$0xff] }
 0x5c0   : > { %7076 = vmatpush1.bf16.msra.mxu1 %v7075_v63  ;;  %7014 = vmatprep.subr.bf16.mxu0 %v7013_v0  ;;  %v7025_v38 = vpack.c.bf16 %v1993_v33, %v1985_v32  ;;  %v1986_v41 = vld [vmem:[%s10142_s5 + $0x490] sm:$0xff]  ;;  %v7089_v42 = vpack.c.bf16 %v1995_v35, %v1987_v34  ;;  %v2001_v44 = vld [vmem:[%s10142_s5 + $0x508] sm:$0xff]  ;;  %v2003_v46 = vld [vmem:[%s10142_s5 + $0x518] sm:$0xff]  ;;  %v7027_v48 = vpack.c.bf16 %v1992_v40, %v1984_v39 }
 0x5c1   : > { %7078 = vmatprep.subr.bf16.mxu1 %v7077_v6  ;;  %v1994_v43 = vld [vmem:[%s10142_s5 + $0x4d0] sm:$0xff]  ;;  %v2009_v45 = vld [vmem:[%s10142_s5 + $0x548] sm:$0xff]  ;;  %v2011_v47 = vld [vmem:[%s10142_s5 + $0x558] sm:$0xff] }
 0x5c2   : > { %v7091_v49 = vpack.c.bf16 %v1994_v43, %v1986_v41  ;;  %v7029_v50 = vpack.c.bf16 %v2009_v45, %v2001_v44  ;;  %v2000_v51 = vld [vmem:[%s10142_s5 + $0x500] sm:$0xff]  ;;  %v2002_v53 = vld [vmem:[%s10142_s5 + $0x510] sm:$0xff]  ;;  %v7093_v54 = vpack.c.bf16 %v2011_v47, %v2003_v46  ;;  %v2017_v56 = vld [vmem:[%s10142_s5 + $0x588] sm:$0xff] }
 0x5c3   : > { %7016 = vmatpush1.bf16.msra.mxu0 %v7015_v12  ;;  %v2008_v52 = vld [vmem:[%s10142_s5 + $0x540] sm:$0xff]  ;;  %v2010_v55 = vld [vmem:[%s10142_s5 + $0x550] sm:$0xff]  ;;  %v2025_v57 = vld [vmem:[%s10142_s5 + $0x5c8] sm:$0xff] }
 0x5c4   : > { %7080 = vmatpush1.bf16.msra.mxu1 %v7079_v13  ;;  %7018 = vmatprep.subr.bf16.mxu0 %v7017_v14  ;;  %v2019_v58 = vld [vmem:[%s10142_s5 + $0x598] sm:$0xff]  ;;  %v7031_v60 = vpack.c.bf16 %v2008_v52, %v2000_v51  ;;  %v2016_v61 = vld [vmem:[%s10142_s5 + $0x580] sm:$0xff]  ;;  %v7095_v62 = vpack.c.bf16 %v2010_v55, %v2002_v53  ;;  %v7033_v63 = vpack.c.bf16 %v2025_v57, %v2017_v56  ;;  %v2018_v1 = vld [vmem:[%s10142_s5 + $0x590] sm:$0xff] }
 0x5c5   : > { %7082 = vmatprep.subr.bf16.mxu1 %v7081_v18  ;;  %v2027_v59 = vld [vmem:[%s10142_s5 + $0x5d8] sm:$0xff]  ;;  %v2024_v0 = vld [vmem:[%s10142_s5 + $0x5c0] sm:$0xff]  ;;  %v2026_v4 = vld [vmem:[%s10142_s5 + $0x5d0] sm:$0xff] }
 0x5c6   : > { %v7097_v5 = vpack.c.bf16 %v2027_v59, %v2019_v58  ;;  %v2033_v6 = vld [vmem:[%s10142_s5 + $0x608] sm:$0xff]  ;;  %v2035_v9 = vld [vmem:[%s10142_s5 + $0x618] sm:$0xff]  ;;  %v7035_v11 = vpack.c.bf16 %v2024_v0, %v2016_v61  ;;  %v7099_v12 = vpack.c.bf16 %v2026_v4, %v2018_v1  ;;  %v2032_v14 = vld [vmem:[%s10142_s5 + $0x600] sm:$0xff] }
 0x5c7   : > { %7020 = vmatpush1.bf16.msra.mxu0 %v7019_v24  ;;  %v2041_v7 = vld [vmem:[%s10142_s5 + $0x648] sm:$0xff]  ;;  %v2043_v10 = vld [vmem:[%s10142_s5 + $0x658] sm:$0xff]  ;;  %v2040_v15 = vld [vmem:[%s10142_s5 + $0x640] sm:$0xff] }
 0x5c8   : > { %7084 = vmatpush1.bf16.msra.mxu1 %v7083_v25  ;;  %7022 = vmatprep.subr.bf16.mxu0 %v7021_v26  ;;  %v10329_v8 = vld [vmem:[#allocation2 + $0x8] sm:$0xff]  ;;  %v7037_v13 = vpack.c.bf16 %v2041_v7, %v2033_v6  ;;  %v2034_v16 = vld [vmem:[%s10142_s5 + $0x610] sm:$0xff]  ;;  %v7101_v17 = vpack.c.bf16 %v2043_v10, %v2035_v9  ;;  %v2051_v21 = vld [vmem:[%s10142_s5 + $0x698] sm:$0xff]  ;;  %v7039_v23 = vpack.c.bf16 %v2040_v15, %v2032_v14 }
 0x5c9   : > { %7086 = vmatprep.subr.bf16.mxu1 %v7085_v30  ;;  %2202 = vmatprep.mubr.f32.mxu0 %v10329_v8  ;;  %v2042_v18 = vld [vmem:[%s10142_s5 + $0x650] sm:$0xff]  ;;  %v2049_v19 = vld [vmem:[%s10142_s5 + $0x688] sm:$0xff]  ;;  %v2059_v22 = vld [vmem:[%s10142_s5 + $0x6d8] sm:$0xff] }
 0x5ca   : > { %2273 = vmatprep.mubr.f32.mxu1 %v10329_v8  ;;  %v2057_v20 = vld [vmem:[%s10142_s5 + $0x6c8] sm:$0xff]  ;;  %v7103_v24 = vpack.c.bf16 %v2042_v18, %v2034_v16  ;;  %v2048_v26 = vld [vmem:[%s10142_s5 + $0x680] sm:$0xff]  ;;  %v2050_v28 = vld [vmem:[%s10142_s5 + $0x690] sm:$0xff]  ;;  %v7105_v29 = vpack.c.bf16 %v2059_v22, %v2051_v21 }
 0x5cb   : > { %7024 = vmatpush1.bf16.msra.mxu0 %v7023_v36  ;;  %v7041_v25 = vpack.c.bf16 %v2057_v20, %v2049_v19  ;;  %v2056_v27 = vld [vmem:[%s10142_s5 + $0x6c0] sm:$0xff]  ;;  %v2058_v30 = vld [vmem:[%s10142_s5 + $0x6d0] sm:$0xff]  ;;  %v2065_v31 = vld [vmem:[%s10142_s5 + $0x708] sm:$0xff] }
 0x5cc   : > { %7088 = vmatpush1.bf16.msra.mxu1 %v7087_v37  ;;  %7026 = vmatprep.subr.bf16.mxu0 %v7025_v38  ;;  %v2073_v32 = vld [vmem:[%s10142_s5 + $0x748] sm:$0xff]  ;;  %v2067_v33 = vld [vmem:[%s10142_s5 + $0x718] sm:$0xff]  ;;  %v7043_v35 = vpack.c.bf16 %v2056_v27, %v2048_v26  ;;  %v7107_v36 = vpack.c.bf16 %v2058_v30, %v2050_v28  ;;  %v2064_v38 = vld [vmem:[%s10142_s5 + $0x700] sm:$0xff] }
 0x5cd   : > { %7090 = vmatprep.subr.bf16.mxu1 %v7089_v42  ;;  %v2075_v34 = vld [vmem:[%s10142_s5 + $0x758] sm:$0xff]  ;;  %v7045_v37 = vpack.c.bf16 %v2073_v32, %v2065_v31  ;;  %v2072_v39 = vld [vmem:[%s10142_s5 + $0x740] sm:$0xff]  ;;  %v2066_v40 = vld [vmem:[%s10142_s5 + $0x710] sm:$0xff] }
 0x5ce   : > { %v7109_v41 = vpack.c.bf16 %v2075_v34, %v2067_v33  ;;  %v2074_v42 = vld [vmem:[%s10142_s5 + $0x750] sm:$0xff]  ;;  %v2081_v43 = vld [vmem:[%s10142_s5 + $0x788] sm:$0xff]  ;;  %v2083_v45 = vld [vmem:[%s10142_s5 + $0x798] sm:$0xff]  ;;  %v7047_v47 = vpack.c.bf16 %v2072_v39, %v2064_v38 }
 0x5cf   : > { %7028 = vmatpush1.bf16.msra.mxu0 %v7027_v48  ;;  %v2089_v44 = vld [vmem:[%s10142_s5 + $0x7c8] sm:$0xff]  ;;  %v2091_v46 = vld [vmem:[%s10142_s5 + $0x7d8] sm:$0xff]  ;;  %v7111_v48 = vpack.c.bf16 %v2074_v42, %v2066_v40  ;;  %v2088_v51 = vld [vmem:[%s10142_s5 + $0x7c0] sm:$0xff] }
 0x5d0   : > { %7092 = vmatpush1.bf16.msra.mxu1 %v7091_v49  ;;  %7030 = vmatprep.subr.bf16.mxu0 %v7029_v50  ;;  %v7049_v49 = vpack.c.bf16 %v2089_v44, %v2081_v43  ;;  %v2080_v50 = vld [vmem:[%s10142_s5 + $0x780] sm:$0xff]  ;;  %v2082_v52 = vld [vmem:[%s10142_s5 + $0x790] sm:$0xff]  ;;  %v7113_v53 = vpack.c.bf16 %v2091_v46, %v2083_v45  ;;  %v1845_v55 = vld [vmem:[%s10142_s5 + $0x28] sm:$0xff] }
 0x5d1   : > { %7094 = vmatprep.subr.bf16.mxu1 %v7093_v54  ;;  %v2090_v54 = vld [vmem:[%s10142_s5 + $0x7d0] sm:$0xff]  ;;  %v1853_v56 = vld [vmem:[%s10142_s5 + $0x68] sm:$0xff]  ;;  %v1847_v57 = vld [vmem:[%s10142_s5 + $0x38] sm:$0xff]  ;;  %v7051_v59 = vpack.c.bf16 %v2088_v51, %v2080_v50 }
 0x5d2   : > { %v1855_v58 = vld [vmem:[%s10142_s5 + $0x78] sm:$0xff]  ;;  %v7117_v61 = vpack.c.bf16 %v1853_v56, %v1845_v55  ;;  %v1846_v0 = vld [vmem:[%s10142_s5 + $0x30] sm:$0xff]  ;;  %v1869_v6 = vld [vmem:[%s10142_s5 + $0xe8] sm:$0xff] }
 0x5d3   : > { %7032 = vmatpush1.bf16.msra.mxu0 %v7031_v60  ;;  %v7115_v60 = vpack.c.bf16 %v2090_v54, %v2082_v52  ;;  %v7181_v1 = vpack.c.bf16 %v1855_v58, %v1847_v57  ;;  %v1854_v4 = vld [vmem:[%s10142_s5 + $0x70] sm:$0xff]  ;;  %v1863_v7 = vld [vmem:[%s10142_s5 + $0xb8] sm:$0xff]  ;;  %v10375_v10 = vld [vmem:[#allocation2] sm:$0xff] }
 0x5d4   : > { %7096 = vmatpush1.bf16.msra.mxu1 %v7095_v62  ;;  %7034 = vmatprep.subr.bf16.mxu0 %v7033_v63  ;;  %v1844_v62 = vld [vmem:[%s10142_s5 + $0x20] sm:$0xff]  ;;  %v1871_v9 = vld [vmem:[%s10142_s5 + $0xf8] sm:$0xff]  ;;  %v1862_v16 = vld [vmem:[%s10142_s5 + $0xb0] sm:$0xff] }
 0x5d5   : > { %7098 = vmatprep.subr.bf16.mxu1 %v7097_v5  ;;  %v1852_v63 = vld [vmem:[%s10142_s5 + $0x60] sm:$0xff]  ;;  %v1861_v5 = vld [vmem:[%s10142_s5 + $0xa8] sm:$0xff]  ;;  %v1870_v18 = vld [vmem:[%s10142_s5 + $0xf0] sm:$0xff] }
 0x5d6   : > { %v1860_v14 = vld [vmem:[%s10142_s5 + $0xa0] sm:$0xff]  ;;  %v1877_v19 = vld [vmem:[%s10142_s5 + $0x128] sm:$0xff]  ;;  %v1879_v21 = vld [vmem:[%s10142_s5 + $0x138] sm:$0xff] }
 0x5d7   : > { %7036 = vmatpush1.bf16.msra.mxu0 %v7035_v11  ;;  %v7119_v11 = vpack.c.bf16 %v1852_v63, %v1844_v62  ;;  %v1868_v15 = vld [vmem:[%s10142_s5 + $0xe0] sm:$0xff]  ;;  %v1885_v20 = vld [vmem:[%s10142_s5 + $0x168] sm:$0xff]  ;;  %v1887_v22 = vld [vmem:[%s10142_s5 + $0x178] sm:$0xff] }
 0x5d8   : > { %7100 = vmatpush1.bf16.msra.mxu1 %v7099_v12  ;;  %7038 = vmatprep.subr.bf16.mxu0 %v7037_v13  ;;  %v7183_v12 = vpack.c.bf16 %v1854_v4, %v1846_v0  ;;  %v7121_v13 = vpack.c.bf16 %v1869_v6, %v1861_v5  ;;  %v1876_v26 = vld [vmem:[%s10142_s5 + $0x120] sm:$0xff]  ;;  %v1878_v28 = vld [vmem:[%s10142_s5 + $0x130] sm:$0xff]  ;;  %v1893_v31 = vld [vmem:[%s10142_s5 + $0x1a8] sm:$0xff] }
 0x5d9   : > { %7102 = vmatprep.subr.bf16.mxu1 %v7101_v17  ;;  %v7185_v17 = vpack.c.bf16 %v1871_v9, %v1863_v7  ;;  %v1884_v27 = vld [vmem:[%s10142_s5 + $0x160] sm:$0xff]  ;;  %v1886_v30 = vld [vmem:[%s10142_s5 + $0x170] sm:$0xff]  ;;  %v1901_v32 = vld [vmem:[%s10142_s5 + $0x1e8] sm:$0xff] }
 0x5da   : > { %v1895_v33 = vld [vmem:[%s10142_s5 + $0x1b8] sm:$0xff]  ;;  %v1892_v38 = vld [vmem:[%s10142_s5 + $0x1a0] sm:$0xff]  ;;  %v1894_v40 = vld [vmem:[%s10142_s5 + $0x1b0] sm:$0xff] }
 0x5db   : > { %7040 = vmatpush1.bf16.msra.mxu0 %v7039_v23  ;;  %v7123_v23 = vpack.c.bf16 %v1868_v15, %v1860_v14  ;;  %v1903_v34 = vld [vmem:[%s10142_s5 + $0x1f8] sm:$0xff]  ;;  %v1900_v39 = vld [vmem:[%s10142_s5 + $0x1e0] sm:$0xff]  ;;  %v1902_v42 = vld [vmem:[%s10142_s5 + $0x1f0] sm:$0xff] }
 0x5dc   : > { %7104 = vmatpush1.bf16.msra.mxu1 %v7103_v24  ;;  %7042 = vmatprep.subr.bf16.mxu0 %v7041_v25  ;;  %v7187_v24 = vpack.c.bf16 %v1870_v18, %v1862_v16  ;;  %v7125_v25 = vpack.c.bf16 %v1885_v20, %v1877_v19  ;;  %v1909_v43 = vld [vmem:[%s10142_s5 + $0x228] sm:$0xff]  ;;  %v1911_v44 = vld [vmem:[%s10142_s5 + $0x238] sm:$0xff]  ;;  %v7131_v46 = vpack.c.bf16 %v1900_v39, %v1892_v38  ;;  %v1916_v50 = vld [vmem:[%s10142_s5 + $0x260] sm:$0xff] }
 0x5dd   : > { %7106 = vmatprep.subr.bf16.mxu1 %v7105_v29  ;;  %v7189_v29 = vpack.c.bf16 %v1887_v22, %v1879_v21  ;;  %v1919_v45 = vld [vmem:[%s10142_s5 + $0x278] sm:$0xff]  ;;  %v1910_v51 = vld [vmem:[%s10142_s5 + $0x230] sm:$0xff]  ;;  %v1925_v54 = vld [vmem:[%s10142_s5 + $0x2a8] sm:$0xff] }
 0x5de   : > { %v7197_v52 = vpack.c.bf16 %v1919_v45, %v1911_v44  ;;  %v1933_v55 = vld [vmem:[%s10142_s5 + $0x2e8] sm:$0xff]  ;;  %v1927_v56 = vld [vmem:[%s10142_s5 + $0x2b8] sm:$0xff]  ;;  %v1932_v62 = vld [vmem:[%s10142_s5 + $0x2e0] sm:$0xff] }
 0x5df   : > { %7044 = vmatpush1.bf16.msra.mxu0 %v7043_v35  ;;  %v7127_v35 = vpack.c.bf16 %v1884_v27, %v1876_v26  ;;  %v1935_v57 = vld [vmem:[%s10142_s5 + $0x2f8] sm:$0xff]  ;;  %v1926_v63 = vld [vmem:[%s10142_s5 + $0x2b0] sm:$0xff]  ;;  %v1941_v4 = vld [vmem:[%s10142_s5 + $0x328] sm:$0xff] }
 0x5e0   : > { %7108 = vmatpush1.bf16.msra.mxu1 %v7107_v36  ;;  %7046 = vmatprep.subr.bf16.mxu0 %v7045_v37  ;;  %v7191_v36 = vpack.c.bf16 %v1886_v30, %v1878_v28  ;;  %v7129_v37 = vpack.c.bf16 %v1901_v32, %v1893_v31  ;;  %v7201_v0 = vpack.c.bf16 %v1935_v57, %v1927_v56  ;;  %v1949_v5 = vld [vmem:[%s10142_s5 + $0x368] sm:$0xff]  ;;  %v1943_v6 = vld [vmem:[%s10142_s5 + $0x338] sm:$0xff]  ;;  %v1942_v15 = vld [vmem:[%s10142_s5 + $0x330] sm:$0xff] }
 0x5e1   : > { %7110 = vmatprep.subr.bf16.mxu1 %v7109_v41  ;;  %v7193_v41 = vpack.c.bf16 %v1903_v34, %v1895_v33  ;;  %v1951_v7 = vld [vmem:[%s10142_s5 + $0x378] sm:$0xff]  ;;  %v7141_v14 = vpack.c.bf16 %v1949_v5, %v1941_v4  ;;  %v1950_v16 = vld [vmem:[%s10142_s5 + $0x370] sm:$0xff]  ;;  %v1965_v19 = vld [vmem:[%s10142_s5 + $0x3e8] sm:$0xff] }
 0x5e2   : > { %v7205_v18 = vpack.c.bf16 %v1951_v7, %v1943_v6  ;;  %v2815_v20 = vld [vmem:[%s12243_s9] sm:$0xff]  ;;  %v2817_v21 = vld [vmem:[%s12243_s9 + $0x10] sm:$0xff]  ;;  %v1959_v22 = vld [vmem:[%s10142_s5 + $0x3b8] sm:$0xff]  ;;  %v7207_v27 = vpack.c.bf16 %v1950_v16, %v1942_v15 }
 0x5e3   : > { %7048 = vmatpush1.bf16.msra.mxu0 %v7047_v47  ;;  %v7195_v47 = vpack.c.bf16 %v1902_v42, %v1894_v40  ;;  %2832 = vperm.xlu0 %8314, %v2815_v20   ;;  %v2818_v26 = vld [vmem:[%s12243_s9 + $0x18] sm:$0xff]  ;;  %v1964_v30 = vld [vmem:[%s10142_s5 + $0x3e0] sm:$0xff]  ;;  %v1958_v31 = vld [vmem:[%s10142_s5 + $0x3b0] sm:$0xff] }
 0x5e4   : > { %7112 = vmatpush1.bf16.msra.mxu1 %v7111_v48  ;;  %7050 = vmatprep.subr.bf16.mxu0 %v7049_v49  ;;  %v1908_v49 = vld [vmem:[%s10142_s5 + $0x220] sm:$0xff]  ;;  %v1966_v33 = vld [vmem:[%s10142_s5 + $0x3f0] sm:$0xff]  ;;  %v1973_v34 = vld [vmem:[%s10142_s5 + $0x428] sm:$0xff] }
 0x5e5   : > { %7114 = vmatprep.subr.bf16.mxu1 %v7113_v53  ;;  %v1918_v53 = vld [vmem:[%s10142_s5 + $0x270] sm:$0xff]  ;;  %v7135_v58 = vpack.c.bf16 %v1916_v50, %v1908_v49  ;;  %2838 = vperm.xlu1 %8315, %v2817_v21   ;;  %v2819_v39 = vld [vmem:[%s12243_s9 + $0x20] sm:$0xff]  ;;  %v2820_v40 = vld [vmem:[%s12243_s9 + $0x28] sm:$0xff] }
 0x5e6   : > { %v1974_v44 = vld [vmem:[%s10142_s5 + $0x430] sm:$0xff]  ;;  %v1991_v49 = vld [vmem:[%s10142_s5 + $0x4b8] sm:$0xff]  ;;  %v1988_v56 = vld [vmem:[%s10142_s5 + $0x4a0] sm:$0xff] }
 0x5e7   : > { %7052 = vmatpush1.bf16.msra.mxu0 %v7051_v59  ;;  %v7199_v59 = vpack.c.bf16 %v1918_v53, %v1910_v51  ;;  %v1999_v50 = vld [vmem:[%s10142_s5 + $0x4f8] sm:$0xff]  ;;  %v1996_v57 = vld [vmem:[%s10142_s5 + $0x4e0] sm:$0xff]  ;;  %v2824_v5 = vld [vmem:[%s12243_s9 + $0x48] sm:$0xff] }
 0x5e8   : > { %7116 = vmatpush1.bf16.msra.mxu1 %v7115_v60  ;;  %7118 = vmatprep.subr.bf16.mxu0 %v7117_v61  ;;  %v7137_v60 = vpack.c.bf16 %v1933_v55, %v1925_v54  ;;  %v1924_v61 = vld [vmem:[%s10142_s5 + $0x2a0] sm:$0xff]  ;;  %v2822_v53 = vld [vmem:[%s12243_s9 + $0x38] sm:$0xff]  ;;  %v2021_v15 = vld [vmem:[%s10142_s5 + $0x5a8] sm:$0xff] }
 0x5e9   : > { %7182 = vmatprep.subr.bf16.mxu1 %v7181_v1  ;;  %v1934_v1 = vld [vmem:[%s10142_s5 + $0x2f0] sm:$0xff]  ;;  %v7139_v9 = vpack.c.bf16 %v1932_v62, %v1924_v61  ;;  %2841 = vperm.xlu1 %8315, %v2818_v26   ;;  %v2005_v61 = vld [vmem:[%s10142_s5 + $0x528] sm:$0xff]  ;;  %v2823_v4 = vld [vmem:[%s12243_s9 + $0x40] sm:$0xff] }
 0x5ea   : > { %2203 = vmatmul.mubr.f32.vlgmr.msra.gmra.mrb[0].mxu0 %v10375_v10  ;;  %v2013_v62 = vld [vmem:[%s10142_s5 + $0x568] sm:$0xff]  ;;  %v2825_v20 = vld [vmem:[%s12243_s9 + $0x50] sm:$0xff]  ;;  %v2826_v21 = vld [vmem:[%s12243_s9 + $0x58] sm:$0xff] }
 0x5eb   : > { %2274 = vmatmul.mubr.f32.vlgmr.msra.gmra.mrb[0].mxu1 %v10375_v10  ;;  %7120 = vmatpush1.bf16.msra.mxu0 %v7119_v11  ;;  %v1940_v11 = vld [vmem:[%s10142_s5 + $0x320] sm:$0xff]  ;;  %v7157_v7 = vpack.c.bf16 %v2013_v62, %v2005_v61  ;;  %v2029_v16 = vld [vmem:[%s10142_s5 + $0x5e8] sm:$0xff]  ;;  %v2022_v26 = vld [vmem:[%s10142_s5 + $0x5b0] sm:$0xff] }
 0x5ec   : > { %7184 = vmatpush1.bf16.msra.mxu1 %v7183_v12  ;;  %7122 = vmatprep.subr.bf16.mxu0 %v7121_v13  ;;  %v1948_v12 = vld [vmem:[%s10142_s5 + $0x360] sm:$0xff]  ;;  %v7203_v13 = vpack.c.bf16 %v1934_v1, %v1926_v63  ;;  %v2007_v63 = vld [vmem:[%s10142_s5 + $0x538] sm:$0xff]  ;;  %v7155_v1 = vpack.c.bf16 %v1996_v57, %v1988_v56  ;;  %v2069_v56 = vld [vmem:[%s10142_s5 + $0x728] sm:$0xff] }
 0x5ed   : > { %7186 = vmatprep.subr.bf16.mxu1 %v7185_v17  ;;  %2344 = vmatprep.mubr.f32.mxu0 %v10329_v8  ;;  %v1957_v17 = vld [vmem:[%s10142_s5 + $0x3a8] sm:$0xff]  ;;  %v2927_v61 = vld [vmem:[%s12244_s11] sm:$0xff] }
 0x5ee   : > { %2415 = vmatprep.mubr.f32.mxu1 %v10329_v8  ;;  %v1917_v8 = vld [vmem:[%s10142_s5 + $0x268] sm:$0xff]  ;;  %v7145_v28 = vpack.c.bf16 %v1965_v19, %v1957_v17  ;;  %2847 = vperm.xlu1 %8315, %v2820_v40   ;;  %v2023_v17 = vld [vmem:[%s10142_s5 + $0x5b8] sm:$0xff]  ;;  %v2038_v40 = vld [vmem:[%s10142_s5 + $0x630] sm:$0xff] }
 0x5ef   : > { %7124 = vmatpush1.bf16.msra.mxu0 %v7123_v23  ;;  %v7133_v48 = vpack.c.bf16 %v1917_v8, %v1909_v43  ;;  %v1967_v23 = vld [vmem:[%s10142_s5 + $0x3f8] sm:$0xff]  ;;  %v1972_v43 = vld [vmem:[%s10142_s5 + $0x420] sm:$0xff]  ;;  %v2077_v57 = vld [vmem:[%s10142_s5 + $0x768] sm:$0xff] }
 0x5f0   : > { %7188 = vmatpush1.bf16.msra.mxu1 %v7187_v24  ;;  %7126 = vmatprep.subr.bf16.mxu0 %v7125_v25  ;;  %v7143_v24 = vpack.c.bf16 %v1948_v12, %v1940_v11  ;;  %v2816_v25 = vld [vmem:[%s12243_s9 + $0x8] sm:$0xff]  ;;  %v7209_v32 = vpack.c.bf16 %v1967_v23, %v1959_v22  ;;  %v1980_v8 = vld [vmem:[%s10142_s5 + $0x460] sm:$0xff]  ;;  %v2006_v12 = vld [vmem:[%s10142_s5 + $0x530] sm:$0xff]  ;;  %v7161_v23 = vpack.c.bf16 %v2029_v16, %v2021_v15 }
 0x5f1   : > { %7190 = vmatprep.subr.bf16.mxu1 %v7189_v29  ;;  %v1956_v29 = vld [vmem:[%s10142_s5 + $0x3a0] sm:$0xff]  ;;  %2835 = vperm.xlu0 %8314, %v2816_v25   ;;  %v7151_v51 = vpack.c.bf16 %v1980_v8, %v1972_v43  ;;  %v2053_v43 = vld [vmem:[%s10142_s5 + $0x6a8] sm:$0xff]  ;;  %v2929_v15 = vld [vmem:[%s12244_s11 + $0x10] sm:$0xff] }
 0x5f2   : > { %v7147_v38 = vpack.c.bf16 %v1964_v30, %v1956_v29  ;;  %2853 = vperm.xlu1 %8315, %v2822_v53   ;;  %v2012_v11 = vld [vmem:[%s10142_s5 + $0x560] sm:$0xff]  ;;  %v2037_v29 = vld [vmem:[%s10142_s5 + $0x628] sm:$0xff]  ;;  %v2054_v53 = vld [vmem:[%s10142_s5 + $0x6b0] sm:$0xff] }
 0x5f3   : > { %7128 = vmatpush1.bf16.msra.mxu0 %v7127_v35  ;;  %v1981_v35 = vld [vmem:[%s10142_s5 + $0x468] sm:$0xff]  ;;  %v2028_v25 = vld [vmem:[%s10142_s5 + $0x5e0] sm:$0xff]  ;;  %v2930_v16 = vld [vmem:[%s12244_s11 + $0x18] sm:$0xff] }
 0x5f4   : > { %7192 = vmatpush1.bf16.msra.mxu1 %v7191_v36  ;;  %7130 = vmatprep.subr.bf16.mxu0 %v7129_v37  ;;  %v1975_v36 = vld [vmem:[%s10142_s5 + $0x438] sm:$0xff]  ;;  %v7149_v42 = vpack.c.bf16 %v1981_v35, %v1973_v34  ;;  %v2045_v30 = vld [vmem:[%s10142_s5 + $0x668] sm:$0xff]  ;;  %v2827_v34 = vld [vmem:[%s12243_s9 + $0x60] sm:$0xff] }
 0x5f5   : > { %7194 = vmatprep.subr.bf16.mxu1 %v7193_v41  ;;  %v1983_v37 = vld [vmem:[%s10142_s5 + $0x478] sm:$0xff]  ;;  %v7211_v41 = vpack.c.bf16 %v1966_v33, %v1958_v31  ;;  %2844 = vperm.xlu0 %8314, %v2819_v39   ;;  %v2828_v35 = vld [vmem:[%s12243_s9 + $0x68] sm:$0xff]  ;;  %v2044_v39 = vld [vmem:[%s10142_s5 + $0x660] sm:$0xff] }
 0x5f6   : > { %v7213_v45 = vpack.c.bf16 %v1983_v37, %v1975_v36  ;;  %2859 = vperm.xlu1 %8315, %v2824_v5   ;;  %v2039_v31 = vld [vmem:[%s10142_s5 + $0x638] sm:$0xff]  ;;  %v7165_v37 = vpack.c.bf16 %v2045_v30, %v2037_v29  ;;  %v2061_v8 = vld [vmem:[%s10142_s5 + $0x6e8] sm:$0xff]  ;;  %v2070_v5 = vld [vmem:[%s10142_s5 + $0x730] sm:$0xff] }
 0x5f7   : > { %7132 = vmatpush1.bf16.msra.mxu0 %v7131_v46  ;;  %v1982_v46 = vld [vmem:[%s10142_s5 + $0x470] sm:$0xff]  ;;  %v2928_v62 = vld [vmem:[%s12244_s11 + $0x8] sm:$0xff]  ;;  %v2934_v30 = vld [vmem:[%s12244_s11 + $0x38] sm:$0xff] }
 0x5f8   : > { %7196 = vmatpush1.bf16.msra.mxu1 %v7195_v47  ;;  %7134 = vmatprep.subr.bf16.mxu0 %v7133_v48  ;;  %v1989_v47 = vld [vmem:[%s10142_s5 + $0x4a8] sm:$0xff]  ;;  %v7215_v54 = vpack.c.bf16 %v1982_v46, %v1974_v44  ;;  %v2055_v44 = vld [vmem:[%s10142_s5 + $0x6b8] sm:$0xff]  ;;  %v2933_v29 = vld [vmem:[%s12244_s11 + $0x30] sm:$0xff] }
 0x5f9   : > { %7198 = vmatprep.subr.bf16.mxu1 %v7197_v52  ;;  %v1997_v48 = vld [vmem:[%s10142_s5 + $0x4e8] sm:$0xff]  ;;  %v2821_v52 = vld [vmem:[%s12243_s9 + $0x30] sm:$0xff] }
 0x5fa   : > { %v7153_v55 = vpack.c.bf16 %v1997_v48, %v1989_v47  ;;  %2850 = vperm.xlu0 %8314, %v2821_v52   ;;  %2865 = vperm.xlu1 %8315, %v2826_v21   ;;  %v2829_v47 = vld [vmem:[%s12243_s9 + $0x70] sm:$0xff]  ;;  %v2830_v48 = vld [vmem:[%s12243_s9 + $0x78] sm:$0xff]  ;;  %v2060_v52 = vld [vmem:[%s10142_s5 + $0x6e0] sm:$0xff] }
 0x5fb   : > { %7136 = vmatpush1.bf16.msra.mxu0 %v7135_v58  ;;  %v1990_v58 = vld [vmem:[%s10142_s5 + $0x4b0] sm:$0xff] }
 0x5fc   : > { %7200 = vmatpush1.bf16.msra.mxu1 %v7199_v59  ;;  %7138 = vmatprep.subr.bf16.mxu0 %v7137_v60  ;;  %v7217_v59 = vpack.c.bf16 %v1999_v50, %v1991_v49  ;;  %v1998_v60 = vld [vmem:[%s10142_s5 + $0x4f0] sm:$0xff]  ;;  %v7169_v50 = vpack.c.bf16 %v2061_v8, %v2053_v43  ;;  %v2940_v43 = vld [vmem:[%s12244_s11 + $0x68] sm:$0xff] }
 0x5fd   : > { %7202 = vmatprep.subr.bf16.mxu1 %v7201_v0  ;;  %v2015_v0 = vld [vmem:[%s10142_s5 + $0x578] sm:$0xff]  ;;  %v7219_v6 = vpack.c.bf16 %v1998_v60, %v1990_v58  ;;  %v2423_v8 = vld [vmem:[%s12245_s19 + $0x8] sm:$0xff] }
 0x5fe   : > { %2856 = vperm.xlu0 %8314, %v2823_v4   ;;  %2871 = vperm.xlu1 %8315, %v2828_v35   ;;  %v2071_v58 = vld [vmem:[%s10142_s5 + $0x738] sm:$0xff]  ;;  %v2076_v4 = vld [vmem:[%s10142_s5 + $0x760] sm:$0xff]  ;;  %v10529_v35 = vld [vmem:[%s12245_s19 + $0x50] sm:$0xff] }
 0x5ff   : > { %7140 = vmatpush1.bf16.msra.mxu0 %v7139_v9  ;;  %v2004_v9 = vld [vmem:[%s10142_s5 + $0x520] sm:$0xff] }
 0x600   : > { %7204 = vmatpush1.bf16.msra.mxu1 %v7203_v13  ;;  %7142 = vmatprep.subr.bf16.mxu0 %v7141_v14  ;;  %v7221_v13 = vpack.c.bf16 %v2015_v0, %v2007_v63  ;;  %v2014_v14 = vld [vmem:[%s10142_s5 + $0x570] sm:$0xff]  ;;  %v7159_v19 = vpack.c.bf16 %v2012_v11, %v2004_v9  ;;  %v7173_v0 = vpack.c.bf16 %v2077_v57, %v2069_v56  ;;  %v2085_v9 = vld [vmem:[%s10142_s5 + $0x7a8] sm:$0xff]  ;;  %v10630_v57 = vsub.s32 2, %v10223_v3 }
 0x601   : > { %7206 = vmatprep.subr.bf16.mxu1 %v7205_v18  ;;  %v2031_v18 = vld [vmem:[%s10142_s5 + $0x5f8] sm:$0xff]  ;;  %v7223_v22 = vpack.c.bf16 %v2014_v14, %v2006_v12  ;;  %v2093_v11 = vld [vmem:[%s10142_s5 + $0x7e8] sm:$0xff] }
 0x602   : > { %2862 = vperm.xlu0 %8314, %v2825_v20   ;;  %2877 = vperm.xlu1 %8315, %v2830_v48   ;;  %v2087_v12 = vld [vmem:[%s10142_s5 + $0x7b8] sm:$0xff]  ;;  %v2092_v20 = vld [vmem:[%s10142_s5 + $0x7e0] sm:$0xff]  ;;  %v2436_v48 = vld [vmem:[%s12245_s19 + $0x70] sm:$0xff]  ;;  %12246 = vst [vmem:[#allocation104_spill] sm:$0xff] %v10630_v57 }
 0x603   : > { %7144 = vmatpush1.bf16.msra.mxu0 %v7143_v24  ;;  %v2020_v24 = vld [vmem:[%s10142_s5 + $0x5a0] sm:$0xff]  ;;  %v2431_v56 = vld [vmem:[%s12245_s19 + $0x48] sm:$0xff] }
 0x604   : > { %7208 = vmatpush1.bf16.msra.mxu1 %v7207_v27  ;;  %7146 = vmatprep.subr.bf16.mxu0 %v7145_v28  ;;  %v7225_v27 = vpack.c.bf16 %v2031_v18, %v2023_v17  ;;  %v2030_v28 = vld [vmem:[%s10142_s5 + $0x5f0] sm:$0xff]  ;;  %v7163_v33 = vpack.c.bf16 %v2028_v25, %v2020_v24  ;;  %v7177_v18 = vpack.c.bf16 %v2093_v11, %v2085_v9  ;;  %v2931_v25 = vld [vmem:[%s12244_s11 + $0x20] sm:$0xff] }
 0x605   : > { %7210 = vmatprep.subr.bf16.mxu1 %v7209_v32  ;;  %v2047_v32 = vld [vmem:[%s10142_s5 + $0x678] sm:$0xff]  ;;  %v7227_v36 = vpack.c.bf16 %v2030_v28, %v2022_v26  ;;  %v2932_v26 = vld [vmem:[%s12244_s11 + $0x28] sm:$0xff] }
 0x606   : > { %2868 = vperm.xlu0 %8314, %v2827_v34   ;;  %2947 = vperm.xlu1 %8315, %v2928_v62   ;;  %v2439_v28 = vld [vmem:[%s10153_s20 + $0x8] sm:$0xff]  ;;  %v12063_v34 = vmov 0.0   ;;  %v10645_v62 = vand.u32 127, %v1688_v2 }
 0x607   : > { %7148 = vmatpush1.bf16.msra.mxu0 %v7147_v38  ;;  %v2036_v38 = vld [vmem:[%s10142_s5 + $0x620] sm:$0xff] }
 0x608   : > { %7212 = vmatpush1.bf16.msra.mxu1 %v7211_v41  ;;  %7150 = vmatprep.subr.bf16.mxu0 %v7149_v42  ;;  %v7229_v41 = vpack.c.bf16 %v2047_v32, %v2039_v31  ;;  %v2046_v42 = vld [vmem:[%s10142_s5 + $0x670] sm:$0xff]  ;;  %v7167_v46 = vpack.c.bf16 %v2044_v39, %v2036_v38  ;;  %v2441_v32 = vld [vmem:[%s10153_s20 + $0x18] sm:$0xff]  ;;  %v10539_v38 = vld [vmem:[%s12245_s19 + $0x58] sm:$0xff]  ;;  %12250 = vst [vmem:[#allocation108_spill] sm:$0xff] %v10645_v62 }
 0x609   : > { %7214 = vmatprep.subr.bf16.mxu1 %v7213_v45  ;;  %v2063_v45 = vld [vmem:[%s10142_s5 + $0x6f8] sm:$0xff]  ;;  %v7231_v49 = vpack.c.bf16 %v2046_v42, %v2038_v40  ;;  %v2438_v31 = vld [vmem:[%s10153_s20] sm:$0xff]  ;;  %v2422_v40 = vld [vmem:[%s12245_s19] sm:$0xff] }
 0x60a   : > { %2874 = vperm.xlu0 %8314, %v2829_v47   ;;  %2953 = vperm.xlu1 %8315, %v2930_v16   ;;  %v2938_v39 = vld [vmem:[%s12244_s11 + $0x58] sm:$0xff]  ;;  %v10550_v42 = vld [vmem:[%s12245_s19 + $0x60] sm:$0xff]  ;;  %v2424_v47 = vld [vmem:[%s12245_s19 + $0x10] sm:$0xff] }
 0x60b   : > { %7152 = vmatpush1.bf16.msra.mxu0 %v7151_v51  ;;  %v2052_v51 = vld [vmem:[%s10142_s5 + $0x6a0] sm:$0xff] }
 0x60c   : > { %7216 = vmatpush1.bf16.msra.mxu1 %v7215_v54  ;;  %7154 = vmatprep.subr.bf16.mxu0 %v7153_v55  ;;  %v7233_v54 = vpack.c.bf16 %v2063_v45, %v2055_v44  ;;  %v2062_v55 = vld [vmem:[%s10142_s5 + $0x6f0] sm:$0xff]  ;;  %v7171_v60 = vpack.c.bf16 %v2060_v52, %v2052_v51  ;;  %v2435_v45 = vld [vmem:[%s12245_s19 + $0x68] sm:$0xff]  ;;  %v2426_v51 = vld [vmem:[%s12245_s19 + $0x20] sm:$0xff] }
 0x60d   : > { %7218 = vmatprep.subr.bf16.mxu1 %v7217_v59  ;;  %v2079_v59 = vld [vmem:[%s10142_s5 + $0x778] sm:$0xff]  ;;  %v7235_v63 = vpack.c.bf16 %v2062_v55, %v2054_v53  ;;  %v2941_v44 = vld [vmem:[%s12244_s11 + $0x70] sm:$0xff]  ;;  %v2427_v52 = vld [vmem:[%s12245_s19 + $0x28] sm:$0xff] }
 0x60e   : > { %2944 = vperm.xlu0 %8314, %v2927_v61   ;;  %2959 = vperm.xlu1 %8315, %v2932_v26   ;;  %v2428_v53 = vld [vmem:[%s12245_s19 + $0x30] sm:$0xff]  ;;  %v2430_v55 = vld [vmem:[%s12245_s19 + $0x40] sm:$0xff]  ;;  %v10642_v61 = vsub.s32 3, %v10223_v3 }
 0x60f   : > { %7156 = vmatpush1.bf16.msra.mxu0 %v7155_v1  ;;  %v2068_v1 = vld [vmem:[%s10142_s5 + $0x720] sm:$0xff] }
 0x610   : > { %7220 = vmatpush1.bf16.msra.mxu1 %v7219_v6  ;;  %7158 = vmatprep.subr.bf16.mxu0 %v7157_v7  ;;  %v7237_v6 = vpack.c.bf16 %v2079_v59, %v2071_v58  ;;  %v2078_v7 = vld [vmem:[%s10142_s5 + $0x770] sm:$0xff]  ;;  %v7175_v14 = vpack.c.bf16 %v2076_v4, %v2068_v1  ;;  %v10633_v58 = vsub.s32 1, %v10223_v3  ;;  %v10636_v59 = vld [vmem:[%s10150_s3] sm:$0xff]  ;;  %12249 = vst [vmem:[#allocation107_spill] sm:$0xff] %v10642_v61 }
 0x611   : > { %7222 = vmatprep.subr.bf16.mxu1 %v7221_v13  ;;  %v2095_v13 = vld [vmem:[%s10142_s5 + $0x7f8] sm:$0xff]  ;;  %v7239_v17 = vpack.c.bf16 %v2078_v7, %v2070_v5  ;;  %v2113_v4 = vrot.slane %v10636_v59, %v10642_v61 }
 0x612   : > { %v7241_v21 = vpack.c.bf16 %v2095_v13, %v2087_v12  ;;  %2950 = vperm.xlu0 %8314, %v2929_v15   ;;  %2965 = vperm.xlu1 %8315, %v2934_v30   ;;  %12247 = vst [vmem:[#allocation105_spill] sm:$0xff] %v10633_v58 }
 0x613   : > { %7160 = vmatpush1.bf16.msra.mxu0 %v7159_v19  ;;  %v2084_v19 = vld [vmem:[%s10142_s5 + $0x7a0] sm:$0xff] }
 0x614   : > { %7224 = vmatpush1.bf16.msra.mxu1 %v7223_v22  ;;  %7162 = vmatprep.subr.bf16.mxu0 %v7161_v23  ;;  %v2086_v22 = vld [vmem:[%s10142_s5 + $0x7b0] sm:$0xff]  ;;  %v7179_v24 = vpack.c.bf16 %v2092_v20, %v2084_v19 }
 0x615   : > { %7226 = vmatprep.subr.bf16.mxu1 %v7225_v27  ;;  %v2094_v23 = vld [vmem:[%s10142_s5 + $0x7f0] sm:$0xff]  ;;  %s12334_s5 = sld [smem:[#allocation72_spill]] }
 0x616   : > { %v7243_v27 = vpack.c.bf16 %v2094_v23, %v2086_v22  ;;  %2956 = vperm.xlu0 %8314, %v2931_v25  }
 0x617   : > { %7164 = vmatpush1.bf16.msra.mxu0 %v7163_v33  ;;  %v2935_v33 = vld [vmem:[%s12244_s11 + $0x40] sm:$0xff] }
 0x618   : > { %7228 = vmatpush1.bf16.msra.mxu1 %v7227_v36  ;;  %7166 = vmatprep.subr.bf16.mxu0 %v7165_v37  ;;  %v2936_v36 = vld [vmem:[%s12244_s11 + $0x48] sm:$0xff]  ;;  %v2440_v37 = vld [vmem:[%s10153_s20 + $0x10] sm:$0xff] }
 0x619   : > { %7230 = vmatprep.subr.bf16.mxu1 %v7229_v41  ;;  %2971 = vperm.xlu1 %8315, %v2936_v36   ;;  %v2939_v41 = vld [vmem:[%s12244_s11 + $0x60] sm:$0xff] }
 0x61a   : > { %2962 = vperm.xlu0 %8314, %v2933_v29  }
 0x61b   : > { %7168 = vmatpush1.bf16.msra.mxu0 %v7167_v46  ;;  %v2942_v46 = vld [vmem:[%s12244_s11 + $0x78] sm:$0xff] }
 0x61c   : > { %7232 = vmatpush1.bf16.msra.mxu1 %v7231_v49  ;;  %7170 = vmatprep.subr.bf16.mxu0 %v7169_v50  ;;  %v2425_v49 = vld [vmem:[%s12245_s19 + $0x18] sm:$0xff] }
 0x61d   : > { %7234 = vmatprep.subr.bf16.mxu1 %v7233_v54  ;;  %2977 = vperm.xlu1 %8315, %v2938_v39   ;;  %v2437_v50 = vld [vmem:[%s12245_s19 + $0x78] sm:$0xff] }
 0x61e   : > { %2968 = vperm.xlu0 %8314, %v2935_v33   ;;  %v2429_v54 = vld [vmem:[%s12245_s19 + $0x38] sm:$0xff] }
 0x61f   : > { %7172 = vmatpush1.bf16.msra.mxu0 %v7171_v60  ;;  %v10639_v60 = vsub.s32 0, %v10223_v3 }
 0x620   : > { %7236 = vmatpush1.bf16.msra.mxu1 %v7235_v63  ;;  %7174 = vmatprep.subr.bf16.mxu0 %v7173_v0  ;;  %v2109_v63 = vrot.slane %v10636_v59, %v10630_v57  ;;  %v2105_v0 = vrot.slane %v10636_v59, %v10633_v58 }
 0x621   : > { %7238 = vmatprep.subr.bf16.mxu1 %v7237_v6  ;;  %2983 = vperm.xlu1 %8315, %v2940_v43   ;;  %12248 = vst [vmem:[#allocation106_spill] sm:$0xff] %v10639_v60  ;;  %v2101_v1 = vrot.slane %v10636_v59, %v10639_v60  ;;  %v2124_v43 = vsub.s32 6, %v10223_v3 }
 0x623   : > { %7176 = vmatpush1.bf16.msra.mxu0 %v7175_v14 }
 0x624   : > { %7240 = vmatpush1.bf16.msra.mxu1 %v7239_v17  ;;  %7178 = vmatprep.subr.bf16.mxu0 %v7177_v18 }
 0x625   : > { %7242 = vmatprep.subr.bf16.mxu1 %v7241_v21  ;;  %2989 = vperm.xlu1 %8315, %v2942_v46  }
 0x627   : > { %7180 = vmatpush1.bf16.msra.mxu0 %v7179_v24 }
 0x628   : > { %7244 = vmatpush1.bf16.msra.mxu1 %v7243_v27  ;;  %2491 = vmatprep.subr.mxu0 %v2439_v28 }
 0x629   : > { %7837 = vmatprep.subr.mxu1 %v2439_v28 }
 0x62a   : > { %2345 = vmatmul.mubr.f32.vlgmr.msra.gmra.mrb[2].mxu0 %v10375_v10 }
 0x62b   : > { %2416 = vmatmul.mubr.f32.vlgmr.msra.gmra.mrb[2].mxu1 %v10375_v10  ;;  %2492 = vmatpush1.msra.mxu0 %v2438_v31  ;;  %v2937_v10 = vld [vmem:[%s12244_s11 + $0x50] sm:$0xff] }
 0x62c   : > { %7838 = vmatpush1.msra.mxu1 %v2438_v31  ;;  %2615 = vmatprep.mubr.f32.mxu1 %v12063_v34 }
 0x62d   : > { %2652 = vmatprep.subr.mxu1 %v2441_v32  ;;  %2555 = vmatprep.mubr.f32.mxu0 %v12063_v34 }
 0x62e   : > { %6672 = vmatmul.mubr.msk.f32.vlgmr.msra.gmra.mrb[4].mxu0 %vm12127_vm1, %v2422_v40  ;;  %2974 = vperm.xlu0 %8314, %v2937_v10  }
 0x62f   : > { %6682 = vmatmul.mubr.msk.f32.vlgmr.msra.gmra.mrb[4].mxu1 %vm12127_vm1, %v10529_v35  ;;  %2561 = vmatprep.mubr.f32.mxu0 %v12063_v34 }
 0x630   : > { %2621 = vmatprep.mubr.f32.mxu1 %v12063_v34  ;;  %2653 = vmatpush1.msra.mxu1 %v2440_v37 }
 0x632   : > { %6673 = vmatmul.mubr.msk.f32.gmra.mrb[6].mxu0 %vm12127_vm1, %v2423_v8  ;;  %2980 = vperm.xlu0 %8314, %v2939_v41  }
 0x633   : > { %6683 = vmatmul.mubr.msk.f32.gmra.mrb[6].mxu1 %vm12127_vm1, %v10539_v38  ;;  %2567 = vmatprep.mubr.f32.mxu0 %v12063_v34 }
 0x634   : > { %2627 = vmatprep.mubr.f32.mxu1 %v12063_v34 }
 0x636   : > { %6674 = vmatmul.mubr.msk.f32.gmra.mrb[8].mxu0 %vm12127_vm1, %v2424_v47  ;;  %2986 = vperm.xlu0 %8314, %v2941_v44   ;;  %v12062_v44 = vsub.s32 4, %v10223_v3 }
 0x637   : > { %6684 = vmatmul.mubr.msk.f32.gmra.mrb[8].mxu1 %vm12127_vm1, %v10550_v42  ;;  %2573 = vmatprep.mubr.f32.mxu0 %v12063_v34 }
 0x638   : > { %2633 = vmatprep.mubr.f32.mxu1 %v12063_v34 }
 0x63a   : > { %6675 = vmatmul.mubr.msk.f32.gmra.mrb[10].mxu0 %vm12127_vm1, %v2425_v49 }
 0x63b   : > { %6685 = vmatmul.mubr.msk.f32.gmra.mrb[10].mxu1 %vm12127_vm1, %v2435_v45  ;;  %2579 = vmatprep.mubr.f32.mxu0 %v12063_v34 }
 0x63c   : > { %2639 = vmatprep.mubr.f32.mxu1 %v12063_v34 }
 0x63e   : > { %6676 = vmatmul.mubr.msk.f32.gmra.mrb[12].mxu0 %vm12127_vm1, %v2426_v51 }
 0x63f   : > { %6686 = vmatmul.mubr.msk.f32.gmra.mrb[12].mxu1 %vm12127_vm1, %v2436_v48  ;;  %2585 = vmatprep.mubr.f32.mxu0 %v12063_v34 }
 0x640   : > { %2645 = vmatprep.mubr.f32.mxu1 %v12063_v34 }
 0x642   : > { %6677 = vmatmul.mubr.msk.f32.gmra.mrb[14].mxu0 %vm12127_vm1, %v2427_v52 }
 0x643   : > { %6687 = vmatmul.mubr.msk.f32.gmra.mrb[14].mxu1 %vm12127_vm1, %v2437_v50  ;;  %2591 = vmatprep.mubr.f32.mxu0 %v12063_v34 }
 0x644   : > { %2716 = vmatprep.mubr.f32.mxu1 %v12063_v34 }
 0x646   : > { %6678 = vmatmul.mubr.msk.f32.gmra.mrb[16].mxu0 %vm12127_vm1, %v2428_v53 }
 0x647   : > { %6688 = vmatmul.mubr.msk.f32.vlgmr.msra.gmra.mrb[16].mxu1 %vm12127_vm1, %v2422_v40  ;;  %2597 = vmatprep.mubr.f32.mxu0 %v12063_v34 }
 0x648   : > { %2722 = vmatprep.mubr.f32.mxu1 %v12063_v34 }
 0x64a   : > { %6679 = vmatmul.mubr.msk.f32.gmra.mrb[18].mxu0 %vm12127_vm1, %v2429_v54 }
 0x64b   : > { %6689 = vmatmul.mubr.msk.f32.gmra.mrb[18].mxu1 %vm12127_vm1, %v2423_v8  ;;  %2603 = vmatprep.mubr.f32.mxu0 %v12063_v34  ;;  %v12061_v8 = vsub.s32 5, %v10223_v3 }
 0x64c   : > { %2728 = vmatprep.mubr.f32.mxu1 %v12063_v34 }
 0x64e   : > { %6680 = vmatmul.mubr.msk.f32.gmra.mrb[20].mxu0 %vm12127_vm1, %v2430_v55 }
 0x64f   : > { %6690 = vmatmul.mubr.msk.f32.gmra.mrb[20].mxu1 %vm12127_vm1, %v2424_v47  ;;  %2609 = vmatprep.mubr.f32.mxu0 %v12063_v34 }
 0x650   : > { %2734 = vmatprep.mubr.f32.mxu1 %v12063_v34 }
 0x652   : > { %6681 = vmatmul.mubr.msk.f32.gmra.mrb[22].mxu0 %vm12127_vm1, %v2431_v56 }
 0x653   : > { %6691 = vmatmul.mubr.msk.f32.gmra.mrb[22].mxu1 %vm12127_vm1, %v2425_v49  ;;  %3151 = vmatprep.mubr.f32.mxu0 %v12063_v34  ;;  %v2121_v49 = vrot.slane %v10636_v59, %v12061_v8 }
 0x654   : > { %2740 = vmatprep.mubr.f32.mxu1 %v12063_v34 }
 0x657   : > { %6692 = vmatmul.mubr.msk.f32.gmra.mrb[24].mxu1 %vm12127_vm1, %v2426_v51 }
 0x658   : > { %2746 = vmatprep.mubr.f32.mxu1 %v12063_v34 }
 0x65b   : > { %6693 = vmatmul.mubr.msk.f32.gmra.mrb[26].mxu1 %vm12127_vm1, %v2427_v52 }
 0x65c   : > { %2752 = vmatprep.mubr.f32.mxu1 %v12063_v34 }
 0x65f   : > { %6694 = vmatmul.mubr.msk.f32.gmra.mrb[28].mxu1 %vm12127_vm1, %v2428_v53 }
 0x660   : > { %2758 = vmatprep.mubr.f32.mxu1 %v12063_v34 }
 0x662   : > { %v2833_v5 = vpop.permute.xlu0 %2832 }
 0x663   : > { %6695 = vmatmul.mubr.msk.f32.gmra.mrb[30].mxu1 %vm12127_vm1, %v2429_v54  ;;  %vm2879_vm2 = vcmp.eq.s32.totalorder %v10645_v62, %v2833_v5 }
 0x664   : > { %2764 = vmatprep.mubr.f32.mxu1 %v12063_v34  ;;  %v6704_v15 = vsel %vm2879_vm2, 1.0, %v12063_v34  ;;  %v2839_v17 = vpop.permute.xlu1 %2838 }
 0x665   : > { %vm2881_vm4 = vcmp.eq.s32.totalorder %v10645_v62, %v2839_v17 }
 0x666   : > { %v6706_v19 = vsel %vm2881_vm4, 1.0, %v12063_v34 }
 0x667   : > { %6696 = vmatmul.mubr.msk.f32.gmra.mrb[32].mxu1 %vm12127_vm1, %v2430_v55 }
 0x668   : > { %2770 = vmatprep.mubr.f32.mxu1 %v12063_v34  ;;  %v2842_v20 = vpop.permute.xlu1 %2841 }
 0x669   : > { %vm2882_vm5 = vcmp.eq.s32.totalorder %v10645_v62, %v2842_v20 }
 0x66a   : > { %v6707_v22 = vsel %vm2882_vm5, 1.0, %v12063_v34 }
 0x66b   : > { %6697 = vmatmul.mubr.msk.f32.gmra.mrb[34].mxu1 %vm12127_vm1, %v2431_v56 }
 0x66c   : > { %2776 = vmatprep.mubr.f32.mxu1 %v12063_v34 }
 0x66d   : > { %v2848_v24 = vpop.permute.xlu1 %2847 }
 0x66e   : > { %vm2884_vm7 = vcmp.eq.s32.totalorder %v10645_v62, %v2848_v24 }
 0x66f   : > { %6698 = vmatmul.mubr.msk.f32.gmra.mrb[36].mxu1 %vm12127_vm1, %v10529_v35  ;;  %v6709_v26 = vsel %vm2884_vm7, 1.0, %v12063_v34 }
 0x670   : > { %2782 = vmatprep.mubr.f32.mxu1 %v12063_v34  ;;  %v2836_v16 = vpop.permute.xlu0 %2835 }
 0x671   : > { %vm2880_vm3 = vcmp.eq.s32.totalorder %v10645_v62, %v2836_v16  ;;  %v2854_v28 = vpop.permute.xlu1 %2853 }
 0x672   : > { %v6705_v18 = vsel %vm2880_vm3, 1.0, %v12063_v34  ;;  %vm2886_vm9 = vcmp.eq.s32.totalorder %v10645_v62, %v2854_v28 }
 0x673   : > { %6699 = vmatmul.mubr.msk.f32.gmra.mrb[38].mxu1 %vm12127_vm1, %v10539_v38  ;;  %v6711_v30 = vsel %vm2886_vm9, 1.0, %v12063_v34 }
 0x674   : > { %2788 = vmatprep.mubr.f32.mxu1 %v12063_v34  ;;  %v2845_v21 = vpop.permute.xlu0 %2844 }
 0x675   : > { %vm2883_vm6 = vcmp.eq.s32.totalorder %v10645_v62, %v2845_v21  ;;  %v2860_v32 = vpop.permute.xlu1 %2859 }
 0x676   : > { %v6708_v23 = vsel %vm2883_vm6, 1.0, %v12063_v34  ;;  %vm2888_vm11 = vcmp.eq.s32.totalorder %v10645_v62, %v2860_v32 }
 0x677   : > { %6700 = vmatmul.mubr.msk.f32.gmra.mrb[40].mxu1 %vm12127_vm1, %v10550_v42  ;;  %v6713_v35 = vsel %vm2888_vm11, 1.0, %v12063_v34 }
 0x678   : > { %2794 = vmatprep.mubr.f32.mxu1 %v12063_v34 }
 0x679   : > { %v2851_v25 = vpop.permute.xlu0 %2850  ;;  %v2866_v37 = vpop.permute.xlu1 %2865 }
 0x67a   : > { %vm2885_vm8 = vcmp.eq.s32.totalorder %v10645_v62, %v2851_v25  ;;  %vm2890_vm13 = vcmp.eq.s32.totalorder %v10645_v62, %v2866_v37 }
 0x67b   : > { %6701 = vmatmul.mubr.msk.f32.gmra.mrb[42].mxu1 %vm12127_vm1, %v2435_v45  ;;  %v6710_v27 = vsel %vm2885_vm8, 1.0, %v12063_v34  ;;  %v6715_v38 = vsel %vm2890_vm13, 1.0, %v12063_v34  ;;  %v2128_v45 = vsub.s32 7, %v10223_v3 }
 0x67c   : > { %2800 = vmatprep.mubr.f32.mxu1 %v12063_v34 }
 0x67d   : > { %v2857_v29 = vpop.permute.xlu0 %2856  ;;  %v2872_v40 = vpop.permute.xlu1 %2871  ;;  %v2129_v51 = vrot.slane %v10636_v59, %v2128_v45 }
 0x67e   : > { %vm2887_vm10 = vcmp.eq.s32.totalorder %v10645_v62, %v2857_v29  ;;  %vm2892_vm15 = vcmp.eq.s32.totalorder %v10645_v62, %v2872_v40 }
 0x67f   : > { %6702 = vmatmul.mubr.msk.f32.gmra.mrb[44].mxu1 %vm12127_vm1, %v2436_v48  ;;  %v6712_v31 = vsel %vm2887_vm10, 1.0, %v12063_v34  ;;  %v6717_v42 = vsel %vm2892_vm15, 1.0, %v12063_v34  ;;  %v2125_v48 = vrot.slane %v10636_v59, %v2124_v43 }
 0x680   : > { %2806 = vmatprep.mubr.f32.mxu1 %v12063_v34 }
 0x681   : > { %v2863_v33 = vpop.permute.xlu0 %2862  ;;  %v2878_v47 = vpop.permute.xlu1 %2877 }
 0x682   : > { %vm2889_vm12 = vcmp.eq.s32.totalorder %v10645_v62, %v2863_v33  ;;  %vm2894_vm2 = vcmp.eq.s32.totalorder %v10645_v62, %v2878_v47 }
 0x683   : > { %6703 = vmatmul.mubr.msk.f32.gmra.mrb[46].mxu1 %vm12127_vm1, %v2437_v50  ;;  %v6714_v36 = vsel %vm2889_vm12, 1.0, %v12063_v34  ;;  %v2117_v50 = vrot.slane %v10636_v59, %v12062_v44  ;;  %v6719_v54 = vsel %vm2894_vm2, 1.0, %v12063_v34 }
 0x684   : > { %3312 = vmatprep.mubr.f32.mxu1 %v12063_v34 }
 0x685   : > { %v2869_v10 = vpop.permute.xlu0 %2868 }
 0x686   : > { %vm2891_vm14 = vcmp.eq.s32.totalorder %v10645_v62, %v2869_v10 }
 0x687   : > { %v6716_v39 = vsel %vm2891_vm14, 1.0, %v12063_v34 }
 0x689   : > { %v2875_v41 = vpop.permute.xlu0 %2874 }
 0x68a   : > { %vm2893_vm0 = vcmp.eq.s32.totalorder %v10645_v62, %v2875_v41 }
 0x68b   : > { %v6718_v46 = vsel %vm2893_vm0, 1.0, %v12063_v34 }
 0x68d   : > { %v2945_v52 = vpop.permute.xlu0 %2944 }
 0x68e   : > { %vm2991_vm3 = vcmp.eq.s32.totalorder %v10645_v62, %v2945_v52 }
 0x68f   : > { %v6720_v59 = vsel %vm2991_vm3, 1.0, %v12063_v34 }
 0x6bd   : > { %v2204_v6 = vpop.f32.mrb[0].mxu0 }
 0x6be   : > { %v2275_v7 = vpop.f32.mrb[0].mxu1  ;;  %v2206_v9 = vpop.f32.mrb[1].mxu0  ;;  %v2205_v13 = vadd.f32 %v2204_v6, %v2101_v1 }
 0x6bf   : > { %v2276_v2 = vadd.f32 %v2275_v7, %v2109_v63  ;;  %v2207_v11 = vadd.f32 %v2206_v9, %v2105_v0  ;;  %v2277_v12 = vpop.f32.mrb[1].mxu1  ;;  %v2948_v6 = vpop.permute.xlu1 %2947 }
 0x6c0   : > { %v2278_v14 = vadd.f32 %v2277_v12, %v2113_v4  ;;  %vm2992_vm4 = vcmp.eq.s32.totalorder %v10645_v62, %v2948_v6 }
 0x6c1   : > { %3087 = vmatprep.subr.mxu0 %v2207_v11  ;;  %v6721_v11 = vsel %vm2992_vm4, 1.0, %v12063_v34 }
 0x6c2   : > { %3248 = vmatprep.subr.mxu1 %v2278_v14  ;;  %3088 = vmatpush1.msra.mxu0 %v2205_v13 }
 0x6c3   : > { %3249 = vmatpush1.msra.mxu1 %v2276_v2  ;;  %6736 = vmatmul.mubr.msk.f32.vlgmr.msra.gmra.mrb[24].mxu0 %vm12127_vm1, %v6704_v15  ;;  %v2951_v2 = vpop.permute.xlu0 %2950 }
 0x6c4   : > { %6752 = vmatmul.mubr.msk.f32.vlgmr.msra.gmra.mrb[48].mxu1 %vm12127_vm1, %v6704_v15  ;;  %3157 = vmatprep.mubr.f32.mxu0 %v12063_v34  ;;  %vm2993_vm5 = vcmp.eq.s32.totalorder %v10645_v62, %v2951_v2  ;;  %v2954_v15 = vpop.permute.xlu1 %2953 }
 0x6c5   : > { %3318 = vmatprep.mubr.f32.mxu1 %v12063_v34  ;;  %v6722_v14 = vsel %vm2993_vm5, 1.0, %v12063_v34  ;;  %vm2994_vm6 = vcmp.eq.s32.totalorder %v10645_v62, %v2954_v15 }
 0x6c7   : > { %6737 = vmatmul.mubr.msk.f32.gmra.mrb[26].mxu0 %vm12127_vm1, %v6705_v18 }
 0x6c8   : > { %6753 = vmatmul.mubr.msk.f32.gmra.mrb[50].mxu1 %vm12127_vm1, %v6705_v18  ;;  %3163 = vmatprep.mubr.f32.mxu0 %v12063_v34  ;;  %v2957_v18 = vpop.permute.xlu0 %2956 }
 0x6c9   : > { %3324 = vmatprep.mubr.f32.mxu1 %v12063_v34  ;;  %vm2995_vm7 = vcmp.eq.s32.totalorder %v10645_v62, %v2957_v18 }
 0x6cb   : > { %6738 = vmatmul.mubr.msk.f32.gmra.mrb[28].mxu0 %vm12127_vm1, %v6706_v19 }
 0x6cc   : > { %6754 = vmatmul.mubr.msk.f32.gmra.mrb[52].mxu1 %vm12127_vm1, %v6706_v19  ;;  %3169 = vmatprep.mubr.f32.mxu0 %v12063_v34  ;;  %v6723_v19 = vsel %vm2994_vm6, 1.0, %v12063_v34 }
 0x6cd   : > { %3330 = vmatprep.mubr.f32.mxu1 %v12063_v34 }
 0x6cf   : > { %6739 = vmatmul.mubr.msk.f32.gmra.mrb[30].mxu0 %vm12127_vm1, %v6707_v22 }
 0x6d0   : > { %6755 = vmatmul.mubr.msk.f32.gmra.mrb[54].mxu1 %vm12127_vm1, %v6707_v22  ;;  %3175 = vmatprep.mubr.f32.mxu0 %v12063_v34  ;;  %v6724_v22 = vsel %vm2995_vm7, 1.0, %v12063_v34 }
 0x6d1   : > { %3336 = vmatprep.mubr.f32.mxu1 %v12063_v34 }
 0x6d3   : > { %6740 = vmatmul.mubr.msk.f32.gmra.mrb[32].mxu0 %vm12127_vm1, %v6708_v23 }
 0x6d4   : > { %6756 = vmatmul.mubr.msk.f32.gmra.mrb[56].mxu1 %vm12127_vm1, %v6708_v23  ;;  %3181 = vmatprep.mubr.f32.mxu0 %v12063_v34  ;;  %v2960_v23 = vpop.permute.xlu1 %2959 }
 0x6d5   : > { %3342 = vmatprep.mubr.f32.mxu1 %v12063_v34  ;;  %vm2996_vm8 = vcmp.eq.s32.totalorder %v10645_v62, %v2960_v23 }
 0x6d7   : > { %6741 = vmatmul.mubr.msk.f32.gmra.mrb[34].mxu0 %vm12127_vm1, %v6709_v26 }
 0x6d8   : > { %6757 = vmatmul.mubr.msk.f32.gmra.mrb[58].mxu1 %vm12127_vm1, %v6709_v26  ;;  %3187 = vmatprep.mubr.f32.mxu0 %v12063_v34  ;;  %v2963_v26 = vpop.permute.xlu0 %2962 }
 0x6d9   : > { %3348 = vmatprep.mubr.f32.mxu1 %v12063_v34  ;;  %vm2997_vm9 = vcmp.eq.s32.totalorder %v10645_v62, %v2963_v26 }
 0x6db   : > { %6742 = vmatmul.mubr.msk.f32.gmra.mrb[36].mxu0 %vm12127_vm1, %v6710_v27 }
 0x6dc   : > { %6758 = vmatmul.mubr.msk.f32.gmra.mrb[60].mxu1 %vm12127_vm1, %v6710_v27  ;;  %3193 = vmatprep.mubr.f32.mxu0 %v12063_v34  ;;  %v6725_v27 = vsel %vm2996_vm8, 1.0, %v12063_v34  ;;  %v2969_v32 = vpop.permute.xlu0 %2968 }
 0x6dd   : > { %3354 = vmatprep.mubr.f32.mxu1 %v12063_v34  ;;  %vm2999_vm11 = vcmp.eq.s32.totalorder %v10645_v62, %v2969_v32 }
 0x6df   : > { %6743 = vmatmul.mubr.msk.f32.gmra.mrb[38].mxu0 %vm12127_vm1, %v6711_v30 }
 0x6e0   : > { %6759 = vmatmul.mubr.msk.f32.gmra.mrb[62].mxu1 %vm12127_vm1, %v6711_v30  ;;  %3199 = vmatprep.mubr.f32.mxu0 %v12063_v34  ;;  %v6726_v30 = vsel %vm2997_vm9, 1.0, %v12063_v34  ;;  %v2975_v37 = vpop.permute.xlu0 %2974 }
 0x6e1   : > { %3360 = vmatprep.mubr.f32.mxu1 %v12063_v34  ;;  %vm3001_vm13 = vcmp.eq.s32.totalorder %v10645_v62, %v2975_v37 }
 0x6e3   : > { %6744 = vmatmul.mubr.msk.f32.gmra.mrb[40].mxu0 %vm12127_vm1, %v6712_v31 }
 0x6e4   : > { %6760 = vmatmul.mubr.msk.f32.gmra.mrb[64].mxu1 %vm12127_vm1, %v6712_v31  ;;  %3205 = vmatprep.mubr.f32.mxu0 %v12063_v34  ;;  %v2966_v31 = vpop.permute.xlu1 %2965  ;;  %v2981_v40 = vpop.permute.xlu0 %2980 }
 0x6e5   : > { %3366 = vmatprep.mubr.f32.mxu1 %v12063_v34  ;;  %vm2998_vm10 = vcmp.eq.s32.totalorder %v10645_v62, %v2966_v31  ;;  %vm3003_vm15 = vcmp.eq.s32.totalorder %v10645_v62, %v2981_v40 }
 0x6e6   : > { %v6727_v33 = vsel %vm2998_vm10, 1.0, %v12063_v34 }
 0x6e7   : > { %6745 = vmatmul.mubr.msk.f32.gmra.mrb[42].mxu0 %vm12127_vm1, %v6713_v35 }
 0x6e8   : > { %6761 = vmatmul.mubr.msk.f32.gmra.mrb[66].mxu1 %vm12127_vm1, %v6713_v35  ;;  %3211 = vmatprep.mubr.f32.mxu0 %v12063_v34  ;;  %v6728_v35 = vsel %vm2999_vm11, 1.0, %v12063_v34  ;;  %v2987_v45 = vpop.permute.xlu0 %2986 }
 0x6e9   : > { %3372 = vmatprep.mubr.f32.mxu1 %v12063_v34  ;;  %vm3005_vm2 = vcmp.eq.s32.totalorder %v10645_v62, %v2987_v45 }
 0x6eb   : > { %6746 = vmatmul.mubr.msk.f32.gmra.mrb[44].mxu0 %vm12127_vm1, %v6714_v36 }
 0x6ec   : > { %6762 = vmatmul.mubr.msk.f32.gmra.mrb[68].mxu1 %vm12127_vm1, %v6714_v36  ;;  %3217 = vmatprep.mubr.f32.mxu0 %v12063_v34  ;;  %v2972_v36 = vpop.permute.xlu1 %2971 }
 0x6ed   : > { %3378 = vmatprep.mubr.f32.mxu1 %v12063_v34  ;;  %vm3000_vm12 = vcmp.eq.s32.totalorder %v10645_v62, %v2972_v36 }
 0x6ee   : > { %v6729_v10 = vsel %vm3000_vm12, 1.0, %v12063_v34 }
 0x6ef   : > { %6747 = vmatmul.mubr.msk.f32.gmra.mrb[46].mxu0 %vm12127_vm1, %v6715_v38 }
 0x6f0   : > { %6763 = vmatmul.mubr.msk.f32.gmra.mrb[70].mxu1 %vm12127_vm1, %v6715_v38  ;;  %3223 = vmatprep.mubr.f32.mxu0 %v12063_v34  ;;  %v6730_v38 = vsel %vm3001_vm13, 1.0, %v12063_v34 }
 0x6f1   : > { %3384 = vmatprep.mubr.f32.mxu1 %v12063_v34 }
 0x6f3   : > { %6748 = vmatmul.mubr.msk.f32.gmra.mrb[48].mxu0 %vm12127_vm1, %v6716_v39 }
 0x6f4   : > { %6764 = vmatmul.mubr.msk.f32.gmra.mrb[72].mxu1 %vm12127_vm1, %v6716_v39  ;;  %3229 = vmatprep.mubr.f32.mxu0 %v12063_v34  ;;  %v2978_v39 = vpop.permute.xlu1 %2977 }
 0x6f5   : > { %3390 = vmatprep.mubr.f32.mxu1 %v12063_v34  ;;  %vm3002_vm14 = vcmp.eq.s32.totalorder %v10645_v62, %v2978_v39 }
 0x6f6   : > { %v6731_v41 = vsel %vm3002_vm14, 1.0, %v12063_v34 }
 0x6f7   : > { %6749 = vmatmul.mubr.msk.f32.gmra.mrb[50].mxu0 %vm12127_vm1, %v6717_v42 }
 0x6f8   : > { %6765 = vmatmul.mubr.msk.f32.gmra.mrb[74].mxu1 %vm12127_vm1, %v6717_v42  ;;  %3235 = vmatprep.mubr.f32.mxu0 %v12063_v34  ;;  %v6732_v42 = vsel %vm3003_vm15, 1.0, %v12063_v34  ;;  %v2984_v43 = vpop.permute.xlu1 %2983 }
 0x6f9   : > { %3396 = vmatprep.mubr.f32.mxu1 %v12063_v34  ;;  %vm3004_vm0 = vcmp.eq.s32.totalorder %v10645_v62, %v2984_v43 }
 0x6fb   : > { %6750 = vmatmul.mubr.msk.f32.gmra.mrb[52].mxu0 %vm12127_vm1, %v6718_v46 }
 0x6fc   : > { %6766 = vmatmul.mubr.msk.f32.gmra.mrb[76].mxu1 %vm12127_vm1, %v6718_v46  ;;  %3241 = vmatprep.mubr.f32.mxu0 %v12063_v34  ;;  %v6733_v46 = vsel %vm3004_vm0, 1.0, %v12063_v34  ;;  %v2990_v47 = vpop.permute.xlu1 %2989 }
 0x6fd   : > { %v2346_v53 = vpop.f32.mrb[2].mxu0  ;;  %3402 = vmatprep.mubr.f32.mxu1 %v12063_v34  ;;  %vm3006_vm3 = vcmp.eq.s32.totalorder %v10645_v62, %v2990_v47 }
 0x6fe   : > { %v2417_v55 = vpop.f32.mrb[2].mxu1  ;;  %v2348_v56 = vpop.f32.mrb[3].mxu0  ;;  %v2347_v4 = vadd.f32 %v2346_v53, %v2117_v50 }
 0x6ff   : > { %v2418_v63 = vadd.f32 %v2417_v55, %v2125_v48  ;;  %v2349_v0 = vadd.f32 %v2348_v56, %v2121_v49  ;;  %v2419_v1 = vpop.f32.mrb[3].mxu1  ;;  %6751 = vmatmul.mubr.msk.f32.gmra.mrb[54].mxu0 %vm12127_vm1, %v6719_v54  ;;  %v6734_v48 = vsel %vm3005_vm2, 1.0, %v12063_v34  ;;  %v6735_v49 = vsel %vm3006_vm3, 1.0, %v12063_v34 }
 0x700   : > { %v2420_v5 = vadd.f32 %v2419_v1, %v2129_v51  ;;  %6767 = vmatmul.mubr.msk.f32.gmra.mrb[78].mxu1 %vm12127_vm1, %v6719_v54  ;;  %3521 = vmatprep.mubr.f32.mxu0 %v12063_v34 }
 0x701   : > { %3457 = vmatprep.subr.mxu0 %v2349_v0  ;;  %3682 = vmatprep.mubr.f32.mxu1 %v12063_v34 }
 0x702   : > { %3618 = vmatprep.subr.mxu1 %v2420_v5  ;;  %3458 = vmatpush1.msra.mxu0 %v2347_v4  ;;  %v10765_v7 = vpop.f32.mrb[4].mxu1 }
 0x703   : > { %3619 = vmatpush1.msra.mxu1 %v2418_v63  ;;  %6768 = vmatmul.mubr.msk.f32.vlgmr.msra.gmra.mrb[4].mxu0 %vm12127_vm1, %v6720_v59  ;;  %v10769_v9 = vpop.f32.mrb[5].mxu1 }
 0x704   : > { %6784 = vmatmul.mubr.msk.f32.vlgmr.msra.gmra.mrb[16].mxu1 %vm12127_vm1, %v6720_v59  ;;  %3527 = vmatprep.mubr.f32.mxu0 %v12063_v34 }
 0x705   : > { %3688 = vmatprep.mubr.f32.mxu1 %v12063_v34 }
 0x706   : > { %v10775_v12 = vpop.f32.mrb[6].mxu1 }
 0x707   : > { %6769 = vmatmul.mubr.msk.f32.gmra.mrb[6].mxu0 %vm12127_vm1, %v6721_v11  ;;  %v10779_v13 = vpop.f32.mrb[7].mxu1 }
 0x708   : > { %6785 = vmatmul.mubr.msk.f32.gmra.mrb[18].mxu1 %vm12127_vm1, %v6721_v11  ;;  %3533 = vmatprep.mubr.f32.mxu0 %v12063_v34 }
 0x709   : > { %3694 = vmatprep.mubr.f32.mxu1 %v12063_v34 }
 0x70a   : > { %v10785_v16 = vpop.f32.mrb[8].mxu1 }
 0x70b   : > { %6770 = vmatmul.mubr.msk.f32.gmra.mrb[8].mxu0 %vm12127_vm1, %v6722_v14  ;;  %v10789_v17 = vpop.f32.mrb[9].mxu1 }
 0x70c   : > { %6786 = vmatmul.mubr.msk.f32.gmra.mrb[20].mxu1 %vm12127_vm1, %v6722_v14  ;;  %3539 = vmatprep.mubr.f32.mxu0 %v12063_v34 }
 0x70d   : > { %3700 = vmatprep.mubr.f32.mxu1 %v12063_v34 }
 0x70e   : > { %v10795_v20 = vpop.f32.mrb[10].mxu1 }
 0x70f   : > { %6771 = vmatmul.mubr.msk.f32.gmra.mrb[10].mxu0 %vm12127_vm1, %v6723_v19  ;;  %v10799_v21 = vpop.f32.mrb[11].mxu1 }
 0x710   : > { %6787 = vmatmul.mubr.msk.f32.gmra.mrb[22].mxu1 %vm12127_vm1, %v6723_v19  ;;  %3545 = vmatprep.mubr.f32.mxu0 %v12063_v34 }
 0x711   : > { %3706 = vmatprep.mubr.f32.mxu1 %v12063_v34 }
 0x712   : > { %v10805_v24 = vpop.f32.mrb[12].mxu1 }
 0x713   : > { %6772 = vmatmul.mubr.msk.f32.gmra.mrb[12].mxu0 %vm12127_vm1, %v6724_v22  ;;  %v10809_v25 = vpop.f32.mrb[13].mxu1 }
 0x714   : > { %6788 = vmatmul.mubr.msk.f32.gmra.mrb[24].mxu1 %vm12127_vm1, %v6724_v22  ;;  %3551 = vmatprep.mubr.f32.mxu0 %v12063_v34 }
 0x715   : > { %3712 = vmatprep.mubr.f32.mxu1 %v12063_v34 }
 0x716   : > { %v10815_v28 = vpop.f32.mrb[14].mxu1 }
 0x717   : > { %6773 = vmatmul.mubr.msk.f32.gmra.mrb[14].mxu0 %vm12127_vm1, %v6725_v27  ;;  %v10819_v29 = vpop.f32.mrb[15].mxu1 }
 0x718   : > { %6789 = vmatmul.mubr.msk.f32.gmra.mrb[26].mxu1 %vm12127_vm1, %v6725_v27  ;;  %3557 = vmatprep.mubr.f32.mxu0 %v12063_v34 }
 0x719   : > { %3718 = vmatprep.mubr.f32.mxu1 %v12063_v34 }
 0x71b   : > { %6774 = vmatmul.mubr.msk.f32.gmra.mrb[16].mxu0 %vm12127_vm1, %v6726_v30 }
 0x71c   : > { %6790 = vmatmul.mubr.msk.f32.gmra.mrb[28].mxu1 %vm12127_vm1, %v6726_v30  ;;  %3563 = vmatprep.mubr.f32.mxu0 %v12063_v34 }
 0x71d   : > { %3724 = vmatprep.mubr.f32.mxu1 %v12063_v34 }
 0x71f   : > { %6775 = vmatmul.mubr.msk.f32.gmra.mrb[18].mxu0 %vm12127_vm1, %v6727_v33 }
 0x720   : > { %6791 = vmatmul.mubr.msk.f32.gmra.mrb[30].mxu1 %vm12127_vm1, %v6727_v33  ;;  %3569 = vmatprep.mubr.f32.mxu0 %v12063_v34  ;;  %v10937_v33 = vld [vmem:[%s10161_s27] sm:$0xf] }
 0x721   : > { %3730 = vmatprep.mubr.f32.mxu1 %v12063_v34  ;;  %12258 = vst [vmem:[#allocation116_spill] sm:$0xff] %v10937_v33  ;;  %v4116_v36 = vrot.slane %v10937_v33, %v10633_v58 }
 0x723   : > { %6776 = vmatmul.mubr.msk.f32.gmra.mrb[20].mxu0 %vm12127_vm1, %v6728_v35 }
 0x724   : > { %6792 = vmatmul.mubr.msk.f32.gmra.mrb[32].mxu1 %vm12127_vm1, %v6728_v35  ;;  %3575 = vmatprep.mubr.f32.mxu0 %v12063_v34 }
 0x725   : > { %3736 = vmatprep.mubr.f32.mxu1 %v12063_v34 }
 0x727   : > { %6777 = vmatmul.mubr.msk.f32.gmra.mrb[22].mxu0 %vm12127_vm1, %v6729_v10 }
 0x728   : > { %6793 = vmatmul.mubr.msk.f32.gmra.mrb[34].mxu1 %vm12127_vm1, %v6729_v10  ;;  %3581 = vmatprep.mubr.f32.mxu0 %v12063_v34 }
 0x729   : > { %3742 = vmatprep.mubr.f32.mxu1 %v12063_v34 }
 0x72b   : > { %6778 = vmatmul.mubr.msk.f32.gmra.mrb[56].mxu0 %vm12127_vm1, %v6730_v38 }
 0x72c   : > { %6794 = vmatmul.mubr.msk.f32.gmra.mrb[36].mxu1 %vm12127_vm1, %v6730_v38  ;;  %3587 = vmatprep.mubr.f32.mxu0 %v12063_v34 }
 0x72d   : > { %3748 = vmatprep.mubr.f32.mxu1 %v12063_v34 }
 0x72f   : > { %6779 = vmatmul.mubr.msk.f32.gmra.mrb[58].mxu0 %vm12127_vm1, %v6731_v41 }
 0x730   : > { %6795 = vmatmul.mubr.msk.f32.gmra.mrb[38].mxu1 %vm12127_vm1, %v6731_v41  ;;  %3593 = vmatprep.mubr.f32.mxu0 %v12063_v34 }
 0x731   : > { %3754 = vmatprep.mubr.f32.mxu1 %v12063_v34 }
 0x733   : > { %6780 = vmatmul.mubr.msk.f32.gmra.mrb[60].mxu0 %vm12127_vm1, %v6732_v42 }
 0x734   : > { %6796 = vmatmul.mubr.msk.f32.gmra.mrb[40].mxu1 %vm12127_vm1, %v6732_v42  ;;  %3599 = vmatprep.mubr.f32.mxu0 %v12063_v34 }
 0x735   : > { %3760 = vmatprep.mubr.f32.mxu1 %v12063_v34 }
 0x737   : > { %6781 = vmatmul.mubr.msk.f32.gmra.mrb[62].mxu0 %vm12127_vm1, %v6733_v46 }
 0x738   : > { %6797 = vmatmul.mubr.msk.f32.gmra.mrb[42].mxu1 %vm12127_vm1, %v6733_v46  ;;  %3605 = vmatprep.mubr.f32.mxu0 %v12063_v34 }
 0x739   : > { %3766 = vmatprep.mubr.f32.mxu1 %v12063_v34 }
 0x73b   : > { %6782 = vmatmul.mubr.msk.f32.gmra.mrb[64].mxu0 %vm12127_vm1, %v6734_v48 }
 0x73c   : > { %6798 = vmatmul.mubr.msk.f32.gmra.mrb[44].mxu1 %vm12127_vm1, %v6734_v48  ;;  %3611 = vmatprep.mubr.f32.mxu0 %v12063_v34 }
 0x73d   : > { %3772 = vmatprep.mubr.f32.mxu1 %v12063_v34 }
 0x73f   : > { %6783 = vmatmul.mubr.msk.f32.gmra.mrb[66].mxu0 %vm12127_vm1, %v6735_v49 }
 0x740   : > { %6799 = vmatmul.mubr.msk.f32.gmra.mrb[46].mxu1 %vm12127_vm1, %v6735_v49  ;;  %4183 = vmatprep.mubr.f32.mxu0 %v4116_v36 }
 0x741   : > { %4270 = vmatprep.mubr.f32.mxu1 %v12063_v34 }
 0x796   : > { %v10882_v50 = vpop.f32.mrb[24].mxu0 }
 0x797   : > { %v10884_v51 = vpop.f32.mrb[25].mxu0  ;;  %v10886_v52 = vpop.f32.mrb[48].mxu1 }
 0x798   : > { %12251 = vst [vmem:[#allocation109_spill] sm:$0xff] %v10886_v52  ;;  %v10888_v53 = vpop.f32.mrb[49].mxu1 }
 0x79a   : > { %v10890_v54 = vpop.f32.mrb[26].mxu0 }
 0x79b   : > { %v7279_v55 = vpack.c.bf16 %v10890_v54, %v10882_v50  ;;  %v10894_v56 = vpop.f32.mrb[27].mxu0  ;;  %v10896_v63 = vpop.f32.mrb[50].mxu1 }
 0x79c   : > { %12252 = vst [vmem:[#allocation110_spill] sm:$0xff] %v10896_v63  ;;  %v7277_v0 = vpack.c.bf16 %v10894_v56, %v10884_v51  ;;  %v10902_v4 = vpop.f32.mrb[51].mxu1 }
 0x79e   : > { %v10906_v59 = vpop.f32.mrb[28].mxu0  ;;  %7278 = vmatprep.subr.bf16.mxu1 %v7277_v0 }
 0x79f   : > { %v10908_v6 = vpop.f32.mrb[29].mxu0  ;;  %v10910_v2 = vpop.f32.mrb[52].mxu1  ;;  %7280 = vmatpush1.bf16.msra.mxu1 %v7279_v55 }
 0x7a0   : > { %12253 = vst [vmem:[#allocation111_spill] sm:$0xff] %v10910_v2  ;;  %v10912_v11 = vpop.f32.mrb[53].mxu1 }
 0x7a1   : > { %12254 = vst [vmem:[#allocation112_spill] sm:$0xff] %v10912_v11 }
 0x7a2   : > { %v10914_v14 = vpop.f32.mrb[30].mxu0 }
 0x7a3   : > { %v7283_v15 = vpack.c.bf16 %v10914_v14, %v10906_v59  ;;  %v10918_v18 = vpop.f32.mrb[31].mxu0  ;;  %v10920_v19 = vpop.f32.mrb[54].mxu1 }
 0x7a4   : > { %12255 = vst [vmem:[#allocation113_spill] sm:$0xff] %v10920_v19  ;;  %v7281_v22 = vpack.c.bf16 %v10918_v18, %v10908_v6  ;;  %v10926_v26 = vpop.f32.mrb[55].mxu1 }
 0x7a5   : > { %12256 = vst [vmem:[#allocation114_spill] sm:$0xff] %v10926_v26 }
 0x7a6   : > { %v10930_v30 = vpop.f32.mrb[32].mxu0  ;;  %7282 = vmatprep.subr.bf16.mxu1 %v7281_v22 }
 0x7a7   : > { %v10932_v31 = vpop.f32.mrb[33].mxu0  ;;  %v10934_v32 = vpop.f32.mrb[56].mxu1  ;;  %7284 = vmatpush1.bf16.msra.mxu1 %v7283_v15 }
 0x7a8   : > { %12257 = vst [vmem:[#allocation115_spill] sm:$0xff] %v10934_v32  ;;  %v10939_v35 = vpop.f32.mrb[57].mxu1 }
 0x7a9   : > { %12259 = vst [vmem:[#allocation117_spill] sm:$0xff] %v10939_v35 }
 0x7aa   : > { %v10943_v37 = vpop.f32.mrb[34].mxu0 }
 0x7ab   : > { %v7287_v10 = vpack.c.bf16 %v10943_v37, %v10930_v30  ;;  %v10947_v38 = vpop.f32.mrb[35].mxu0  ;;  %v10949_v39 = vpop.f32.mrb[58].mxu1 }
 0x7ac   : > { %12260 = vst [vmem:[#allocation118_spill] sm:$0xff] %v10949_v39  ;;  %v7285_v40 = vpack.c.bf16 %v10947_v38, %v10932_v31  ;;  %v10955_v42 = vpop.f32.mrb[59].mxu1 }
 0x7ad   : > { %12261 = vst [vmem:[#allocation119_spill] sm:$0xff] %v10955_v42 }
 0x7ae   : > { %v10959_v45 = vpop.f32.mrb[36].mxu0  ;;  %7286 = vmatprep.subr.bf16.mxu1 %v7285_v40 }
 0x7af   : > { %v10961_v46 = vpop.f32.mrb[37].mxu0  ;;  %v10963_v47 = vpop.f32.mrb[60].mxu1  ;;  %7288 = vmatpush1.bf16.msra.mxu1 %v7287_v10 }
 0x7b0   : > { %12262 = vst [vmem:[#allocation120_spill] sm:$0xff] %v10963_v47  ;;  %v10965_v48 = vpop.f32.mrb[61].mxu1 }
 0x7b1   : > { %12263 = vst [vmem:[#allocation121_spill] sm:$0xff] %v10965_v48 }
 0x7b2   : > { %v10967_v49 = vpop.f32.mrb[38].mxu0 }
 0x7b3   : > { %v7291_v55 = vpack.c.bf16 %v10967_v49, %v10959_v45  ;;  %v10971_v0 = vpop.f32.mrb[39].mxu0  ;;  %v10973_v15 = vpop.f32.mrb[62].mxu1 }
 0x7b4   : > { %12264 = vst [vmem:[#allocation122_spill] sm:$0xff] %v10973_v15  ;;  %v7289_v22 = vpack.c.bf16 %v10971_v0, %v10961_v46  ;;  %v10979_v40 = vpop.f32.mrb[63].mxu1 }
 0x7b5   : > { %12265 = vst [vmem:[#allocation123_spill] sm:$0xff] %v10979_v40 }
 0x7b6   : > { %v10983_v8 = vpop.f32.mrb[40].mxu0  ;;  %7290 = vmatprep.subr.bf16.mxu1 %v7289_v22 }
 0x7b7   : > { %v10985_v44 = vpop.f32.mrb[41].mxu0  ;;  %v10987_v41 = vpop.f32.mrb[64].mxu1  ;;  %7292 = vmatpush1.bf16.msra.mxu1 %v7291_v55 }
 0x7b8   : > { %12266 = vst [vmem:[#allocation124_spill] sm:$0xff] %v10987_v41  ;;  %v10989_v43 = vpop.f32.mrb[65].mxu1 }
 0x7b9   : > { %12267 = vst [vmem:[#allocation125_spill] sm:$0xff] %v10989_v43 }
 0x7ba   : > { %v10991_v23 = vpop.f32.mrb[42].mxu0 }
 0x7bb   : > { %v7295_v36 = vpack.c.bf16 %v10991_v23, %v10983_v8  ;;  %v10995_v27 = vpop.f32.mrb[43].mxu0  ;;  %v10997_v1 = vpop.f32.mrb[66].mxu1 }
 0x7bc   : > { %12268 = vst [vmem:[#allocation126_spill] sm:$0xff] %v10997_v1  ;;  %v7293_v10 = vpack.c.bf16 %v10995_v27, %v10985_v44  ;;  %v11003_v34 = vpop.f32.mrb[67].mxu1 }
 0x7bd   : > { %12269 = vst [vmem:[#allocation127_spill] sm:$0xff] %v11003_v34 }
 0x7be   : > { %v3213_v5 = vpop.f32.mrb[44].mxu0  ;;  %7294 = vmatprep.subr.bf16.mxu1 %v7293_v10 }
 0x7bf   : > { %v11008_v62 = vadd.f32 %v3213_v5, %v10765_v7  ;;  %v3215_v58 = vpop.f32.mrb[45].mxu0  ;;  %v11010_v3 = vpop.f32.mrb[68].mxu1  ;;  %7296 = vmatpush1.bf16.msra.mxu1 %v7295_v36 }
 0x7c0   : > { %12271 = vst [vmem:[#allocation129_spill] sm:$0xff] %v11010_v3  ;;  %v11013_v57 = vadd.f32 %v3215_v58, %v10769_v9  ;;  %v11015_v61 = vpop.f32.mrb[69].mxu1 }
 0x7c1   : > { %12270 = vst [vmem:[#allocation128_spill] sm:$0xff] %v11008_v62  ;;  %12273 = vst [vmem:[#allocation131_spill] sm:$0xff] %v11015_v61 }
 0x7c2   : > { %12272 = vst [vmem:[#allocation130_spill] sm:$0xff] %v11013_v57  ;;  %v3219_v22 = vpop.f32.mrb[46].mxu0 }
 0x7c3   : > { %v11018_v33 = vadd.f32 %v3219_v22, %v10775_v12  ;;  %v7299_v60 = vpack.c.bf16 %v3219_v22, %v3213_v5  ;;  %v3221_v55 = vpop.f32.mrb[47].mxu0  ;;  %v11020_v34 = vpop.f32.mrb[70].mxu1 }
 0x7c4   : > { %12274 = vst [vmem:[#allocation132_spill] sm:$0xff] %v11020_v34  ;;  %v11023_v7 = vadd.f32 %v3221_v55, %v10779_v13  ;;  %v7297_v10 = vpack.c.bf16 %v3221_v55, %v3215_v58  ;;  %v11027_v62 = vpop.f32.mrb[71].mxu1 }
 0x7c5   : > { %12276 = vst [vmem:[#allocation134_spill] sm:$0xff] %v11027_v62 }
 0x7c6   : > { %12275 = vst [vmem:[#allocation133_spill] sm:$0xff] %v11023_v7  ;;  %v3225_v57 = vpop.f32.mrb[48].mxu0  ;;  %7298 = vmatprep.subr.bf16.mxu1 %v7297_v10 }
 0x7c7   : > { %v11032_v12 = vadd.f32 %v3225_v57, %v10785_v16  ;;  %v3227_v5 = vpop.f32.mrb[49].mxu0  ;;  %v11034_v22 = vpop.f32.mrb[72].mxu1  ;;  %7300 = vmatpush1.bf16.msra.mxu1 %v7299_v60 }
 0x7c8   : > { %12278 = vst [vmem:[#allocation136_spill] sm:$0xff] %v11034_v22  ;;  %v11037_v13 = vadd.f32 %v3227_v5, %v10789_v17  ;;  %v11039_v58 = vpop.f32.mrb[73].mxu1 }
 0x7c9   : > { %12277 = vst [vmem:[#allocation135_spill] sm:$0xff] %v11032_v12  ;;  %12280 = vst [vmem:[#allocation138_spill] sm:$0xff] %v11039_v58 }
 0x7ca   : > { %12279 = vst [vmem:[#allocation137_spill] sm:$0xff] %v11037_v13  ;;  %v3231_v55 = vpop.f32.mrb[50].mxu0 }
 0x7cb   : > { %v11042_v36 = vadd.f32 %v3231_v55, %v10795_v20  ;;  %v7303_v7 = vpack.c.bf16 %v3231_v55, %v3225_v57  ;;  %v3233_v9 = vpop.f32.mrb[51].mxu0  ;;  %v11044_v62 = vpop.f32.mrb[74].mxu1 }
 0x7cc   : > { %12282 = vst [vmem:[#allocation140_spill] sm:$0xff] %v11044_v62  ;;  %v11047_v16 = vadd.f32 %v3233_v9, %v10799_v21  ;;  %v7301_v10 = vpack.c.bf16 %v3233_v9, %v3227_v5  ;;  %v11051_v12 = vpop.f32.mrb[75].mxu1 }
 0x7cd   : > { %12281 = vst [vmem:[#allocation139_spill] sm:$0xff] %v11042_v36  ;;  %12284 = vst [vmem:[#allocation142_spill] sm:$0xff] %v11051_v12 }
 0x7ce   : > { %12283 = vst [vmem:[#allocation141_spill] sm:$0xff] %v11047_v16  ;;  %v3237_v13 = vpop.f32.mrb[52].mxu0  ;;  %7302 = vmatprep.subr.bf16.mxu1 %v7301_v10 }
 0x7cf   : > { %v11056_v20 = vadd.f32 %v3237_v13, %v10805_v24  ;;  %v3239_v57 = vpop.f32.mrb[53].mxu0  ;;  %v11058_v55 = vpop.f32.mrb[76].mxu1  ;;  %7304 = vmatpush1.bf16.msra.mxu1 %v7303_v7 }
 0x7d0   : > { %12286 = vst [vmem:[#allocation144_spill] sm:$0xff] %v11058_v55  ;;  %v11061_v21 = vadd.f32 %v3239_v57, %v10809_v25  ;;  %v11063_v9 = vpop.f32.mrb[77].mxu1 }
 0x7d1   : > { %12285 = vst [vmem:[#allocation143_spill] sm:$0xff] %v11056_v20  ;;  %12288 = vst [vmem:[#allocation146_spill] sm:$0xff] %v11063_v9 }
 0x7d2   : > { %12287 = vst [vmem:[#allocation145_spill] sm:$0xff] %v11061_v21  ;;  %v3243_v5 = vpop.f32.mrb[54].mxu0 }
 0x7d3   : > { %v11066_v60 = vadd.f32 %v3243_v5, %v10815_v28  ;;  %v7307_v16 = vpack.c.bf16 %v3243_v5, %v3237_v13  ;;  %v3245_v17 = vpop.f32.mrb[55].mxu0  ;;  %v11068_v12 = vpop.f32.mrb[78].mxu1 }
 0x7d4   : > { %12290 = vst [vmem:[#allocation148_spill] sm:$0xff] %v11068_v12  ;;  %v11071_v24 = vadd.f32 %v3245_v17, %v10819_v29  ;;  %v7305_v10 = vpack.c.bf16 %v3245_v17, %v3239_v57  ;;  %v11075_v20 = vpop.f32.mrb[79].mxu1  ;;  %v12293_v57 = vpack.c.bf16 %v10902_v4, %v10888_v53 }
 0x7d5   : > { %12289 = vst [vmem:[#allocation147_spill] sm:$0xff] %v11066_v60  ;;  %12292 = vst [vmem:[#allocation150_spill] sm:$0xff] %v11075_v20 }
 0x7d6   : > { %12291 = vst [vmem:[#allocation149_spill] sm:$0xff] %v11071_v24  ;;  %v3523_v21 = vpop.f32.mrb[4].mxu0  ;;  %7306 = vmatprep.subr.bf16.mxu1 %v7305_v10 }
 0x7d7   : > { %v3779_v28 = vadd.f32 %v3523_v21, %v10882_v50  ;;  %v3684_v13 = vpop.f32.mrb[16].mxu1  ;;  %v3525_v5 = vpop.f32.mrb[5].mxu0  ;;  %7308 = vmatpush1.bf16.msra.mxu1 %v7307_v16 }
 0x7d8   : > { %v3781_v60 = vadd.f32 %v3684_v13, %v10886_v52  ;;  %v3780_v29 = vadd.f32 %v3525_v5, %v10884_v51  ;;  %v3686_v17 = vpop.f32.mrb[17].mxu1  ;;  %7342 = vmatprep.subr.bf16.mxu1 %v12293_v57 }
 0x7d9   : > { %v3971_v7 = vmul.f32 0.2, %v3779_v28  ;;  %v3782_v24 = vadd.f32 %v3686_v17, %v10888_v53  ;;  %vm3907_vm4 = vcmp.gt.f32.partialorder %v3779_v28, 0.0 }
 0x7da   : > { %vm3909_vm5 = vcmp.gt.f32.partialorder %v3781_v60, 0.0  ;;  %v3973_v10 = vmul.f32 0.2, %v3781_v60  ;;  %v3529_v25 = vpop.f32.mrb[6].mxu0  ;;  %vm3908_vm6 = vcmp.gt.f32.partialorder %v3780_v29, 0.0 }
 0x7db   : > { %v3690_v50 = vpop.f32.mrb[18].mxu1  ;;  %v3972_v21 = vmul.f32 0.2, %v3780_v29  ;;  %v3783_v16 = vadd.f32 %v3529_v25, %v10890_v54  ;;  %v3531_v51 = vpop.f32.mrb[7].mxu0  ;;  %v4035_v52 = vsel %vm3907_vm4, %v3779_v28, %v3971_v7  ;;  %v3974_v20 = vmul.f32 0.2, %v3782_v24 }
 0x7dc   : > { %v3785_v13 = vadd.f32 %v3690_v50, %v10896_v63  ;;  %v3692_v5 = vpop.f32.mrb[19].mxu1  ;;  %v3784_v57 = vadd.f32 %v3531_v51, %v10894_v56  ;;  %vm3910_vm9 = vcmp.gt.f32.partialorder %v3782_v24, 0.0  ;;  %v11091_v54 = vsel %vm3909_vm5, %v3781_v60, %v3973_v10 }
 0x7dd   : > { %v3786_v12 = vadd.f32 %v3692_v5, %v10902_v4  ;;  %vm3911_vm7 = vcmp.gt.f32.partialorder %v3783_v16, 0.0  ;;  %v3975_v53 = vmul.f32 0.2, %v3783_v16 }
 0x7de   : > { %vm3913_vm8 = vcmp.gt.f32.partialorder %v3785_v13, 0.0  ;;  %v3977_v17 = vmul.f32 0.2, %v3785_v13  ;;  %vm3912_vm10 = vcmp.gt.f32.partialorder %v3784_v57, 0.0  ;;  %v3976_v9 = vmul.f32 0.2, %v3784_v57 }
 0x7df   : > { %v3978_v55 = vmul.f32 0.2, %v3786_v12  ;;  %v4039_v25 = vsel %vm3911_vm7, %v3783_v16, %v3975_v53  ;;  %vm3914_vm11 = vcmp.gt.f32.partialorder %v3786_v12, 0.0  ;;  %v3535_v7 = vpop.f32.mrb[8].mxu0  ;;  %v3696_v28 = vpop.f32.mrb[20].mxu1  ;;  %v4036_v53 = vsel %vm3908_vm6, %v3780_v29, %v3972_v21 }
 0x7e0   : > { %v11093_v50 = vsel %vm3913_vm8, %v3785_v13, %v3977_v17  ;;  %v7247_v56 = vpack.c.bf16 %v4039_v25, %v4035_v52  ;;  %v3787_v51 = vadd.f32 %v3535_v7, %v10906_v59  ;;  %v3789_v5 = vadd.f32 %v3696_v28, %v10910_v2  ;;  %v3537_v63 = vpop.f32.mrb[9].mxu0  ;;  %v3698_v62 = vpop.f32.mrb[21].mxu1  ;;  %v12309_v2 = vld [vmem:[#allocation140_spill] sm:$0xff] }
 0x7e1   : > { %v3788_v36 = vadd.f32 %v3537_v63, %v10908_v6  ;;  %v11101_v60 = vadd.f32 %v3698_v62, %v10912_v11  ;;  %v4040_v16 = vsel %vm3912_vm10, %v3784_v57, %v3976_v9  ;;  %v11104_v13 = vsel %vm3914_vm11, %v3786_v12, %v3978_v55 }
 0x7e2   : > { %v3541_v10 = vpop.f32.mrb[10].mxu0  ;;  %vm3915_vm12 = vcmp.gt.f32.partialorder %v3787_v51, 0.0  ;;  %v3979_v52 = vmul.f32 0.2, %v3787_v51  ;;  %v11108_v59 = vsel %vm3910_vm9, %v3782_v24, %v3974_v20  ;;  %vm3917_vm13 = vcmp.gt.f32.partialorder %v3789_v5, 0.0 }
 0x7e3   : > { %v3981_v17 = vmul.f32 0.2, %v3789_v5  ;;  %v3791_v25 = vadd.f32 %v3541_v10, %v10914_v14  ;;  %v3702_v63 = vpop.f32.mrb[22].mxu1  ;;  %v3543_v6 = vpop.f32.mrb[11].mxu0  ;;  %v7245_v62 = vpack.c.bf16 %v4040_v16, %v4036_v53  ;;  %vm3916_vm14 = vcmp.gt.f32.partialorder %v3788_v36, 0.0 }
 0x7e4   : > { %v3793_v7 = vadd.f32 %v3702_v63, %v10920_v19  ;;  %v3792_v12 = vadd.f32 %v3543_v6, %v10918_v18  ;;  %v3704_v55 = vpop.f32.mrb[23].mxu1  ;;  %v4043_v28 = vsel %vm3915_vm12, %v3787_v51, %v3979_v52  ;;  %v3980_v10 = vmul.f32 0.2, %v3788_v36 }
 0x7e5   : > { %vm3919_vm15 = vcmp.gt.f32.partialorder %v3791_v25, 0.0  ;;  %v3983_v20 = vmul.f32 0.2, %v3791_v25  ;;  %v11116_v24 = vadd.f32 %v3704_v55, %v10926_v26  ;;  %7246 = vmatprep.subr.bf16.mxu0 %v7245_v62  ;;  %v11121_v16 = vsel %vm3917_vm13, %v3789_v5, %v3981_v17  ;;  %v12317_v26 = vld [vmem:[#allocation146_spill] sm:$0xff] }
 0x7e6   : > { %v3547_v9 = vpop.f32.mrb[12].mxu0  ;;  %vm3921_vm0 = vcmp.gt.f32.partialorder %v3793_v7, 0.0  ;;  %v3985_v18 = vmul.f32 0.2, %v3793_v7  ;;  %7248 = vmatpush1.bf16.xpose.msra.mxu0 %v7247_v56  ;;  %v3984_v63 = vmul.f32 0.2, %v3792_v12 }
 0x7e7   : > { %v3795_v14 = vadd.f32 %v3547_v9, %v10930_v30  ;;  %v3708_v21 = vpop.f32.mrb[24].mxu1  ;;  %v3549_v57 = vpop.f32.mrb[13].mxu0  ;;  %v4047_v53 = vsel %vm3919_vm15, %v3791_v25, %v3983_v20  ;;  %vm3920_vm3 = vcmp.gt.f32.partialorder %v3792_v12, 0.0 }
 0x7e8   : > { %v3710_v6 = vpop.f32.mrb[25].mxu1  ;;  %v7251_v55 = vpack.c.bf16 %v4047_v53, %v4043_v28  ;;  %v11123_v4 = vsel %vm3921_vm0, %v3793_v7, %v3985_v18  ;;  %v3797_v30 = vadd.f32 %v3708_v21, %v10934_v32  ;;  %v11129_v52 = vadd.f32 %v3549_v57, %v10932_v31 }
 0x7e9   : > { %vm3923_vm2 = vcmp.gt.f32.partialorder %v3795_v14, 0.0  ;;  %v3987_v62 = vmul.f32 0.2, %v3795_v14  ;;  %v11132_v56 = vadd.f32 %v3710_v6, %v10939_v35  ;;  %v4044_v18 = vsel %vm3916_vm14, %v3788_v36, %v3980_v10 }
 0x7ea   : > { %v3553_v9 = vpop.f32.mrb[14].mxu0  ;;  %v3989_v28 = vmul.f32 0.2, %v3797_v30  ;;  %vm3925_vm4 = vcmp.gt.f32.partialorder %v3797_v30, 0.0  ;;  %vm3924_vm8 = vcmp.gt.f32.partialorder %v11129_v52, 0.0 }
 0x7eb   : > { %v3799_v5 = vadd.f32 %v3553_v9, %v10943_v37  ;;  %v3714_v17 = vpop.f32.mrb[26].mxu1  ;;  %v3555_v25 = vpop.f32.mrb[15].mxu0  ;;  %v11137_v21 = vsel %vm3923_vm2, %v3795_v14, %v3987_v62  ;;  %v4048_v9 = vsel %vm3920_vm3, %v3792_v12, %v3984_v63 }
 0x7ec   : > { %v3801_v7 = vadd.f32 %v3714_v17, %v10949_v39  ;;  %v3716_v20 = vpop.f32.mrb[27].mxu1  ;;  %v3800_v37 = vadd.f32 %v3555_v25, %v10947_v38  ;;  %v7249_v14 = vpack.c.bf16 %v4048_v9, %v4044_v18  ;;  %v11149_v32 = vsel %vm3925_vm4, %v3797_v30, %v3989_v28 }
 0x7ed   : > { %vm3927_vm5 = vcmp.gt.f32.partialorder %v3799_v5, 0.0  ;;  %v3991_v31 = vmul.f32 0.2, %v3799_v5  ;;  %v11142_v6 = vadd.f32 %v3716_v20, %v10955_v42 }
 0x7ee   : > { %vm3929_vm6 = vcmp.gt.f32.partialorder %v3801_v7, 0.0  ;;  %v3559_v57 = vpop.f32.mrb[16].mxu0  ;;  %v3993_v53 = vmul.f32 0.2, %v3801_v7  ;;  %7250 = vmatprep.subr.bf16.mxu0 %v7249_v14  ;;  %v3992_v28 = vmul.f32 0.2, %v3800_v37 }
 0x7ef   : > { %v3720_v17 = vpop.f32.mrb[28].mxu1  ;;  %v3561_v51 = vpop.f32.mrb[17].mxu0  ;;  %v11144_v29 = vsel %vm3927_vm5, %v3799_v5, %v3991_v31  ;;  %v3803_v62 = vadd.f32 %v3559_v57, %v10959_v45  ;;  %v11158_v5 = vmul.f32 0.2, %v11101_v60  ;;  %7252 = vmatpush1.bf16.xpose.msra.mxu0 %v7251_v55  ;;  %v3988_v57 = vmul.f32 0.2, %v11129_v52 }
 0x7f0   : > { %v3805_v36 = vadd.f32 %v3720_v17, %v10963_v47  ;;  %v3722_v10 = vpop.f32.mrb[29].mxu1  ;;  %v7255_v38 = vpack.c.bf16 %v11144_v29, %v11137_v21  ;;  %v11153_v25 = vsel %vm3929_vm6, %v3801_v7, %v3993_v53  ;;  %v3804_v20 = vadd.f32 %v3561_v51, %v10961_v46 }
 0x7f1   : > { %vm3931_vm7 = vcmp.gt.f32.partialorder %v3803_v62, 0.0  ;;  %v3995_v45 = vmul.f32 0.2, %v3803_v62  ;;  %v11162_v18 = vadd.f32 %v3722_v10, %v10965_v48  ;;  %vm3928_vm9 = vcmp.gt.f32.partialorder %v3800_v37, 0.0 }
 0x7f2   : > { %v3565_v63 = vpop.f32.mrb[18].mxu0  ;;  %v3997_v55 = vmul.f32 0.2, %v3805_v36  ;;  %vm3933_vm10 = vcmp.gt.f32.partialorder %v3805_v36, 0.0  ;;  %vm3932_vm13 = vcmp.gt.f32.partialorder %v3804_v20, 0.0 }
 0x7f3   : > { %v3726_v30 = vpop.f32.mrb[30].mxu1  ;;  %v3807_v29 = vadd.f32 %v3565_v63, %v10967_v49  ;;  %v3567_v21 = vpop.f32.mrb[19].mxu0  ;;  %v11168_v53 = vsel %vm3931_vm7, %v3803_v62, %v3995_v45  ;;  %v4056_v63 = vsel %vm3928_vm9, %v3800_v37, %v3992_v28  ;;  %v3996_v37 = vmul.f32 0.2, %v3804_v20 }
 0x7f4   : > { %v3809_v7 = vadd.f32 %v3726_v30, %v10973_v15  ;;  %v3728_v31 = vpop.f32.mrb[31].mxu1  ;;  %v3808_v9 = vadd.f32 %v3567_v21, %v10971_v0  ;;  %v11178_v47 = vsel %vm3933_vm10, %v3805_v36, %v3997_v55  ;;  %v4052_v21 = vsel %vm3924_vm8, %v11129_v52, %v3988_v57 }
 0x7f5   : > { %vm3935_vm11 = vcmp.gt.f32.partialorder %v3807_v29, 0.0  ;;  %v3999_v46 = vmul.f32 0.2, %v3807_v29  ;;  %v11172_v49 = vadd.f32 %v3728_v31, %v10979_v40  ;;  %12294 = vst [vmem:[#allocation151_spill] sm:$0xff] %v11178_v47  ;;  %v7253_v28 = vpack.c.bf16 %v4056_v63, %v4052_v21  ;;  %v12321_v47 = vld [vmem:[#allocation150_spill] sm:$0xff] }
 0x7f6   : > { %vm3937_vm12 = vcmp.gt.f32.partialorder %v3809_v7, 0.0  ;;  %v4001_v51 = vmul.f32 0.2, %v3809_v7  ;;  %v3571_v17 = vpop.f32.mrb[20].mxu0  ;;  %vm3936_vm14 = vcmp.gt.f32.partialorder %v3808_v9, 0.0 }
 0x7f7   : > { %v3732_v14 = vpop.f32.mrb[32].mxu1  ;;  %v11174_v10 = vsel %vm3935_vm11, %v3807_v29, %v3999_v46  ;;  %v3811_v30 = vadd.f32 %v3571_v17, %v10983_v8  ;;  %v3573_v45 = vpop.f32.mrb[21].mxu0  ;;  %v11188_v29 = vmul.f32 0.2, %v11116_v24  ;;  %v4000_v36 = vmul.f32 0.2, %v3808_v9  ;;  %7254 = vmatprep.subr.bf16.mxu0 %v7253_v28 }
 0x7f8   : > { %v3813_v62 = vadd.f32 %v3732_v14, %v10987_v41  ;;  %v3734_v12 = vpop.f32.mrb[33].mxu1  ;;  %v11182_v0 = vsel %vm3937_vm12, %v3809_v7, %v4001_v51  ;;  %v11193_v46 = vadd.f32 %v3573_v45, %v10985_v44  ;;  %7256 = vmatpush1.bf16.xpose.msra.mxu0 %v7255_v38  ;;  %v11204_v28 = vmul.f32 0.2, %v11132_v56 }
 0x7f9   : > { %12295 = vst [vmem:[#allocation152_spill] sm:$0xff] %v11182_v0  ;;  %v4003_v55 = vmul.f32 0.2, %v3811_v30  ;;  %v11196_v52 = vadd.f32 %v3734_v12, %v10989_v43  ;;  %vm3939_vm15 = vcmp.gt.f32.partialorder %v3811_v30, 0.0  ;;  %v11207_v44 = vmul.f32 0.2, %v11142_v6 }
 0x7fa   : > { %v3577_v31 = vpop.f32.mrb[22].mxu0  ;;  %v4005_v7 = vmul.f32 0.2, %v3813_v62  ;;  %vm3941_vm0 = vcmp.gt.f32.partialorder %v3813_v62, 0.0  ;;  %v11210_v12 = vmul.f32 0.2, %v11162_v18  ;;  %v4064_v8 = vsel %vm3936_vm14, %v3808_v9, %v4000_v36 }
 0x7fb   : > { %v3815_v57 = vadd.f32 %v3577_v31, %v10991_v23  ;;  %v3738_v51 = vpop.f32.mrb[34].mxu1  ;;  %v3579_v17 = vpop.f32.mrb[23].mxu0  ;;  %v4060_v23 = vsel %vm3932_vm13, %v3804_v20, %v3996_v37  ;;  %v11213_v31 = vsel %vm3939_vm15, %v3811_v30, %v4003_v55  ;;  %v12299_v37 = vld [vmem:[#allocation128_spill] sm:$0xff]  ;;  %v11227_v30 = vmul.f32 0.2, %v11172_v49 }
 0x7fc   : > { %v3817_v14 = vadd.f32 %v3738_v51, %v10997_v1  ;;  %v11201_v63 = vadd.f32 %v3579_v17, %v10995_v27  ;;  %v3740_v21 = vpop.f32.mrb[35].mxu1  ;;  %v11215_v27 = vsel %vm3941_vm0, %v3813_v62, %v4005_v7  ;;  %v12297_v51 = vld [vmem:[#allocation127_spill] sm:$0xff]  ;;  %v7257_v20 = vpack.c.bf16 %v4064_v8, %v4060_v23 }
 0x7fd   : > { %vm3943_vm2 = vcmp.gt.f32.partialorder %v3815_v57, 0.0  ;;  %v4007_v38 = vmul.f32 0.2, %v3815_v57  ;;  %12296 = vst [vmem:[#allocation153_spill] sm:$0xff] %v11215_v27  ;;  %v11218_v17 = vadd.f32 %v3740_v21, %v12297_v51  ;;  %v4004_v62 = vmul.f32 0.2, %v11193_v46 }
 0x7fe   : > { %vm3945_vm3 = vcmp.gt.f32.partialorder %v3817_v14, 0.0  ;;  %v4009_v45 = vmul.f32 0.2, %v3817_v14  ;;  %v3583_v15 = vpop.f32.mrb[56].mxu0  ;;  %7258 = vmatprep.subr.bf16.mxu0 %v7257_v20  ;;  %vm3940_vm5 = vcmp.gt.f32.partialorder %v11193_v46, 0.0  ;;  %vm3944_vm7 = vcmp.gt.f32.partialorder %v11201_v63, 0.0 }
 0x7ff   : > { %v3744_v41 = vpop.f32.mrb[36].mxu1  ;;  %v11221_v1 = vsel %vm3943_vm2, %v3815_v57, %v4007_v38  ;;  %v7860_v48 = vadd.f32 %v12299_v37, %v3583_v15  ;;  %v3585_v40 = vpop.f32.mrb[57].mxu0  ;;  %v12300_v15 = vld [vmem:[#allocation130_spill] sm:$0xff] }
 0x800   : > { %v11223_v43 = vsel %vm3945_vm3, %v3817_v14, %v4009_v45  ;;  %v3746_v39 = vpop.f32.mrb[37].mxu1  ;;  %v7263_v55 = vpack.c.bf16 %v11221_v1, %v11213_v31  ;;  %v3821_v8 = vadd.f32 %v3744_v41, %v11010_v3  ;;  %v11236_v57 = vadd.f32 %v12300_v15, %v3585_v40  ;;  %v12301_v45 = vld [vmem:[#allocation133_spill] sm:$0xff] }
 0x801   : > { %12298 = vst [vmem:[#allocation154_spill] sm:$0xff] %v11223_v43  ;;  %vm3947_vm4 = vcmp.gt.f32.partialorder %v7860_v48, 0.0  ;;  %v4011_v7 = vmul.f32 0.2, %v7860_v48  ;;  %v11239_v23 = vadd.f32 %v3746_v39, %v11015_v61  ;;  %v4008_v41 = vmul.f32 0.2, %v11201_v63 }
 0x802   : > { %v3589_v36 = vpop.f32.mrb[58].mxu0  ;;  %v12302_v40 = vpack.c.bf16 %v11174_v10, %v11168_v53  ;;  %vm3949_vm6 = vcmp.gt.f32.partialorder %v3821_v8, 0.0  ;;  %v4013_v37 = vmul.f32 0.2, %v3821_v8  ;;  %v11252_v39 = vmul.f32 0.2, %v11196_v52 }
 0x803   : > { %v3750_v14 = vpop.f32.mrb[38].mxu1  ;;  %v3591_v21 = vpop.f32.mrb[59].mxu0  ;;  %v7864_v38 = vadd.f32 %v11018_v33, %v3589_v36  ;;  %v11256_v33 = vmul.f32 0.2, %v11218_v17  ;;  %v11259_v36 = vsel %vm3947_vm4, %v7860_v48, %v4011_v7  ;;  %vm3948_vm9 = vcmp.gt.f32.partialorder %v11236_v57, 0.0 }
 0x804   : > { %v3825_v1 = vadd.f32 %v3750_v14, %v11020_v34  ;;  %v11244_v31 = vadd.f32 %v12301_v45, %v3591_v21  ;;  %v3752_v20 = vpop.f32.mrb[39].mxu1  ;;  %7260 = vmatpush1.bf16.xpose.msra.mxu0 %v12302_v40  ;;  %v11262_v14 = vsel %vm3949_vm6, %v3821_v8, %v4013_v37  ;;  %v4012_v21 = vmul.f32 0.2, %v11236_v57  ;;  %v12304_v40 = vld [vmem:[#allocation134_spill] sm:$0xff]  ;;  %v12306_v8 = vld [vmem:[#allocation135_spill] sm:$0xff] }
 0x805   : > { %vm3951_vm8 = vcmp.gt.f32.partialorder %v7864_v38, 0.0  ;;  %v4015_v15 = vmul.f32 0.2, %v7864_v38  ;;  %12303 = vst [vmem:[#allocation128_spill] sm:$0xff] %v11262_v14  ;;  %v11266_v45 = vmul.f32 0.2, %v11239_v23  ;;  %v11269_v9 = vadd.f32 %v3752_v20, %v12304_v40 }
 0x806   : > { %vm3953_vm10 = vcmp.gt.f32.partialorder %v3825_v1, 0.0  ;;  %v4017_v53 = vmul.f32 0.2, %v3825_v1  ;;  %v3595_v10 = vpop.f32.mrb[60].mxu0  ;;  %v4072_v61 = vsel %vm3944_vm7, %v11201_v63, %v4008_v41  ;;  %vm3952_vm11 = vcmp.gt.f32.partialorder %v11244_v31, 0.0  ;;  %v12308_v20 = vld [vmem:[#allocation139_spill] sm:$0xff] }
 0x807   : > { %v3756_v3 = vpop.f32.mrb[40].mxu1  ;;  %v3597_v34 = vpop.f32.mrb[61].mxu0  ;;  %v11271_v48 = vsel %vm3951_vm8, %v7864_v38, %v4015_v15  ;;  %v7868_v37 = vadd.f32 %v12306_v8, %v3595_v10  ;;  %v4068_v38 = vsel %vm3940_vm5, %v11193_v46, %v4004_v62  ;;  %v12307_v8 = vld [vmem:[#allocation137_spill] sm:$0xff]  ;;  %v4016_v46 = vmul.f32 0.2, %v11244_v31 }
 0x808   : > { %v11273_v7 = vsel %vm3953_vm10, %v3825_v1, %v4017_v53  ;;  %v3758_v51 = vpop.f32.mrb[41].mxu1  ;;  %v7261_v15 = vpack.c.bf16 %v4072_v61, %v4068_v38  ;;  %v3829_v63 = vadd.f32 %v3756_v3, %v11034_v22  ;;  %v11289_v40 = vadd.f32 %v12307_v8, %v3597_v34  ;;  %v12310_v62 = vld [vmem:[#allocation141_spill] sm:$0xff] }
 0x809   : > { %12305 = vst [vmem:[#allocation130_spill] sm:$0xff] %v11273_v7  ;;  %vm3955_vm12 = vcmp.gt.f32.partialorder %v7868_v37, 0.0  ;;  %v4019_v53 = vmul.f32 0.2, %v7868_v37  ;;  %v11292_v35 = vadd.f32 %v3758_v51, %v11039_v58  ;;  %v11301_v38 = vmul.f32 0.2, %v11269_v9 }
 0x80a   : > { %v3601_v1 = vpop.f32.mrb[62].mxu0  ;;  %7262 = vmatprep.subr.bf16.mxu0 %v7261_v15  ;;  %vm3957_vm13 = vcmp.gt.f32.partialorder %v3829_v63, 0.0  ;;  %v4021_v61 = vmul.f32 0.2, %v3829_v63  ;;  %v11304_v34 = vmul.f32 0.2, %v11289_v40 }
 0x80b   : > { %v3762_v41 = vpop.f32.mrb[42].mxu1  ;;  %v3603_v10 = vpop.f32.mrb[63].mxu0  ;;  %v7872_v42 = vadd.f32 %v12308_v20, %v3601_v1  ;;  %v11307_v51 = vmul.f32 0.2, %v11292_v35  ;;  %v11310_v20 = vsel %vm3955_vm12, %v7868_v37, %v4019_v53  ;;  %vm3956_vm14 = vcmp.gt.f32.partialorder %v11289_v40, 0.0  ;;  %v12318_v7 = vld [vmem:[#allocation147_spill] sm:$0xff] }
 0x80c   : > { %v3833_v19 = vadd.f32 %v3762_v41, %v12309_v2  ;;  %v3764_v11 = vpop.f32.mrb[43].mxu1  ;;  %v11298_v3 = vadd.f32 %v12310_v62, %v3603_v10  ;;  %7264 = vmatpush1.bf16.xpose.msra.mxu0 %v7263_v55  ;;  %v11313_v10 = vsel %vm3957_vm13, %v3829_v63, %v4021_v61  ;;  %v12312_v55 = vld [vmem:[#allocation142_spill] sm:$0xff]  ;;  %vm3918_vm3 = vcmp.gt.f32.partialorder %v11101_v60, 0.0  ;;  %v12313_v61 = vld [vmem:[#allocation143_spill] sm:$0xff] }
 0x80d   : > { %vm3959_vm15 = vcmp.gt.f32.partialorder %v7872_v42, 0.0  ;;  %v4023_v1 = vmul.f32 0.2, %v7872_v42  ;;  %12311 = vst [vmem:[#allocation133_spill] sm:$0xff] %v11313_v10  ;;  %v11317_v62 = vadd.f32 %v3764_v11, %v12312_v55  ;;  %vm3922_vm4 = vcmp.gt.f32.partialorder %v11116_v24, 0.0 }
 0x80e   : > { %vm3961_vm0 = vcmp.gt.f32.partialorder %v3833_v19, 0.0  ;;  %v3607_v15 = vpop.f32.mrb[64].mxu0  ;;  %v4025_v8 = vmul.f32 0.2, %v3833_v19  ;;  %vm3960_vm2 = vcmp.gt.f32.partialorder %v11298_v3, 0.0  ;;  %vm3926_vm5 = vcmp.gt.f32.partialorder %v11132_v56, 0.0 }
 0x80f   : > { %v3768_v41 = vpop.f32.mrb[44].mxu1  ;;  %v3609_v22 = vpop.f32.mrb[65].mxu0  ;;  %v11322_v37 = vsel %vm3959_vm15, %v7872_v42, %v4023_v1  ;;  %v4024_v53 = vmul.f32 0.2, %v11298_v3  ;;  %v4080_v63 = vsel %vm3952_vm11, %v11244_v31, %v4016_v46  ;;  %v7876_v2 = vadd.f32 %v12313_v61, %v3607_v15 }
 0x810   : > { %v3770_v58 = vpop.f32.mrb[45].mxu1  ;;  %vm3930_vm6 = vcmp.gt.f32.partialorder %v11142_v6, 0.0  ;;  %vm3934_vm7 = vcmp.gt.f32.partialorder %v11162_v18, 0.0  ;;  %vm3938_vm8 = vcmp.gt.f32.partialorder %v11172_v49, 0.0  ;;  %v7271_v11 = vpack.c.bf16 %v11322_v37, %v11310_v20  ;;  %v12316_v37 = vld [vmem:[#allocation145_spill] sm:$0xff] }
 0x811   : > { %v11335_v42 = vsel %vm3961_vm0, %v3833_v19, %v4025_v8  ;;  %v11338_v1 = vmul.f32 0.2, %v11317_v62  ;;  %v4076_v31 = vsel %vm3948_vm9, %v11236_v57, %v4012_v21  ;;  %vm3942_vm10 = vcmp.gt.f32.partialorder %v11196_v52, 0.0  ;;  %v12315_v57 = vld [vmem:[#allocation144_spill] sm:$0xff] }
 0x812   : > { %12314 = vst [vmem:[#allocation135_spill] sm:$0xff] %v11335_v42  ;;  %v3613_v46 = vpop.f32.mrb[66].mxu0  ;;  %v7265_v61 = vpack.c.bf16 %v4080_v63, %v4076_v31  ;;  %vm3963_vm12 = vcmp.gt.f32.partialorder %v7876_v2, 0.0  ;;  %v4027_v20 = vmul.f32 0.2, %v7876_v2  ;;  %v3837_v21 = vadd.f32 %v3768_v41, %v12315_v57  ;;  %v12319_v31 = vld [vmem:[#allocation148_spill] sm:$0xff] }
 0x813   : > { %v3774_v19 = vpop.f32.mrb[46].mxu1  ;;  %v3615_v8 = vpop.f32.mrb[67].mxu0  ;;  %v7878_v55 = vadd.f32 %v12316_v37, %v3609_v22  ;;  %v3838_v14 = vadd.f32 %v3770_v58, %v12317_v26  ;;  %v7880_v27 = vadd.f32 %v12318_v7, %v3613_v46  ;;  %v12320_v42 = vld [vmem:[#allocation149_spill] sm:$0xff]  ;;  %v12322_v41 = vpack.c.bf16 %v11271_v48, %v11259_v36 }
 0x814   : > { %v3776_v15 = vpop.f32.mrb[47].mxu1  ;;  %7266 = vmatprep.subr.bf16.mxu0 %v7265_v61  ;;  %v4091_v63 = vsel %vm3963_vm12, %v7876_v2, %v4027_v20  ;;  %v3841_v10 = vadd.f32 %v3774_v19, %v12319_v31  ;;  %v7882_v43 = vadd.f32 %v12320_v42, %v3615_v8  ;;  %vm3965_vm1 = vcmp.gt.f32.partialorder %v3837_v21, 0.0 }
 0x815   : > { %v3842_v0 = vadd.f32 %v3776_v15, %v12321_v47  ;;  %7268 = vmatpush1.bf16.xpose.msra.mxu0 %v12322_v41  ;;  %v4029_v22 = vmul.f32 0.2, %v3837_v21  ;;  %vm3964_vm0 = vcmp.gt.f32.partialorder %v7878_v55, 0.0  ;;  %v4028_v58 = vmul.f32 0.2, %v7878_v55 }
 0x816   : > { %vm3966_vm15 = vcmp.gt.f32.partialorder %v3838_v14, 0.0  ;;  %v4030_v7 = vmul.f32 0.2, %v3838_v14  ;;  %vm3967_vm13 = vcmp.gt.f32.partialorder %v7880_v27, 0.0  ;;  %v4031_v46 = vmul.f32 0.2, %v7880_v27 }
 0x817   : > { %v4093_v61 = vsel %vm3965_vm1, %v3837_v21, %v4029_v22  ;;  %vm3969_vm12 = vcmp.gt.f32.partialorder %v3841_v10, 0.0  ;;  %v4033_v2 = vmul.f32 0.2, %v3841_v10  ;;  %vm3968_vm9 = vcmp.gt.f32.partialorder %v7882_v43, 0.0 }
 0x818   : > { %v4095_v20 = vsel %vm3967_vm13, %v7880_v27, %v4031_v46  ;;  %v4032_v42 = vmul.f32 0.2, %v7882_v43  ;;  %vm3970_vm11 = vcmp.gt.f32.partialorder %v3842_v0, 0.0  ;;  %v4034_v15 = vmul.f32 0.2, %v3842_v0  ;;  %v12349_v46 = vld [vmem:[#allocation103_spill] sm:$0xff] }
 0x819   : > { %v7275_v19 = vpack.c.bf16 %v4095_v20, %v4091_v63  ;;  %v4097_v8 = vsel %vm3969_vm12, %v3841_v10, %v4033_v2  ;;  %v4084_v36 = vsel %vm3956_vm14, %v11289_v40, %v11304_v34  ;;  %v4088_v48 = vsel %vm3960_vm2, %v11298_v3, %v4024_v53  ;;  %v12346_v63 = vld [vmem:[#allocation133_spill] sm:$0xff] }
 0x81a   : > { %v7339_v37 = vpack.c.bf16 %v4097_v8, %v4093_v61  ;;  %v7269_v21 = vpack.c.bf16 %v4088_v48, %v4084_v36  ;;  %v4092_v41 = vsel %vm3964_vm0, %v7878_v55, %v4028_v58  ;;  %v4096_v22 = vsel %vm3968_vm9, %v7882_v43, %v4032_v42 }
 0x81b   : > { %v7273_v27 = vpack.c.bf16 %v4096_v22, %v4092_v41  ;;  %v4046_v10 = vsel %vm3918_vm3, %v11101_v60, %v11158_v5  ;;  %v4050_v40 = vsel %vm3922_vm4, %v11116_v24, %v11188_v29  ;;  %v4054_v3 = vsel %vm3926_vm5, %v11132_v56, %v11204_v28 }
 0x81c   : > { %7270 = vmatprep.subr.bf16.mxu0 %v7269_v21  ;;  %v7313_v34 = vpack.c.bf16 %v4050_v40, %v4046_v10  ;;  %v4058_v43 = vsel %vm3930_vm6, %v11142_v6, %v11207_v44  ;;  %v4062_v60 = vsel %vm3934_vm7, %v11162_v18, %v11210_v12  ;;  %v4066_v24 = vsel %vm3938_vm8, %v11172_v49, %v11227_v30 }
 0x81d   : > { %7272 = vmatpush1.bf16.xpose.msra.mxu0 %v7271_v11  ;;  %v7317_v5 = vpack.c.bf16 %v4058_v43, %v4054_v3  ;;  %v7321_v56 = vpack.c.bf16 %v4066_v24, %v4062_v60  ;;  %v4070_v29 = vsel %vm3942_vm10, %v11196_v52, %v11252_v39  ;;  %vm12323_vm1 = vcmp.gt.f32.partialorder %v11218_v17, 0.0  ;;  %v12342_v11 = vld [vmem:[#allocation130_spill] sm:$0xff] }
 0x81e   : > { %v4074_v6 = vsel %vm12323_vm1, %v11218_v17, %v11256_v33  ;;  %7274 = vmatprep.subr.bf16.mxu0 %v7273_v27  ;;  %vm12324_vm14 = vcmp.gt.f32.partialorder %v11239_v23, 0.0  ;;  %vm12325_vm2 = vcmp.gt.f32.partialorder %v11269_v9, 0.0  ;;  %vm12326_vm3 = vcmp.gt.f32.partialorder %v11292_v35, 0.0  ;;  %v12329_v33 = vld [vmem:[#allocation106_spill] sm:$0xff] }
 0x81f   : > { %v7325_v18 = vpack.c.bf16 %v4074_v6, %v4070_v29  ;;  %v4078_v49 = vsel %vm12324_vm14, %v11239_v23, %v11266_v45  ;;  %v4082_v28 = vsel %vm12325_vm2, %v11269_v9, %v11301_v38  ;;  %v4086_v52 = vsel %vm12326_vm3, %v11292_v35, %v11307_v51  ;;  %v12330_v45 = vld [vmem:[#allocation116_spill] sm:$0xff]  ;;  %v12331_v38 = vld [vmem:[#allocation107_spill] sm:$0xff]  ;;  %v12351_v6 = vld [vmem:[#allocation110_spill] sm:$0xff] }
 0x820   : > { %v7329_v44 = vpack.c.bf16 %v4082_v28, %v4078_v49  ;;  %vm12327_vm4 = vcmp.gt.f32.partialorder %v11317_v62, 0.0  ;;  %v4094_v17 = vsel %vm3966_vm15, %v3838_v14, %v4030_v7  ;;  %v4098_v30 = vsel %vm3970_vm11, %v3842_v0, %v4034_v15  ;;  %v12337_v14 = vld [vmem:[#allocation151_spill] sm:$0xff]  ;;  %v6800_v7 = vld [vmem:[%s12334_s5] ss:$0 sm:$0xff] }
 0x821   : > { %v4090_v12 = vsel %vm12327_vm4, %v11317_v62, %v11338_v1  ;;  %v7337_v39 = vpack.c.bf16 %v4098_v30, %v4094_v17  ;;  %v12328_v9 = vpack.c.bf16 %v11104_v13, %v11108_v59  ;;  %v4112_v35 = vrot.slane %v12330_v45, %v12329_v33  ;;  %v12336_v59 = vld [vmem:[#allocation152_spill] sm:$0xff]  ;;  %v12345_v1 = vld [vmem:[#allocation135_spill] sm:$0xff]  ;;  %v12354_v28 = vld [vmem:[#allocation114_spill] sm:$0xff] }
 0x822   : > { %v7333_v23 = vpack.c.bf16 %v4090_v12, %v4086_v52  ;;  %v4284_v51 = vrot.slane %v12330_v45, %v12331_v38  ;;  %v12332_v55 = vpack.c.bf16 %v11093_v50, %v11091_v54  ;;  %v12333_v0 = vpack.c.bf16 %v11123_v4, %v11121_v16  ;;  %v12339_v54 = vld [vmem:[#allocation154_spill] sm:$0xff]  ;;  %v12340_v50 = vld [vmem:[#allocation153_spill] sm:$0xff]  ;;  %v12343_v4 = vld [vmem:[#allocation128_spill] sm:$0xff] }
 0x823   : > { %v12335_v13 = vpack.c.bf16 %v11153_v25, %v11149_v32  ;;  %v12338_v62 = vpack.c.bf16 %v12336_v59, %v12337_v14  ;;  %v12341_v53 = vpack.c.bf16 %v12339_v54, %v12340_v50  ;;  %v12344_v16 = vpack.c.bf16 %v12342_v11, %v12343_v4  ;;  %v12348_v25 = vld [vmem:[#allocation104_spill] sm:$0xff]  ;;  %v12357_v12 = vld [vmem:[#allocation113_spill] sm:$0xff]  ;;  %v12358_v17 = vld [vmem:[#allocation111_spill] sm:$0xff] }
 0x824   : > { %v12347_v32 = vpack.c.bf16 %v12345_v1, %v12346_v63  ;;  %v4280_v58 = vrot.slane %v12330_v45, %v12348_v25  ;;  %vm4104_vm5 = vcmp.eq.s32.totalorder %v12349_v46, %v6800_v7  ;;  %v12350_v61 = vmov 0.0   ;;  %v12355_v52 = vld [vmem:[#allocation112_spill] sm:$0xff]  ;;  %v12363_v45 = vld [vmem:[#allocation118_spill] sm:$0xff]  ;;  %v12372_v54 = vld [vmem:[#allocation127_spill] sm:$0xff] }
 0x825   : > { %7276 = vmatpush1.bf16.xpose.msra.mxu0 %v7275_v19  ;;  %v6801_v2 = vsel %vm4104_vm5, 1.0, %v12350_v61  ;;  %v12359_v30 = vpack.c.bf16 %v12357_v12, %v12358_v17  ;;  %v12369_v59 = vld [vmem:[#allocation122_spill] sm:$0xff]  ;;  %v12370_v14 = vld [vmem:[#allocation120_spill] sm:$0xff]  ;;  %v12373_v50 = vld [vmem:[#allocation125_spill] sm:$0xff]  ;;  %vm9384_vm7 = vmmov 0   ;;  %vm12395_vm10 = vcmask 64512  }
 0x826   : > { %7310 = vmatprep.subr.bf16.mxu0 %v12328_v9  ;;  %vm4189_vm6 = vcmp.gt.f32.partialorder %v6801_v2, 0.0  ;;  %v12375_v11 = vld [vmem:[#allocation126_spill] sm:$0xff]  ;;  %v12376_v4 = vld [vmem:[#allocation124_spill] sm:$0xff]  ;;  %v12379_v63 = vld [vmem:[#allocation131_spill] sm:$0xff]  ;;  %vm5710_vm12 = vcmask (!%p6804_p10), 7168   ;;  %vm5854_vm1 = vcmask (!%p6804_p10), 1040384  }
 0x827   : > { %v12378_v1 = vld [vmem:[#allocation134_spill] sm:$0xff]  ;;  %v12382_v7 = vld [vmem:[#allocation129_spill] sm:$0xff]  ;;  %vm12396_vm11 = vmmov %vm12395_vm10  ;;  %vm9387_vm14 = vmmov (!%p6804_p10), 0   ;;  %vm6124_vm4 = vcmask (!%p6804_p10), 0  }
 0x828   : > { %v4456_v17 = vld [vmem:[%s10164_s1 + $0x60] sm:$0xff]  ;;  %vm12398_vm13 = vmmov %vm12395_vm10 }
 0x829   : > { %vm12399_vm15 = vmmov %vm12395_vm10 }
 0x82a   : > { %vm12400_vm0 = vmmov %vm12395_vm10 }
 0x82b   : > { %vm12401_vm9 = vmmov %vm12400_vm0 }
 0x82c   : > { %4184 = vmatmul.mubr.f32.vlgmr.msra.gmra.mrb[68].mxu0 %v4112_v35  ;;  %v12364_v35 = vld [vmem:[#allocation115_spill] sm:$0xff] }
 0x82d   : > { %7312 = vmatpush1.bf16.xpose.msra.mxu0 %v12332_v55  ;;  %4351 = vmatprep.mubr.f32.mxu0 %v4284_v51  ;;  %v12365_v51 = vpack.c.bf16 %v12363_v45, %v12364_v35  ;;  %v12366_v55 = vld [vmem:[#allocation123_spill] sm:$0xff]  ;;  %v4460_v35 = vld [vmem:[%s10164_s1 + $0x80] sm:$0xff] }
 0x82e   : > { %7314 = vmatprep.subr.bf16.mxu0 %v7313_v34 }
 0x835   : > { %7316 = vmatpush1.bf16.xpose.msra.mxu0 %v12333_v0  ;;  %v12367_v0 = vld [vmem:[#allocation121_spill] sm:$0xff] }
 0x836   : > { %7318 = vmatprep.subr.bf16.mxu0 %v7317_v5 }
 0x83d   : > { %7320 = vmatpush1.bf16.xpose.msra.mxu0 %v12335_v13  ;;  %v12368_v13 = vpack.c.bf16 %v12366_v55, %v12367_v0  ;;  %v4465_v55 = vld [vmem:[%s10164_s1 + $0xa8] sm:$0xff]  ;;  %v4467_v0 = vld [vmem:[%s10164_s1 + $0xb8] sm:$0xff] }
 0x83e   : > { %7322 = vmatprep.subr.bf16.mxu0 %v7321_v56 }
 0x845   : > { %7324 = vmatpush1.bf16.xpose.msra.mxu0 %v12338_v62  ;;  %v12371_v62 = vpack.c.bf16 %v12369_v59, %v12370_v14  ;;  %v7393_v59 = vpack.c.bf16 %v4467_v0, %v4465_v55  ;;  %v4464_v14 = vld [vmem:[%s10164_s1 + $0xa0] sm:$0xff]  ;;  %v4502_v55 = vld [vmem:[%s10164_s1 + $0x1d0] sm:$0xff]  ;;  %v4505_v0 = vld [vmem:[%s10164_s1 + $0x1e8] sm:$0xff] }
 0x846   : > { %7326 = vmatprep.subr.bf16.mxu0 %v7325_v18  ;;  %v12352_v18 = vld [vmem:[#allocation109_spill] sm:$0xff] }
 0x847   : > { %v12353_v49 = vpack.c.bf16 %v12351_v6, %v12352_v18 }
 0x84d   : > { %7328 = vmatpush1.bf16.xpose.msra.mxu0 %v12341_v53  ;;  %v12374_v53 = vpack.c.bf16 %v12372_v54, %v12373_v50  ;;  %v4469_v54 = vld [vmem:[%s10164_s1 + $0xc8] sm:$0xff]  ;;  %v4471_v50 = vld [vmem:[%s10164_s1 + $0xd8] sm:$0xff] }
 0x84e   : > { %7330 = vmatprep.subr.bf16.mxu0 %v7329_v44  ;;  %v12356_v44 = vpack.c.bf16 %v12354_v28, %v12355_v52  ;;  %v4454_v28 = vld [vmem:[%s10164_s1 + $0x50] sm:$0xff]  ;;  %v4457_v52 = vld [vmem:[%s10164_s1 + $0x68] sm:$0xff] }
 0x855   : > { %7332 = vmatpush1.bf16.xpose.msra.mxu0 %v12344_v16  ;;  %v12377_v16 = vpack.c.bf16 %v12375_v11, %v12376_v4  ;;  %v7397_v11 = vpack.c.bf16 %v4471_v50, %v4469_v54  ;;  %v4468_v4 = vld [vmem:[%s10164_s1 + $0xc0] sm:$0xff]  ;;  %v4506_v54 = vld [vmem:[%s10164_s1 + $0x1f0] sm:$0xff]  ;;  %v4509_v50 = vld [vmem:[%s10164_s1 + $0x208] sm:$0xff] }
 0x856   : > { %7334 = vmatprep.subr.bf16.mxu0 %v7333_v23  ;;  %v12360_v23 = vld [vmem:[#allocation119_spill] sm:$0xff] }
 0x85d   : > { %7336 = vmatpush1.bf16.xpose.msra.mxu0 %v12347_v32  ;;  %v12380_v32 = vpack.c.bf16 %v12378_v1, %v12379_v63  ;;  %v4473_v1 = vld [vmem:[%s10164_s1 + $0xe8] sm:$0xff]  ;;  %v4475_v63 = vld [vmem:[%s10164_s1 + $0xf8] sm:$0xff] }
 0x85e   : > { %7338 = vmatprep.subr.bf16.mxu0 %v7337_v39  ;;  %v12361_v39 = vld [vmem:[#allocation117_spill] sm:$0xff] }
 0x85f   : > { %v12362_v9 = vpack.c.bf16 %v12360_v23, %v12361_v39  ;;  %v4461_v23 = vld [vmem:[%s10164_s1 + $0x88] sm:$0xff]  ;;  %v4463_v39 = vld [vmem:[%s10164_s1 + $0x98] sm:$0xff] }
 0x860   : > { %v7389_v45 = vpack.c.bf16 %v4463_v39, %v4461_v23  ;;  %v4498_v23 = vld [vmem:[%s10164_s1 + $0x1b0] sm:$0xff]  ;;  %v4501_v39 = vld [vmem:[%s10164_s1 + $0x1c8] sm:$0xff] }
 0x865   : > { %7340 = vmatpush1.bf16.xpose.msra.mxu0 %v7339_v37 }
 0x86c   : > { %4352 = vmatmul.mubr.f32.vlgmr.msra.gmra.mrb[70].mxu0 %v4280_v58  ;;  %v12381_v58 = vld [vmem:[#allocation132_spill] sm:$0xff] }
 0x8ff   : > { %v4185_v20 = vpop.f32.mrb[68].mxu0 }
 0x900   : > { %v4193_v42 = vrot.slane %v4185_v20, %v12329_v33  ;;  %v4187_v15 = vpop.f32.mrb[69].mxu0  ;;  %v12384_v20 = vld [vmem:[#allocation142_spill] sm:$0xff] }
 0x902   : > { %v4194_v19 = vsel %vm4189_vm6, %v4193_v42, -1e+30  ;;  %v12385_v42 = vld [vmem:[#allocation138_spill] sm:$0xff] }
 0x903   : > { %4195 = vmax.xlane.f32.xlu0 %v4194_v19  ;;  %v12386_v15 = vpack.c.bf16 %v12384_v20, %v12385_v42  ;;  %v4477_v20 = vld [vmem:[%s10164_s1 + $0x108] sm:$0xff]  ;;  %v4479_v42 = vld [vmem:[%s10164_s1 + $0x118] sm:$0xff] }
 0x93f   : > { %v4353_v8 = vpop.f32.mrb[70].mxu0 }
 0x940   : > { %v4360_v36 = vrot.slane %v4353_v8, %v12329_v33  ;;  %v4355_v48 = vpop.f32.mrb[71].mxu0  ;;  %v4447_v8 = vld [vmem:[%s10164_s1 + $0x18] sm:$0xff] }
 0x941   : > { %v12388_v48 = vld [vmem:[#allocation136_spill] sm:$0xff] }
 0x942   : > { %v4361_v37 = vsel %vm4189_vm6, %v4360_v36, -1e+30  ;;  %v12387_v36 = vld [vmem:[#allocation140_spill] sm:$0xff] }
 0x943   : > { %4362 = vmax.xlane.f32.xlu1 %v4361_v37 }
 0x990   : > { %v4196_v21 = vpop.xlane.xlu0 %4195 }
 0x991   : > { %v4197_v41 = vsub.f32 %v4194_v19, %v4196_v21  ;;  %v4445_v19 = vld [vmem:[%s10164_s1 + $0x8] sm:$0xff]  ;;  %v12390_v21 = vpack.c.bf16 %v12321_v47, %v12317_v26  ;;  %v4451_v26 = vld [vmem:[%s10164_s1 + $0x38] sm:$0xff] }
 0x993   : > { %v4198_v22 = vmul.f32 1.442695, %v4197_v41  ;;  %v7373_v41 = vpack.c.bf16 %v4447_v8, %v4445_v19  ;;  %v7405_v19 = vpack.c.bf16 %v4479_v42, %v4477_v20  ;;  %v4476_v8 = vld [vmem:[%s10164_s1 + $0x100] sm:$0xff] }
 0x994   : > { %v4747_v20 = vld [vmem:[%s10175_s13 + $0x98] sm:$0xff]  ;;  %v4740_v42 = vld [vmem:[%s10175_s13 + $0x60] sm:$0xff] }
 0x995   : > { %8316 = vpow2.f32 %v4198_v22  ;;  %v12391_v22 = vpack.c.bf16 %v12319_v31, %v12315_v57  ;;  %v4448_v57 = vld [vmem:[%s10164_s1 + $0x20] sm:$0xff]  ;;  %v4450_v31 = vld [vmem:[%s10164_s1 + $0x30] sm:$0xff] }
 0x996   : > { %v7379_v6 = vpack.c.bf16 %v4450_v31, %v4448_v57  ;;  %v4488_v31 = vld [vmem:[%s10164_s1 + $0x160] sm:$0xff] }
 0x99f   : > { %v8317_v27 = vpop.eup %8316 }
 0x9a0   : > { %v4200_v10 = vmul.f32 %v8317_v27, %v6801_v2 }
 0x9a2   : > { %4201 = vadd.xlane.f32.xlu0 %v4200_v10 }
 0x9d0   : > { %v4363_v40 = vpop.xlane.xlu1 %4362 }
 0x9d1   : > { %v4364_v3 = vsub.f32 %v4361_v37, %v4363_v40  ;;  %v12389_v37 = vpack.c.bf16 %v12387_v36, %v12388_v48  ;;  %v4444_v40 = vld [vmem:[%s10164_s1] sm:$0xff]  ;;  %v4478_v36 = vld [vmem:[%s10164_s1 + $0x110] sm:$0xff]  ;;  %v4481_v48 = vld [vmem:[%s10164_s1 + $0x128] sm:$0xff] }
 0x9d3   : > { %v4365_v34 = vmul.f32 1.442695, %v4364_v3  ;;  %v4446_v3 = vld [vmem:[%s10164_s1 + $0x10] sm:$0xff] }
 0x9d5   : > { %8318 = vpow2.f32 %v4365_v34  ;;  %v4449_v34 = vld [vmem:[%s10164_s1 + $0x28] sm:$0xff] }
 0x9df   : > { %v8319_v43 = vpop.eup %8318 }
 0x9e0   : > { %v4367_v60 = vmul.f32 %v8319_v43, %v6801_v2  ;;  %v12383_v2 = vpack.c.bf16 %v12381_v58, %v12382_v7  ;;  %v7375_v43 = vpack.c.bf16 %v4446_v3, %v4444_v40  ;;  %v7401_v58 = vpack.c.bf16 %v4475_v63, %v4473_v1  ;;  %v4472_v7 = vld [vmem:[%s10164_s1 + $0xe0] sm:$0xff]  ;;  %v4487_v40 = vld [vmem:[%s10164_s1 + $0x158] sm:$0xff] }
 0x9e1   : > { %v4735_v1 = vld [vmem:[%s10175_s13 + $0x38] sm:$0xff]  ;;  %v4728_v63 = vld [vmem:[%s10175_s13] sm:$0xff] }
 0x9e2   : > { %4368 = vadd.xlane.f32.xlu0 %v4367_v60 }
 0xa2f   : > { %v4202_v24 = vpop.xlane.xlu0 %4201 }
 0xa30   : > { %v4203_v5 = vadd.f32 1e-16, %v4202_v24 }
 0xa32   : > { %8320 = vrcp.f32 %v4203_v5  ;;  %v7377_v5 = vpack.c.bf16 %v4451_v26, %v4449_v34  ;;  %v4484_v26 = vld [vmem:[%s10164_s1 + $0x140] sm:$0xff] }
 0xa3c   : > { %v8321_v56 = vpop.eup %8320 }
 0xa3d   : > { %v4205_v29 = vmul.f32 %v8321_v56, %v4200_v10  ;;  %v4453_v56 = vld [vmem:[%s10164_s1 + $0x48] sm:$0xff] }
 0xa3f   : > { %4271 = vmatmul.mubr.f32.vlgmr.msra.gmra.mrb[80].mxu1 %v4205_v29  ;;  %v4455_v29 = vld [vmem:[%s10164_s1 + $0x58] sm:$0xff] }
 0xa40   : > { %7344 = vmatpush1.bf16.msra.mxu1 %v12353_v49  ;;  %4437 = vmatprep.mubr.f32.mxu1 %v12350_v61  ;;  %v7381_v18 = vpack.c.bf16 %v4455_v29, %v4453_v56  ;;  %v4452_v49 = vld [vmem:[%s10164_s1 + $0x40] sm:$0xff]  ;;  %v4490_v56 = vld [vmem:[%s10164_s1 + $0x170] sm:$0xff]  ;;  %v4493_v29 = vld [vmem:[%s10164_s1 + $0x188] sm:$0xff] }
 0xa41   : > { %7346 = vmatprep.subr.bf16.mxu1 %v12356_v44  ;;  %v7383_v44 = vpack.c.bf16 %v4454_v28, %v4452_v49  ;;  %v4492_v28 = vld [vmem:[%s10164_s1 + $0x180] sm:$0xff] }
 0xa44   : > { %7348 = vmatpush1.bf16.msra.mxu1 %v12359_v30  ;;  %v4458_v30 = vld [vmem:[%s10164_s1 + $0x70] sm:$0xff] }
 0xa45   : > { %7350 = vmatprep.subr.bf16.mxu1 %v12362_v9  ;;  %v7387_v9 = vpack.c.bf16 %v4458_v30, %v4456_v17  ;;  %v4496_v30 = vld [vmem:[%s10164_s1 + $0x1a0] sm:$0xff] }
 0xa48   : > { %7352 = vmatpush1.bf16.msra.mxu1 %v12365_v51  ;;  %v4462_v51 = vld [vmem:[%s10164_s1 + $0x90] sm:$0xff] }
 0xa49   : > { %7354 = vmatprep.subr.bf16.mxu1 %v12368_v13  ;;  %v7391_v13 = vpack.c.bf16 %v4462_v51, %v4460_v35  ;;  %v4500_v51 = vld [vmem:[%s10164_s1 + $0x1c0] sm:$0xff] }
 0xa4c   : > { %7356 = vmatpush1.bf16.msra.mxu1 %v12371_v62  ;;  %v4466_v62 = vld [vmem:[%s10164_s1 + $0xb0] sm:$0xff] }
 0xa4d   : > { %7358 = vmatprep.subr.bf16.mxu1 %v12374_v53  ;;  %v7395_v53 = vpack.c.bf16 %v4466_v62, %v4464_v14  ;;  %v4504_v62 = vld [vmem:[%s10164_s1 + $0x1e0] sm:$0xff] }
 0xa50   : > { %7360 = vmatpush1.bf16.msra.mxu1 %v12377_v16  ;;  %v4470_v16 = vld [vmem:[%s10164_s1 + $0xd0] sm:$0xff] }
 0xa51   : > { %7362 = vmatprep.subr.bf16.mxu1 %v12380_v32  ;;  %v7399_v32 = vpack.c.bf16 %v4470_v16, %v4468_v4  ;;  %v4729_v16 = vld [vmem:[%s10175_s13 + $0x8] sm:$0xff] }
 0xa54   : > { %7364 = vmatpush1.bf16.msra.mxu1 %v12383_v2  ;;  %v4474_v2 = vld [vmem:[%s10164_s1 + $0xf0] sm:$0xff] }
 0xa55   : > { %7366 = vmatprep.subr.bf16.mxu1 %v12386_v15  ;;  %v7403_v15 = vpack.c.bf16 %v4474_v2, %v4472_v7  ;;  %v4741_v2 = vld [vmem:[%s10175_s13 + $0x68] sm:$0xff] }
 0xa58   : > { %7368 = vmatpush1.bf16.msra.mxu1 %v12389_v37  ;;  %v4483_v37 = vld [vmem:[%s10164_s1 + $0x138] sm:$0xff] }
 0xa59   : > { %7370 = vmatprep.subr.bf16.mxu1 %v12390_v21  ;;  %v7407_v21 = vpack.c.bf16 %v4478_v36, %v4476_v8  ;;  %v4753_v36 = vld [vmem:[%s10175_s13 + $0xc8] sm:$0xff] }
 0xa5c   : > { %7372 = vmatpush1.bf16.msra.mxu1 %v12391_v22  ;;  %v4480_v22 = vld [vmem:[%s10164_s1 + $0x120] sm:$0xff] }
 0xa5d   : > { %7374 = vmatprep.subr.bf16.mxu1 %v7373_v41  ;;  %v7409_v41 = vpack.c.bf16 %v4483_v37, %v4481_v48  ;;  %v4759_v48 = vld [vmem:[%s10175_s13 + $0xf8] sm:$0xff] }
 0xa5e   : > { %v7509_v37 = vpack.c.bf16 %v4759_v48, %v4753_v36  ;;  %v4873_v48 = vld [vmem:[%s10175_s13 + $0x488] sm:$0xff] }
 0xa6f   : > { %v4369_v27 = vpop.xlane.xlu0 %4368 }
 0xa70   : > { %v4370_v10 = vadd.f32 1e-16, %v4369_v27  ;;  %v4482_v27 = vld [vmem:[%s10164_s1 + $0x130] sm:$0xff] }
 0xa71   : > { %v7411_v3 = vpack.c.bf16 %v4482_v27, %v4480_v22  ;;  %v4765_v27 = vld [vmem:[%s10175_s13 + $0x128] sm:$0xff] }
 0xa72   : > { %8322 = vrcp.f32 %v4370_v10  ;;  %v4485_v10 = vld [vmem:[%s10164_s1 + $0x148] sm:$0xff] }
 0xa73   : > { %v7413_v34 = vpack.c.bf16 %v4487_v40, %v4485_v10  ;;  %v4771_v10 = vld [vmem:[%s10175_s13 + $0x158] sm:$0xff]  ;;  %v4764_v40 = vld [vmem:[%s10175_s13 + $0x120] sm:$0xff] }
 0xa7c   : > { %v8323_v47 = vpop.eup %8322 }
 0xa7d   : > { %v4372_v24 = vmul.f32 %v8323_v47, %v4367_v60  ;;  %v4459_v60 = vld [vmem:[%s10164_s1 + $0x78] sm:$0xff]  ;;  %v4486_v47 = vld [vmem:[%s10164_s1 + $0x150] sm:$0xff] }
 0xa7e   : > { %v7385_v12 = vpack.c.bf16 %v4459_v60, %v4457_v52  ;;  %v4494_v52 = vld [vmem:[%s10164_s1 + $0x190] sm:$0xff]  ;;  %v4497_v60 = vld [vmem:[%s10164_s1 + $0x1a8] sm:$0xff] }
 0xa7f   : > { %4438 = vmatmul.mubr.f32.vlgmr.msra.gmra.mrb[82].mxu1 %v4372_v24  ;;  %v4491_v24 = vld [vmem:[%s10164_s1 + $0x178] sm:$0xff] }
 0xa80   : > { %7376 = vmatpush1.bf16.msra.mxu1 %v7375_v43  ;;  %v4489_v43 = vld [vmem:[%s10164_s1 + $0x168] sm:$0xff] }
 0xa81   : > { %7378 = vmatprep.subr.bf16.mxu1 %v7377_v5  ;;  %v7415_v5 = vpack.c.bf16 %v4486_v47, %v4484_v26  ;;  %v7417_v57 = vpack.c.bf16 %v4491_v24, %v4489_v43  ;;  %v4777_v47 = vld [vmem:[%s10175_s13 + $0x188] sm:$0xff]  ;;  %v4783_v43 = vld [vmem:[%s10175_s13 + $0x1b8] sm:$0xff]  ;;  %v4776_v24 = vld [vmem:[%s10175_s13 + $0x180] sm:$0xff] }
 0xa84   : > { %7380 = vmatpush1.bf16.msra.mxu1 %v7379_v6  ;;  %v4495_v6 = vld [vmem:[%s10164_s1 + $0x198] sm:$0xff] }
 0xa85   : > { %7382 = vmatprep.subr.bf16.mxu1 %v7381_v18  ;;  %v7419_v18 = vpack.c.bf16 %v4490_v56, %v4488_v31  ;;  %v7421_v49 = vpack.c.bf16 %v4495_v6, %v4493_v29  ;;  %v4789_v56 = vld [vmem:[%s10175_s13 + $0x1e8] sm:$0xff]  ;;  %v4795_v29 = vld [vmem:[%s10175_s13 + $0x218] sm:$0xff]  ;;  %v4788_v6 = vld [vmem:[%s10175_s13 + $0x1e0] sm:$0xff] }
 0xa88   : > { %7384 = vmatpush1.bf16.msra.mxu1 %v7383_v44  ;;  %v4499_v44 = vld [vmem:[%s10164_s1 + $0x1b8] sm:$0xff] }
 0xa89   : > { %7386 = vmatprep.subr.bf16.mxu1 %v7385_v12  ;;  %v7423_v12 = vpack.c.bf16 %v4494_v52, %v4492_v28  ;;  %v7425_v17 = vpack.c.bf16 %v4499_v44, %v4497_v60  ;;  %v4801_v52 = vld [vmem:[%s10175_s13 + $0x248] sm:$0xff]  ;;  %v4807_v60 = vld [vmem:[%s10175_s13 + $0x278] sm:$0xff]  ;;  %v4800_v44 = vld [vmem:[%s10175_s13 + $0x240] sm:$0xff] }
 0xa8c   : > { %7388 = vmatpush1.bf16.msra.mxu1 %v7387_v9  ;;  %v4503_v9 = vld [vmem:[%s10164_s1 + $0x1d8] sm:$0xff] }
 0xa8d   : > { %7390 = vmatprep.subr.bf16.mxu1 %v7389_v45  ;;  %v7427_v45 = vpack.c.bf16 %v4498_v23, %v4496_v30  ;;  %v7429_v35 = vpack.c.bf16 %v4503_v9, %v4501_v39  ;;  %v4813_v23 = vld [vmem:[%s10175_s13 + $0x2a8] sm:$0xff]  ;;  %v4819_v39 = vld [vmem:[%s10175_s13 + $0x2d8] sm:$0xff]  ;;  %v4812_v9 = vld [vmem:[%s10175_s13 + $0x2a0] sm:$0xff] }
 0xa90   : > { %7392 = vmatpush1.bf16.msra.mxu1 %v7391_v13  ;;  %v4507_v13 = vld [vmem:[%s10164_s1 + $0x1f8] sm:$0xff] }
 0xa91   : > { %7394 = vmatprep.subr.bf16.mxu1 %v7393_v59  ;;  %v7431_v59 = vpack.c.bf16 %v4502_v55, %v4500_v51  ;;  %v7433_v14 = vpack.c.bf16 %v4507_v13, %v4505_v0  ;;  %v4825_v55 = vld [vmem:[%s10175_s13 + $0x308] sm:$0xff]  ;;  %v4831_v0 = vld [vmem:[%s10175_s13 + $0x338] sm:$0xff]  ;;  %v4824_v13 = vld [vmem:[%s10175_s13 + $0x300] sm:$0xff] }
 0xa94   : > { %7396 = vmatpush1.bf16.msra.mxu1 %v7395_v53  ;;  %v4511_v53 = vld [vmem:[%s10164_s1 + $0x218] sm:$0xff] }
 0xa95   : > { %7398 = vmatprep.subr.bf16.mxu1 %v7397_v11  ;;  %v7435_v11 = vpack.c.bf16 %v4506_v54, %v4504_v62  ;;  %v7437_v4 = vpack.c.bf16 %v4511_v53, %v4509_v50  ;;  %v4837_v54 = vld [vmem:[%s10175_s13 + $0x368] sm:$0xff]  ;;  %v4843_v50 = vld [vmem:[%s10175_s13 + $0x398] sm:$0xff]  ;;  %v4836_v53 = vld [vmem:[%s10175_s13 + $0x360] sm:$0xff] }
 0xa98   : > { %7400 = vmatpush1.bf16.msra.mxu1 %v7399_v32  ;;  %v7501_v32 = vpack.c.bf16 %v4735_v1, %v4729_v16  ;;  %v4849_v1 = vld [vmem:[%s10175_s13 + $0x3c8] sm:$0xff] }
 0xa99   : > { %7402 = vmatprep.subr.bf16.mxu1 %v7401_v58  ;;  %v4734_v58 = vld [vmem:[%s10175_s13 + $0x30] sm:$0xff] }
 0xa9a   : > { %v7503_v7 = vpack.c.bf16 %v4734_v58, %v4728_v63  ;;  %7502 = vmatprep.subr.bf16.mxu0 %v7501_v32  ;;  %v4855_v63 = vld [vmem:[%s10175_s13 + $0x3f8] sm:$0xff]  ;;  %v4848_v32 = vld [vmem:[%s10175_s13 + $0x3c0] sm:$0xff] }
 0xa9b   : > { %v7541_v58 = vpack.c.bf16 %v4855_v63, %v4849_v1  ;;  %v4531_v1 = vld [vmem:[%s10164_s1 + $0x2b8] sm:$0xff] }
 0xa9c   : > { %7404 = vmatpush1.bf16.msra.mxu1 %v7403_v15  ;;  %v4746_v15 = vld [vmem:[%s10175_s13 + $0x90] sm:$0xff]  ;;  %7504 = vmatpush1.bf16.msra.mxu0 %v7503_v7 }
 0xa9d   : > { %7406 = vmatprep.subr.bf16.mxu1 %v7405_v19  ;;  %v7505_v19 = vpack.c.bf16 %v4747_v20, %v4741_v2  ;;  %v7507_v8 = vpack.c.bf16 %v4746_v15, %v4740_v42  ;;  %v4854_v7 = vld [vmem:[%s10175_s13 + $0x3f0] sm:$0xff]  ;;  %v4861_v20 = vld [vmem:[%s10175_s13 + $0x428] sm:$0xff]  ;;  %v4867_v42 = vld [vmem:[%s10175_s13 + $0x458] sm:$0xff] }
 0xa9e   : > { %v7543_v2 = vpack.c.bf16 %v4854_v7, %v4848_v32  ;;  %v4860_v15 = vld [vmem:[%s10175_s13 + $0x420] sm:$0xff]  ;;  %v4530_v7 = vld [vmem:[%s10164_s1 + $0x2b0] sm:$0xff] }
 0xa9f   : > { %7506 = vmatprep.subr.bf16.mxu0 %v7505_v19  ;;  %v7545_v19 = vpack.c.bf16 %v4867_v42, %v4861_v20  ;;  %v4535_v20 = vld [vmem:[%s10164_s1 + $0x2d8] sm:$0xff] }
 0xaa0   : > { %7408 = vmatpush1.bf16.msra.mxu1 %v7407_v21  ;;  %v4752_v21 = vld [vmem:[%s10175_s13 + $0xc0] sm:$0xff]  ;;  %7508 = vmatpush1.bf16.msra.mxu0 %v7507_v8  ;;  %v4866_v8 = vld [vmem:[%s10175_s13 + $0x450] sm:$0xff] }
 0xaa1   : > { %7410 = vmatprep.subr.bf16.mxu1 %v7409_v41  ;;  %v4758_v41 = vld [vmem:[%s10175_s13 + $0xf0] sm:$0xff]  ;;  %7510 = vmatprep.subr.bf16.mxu0 %v7509_v37  ;;  %v7547_v36 = vpack.c.bf16 %v4866_v8, %v4860_v15  ;;  %v4879_v37 = vld [vmem:[%s10175_s13 + $0x4b8] sm:$0xff] }
 0xaa2   : > { %v7511_v22 = vpack.c.bf16 %v4758_v41, %v4752_v21  ;;  %v4872_v21 = vld [vmem:[%s10175_s13 + $0x480] sm:$0xff]  ;;  %v7549_v41 = vpack.c.bf16 %v4879_v37, %v4873_v48  ;;  %v4534_v8 = vld [vmem:[%s10164_s1 + $0x2d0] sm:$0xff]  ;;  %v4539_v48 = vld [vmem:[%s10164_s1 + $0x2f8] sm:$0xff] }
 0xaa4   : > { %7412 = vmatpush1.bf16.msra.mxu1 %v7411_v3  ;;  %v7513_v3 = vpack.c.bf16 %v4771_v10, %v4765_v27  ;;  %7512 = vmatpush1.bf16.msra.mxu0 %v7511_v22  ;;  %v4878_v22 = vld [vmem:[%s10175_s13 + $0x4b0] sm:$0xff]  ;;  %v4885_v10 = vld [vmem:[%s10175_s13 + $0x4e8] sm:$0xff] }
 0xaa5   : > { %7414 = vmatprep.subr.bf16.mxu1 %v7413_v34  ;;  %v4770_v34 = vld [vmem:[%s10175_s13 + $0x150] sm:$0xff]  ;;  %v7551_v27 = vpack.c.bf16 %v4878_v22, %v4872_v21 }
 0xaa6   : > { %v7515_v26 = vpack.c.bf16 %v4770_v34, %v4764_v40  ;;  %7514 = vmatprep.subr.bf16.mxu0 %v7513_v3  ;;  %v4891_v40 = vld [vmem:[%s10175_s13 + $0x518] sm:$0xff]  ;;  %v4884_v3 = vld [vmem:[%s10175_s13 + $0x4e0] sm:$0xff]  ;;  %v4538_v22 = vld [vmem:[%s10164_s1 + $0x2f0] sm:$0xff] }
 0xaa7   : > { %v7553_v34 = vpack.c.bf16 %v4891_v40, %v4885_v10  ;;  %v4543_v10 = vld [vmem:[%s10164_s1 + $0x318] sm:$0xff] }
 0xaa8   : > { %7416 = vmatpush1.bf16.msra.mxu1 %v7415_v5  ;;  %v7517_v5 = vpack.c.bf16 %v4783_v43, %v4777_v47  ;;  %7516 = vmatpush1.bf16.msra.mxu0 %v7515_v26  ;;  %v4890_v26 = vld [vmem:[%s10175_s13 + $0x510] sm:$0xff]  ;;  %v4897_v43 = vld [vmem:[%s10175_s13 + $0x548] sm:$0xff] }
 0xaa9   : > { %7418 = vmatprep.subr.bf16.mxu1 %v7417_v57  ;;  %v4782_v57 = vld [vmem:[%s10175_s13 + $0x1b0] sm:$0xff]  ;;  %v7555_v47 = vpack.c.bf16 %v4890_v26, %v4884_v3 }
 0xaaa   : > { %v7519_v31 = vpack.c.bf16 %v4782_v57, %v4776_v24  ;;  %7518 = vmatprep.subr.bf16.mxu0 %v7517_v5  ;;  %v4903_v24 = vld [vmem:[%s10175_s13 + $0x578] sm:$0xff]  ;;  %v4896_v5 = vld [vmem:[%s10175_s13 + $0x540] sm:$0xff]  ;;  %v4542_v26 = vld [vmem:[%s10164_s1 + $0x310] sm:$0xff] }
 0xaab   : > { %v7557_v57 = vpack.c.bf16 %v4903_v24, %v4897_v43  ;;  %v4547_v43 = vld [vmem:[%s10164_s1 + $0x338] sm:$0xff] }
 0xaac   : > { %7420 = vmatpush1.bf16.msra.mxu1 %v7419_v18  ;;  %v7521_v18 = vpack.c.bf16 %v4795_v29, %v4789_v56  ;;  %7520 = vmatpush1.bf16.msra.mxu0 %v7519_v31  ;;  %v4902_v31 = vld [vmem:[%s10175_s13 + $0x570] sm:$0xff]  ;;  %v4508_v29 = vld [vmem:[%s10164_s1 + $0x200] sm:$0xff] }
 0xaad   : > { %7422 = vmatprep.subr.bf16.mxu1 %v7421_v49  ;;  %v4794_v49 = vld [vmem:[%s10175_s13 + $0x210] sm:$0xff]  ;;  %v7559_v56 = vpack.c.bf16 %v4902_v31, %v4896_v5 }
 0xaae   : > { %v7523_v28 = vpack.c.bf16 %v4794_v49, %v4788_v6  ;;  %7522 = vmatprep.subr.bf16.mxu0 %v7521_v18  ;;  %v4510_v6 = vld [vmem:[%s10164_s1 + $0x210] sm:$0xff]  ;;  %v4513_v18 = vld [vmem:[%s10164_s1 + $0x228] sm:$0xff]  ;;  %v4515_v49 = vld [vmem:[%s10164_s1 + $0x238] sm:$0xff] }
 0xaaf   : > { %v4546_v31 = vld [vmem:[%s10164_s1 + $0x330] sm:$0xff] }
 0xab0   : > { %7424 = vmatpush1.bf16.msra.mxu1 %v7423_v12  ;;  %v7525_v12 = vpack.c.bf16 %v4807_v60, %v4801_v52  ;;  %7524 = vmatpush1.bf16.msra.mxu0 %v7523_v28  ;;  %v7439_v52 = vpack.c.bf16 %v4510_v6, %v4508_v29  ;;  %v4551_v29 = vld [vmem:[%s10164_s1 + $0x358] sm:$0xff] }
 0xab1   : > { %7426 = vmatprep.subr.bf16.mxu1 %v7425_v17  ;;  %v4806_v17 = vld [vmem:[%s10175_s13 + $0x270] sm:$0xff] }
 0xab2   : > { %v7527_v30 = vpack.c.bf16 %v4806_v17, %v4800_v44  ;;  %7526 = vmatprep.subr.bf16.mxu0 %v7525_v12  ;;  %v7441_v44 = vpack.c.bf16 %v4515_v49, %v4513_v18  ;;  %v4512_v12 = vld [vmem:[%s10164_s1 + $0x220] sm:$0xff]  ;;  %v4514_v17 = vld [vmem:[%s10164_s1 + $0x230] sm:$0xff] }
 0xab3   : > { %v4548_v49 = vld [vmem:[%s10164_s1 + $0x340] sm:$0xff] }
 0xab4   : > { %7428 = vmatpush1.bf16.msra.mxu1 %v7427_v45  ;;  %v7529_v45 = vpack.c.bf16 %v4819_v39, %v4813_v23  ;;  %7528 = vmatpush1.bf16.msra.mxu0 %v7527_v30  ;;  %v4517_v30 = vld [vmem:[%s10164_s1 + $0x248] sm:$0xff]  ;;  %v4519_v23 = vld [vmem:[%s10164_s1 + $0x258] sm:$0xff]  ;;  %v7443_v39 = vpack.c.bf16 %v4514_v17, %v4512_v12  ;;  %v4552_v17 = vld [vmem:[%s10164_s1 + $0x360] sm:$0xff] }
 0xab5   : > { %7430 = vmatprep.subr.bf16.mxu1 %v7429_v35  ;;  %v4818_v35 = vld [vmem:[%s10175_s13 + $0x2d0] sm:$0xff] }
 0xab6   : > { %v7531_v51 = vpack.c.bf16 %v4818_v35, %v4812_v9  ;;  %7530 = vmatprep.subr.bf16.mxu0 %v7529_v45  ;;  %v7445_v9 = vpack.c.bf16 %v4519_v23, %v4517_v30  ;;  %v4516_v45 = vld [vmem:[%s10164_s1 + $0x240] sm:$0xff]  ;;  %v4518_v35 = vld [vmem:[%s10164_s1 + $0x250] sm:$0xff]  ;;  %v4557_v23 = vld [vmem:[%s10164_s1 + $0x388] sm:$0xff] }
 0xab7   : > { %v4554_v30 = vld [vmem:[%s10164_s1 + $0x370] sm:$0xff] }
 0xab8   : > { %7432 = vmatpush1.bf16.msra.mxu1 %v7431_v59  ;;  %v7533_v59 = vpack.c.bf16 %v4831_v0, %v4825_v55  ;;  %7532 = vmatpush1.bf16.msra.mxu0 %v7531_v51  ;;  %v4521_v51 = vld [vmem:[%s10164_s1 + $0x268] sm:$0xff]  ;;  %v4523_v55 = vld [vmem:[%s10164_s1 + $0x278] sm:$0xff]  ;;  %v7447_v0 = vpack.c.bf16 %v4518_v35, %v4516_v45  ;;  %v4556_v35 = vld [vmem:[%s10164_s1 + $0x380] sm:$0xff] }
 0xab9   : > { %7434 = vmatprep.subr.bf16.mxu1 %v7433_v14  ;;  %v4830_v14 = vld [vmem:[%s10175_s13 + $0x330] sm:$0xff] }
 0xaba   : > { %v7535_v62 = vpack.c.bf16 %v4830_v14, %v4824_v13  ;;  %7534 = vmatprep.subr.bf16.mxu0 %v7533_v59  ;;  %v7449_v13 = vpack.c.bf16 %v4523_v55, %v4521_v51  ;;  %v4520_v59 = vld [vmem:[%s10164_s1 + $0x260] sm:$0xff]  ;;  %v4522_v14 = vld [vmem:[%s10164_s1 + $0x270] sm:$0xff]  ;;  %v4561_v55 = vld [vmem:[%s10164_s1 + $0x3a8] sm:$0xff] }
 0xabb   : > { %v4558_v51 = vld [vmem:[%s10164_s1 + $0x390] sm:$0xff] }
 0xabc   : > { %7436 = vmatpush1.bf16.msra.mxu1 %v7435_v11  ;;  %v7537_v11 = vpack.c.bf16 %v4843_v50, %v4837_v54  ;;  %7536 = vmatpush1.bf16.msra.mxu0 %v7535_v62  ;;  %v4525_v62 = vld [vmem:[%s10164_s1 + $0x288] sm:$0xff]  ;;  %v4527_v54 = vld [vmem:[%s10164_s1 + $0x298] sm:$0xff]  ;;  %v7451_v50 = vpack.c.bf16 %v4522_v14, %v4520_v59  ;;  %v4560_v14 = vld [vmem:[%s10164_s1 + $0x3a0] sm:$0xff] }
 0xabd   : > { %7438 = vmatprep.subr.bf16.mxu1 %v7437_v4  ;;  %v4842_v4 = vld [vmem:[%s10175_s13 + $0x390] sm:$0xff] }
 0xabe   : > { %v7539_v16 = vpack.c.bf16 %v4842_v4, %v4836_v53  ;;  %7538 = vmatprep.subr.bf16.mxu0 %v7537_v11  ;;  %v7453_v53 = vpack.c.bf16 %v4527_v54, %v4525_v62  ;;  %v4524_v11 = vld [vmem:[%s10164_s1 + $0x280] sm:$0xff]  ;;  %v4526_v4 = vld [vmem:[%s10164_s1 + $0x290] sm:$0xff]  ;;  %v4565_v54 = vld [vmem:[%s10164_s1 + $0x3c8] sm:$0xff] }
 0xabf   : > { %v7455_v63 = vpack.c.bf16 %v4526_v4, %v4524_v11  ;;  %v4562_v62 = vld [vmem:[%s10164_s1 + $0x3b0] sm:$0xff]  ;;  %v4564_v4 = vld [vmem:[%s10164_s1 + $0x3c0] sm:$0xff] }
 0xac0   : > { %7540 = vmatpush1.bf16.msra.mxu0 %v7539_v16  ;;  %v4529_v16 = vld [vmem:[%s10164_s1 + $0x2a8] sm:$0xff] }
 0xac1   : > { %7542 = vmatprep.subr.bf16.mxu0 %v7541_v58  ;;  %v7457_v32 = vpack.c.bf16 %v4531_v1, %v4529_v16  ;;  %v4528_v58 = vld [vmem:[%s10164_s1 + $0x2a0] sm:$0xff]  ;;  %v4566_v16 = vld [vmem:[%s10164_s1 + $0x3d0] sm:$0xff]  ;;  %v4569_v1 = vld [vmem:[%s10164_s1 + $0x3e8] sm:$0xff] }
 0xac2   : > { %v7459_v42 = vpack.c.bf16 %v4530_v7, %v4528_v58  ;;  %v4568_v7 = vld [vmem:[%s10164_s1 + $0x3e0] sm:$0xff] }
 0xac4   : > { %7544 = vmatpush1.bf16.msra.mxu0 %v7543_v2  ;;  %v4533_v2 = vld [vmem:[%s10164_s1 + $0x2c8] sm:$0xff] }
 0xac5   : > { %7546 = vmatprep.subr.bf16.mxu0 %v7545_v19  ;;  %v7461_v15 = vpack.c.bf16 %v4535_v20, %v4533_v2  ;;  %v4532_v19 = vld [vmem:[%s10164_s1 + $0x2c0] sm:$0xff]  ;;  %v4570_v2 = vld [vmem:[%s10164_s1 + $0x3f0] sm:$0xff] }
 0xac6   : > { %v7463_v37 = vpack.c.bf16 %v4534_v8, %v4532_v19  ;;  %v4733_v20 = vld [vmem:[%s10175_s13 + $0x28] sm:$0xff]  ;;  %v4732_v8 = vld [vmem:[%s10175_s13 + $0x20] sm:$0xff] }
 0xac8   : > { %7548 = vmatpush1.bf16.msra.mxu0 %v7547_v36  ;;  %v4537_v36 = vld [vmem:[%s10164_s1 + $0x2e8] sm:$0xff] }
 0xac9   : > { %7550 = vmatprep.subr.bf16.mxu0 %v7549_v41  ;;  %v7465_v21 = vpack.c.bf16 %v4539_v48, %v4537_v36  ;;  %v4536_v41 = vld [vmem:[%s10164_s1 + $0x2e0] sm:$0xff]  ;;  %v4738_v36 = vld [vmem:[%s10175_s13 + $0x50] sm:$0xff]  ;;  %v4745_v48 = vld [vmem:[%s10175_s13 + $0x88] sm:$0xff] }
 0xaca   : > { %v7467_v40 = vpack.c.bf16 %v4538_v22, %v4536_v41  ;;  %v7631_v41 = vpack.c.bf16 %v4738_v36, %v4732_v8  ;;  %v4859_v8 = vld [vmem:[%s10175_s13 + $0x418] sm:$0xff] }
 0xacc   : > { %7552 = vmatpush1.bf16.msra.mxu0 %v7551_v27  ;;  %v4541_v27 = vld [vmem:[%s10164_s1 + $0x308] sm:$0xff] }
 0xacd   : > { %7554 = vmatprep.subr.bf16.mxu0 %v7553_v34  ;;  %v7469_v3 = vpack.c.bf16 %v4543_v10, %v4541_v27  ;;  %v4540_v34 = vld [vmem:[%s10164_s1 + $0x300] sm:$0xff] }
 0xace   : > { %v7471_v24 = vpack.c.bf16 %v4542_v26, %v4540_v34  ;;  %v4744_v10 = vld [vmem:[%s10175_s13 + $0x80] sm:$0xff]  ;;  %v4763_v34 = vld [vmem:[%s10175_s13 + $0x118] sm:$0xff] }
 0xad0   : > { %7556 = vmatpush1.bf16.msra.mxu0 %v7555_v47  ;;  %v4545_v47 = vld [vmem:[%s10164_s1 + $0x328] sm:$0xff] }
 0xad1   : > { %7558 = vmatprep.subr.bf16.mxu0 %v7557_v57  ;;  %v7473_v5 = vpack.c.bf16 %v4547_v43, %v4545_v47  ;;  %v4544_v57 = vld [vmem:[%s10164_s1 + $0x320] sm:$0xff] }
 0xad2   : > { %v7475_v6 = vpack.c.bf16 %v4546_v31, %v4544_v57  ;;  %v4756_v43 = vld [vmem:[%s10175_s13 + $0xe0] sm:$0xff]  ;;  %v4775_v57 = vld [vmem:[%s10175_s13 + $0x178] sm:$0xff] }
 0xad4   : > { %7560 = vmatpush1.bf16.msra.mxu0 %v7559_v56  ;;  %v4549_v56 = vld [vmem:[%s10164_s1 + $0x348] sm:$0xff] }
 0xad5   : > { %v7477_v18 = vpack.c.bf16 %v4551_v29, %v4549_v56  ;;  %v4768_v29 = vld [vmem:[%s10175_s13 + $0x140] sm:$0xff] }
 0xb12   : > { %v4272_v28 = vpop.f32.mrb[80].mxu1 }
 0xb13   : > { %v4274_v60 = vpop.f32.mrb[81].mxu1 }
 0xb14   : > { %4648 = vmatprep.mubr.f32.mxu1 %v4274_v60  ;;  %v4555_v60 = vld [vmem:[%s10164_s1 + $0x378] sm:$0xff] }
 0xb15   : > { %4649 = vmatmul.mubr.f32.vlgmr.msra.gmra.mrb[84].mxu1 %v4272_v28  ;;  %v4550_v28 = vld [vmem:[%s10164_s1 + $0x350] sm:$0xff] }
 0xb16   : > { %7440 = vmatpush1.bf16.msra.mxu1 %v7439_v52  ;;  %v4553_v52 = vld [vmem:[%s10164_s1 + $0x368] sm:$0xff] }
 0xb17   : > { %7442 = vmatprep.subr.bf16.mxu1 %v7441_v44  ;;  %v7479_v44 = vpack.c.bf16 %v4550_v28, %v4548_v49  ;;  %v7481_v12 = vpack.c.bf16 %v4555_v60, %v4553_v52  ;;  %v4787_v49 = vld [vmem:[%s10175_s13 + $0x1d8] sm:$0xff]  ;;  %v4780_v60 = vld [vmem:[%s10175_s13 + $0x1a0] sm:$0xff] }
 0xb1a   : > { %7444 = vmatpush1.bf16.msra.mxu1 %v7443_v39  ;;  %v4559_v39 = vld [vmem:[%s10164_s1 + $0x398] sm:$0xff] }
 0xb1b   : > { %7446 = vmatprep.subr.bf16.mxu1 %v7445_v9  ;;  %v7483_v9 = vpack.c.bf16 %v4554_v30, %v4552_v17  ;;  %v7485_v45 = vpack.c.bf16 %v4559_v39, %v4557_v23  ;;  %v4799_v17 = vld [vmem:[%s10175_s13 + $0x238] sm:$0xff]  ;;  %v4792_v39 = vld [vmem:[%s10175_s13 + $0x200] sm:$0xff] }
 0xb1e   : > { %7448 = vmatpush1.bf16.msra.mxu1 %v7447_v0  ;;  %v4563_v0 = vld [vmem:[%s10164_s1 + $0x3b8] sm:$0xff] }
 0xb1f   : > { %7450 = vmatprep.subr.bf16.mxu1 %v7449_v13  ;;  %v7487_v13 = vpack.c.bf16 %v4558_v51, %v4556_v35  ;;  %v7489_v59 = vpack.c.bf16 %v4563_v0, %v4561_v55  ;;  %v4811_v35 = vld [vmem:[%s10175_s13 + $0x298] sm:$0xff]  ;;  %v4804_v0 = vld [vmem:[%s10175_s13 + $0x260] sm:$0xff] }
 0xb22   : > { %7452 = vmatpush1.bf16.msra.mxu1 %v7451_v50  ;;  %v4567_v50 = vld [vmem:[%s10164_s1 + $0x3d8] sm:$0xff] }
 0xb23   : > { %7454 = vmatprep.subr.bf16.mxu1 %v7453_v53  ;;  %v7491_v53 = vpack.c.bf16 %v4562_v62, %v4560_v14  ;;  %v7493_v11 = vpack.c.bf16 %v4567_v50, %v4565_v54  ;;  %v4823_v14 = vld [vmem:[%s10175_s13 + $0x2f8] sm:$0xff]  ;;  %v4816_v50 = vld [vmem:[%s10175_s13 + $0x2c0] sm:$0xff] }
 0xb26   : > { %7456 = vmatpush1.bf16.msra.mxu1 %v7455_v63  ;;  %v4571_v63 = vld [vmem:[%s10164_s1 + $0x3f8] sm:$0xff] }
 0xb27   : > { %7458 = vmatprep.subr.bf16.mxu1 %v7457_v32  ;;  %v7495_v32 = vpack.c.bf16 %v4566_v16, %v4564_v4  ;;  %v7497_v58 = vpack.c.bf16 %v4571_v63, %v4569_v1  ;;  %v4835_v4 = vld [vmem:[%s10175_s13 + $0x358] sm:$0xff]  ;;  %v4828_v63 = vld [vmem:[%s10175_s13 + $0x320] sm:$0xff] }
 0xb2a   : > { %7460 = vmatpush1.bf16.msra.mxu1 %v7459_v42  ;;  %v4739_v42 = vld [vmem:[%s10175_s13 + $0x58] sm:$0xff] }
 0xb2b   : > { %7462 = vmatprep.subr.bf16.mxu1 %v7461_v15  ;;  %v7499_v15 = vpack.c.bf16 %v4570_v2, %v4568_v7  ;;  %v7629_v19 = vpack.c.bf16 %v4739_v42, %v4733_v20  ;;  %v4847_v7 = vld [vmem:[%s10175_s13 + $0x3b8] sm:$0xff]  ;;  %v4840_v42 = vld [vmem:[%s10175_s13 + $0x380] sm:$0xff] }
 0xb2e   : > { %7464 = vmatpush1.bf16.msra.mxu1 %v7463_v37  ;;  %v4751_v37 = vld [vmem:[%s10175_s13 + $0xb8] sm:$0xff] }
 0xb2f   : > { %7466 = vmatprep.subr.bf16.mxu1 %v7465_v21  ;;  %v7633_v27 = vpack.c.bf16 %v4751_v37, %v4745_v48  ;;  %v4852_v37 = vld [vmem:[%s10175_s13 + $0x3e0] sm:$0xff] }
 0xb32   : > { %7468 = vmatpush1.bf16.msra.mxu1 %v7467_v40  ;;  %v4750_v40 = vld [vmem:[%s10175_s13 + $0xb0] sm:$0xff] }
 0xb33   : > { %7470 = vmatprep.subr.bf16.mxu1 %v7469_v3  ;;  %v4757_v3 = vld [vmem:[%s10175_s13 + $0xe8] sm:$0xff]  ;;  %v7635_v26 = vpack.c.bf16 %v4750_v40, %v4744_v10  ;;  %v4864_v40 = vld [vmem:[%s10175_s13 + $0x440] sm:$0xff] }
 0xb34   : > { %v7637_v47 = vpack.c.bf16 %v4763_v34, %v4757_v3  ;;  %v4870_v3 = vld [vmem:[%s10175_s13 + $0x470] sm:$0xff]  ;;  %v4877_v34 = vld [vmem:[%s10175_s13 + $0x4a8] sm:$0xff] }
 0xb36   : > { %7472 = vmatpush1.bf16.msra.mxu1 %v7471_v24  ;;  %v4762_v24 = vld [vmem:[%s10175_s13 + $0x110] sm:$0xff] }
 0xb37   : > { %7474 = vmatprep.subr.bf16.mxu1 %v7473_v5  ;;  %v4769_v5 = vld [vmem:[%s10175_s13 + $0x148] sm:$0xff]  ;;  %v7639_v31 = vpack.c.bf16 %v4762_v24, %v4756_v43  ;;  %v4876_v24 = vld [vmem:[%s10175_s13 + $0x4a0] sm:$0xff] }
 0xb38   : > { %v7641_v56 = vpack.c.bf16 %v4775_v57, %v4769_v5  ;;  %v4882_v5 = vld [vmem:[%s10175_s13 + $0x4d0] sm:$0xff]  ;;  %v4889_v57 = vld [vmem:[%s10175_s13 + $0x508] sm:$0xff] }
 0xb3a   : > { %7476 = vmatpush1.bf16.msra.mxu1 %v7475_v6  ;;  %v4774_v6 = vld [vmem:[%s10175_s13 + $0x170] sm:$0xff] }
 0xb3b   : > { %7478 = vmatprep.subr.bf16.mxu1 %v7477_v18  ;;  %v4781_v18 = vld [vmem:[%s10175_s13 + $0x1a8] sm:$0xff]  ;;  %v7643_v28 = vpack.c.bf16 %v4774_v6, %v4768_v29  ;;  %v4888_v6 = vld [vmem:[%s10175_s13 + $0x500] sm:$0xff] }
 0xb3c   : > { %v7645_v52 = vpack.c.bf16 %v4787_v49, %v4781_v18  ;;  %v4894_v18 = vld [vmem:[%s10175_s13 + $0x530] sm:$0xff]  ;;  %v4901_v49 = vld [vmem:[%s10175_s13 + $0x568] sm:$0xff] }
 0xb3e   : > { %7480 = vmatpush1.bf16.msra.mxu1 %v7479_v44  ;;  %v4786_v44 = vld [vmem:[%s10175_s13 + $0x1d0] sm:$0xff] }
 0xb3f   : > { %7482 = vmatprep.subr.bf16.mxu1 %v7481_v12  ;;  %v4793_v12 = vld [vmem:[%s10175_s13 + $0x208] sm:$0xff]  ;;  %v7647_v30 = vpack.c.bf16 %v4786_v44, %v4780_v60  ;;  %v4900_v44 = vld [vmem:[%s10175_s13 + $0x560] sm:$0xff] }
 0xb40   : > { %v7649_v23 = vpack.c.bf16 %v4799_v17, %v4793_v12  ;;  %v4906_v12 = vld [vmem:[%s10175_s13 + $0x590] sm:$0xff] }
 0xb41   : > { %v7687_v17 = vpack.c.bf16 %v4906_v12, %v4900_v44  ;;  %v4796_v44 = vld [vmem:[%s10175_s13 + $0x220] sm:$0xff]  ;;  %v4803_v12 = vld [vmem:[%s10175_s13 + $0x258] sm:$0xff] }
 0xb42   : > { %7484 = vmatpush1.bf16.msra.mxu1 %v7483_v9  ;;  %v4798_v9 = vld [vmem:[%s10175_s13 + $0x230] sm:$0xff] }
 0xb43   : > { %7486 = vmatprep.subr.bf16.mxu1 %v7485_v45  ;;  %v4805_v45 = vld [vmem:[%s10175_s13 + $0x268] sm:$0xff]  ;;  %v7651_v51 = vpack.c.bf16 %v4798_v9, %v4792_v39  ;;  %v4908_v39 = vld [vmem:[%s10175_s13 + $0x5a0] sm:$0xff] }
 0xb44   : > { %v7653_v55 = vpack.c.bf16 %v4811_v35, %v4805_v45  ;;  %v4914_v45 = vld [vmem:[%s10175_s13 + $0x5d0] sm:$0xff]  ;;  %v4913_v35 = vld [vmem:[%s10175_s13 + $0x5c8] sm:$0xff] }
 0xb46   : > { %7488 = vmatpush1.bf16.msra.mxu1 %v7487_v13  ;;  %v4810_v13 = vld [vmem:[%s10175_s13 + $0x290] sm:$0xff] }
 0xb47   : > { %7490 = vmatprep.subr.bf16.mxu1 %v7489_v59  ;;  %v4817_v59 = vld [vmem:[%s10175_s13 + $0x2c8] sm:$0xff]  ;;  %v7655_v62 = vpack.c.bf16 %v4810_v13, %v4804_v0  ;;  %v4912_v13 = vld [vmem:[%s10175_s13 + $0x5c0] sm:$0xff] }
 0xb48   : > { %v7657_v54 = vpack.c.bf16 %v4823_v14, %v4817_v59  ;;  %v4918_v59 = vld [vmem:[%s10175_s13 + $0x5f0] sm:$0xff]  ;;  %v4731_v14 = vld [vmem:[%s10175_s13 + $0x18] sm:$0xff] }
 0xb4a   : > { %7492 = vmatpush1.bf16.msra.mxu1 %v7491_v53  ;;  %v4822_v53 = vld [vmem:[%s10175_s13 + $0x2f0] sm:$0xff] }
 0xb4b   : > { %7494 = vmatprep.subr.bf16.mxu1 %v7493_v11  ;;  %v4829_v11 = vld [vmem:[%s10175_s13 + $0x328] sm:$0xff]  ;;  %v7659_v16 = vpack.c.bf16 %v4822_v53, %v4816_v50  ;;  %v4572_v53 = vld [vmem:[%s10172_s14] sm:$0x3] }
 0xb4c   : > { %v7661_v1 = vpack.c.bf16 %v4835_v4, %v4829_v11  ;;  %v4577_v11 = vrot.slane %v4572_v53, %v12329_v33  ;;  %v12392_v4 = vld [vmem:[#allocation105_spill] sm:$0xff] }
 0xb4e   : > { %7496 = vmatpush1.bf16.msra.mxu1 %v7495_v32  ;;  %v4834_v32 = vld [vmem:[%s10175_s13 + $0x350] sm:$0xff] }
 0xb4f   : > { %7498 = vmatprep.subr.bf16.mxu1 %v7497_v58  ;;  %v4841_v58 = vld [vmem:[%s10175_s13 + $0x388] sm:$0xff]  ;;  %v7663_v2 = vpack.c.bf16 %v4834_v32, %v4828_v63 }
 0xb50   : > { %v7665_v20 = vpack.c.bf16 %v4847_v7, %v4841_v58  ;;  %v4730_v58 = vld [vmem:[%s10175_s13 + $0x10] sm:$0xff]  ;;  %v4736_v7 = vld [vmem:[%s10175_s13 + $0x40] sm:$0xff] }
 0xb52   : > { %v4439_v21 = vpop.f32.mrb[82].mxu1  ;;  %7500 = vmatpush1.bf16.msra.mxu1 %v7499_v15  ;;  %v4846_v15 = vld [vmem:[%s10175_s13 + $0x3b0] sm:$0xff] }
 0xb53   : > { %v4441_v22 = vpop.f32.mrb[83].mxu1  ;;  %7630 = vmatprep.subr.bf16.mxu1 %v7629_v19  ;;  %v4853_v19 = vld [vmem:[%s10175_s13 + $0x3e8] sm:$0xff]  ;;  %v7667_v36 = vpack.c.bf16 %v4846_v15, %v4840_v42 }
 0xb54   : > { %4719 = vmatprep.mubr.f32.mxu1 %v4441_v22  ;;  %v7669_v48 = vpack.c.bf16 %v4859_v8, %v4853_v19  ;;  %v4871_v22 = vld [vmem:[%s10175_s13 + $0x478] sm:$0xff]  ;;  %v4749_v42 = vld [vmem:[%s10175_s13 + $0xa8] sm:$0xff]  ;;  %v7567_v19 = vpack.c.bf16 %v4736_v7, %v4730_v58  ;;  %v4844_v58 = vld [vmem:[%s10175_s13 + $0x3a0] sm:$0xff] }
 0xb55   : > { %4720 = vmatmul.mubr.f32.vlgmr.msra.gmra.mrb[84].mxu1 %v4439_v21  ;;  %v4858_v21 = vld [vmem:[%s10175_s13 + $0x410] sm:$0xff]  ;;  %v4851_v7 = vld [vmem:[%s10175_s13 + $0x3d8] sm:$0xff] }
 0xb56   : > { %7632 = vmatpush1.bf16.msra.mxu1 %v7631_v41  ;;  %v4865_v41 = vld [vmem:[%s10175_s13 + $0x448] sm:$0xff] }
 0xb57   : > { %7634 = vmatprep.subr.bf16.mxu1 %v7633_v27  ;;  %v7671_v27 = vpack.c.bf16 %v4858_v21, %v4852_v37  ;;  %v7673_v10 = vpack.c.bf16 %v4871_v22, %v4865_v41  ;;  %v4748_v37 = vld [vmem:[%s10175_s13 + $0xa0] sm:$0xff]  ;;  %v4755_v21 = vld [vmem:[%s10175_s13 + $0xd8] sm:$0xff]  ;;  %v4761_v41 = vld [vmem:[%s10175_s13 + $0x108] sm:$0xff] }
 0xb5a   : > { %7636 = vmatpush1.bf16.msra.mxu1 %v7635_v26  ;;  %v4883_v26 = vld [vmem:[%s10175_s13 + $0x4d8] sm:$0xff] }
 0xb5b   : > { %7638 = vmatprep.subr.bf16.mxu1 %v7637_v47  ;;  %v7675_v47 = vpack.c.bf16 %v4870_v3, %v4864_v40  ;;  %v7677_v43 = vpack.c.bf16 %v4883_v26, %v4877_v34  ;;  %v4760_v40 = vld [vmem:[%s10175_s13 + $0x100] sm:$0xff]  ;;  %v4767_v3 = vld [vmem:[%s10175_s13 + $0x138] sm:$0xff]  ;;  %v4773_v34 = vld [vmem:[%s10175_s13 + $0x168] sm:$0xff] }
 0xb5e   : > { %7640 = vmatpush1.bf16.msra.mxu1 %v7639_v31  ;;  %v4895_v31 = vld [vmem:[%s10175_s13 + $0x538] sm:$0xff] }
 0xb5f   : > { %7642 = vmatprep.subr.bf16.mxu1 %v7641_v56  ;;  %v7679_v56 = vpack.c.bf16 %v4882_v5, %v4876_v24  ;;  %v7681_v29 = vpack.c.bf16 %v4895_v31, %v4889_v57  ;;  %v4772_v24 = vld [vmem:[%s10175_s13 + $0x160] sm:$0xff]  ;;  %v4779_v5 = vld [vmem:[%s10175_s13 + $0x198] sm:$0xff]  ;;  %v4785_v57 = vld [vmem:[%s10175_s13 + $0x1c8] sm:$0xff] }
 0xb62   : > { %7644 = vmatpush1.bf16.msra.mxu1 %v7643_v28  ;;  %v4907_v28 = vld [vmem:[%s10175_s13 + $0x598] sm:$0xff] }
 0xb63   : > { %7646 = vmatprep.subr.bf16.mxu1 %v7645_v52  ;;  %v7683_v52 = vpack.c.bf16 %v4894_v18, %v4888_v6  ;;  %v7685_v60 = vpack.c.bf16 %v4907_v28, %v4901_v49  ;;  %v4784_v6 = vld [vmem:[%s10175_s13 + $0x1c0] sm:$0xff]  ;;  %v4791_v18 = vld [vmem:[%s10175_s13 + $0x1f8] sm:$0xff]  ;;  %v4797_v49 = vld [vmem:[%s10175_s13 + $0x228] sm:$0xff] }
 0xb66   : > { %7648 = vmatpush1.bf16.msra.mxu1 %v7647_v30  ;;  %v4909_v30 = vld [vmem:[%s10175_s13 + $0x5a8] sm:$0xff] }
 0xb67   : > { %7650 = vmatprep.subr.bf16.mxu1 %v7649_v23  ;;  %v4915_v23 = vld [vmem:[%s10175_s13 + $0x5d8] sm:$0xff] }
 0xb68   : > { %v7561_v9 = vpack.c.bf16 %v4915_v23, %v4909_v30 }
 0xb6a   : > { %7652 = vmatpush1.bf16.msra.mxu1 %v7651_v51  ;;  %v4919_v51 = vld [vmem:[%s10175_s13 + $0x5f8] sm:$0xff]  ;;  %7562 = vmatprep.subr.bf16.mxu0 %v7561_v9  ;;  %v4808_v9 = vld [vmem:[%s10175_s13 + $0x280] sm:$0xff] }
 0xb6b   : > { %7654 = vmatprep.subr.bf16.mxu1 %v7653_v55  ;;  %v7563_v55 = vpack.c.bf16 %v4914_v45, %v4908_v39  ;;  %v7689_v0 = vpack.c.bf16 %v4919_v51, %v4913_v35  ;;  %v4802_v39 = vld [vmem:[%s10175_s13 + $0x250] sm:$0xff]  ;;  %v4815_v45 = vld [vmem:[%s10175_s13 + $0x2b8] sm:$0xff]  ;;  %v4821_v35 = vld [vmem:[%s10175_s13 + $0x2e8] sm:$0xff] }
 0xb6c   : > { %v7591_v51 = vpack.c.bf16 %v4808_v9, %v4802_v39 }
 0xb6d   : > { %7564 = vmatpush1.bf16.msra.mxu0 %v7563_v55  ;;  %v7593_v55 = vpack.c.bf16 %v4821_v35, %v4815_v45 }
 0xb6e   : > { %7656 = vmatpush1.bf16.msra.mxu1 %v7655_v62  ;;  %v7691_v62 = vpack.c.bf16 %v4918_v59, %v4912_v13  ;;  %v4820_v13 = vld [vmem:[%s10175_s13 + $0x2e0] sm:$0xff]  ;;  %v4827_v59 = vld [vmem:[%s10175_s13 + $0x318] sm:$0xff] }
 0xb6f   : > { %7658 = vmatprep.subr.bf16.mxu1 %v7657_v54  ;;  %v4737_v54 = vld [vmem:[%s10175_s13 + $0x48] sm:$0xff] }
 0xb70   : > { %v7565_v50 = vpack.c.bf16 %v4737_v54, %v4731_v14  ;;  %v4833_v14 = vld [vmem:[%s10175_s13 + $0x348] sm:$0xff] }
 0xb71   : > { %v7597_v54 = vpack.c.bf16 %v4833_v14, %v4827_v59  ;;  %v12393_v59 = vsub.s32 4, %v12349_v46 }
 0xb72   : > { %7660 = vmatpush1.bf16.msra.mxu1 %v7659_v16  ;;  %7566 = vmatprep.subr.bf16.mxu0 %v7565_v50  ;;  %v4581_v16 = vrot.slane %v4572_v53, %v12392_v4  ;;  %v4826_v50 = vld [vmem:[%s10175_s13 + $0x310] sm:$0xff]  ;;  %v4832_v53 = vld [vmem:[%s10175_s13 + $0x340] sm:$0xff] }
 0xb73   : > { %7662 = vmatprep.subr.bf16.mxu1 %v7661_v1 }
 0xb76   : > { %7664 = vmatpush1.bf16.msra.mxu1 %v7663_v2 }
 0xb77   : > { %7666 = vmatprep.subr.bf16.mxu1 %v7665_v20  ;;  %v4743_v20 = vld [vmem:[%s10175_s13 + $0x78] sm:$0xff] }
 0xb7a   : > { %7668 = vmatpush1.bf16.msra.mxu1 %v7667_v36  ;;  %v7569_v36 = vpack.c.bf16 %v4749_v42, %v4743_v20 }
 0xb7b   : > { %7670 = vmatprep.subr.bf16.mxu1 %v7669_v48  ;;  %v4742_v48 = vld [vmem:[%s10175_s13 + $0x70] sm:$0xff] }
 0xb7c   : > { %v7571_v22 = vpack.c.bf16 %v4748_v37, %v4742_v48  ;;  %v4869_v48 = vld [vmem:[%s10175_s13 + $0x468] sm:$0xff] }
 0xb7e   : > { %7672 = vmatpush1.bf16.msra.mxu1 %v7671_v27  ;;  %v7573_v27 = vpack.c.bf16 %v4761_v41, %v4755_v21  ;;  %v4862_v41 = vld [vmem:[%s10175_s13 + $0x430] sm:$0xff] }
 0xb7f   : > { %7674 = vmatprep.subr.bf16.mxu1 %v7673_v10  ;;  %v4754_v10 = vld [vmem:[%s10175_s13 + $0xd0] sm:$0xff] }
 0xb80   : > { %v7575_v26 = vpack.c.bf16 %v4760_v40, %v4754_v10  ;;  %v4881_v10 = vld [vmem:[%s10175_s13 + $0x4c8] sm:$0xff] }
 0xb82   : > { %7676 = vmatpush1.bf16.msra.mxu1 %v7675_v47  ;;  %v7577_v47 = vpack.c.bf16 %v4773_v34, %v4767_v3  ;;  %v4874_v34 = vld [vmem:[%s10175_s13 + $0x490] sm:$0xff] }
 0xb83   : > { %7678 = vmatprep.subr.bf16.mxu1 %v7677_v43  ;;  %v4766_v43 = vld [vmem:[%s10175_s13 + $0x130] sm:$0xff] }
 0xb84   : > { %v7579_v31 = vpack.c.bf16 %v4772_v24, %v4766_v43  ;;  %v4893_v43 = vld [vmem:[%s10175_s13 + $0x528] sm:$0xff] }
 0xb86   : > { %7680 = vmatpush1.bf16.msra.mxu1 %v7679_v56  ;;  %v7581_v56 = vpack.c.bf16 %v4785_v57, %v4779_v5  ;;  %v4886_v57 = vld [vmem:[%s10175_s13 + $0x4f0] sm:$0xff] }
 0xb87   : > { %7682 = vmatprep.subr.bf16.mxu1 %v7681_v29  ;;  %v4778_v29 = vld [vmem:[%s10175_s13 + $0x190] sm:$0xff] }
 0xb88   : > { %v7583_v28 = vpack.c.bf16 %v4784_v6, %v4778_v29  ;;  %v4905_v29 = vld [vmem:[%s10175_s13 + $0x588] sm:$0xff] }
 0xb8a   : > { %7684 = vmatpush1.bf16.msra.mxu1 %v7683_v52  ;;  %v7585_v52 = vpack.c.bf16 %v4797_v49, %v4791_v18  ;;  %v4898_v49 = vld [vmem:[%s10175_s13 + $0x550] sm:$0xff] }
 0xb8b   : > { %7686 = vmatprep.subr.bf16.mxu1 %v7685_v60  ;;  %v4790_v60 = vld [vmem:[%s10175_s13 + $0x1f0] sm:$0xff] }
 0xb8c   : > { %v7587_v30 = vpack.c.bf16 %v4796_v44, %v4790_v60  ;;  %v4917_v60 = vld [vmem:[%s10175_s13 + $0x5e8] sm:$0xff] }
 0xb8e   : > { %7688 = vmatpush1.bf16.msra.mxu1 %v7687_v17  ;;  %v4809_v17 = vld [vmem:[%s10175_s13 + $0x288] sm:$0xff] }
 0xb8f   : > { %7690 = vmatprep.subr.bf16.mxu1 %v7689_v0  ;;  %v7589_v23 = vpack.c.bf16 %v4809_v17, %v4803_v12  ;;  %v4814_v0 = vld [vmem:[%s10175_s13 + $0x2b0] sm:$0xff] }
 0xb90   : > { %v4910_v17 = vld [vmem:[%s10175_s13 + $0x5b0] sm:$0xff] }
 0xb92   : > { %7692 = vmatpush1.bf16.msra.mxu1 %v7691_v62  ;;  %v7595_v62 = vpack.c.bf16 %v4820_v13, %v4814_v0 }
 0xc28   : > { %v4721_v1 = vpop.f32.mrb[84].mxu1 }
 0xc29   : > { %v7915_v63 = vadd.f32 %v4721_v1, %v4577_v11  ;;  %v4723_v32 = vpop.f32.mrb[85].mxu1  ;;  %v4839_v11 = vld [vmem:[%s10175_s13 + $0x378] sm:$0xff]  ;;  %v7599_v1 = vpack.c.bf16 %v4832_v53, %v4826_v50  ;;  %v12394_v53 = vld [vmem:[#allocation108_spill] sm:$0xff] }
 0xc2a   : > { %v7916_v2 = vadd.f32 %v4723_v32, %v4581_v16  ;;  %v4845_v16 = vld [vmem:[%s10175_s13 + $0x3a8] sm:$0xff]  ;;  %v4838_v32 = vld [vmem:[%s10175_s13 + $0x370] sm:$0xff]  ;;  %vm5165_vm8 = vcmp.lt.s32.totalorder %v12394_v53, 8 }
 0xc2b   : > { %v11765_v8 = vmax.f32 %v7915_v63, 0.0  ;;  %v7601_v63 = vpack.c.bf16 %v4845_v16, %v4839_v11  ;;  %v7603_v20 = vpack.c.bf16 %v4844_v58, %v4838_v32  ;;  %v5494_v53 = vld [vmem:[%s10186_s0 + $0x80] sm:$0xff] }
 0xc2c   : > { %v4727_v15 = vmax.f32 %v7916_v2, 0.0  ;;  %v4857_v2 = vld [vmem:[%s10175_s13 + $0x408] sm:$0xff] }
 0xc2d   : > { %v7605_v42 = vpack.c.bf16 %v4857_v2, %v4851_v7 }
 0xc2e   : > { %5016 = vmatprep.mubr.f32.mxu0 %v4727_v15  ;;  %5158 = vmatprep.mubr.f32.mxu1 %v4727_v15 }
 0xc2f   : > { %5017 = vmatmul.mubr.f32.vlgmr.msra.gmra.mrb[72].mxu0 %v11765_v8  ;;  %5159 = vmatmul.mubr.f32.vlgmr.msra.gmra.mrb[86].mxu1 %v11765_v8 }
 0xc30   : > { %7568 = vmatpush1.bf16.msra.mxu0 %v7567_v19  ;;  %5087 = vmatprep.mubr.f32.mxu0 %v4727_v15  ;;  %v4850_v15 = vld [vmem:[%s10175_s13 + $0x3d0] sm:$0xff]  ;;  %v4856_v19 = vld [vmem:[%s10175_s13 + $0x400] sm:$0xff] }
 0xc31   : > { %7570 = vmatprep.subr.bf16.mxu0 %v7569_v36  ;;  %v4863_v36 = vld [vmem:[%s10175_s13 + $0x438] sm:$0xff]  ;;  %v7607_v37 = vpack.c.bf16 %v4856_v19, %v4850_v15 }
 0xc32   : > { %v7609_v21 = vpack.c.bf16 %v4869_v48, %v4863_v36 }
 0xc34   : > { %7572 = vmatpush1.bf16.msra.mxu0 %v7571_v22  ;;  %v4868_v22 = vld [vmem:[%s10175_s13 + $0x460] sm:$0xff] }
 0xc35   : > { %7574 = vmatprep.subr.bf16.mxu0 %v7573_v27  ;;  %v4875_v27 = vld [vmem:[%s10175_s13 + $0x498] sm:$0xff]  ;;  %v7611_v40 = vpack.c.bf16 %v4868_v22, %v4862_v41 }
 0xc36   : > { %v7613_v3 = vpack.c.bf16 %v4881_v10, %v4875_v27 }
 0xc38   : > { %7576 = vmatpush1.bf16.msra.mxu0 %v7575_v26  ;;  %v4880_v26 = vld [vmem:[%s10175_s13 + $0x4c0] sm:$0xff] }
 0xc39   : > { %7578 = vmatprep.subr.bf16.mxu0 %v7577_v47  ;;  %v4887_v47 = vld [vmem:[%s10175_s13 + $0x4f8] sm:$0xff]  ;;  %v7615_v24 = vpack.c.bf16 %v4880_v26, %v4874_v34 }
 0xc3a   : > { %v7617_v5 = vpack.c.bf16 %v4893_v43, %v4887_v47 }
 0xc3c   : > { %7580 = vmatpush1.bf16.msra.mxu0 %v7579_v31  ;;  %v4892_v31 = vld [vmem:[%s10175_s13 + $0x520] sm:$0xff] }
 0xc3d   : > { %7582 = vmatprep.subr.bf16.mxu0 %v7581_v56  ;;  %v4899_v56 = vld [vmem:[%s10175_s13 + $0x558] sm:$0xff]  ;;  %v7619_v6 = vpack.c.bf16 %v4892_v31, %v4886_v57  ;;  %v5481_v31 = vld [vmem:[%s10186_s0 + $0x18] sm:$0xff] }
 0xc3e   : > { %v7621_v18 = vpack.c.bf16 %v4905_v29, %v4899_v56  ;;  %v5479_v57 = vld [vmem:[%s10186_s0 + $0x8] sm:$0xff] }
 0xc3f   : > { %v7693_v56 = vpack.c.bf16 %v5481_v31, %v5479_v57  ;;  %v5516_v57 = vld [vmem:[%s10186_s0 + $0x130] sm:$0xff]  ;;  %v5519_v31 = vld [vmem:[%s10186_s0 + $0x148] sm:$0xff] }
 0xc40   : > { %7584 = vmatpush1.bf16.msra.mxu0 %v7583_v28  ;;  %v4904_v28 = vld [vmem:[%s10175_s13 + $0x580] sm:$0xff] }
 0xc41   : > { %7586 = vmatprep.subr.bf16.mxu0 %v7585_v52  ;;  %v4911_v52 = vld [vmem:[%s10175_s13 + $0x5b8] sm:$0xff]  ;;  %v7623_v44 = vpack.c.bf16 %v4904_v28, %v4898_v49  ;;  %v5485_v28 = vld [vmem:[%s10186_s0 + $0x38] sm:$0xff] }
 0xc42   : > { %v7625_v12 = vpack.c.bf16 %v4917_v60, %v4911_v52  ;;  %v5483_v49 = vld [vmem:[%s10186_s0 + $0x28] sm:$0xff] }
 0xc44   : > { %7588 = vmatpush1.bf16.msra.mxu0 %v7587_v30  ;;  %v4916_v30 = vld [vmem:[%s10175_s13 + $0x5e0] sm:$0xff] }
 0xc45   : > { %7590 = vmatprep.subr.bf16.mxu0 %v7589_v23  ;;  %v7627_v23 = vpack.c.bf16 %v4916_v30, %v4910_v17  ;;  %v5482_v17 = vld [vmem:[%s10186_s0 + $0x20] sm:$0xff]  ;;  %v5484_v30 = vld [vmem:[%s10186_s0 + $0x30] sm:$0xff] }
 0xc48   : > { %7592 = vmatpush1.bf16.msra.mxu0 %v7591_v51  ;;  %v4920_v51 = vld [vmem:[%s10183_s4] sm:$0x3f] }
 0xc49   : > { %7594 = vmatprep.subr.bf16.mxu0 %v7593_v55  ;;  %v4933_v55 = vrot.slane %v4920_v51, %v12348_v25  ;;  %v4925_v0 = vrot.slane %v4920_v51, %v12329_v33  ;;  %v4941_v14 = vrot.slane %v4920_v51, %v12393_v59  ;;  %v4937_v15 = vrot.slane %v4920_v51, %v12331_v38 }
 0xc4a   : > { %v4929_v36 = vrot.slane %v4920_v51, %v12392_v4 }
 0xc4c   : > { %7596 = vmatpush1.bf16.msra.mxu0 %v7595_v62 }
 0xc4d   : > { %7598 = vmatprep.subr.bf16.mxu0 %v7597_v54 }
 0xc50   : > { %7600 = vmatpush1.bf16.msra.mxu0 %v7599_v1 }
 0xc51   : > { %7602 = vmatprep.subr.bf16.mxu0 %v7601_v63 }
 0xc54   : > { %7604 = vmatpush1.bf16.msra.mxu0 %v7603_v20 }
 0xc55   : > { %7606 = vmatprep.subr.bf16.mxu0 %v7605_v42 }
 0xc58   : > { %7608 = vmatpush1.bf16.msra.mxu0 %v7607_v37  ;;  %v12397_v37 = vsub.s32 5, %v12349_v46 }
 0xc59   : > { %7610 = vmatprep.subr.bf16.mxu0 %v7609_v21 }
 0xc5a   : > { %v4945_v21 = vrot.slane %v4920_v51, %v12397_v37  ;;  %v5488_v51 = vld [vmem:[%s10186_s0 + $0x50] sm:$0xff]  ;;  %v5509_v37 = vld [vmem:[%s10186_s0 + $0xf8] sm:$0xff] }
 0xc5c   : > { %7612 = vmatpush1.bf16.msra.mxu0 %v7611_v40 }
 0xc5d   : > { %7614 = vmatprep.subr.bf16.mxu0 %v7613_v3 }
 0xc60   : > { %7616 = vmatpush1.bf16.msra.mxu0 %v7615_v24 }
 0xc61   : > { %7618 = vmatprep.subr.bf16.mxu0 %v7617_v5 }
 0xc64   : > { %7620 = vmatpush1.bf16.msra.mxu0 %v7619_v6  ;;  %v5478_v6 = vld [vmem:[%s10186_s0] sm:$0xff] }
 0xc65   : > { %7622 = vmatprep.subr.bf16.mxu0 %v7621_v18  ;;  %v5480_v18 = vld [vmem:[%s10186_s0 + $0x10] sm:$0xff] }
 0xc66   : > { %v7695_v60 = vpack.c.bf16 %v5480_v18, %v5478_v6  ;;  %v5518_v18 = vld [vmem:[%s10186_s0 + $0x140] sm:$0xff] }
 0xc68   : > { %7624 = vmatpush1.bf16.msra.mxu0 %v7623_v44 }
 0xc69   : > { %7626 = vmatprep.subr.bf16.mxu0 %v7625_v12  ;;  %v7697_v12 = vpack.c.bf16 %v5485_v28, %v5483_v49  ;;  %v5520_v49 = vld [vmem:[%s10186_s0 + $0x150] sm:$0xff]  ;;  %v5523_v28 = vld [vmem:[%s10186_s0 + $0x168] sm:$0xff] }
 0xc6c   : > { %7628 = vmatpush1.bf16.msra.mxu0 %v7627_v23  ;;  %v5487_v23 = vld [vmem:[%s10186_s0 + $0x48] sm:$0xff] }
 0xc6d   : > { %6895 = vmatprep.subr.mxu0 %v12350_v61 }
 0xc6f   : > { %5088 = vmatmul.mubr.f32.vlgmr.msra.gmra.mrb[74].mxu0 %v11765_v8 }
 0xc70   : > { %6897 = vmatprep.mubr.msk.f32.mxu0 %vm9384_vm7, %v12350_v61 }
 0xd02   : > { %v5018_v39 = vpop.f32.mrb[72].mxu0  ;;  %v5160_v9 = vpop.f32.mrb[86].mxu1 }
 0xd03   : > { %v5020_v45 = vpop.f32.mrb[73].mxu0  ;;  %v5162_v35 = vpop.f32.mrb[87].mxu1  ;;  %v5019_v8 = vadd.f32 %v5018_v39, %v4925_v0  ;;  %v5161_v50 = vadd.f32 %v5160_v9, %v4941_v14  ;;  %v5489_v39 = vld [vmem:[%s10186_s0 + $0x58] sm:$0xff]  ;;  %v7699_v9 = vpack.c.bf16 %v5484_v30, %v5482_v17  ;;  %v5490_v14 = vld [vmem:[%s10186_s0 + $0x60] sm:$0xff]  ;;  %v5524_v17 = vld [vmem:[%s10186_s0 + $0x170] sm:$0xff] }
 0xd04   : > { %v5021_v22 = vadd.f32 %v5020_v45, %v4929_v36  ;;  %v5163_v27 = vadd.f32 %v5162_v35, %v4945_v21  ;;  %v7701_v45 = vpack.c.bf16 %v5489_v39, %v5487_v23  ;;  %v5486_v35 = vld [vmem:[%s10186_s0 + $0x40] sm:$0xff]  ;;  %v5493_v0 = vld [vmem:[%s10186_s0 + $0x78] sm:$0xff]  ;;  %v5504_v36 = vld [vmem:[%s10186_s0 + $0xd0] sm:$0xff] }
 0xd05   : > { %v5527_v30 = vld [vmem:[%s10186_s0 + $0x188] sm:$0xff]  ;;  %v5529_v23 = vld [vmem:[%s10186_s0 + $0x198] sm:$0xff] }
 0xd42   : > { %v5089_v13 = vpop.f32.mrb[74].mxu0 }
 0xd43   : > { %v5090_v62 = vadd.f32 %v5089_v13, %v4933_v55  ;;  %v5091_v54 = vpop.f32.mrb[75].mxu0  ;;  %v5491_v55 = vld [vmem:[%s10186_s0 + $0x68] sm:$0xff]  ;;  %v7703_v13 = vpack.c.bf16 %v5488_v51, %v5486_v35  ;;  %v5528_v35 = vld [vmem:[%s10186_s0 + $0x190] sm:$0xff] }
 0xd44   : > { %v5092_v41 = vadd.f32 %v5091_v54, %v4937_v15  ;;  %v7705_v59 = vpack.c.bf16 %v5493_v0, %v5491_v55  ;;  %v5495_v54 = vld [vmem:[%s10186_s0 + $0x88] sm:$0xff]  ;;  %v5533_v55 = vld [vmem:[%s10186_s0 + $0x1b8] sm:$0xff] }
 0xd45   : > { %6896 = vmatpush3.xpose.msra.mxu0 %v5090_v62  ;;  %v5492_v62 = vld [vmem:[%s10186_s0 + $0x70] sm:$0xff]  ;;  %v5531_v51 = vld [vmem:[%s10186_s0 + $0x1a8] sm:$0xff] }
 0xd46   : > { %6900 = vmatprep.subr.mxu0 %v12350_v61 }
 0xd48   : > { %6898 = vmatmul.mubr.f32.vlgmr.msra.gmra.mrb[76].mxu0 %v5019_v8  ;;  %v5497_v8 = vld [vmem:[%s10186_s0 + $0x98] sm:$0xff] }
 0xd49   : > { %6901 = vmatpush3.msra.mxu0 %v5161_v50  ;;  %6902 = vmatprep.mubr.msk.f32.mxu0 %vm9384_vm7, %v12350_v61  ;;  %v7707_v50 = vpack.c.bf16 %v5492_v62, %v5490_v14  ;;  %v5532_v14 = vld [vmem:[%s10186_s0 + $0x1b0] sm:$0xff]  ;;  %v5535_v62 = vld [vmem:[%s10186_s0 + $0x1c8] sm:$0xff] }
 0xd4a   : > { %6905 = vmatprep.subr.mxu0 %v12350_v61 }
 0xe1b   : > { %v5232_v25 = vpop.f32.mrb[76].mxu0 }
 0xe1c   : > { %v5236_v11 = vmul.f32 0.088388346, %v5232_v25  ;;  %v6899_v16 = vpop.f32.mrb[77].mxu0  ;;  %v7709_v25 = vpack.c.bf16 %v5497_v8, %v5495_v54  ;;  %v5537_v54 = vld [vmem:[%s10186_s0 + $0x1d8] sm:$0xff] }
 0xe1d   : > { %v5499_v16 = vld [vmem:[%s10186_s0 + $0xa8] sm:$0xff] }
 0xe1e   : > { %v5237_v1 = vsel %vm5165_vm8, %v5236_v11, -1e+30  ;;  %v5496_v11 = vld [vmem:[%s10186_s0 + $0x90] sm:$0xff] }
 0xe1f   : > { %v5238_v63 = vsel %vm12395_vm10, %v5237_v1, -inf }
 0xe20   : > { %5239 = vmax.xlane.f32.xlu1 %v5238_v63  ;;  %v7711_v63 = vpack.c.bf16 %v5496_v11, %v5494_v53  ;;  %v5536_v53 = vld [vmem:[%s10186_s0 + $0x1d0] sm:$0xff]  ;;  %v5539_v11 = vld [vmem:[%s10186_s0 + $0x1e8] sm:$0xff] }
 0xead   : > { %v5240_v32 = vpop.xlane.xlu1 %5239 }
 0xeae   : > { %v5241_v58 = vsub.f32 %v5237_v1, %v5240_v32  ;;  %v5501_v1 = vld [vmem:[%s10186_s0 + $0xb8] sm:$0xff] }
 0xeaf   : > { %v7713_v32 = vpack.c.bf16 %v5501_v1, %v5499_v16  ;;  %v5541_v16 = vld [vmem:[%s10186_s0 + $0x1f8] sm:$0xff] }
 0xeb0   : > { %v5242_v7 = vmul.f32 1.442695, %v5241_v58  ;;  %v5498_v58 = vld [vmem:[%s10186_s0 + $0xa0] sm:$0xff] }
 0xeb2   : > { %8324 = vpow2.f32 %v5242_v7  ;;  %v5500_v7 = vld [vmem:[%s10186_s0 + $0xb0] sm:$0xff] }
 0xebc   : > { %v8325_v2 = vpop.eup %8324 }
 0xebd   : > { %v5244_v20 = vsel %vm12396_vm11, %v8325_v2, 0.0 }
 0xebe   : > { %5245 = vadd.xlane.f32.xlu0 %v5244_v20  ;;  %v5505_v20 = vld [vmem:[%s10186_s0 + $0xd8] sm:$0xff] }
 0xf4b   : > { %v5246_v42 = vpop.xlane.xlu0 %5245 }
 0xf4c   : > { %8326 = vrcp.f32 %v5246_v42  ;;  %v7715_v42 = vpack.c.bf16 %v5500_v7, %v5498_v58  ;;  %v5540_v58 = vld [vmem:[%s10186_s0 + $0x1f0] sm:$0xff] }
 0xf56   : > { %v8327_v19 = vpop.eup %8326 }
 0xf57   : > { %v5248_v48 = vmul.f32 %v8327_v19, %v8325_v2  ;;  %v5503_v2 = vld [vmem:[%s10186_s0 + $0xc8] sm:$0xff]  ;;  %v5502_v19 = vld [vmem:[%s10186_s0 + $0xc0] sm:$0xff] }
 0xf58   : > { %v7717_v15 = vpack.c.bf16 %v5505_v20, %v5503_v2  ;;  %v7719_v21 = vpack.c.bf16 %v5504_v36, %v5502_v19 }
 0xf59   : > { %6903 = vmatmul.mubr.msk.f32.vlgmr.msra.gmra.mrb[78].mxu0 %vm12398_vm13, %v5248_v48  ;;  %v5507_v48 = vld [vmem:[%s10186_s0 + $0xe8] sm:$0xff] }
 0xf5a   : > { %6906 = vmatpush3.xpose.msra.mxu0 %v5092_v41  ;;  %6907 = vmatprep.mubr.msk.f32.mxu0 %vm9384_vm7, %v12350_v61  ;;  %v7721_v41 = vpack.c.bf16 %v5509_v37, %v5507_v48 }
 0xf5b   : > { %6910 = vmatprep.subr.mxu0 %v12350_v61 }
 0xf5d   : > { %6908 = vmatmul.mubr.f32.vlgmr.msra.gmra.mrb[80].mxu0 %v5021_v22  ;;  %v5506_v22 = vld [vmem:[%s10186_s0 + $0xe0] sm:$0xff] }
 0xf5e   : > { %6911 = vmatpush3.msra.mxu0 %v5163_v27  ;;  %6912 = vmatprep.mubr.msk.f32.mxu0 %vm9384_vm7, %v12350_v61  ;;  %v5508_v27 = vld [vmem:[%s10186_s0 + $0xf0] sm:$0xff] }
 0xf5f   : > { %7694 = vmatprep.subr.bf16.mxu0 %v7693_v56  ;;  %v5521_v56 = vld [vmem:[%s10186_s0 + $0x158] sm:$0xff] }
 0xf60   : > { %v7733_v6 = vpack.c.bf16 %v5521_v56, %v5519_v31  ;;  %v5640_v31 = vld [vmem:[#allocation31] sm:$0x3] (!%p6804_p10)  ;;  %v12402_v56 = vld [vmem:[#allocation106_spill] sm:$0xff] (!%p6804_p10) }
0x102c   : > { %v11855_v38 = vpop.f32.mrb[78].mxu0 }
0x102d   : > { %v6904_v46 = vpop.f32.mrb[79].mxu0 }
0x102e   : > { %v5511_v46 = vld [vmem:[%s10186_s0 + $0x108] sm:$0xff] }
0x1030   : > { %v5388_v10 = vpop.f32.mrb[80].mxu0 }
0x1031   : > { %v5392_v40 = vmul.f32 0.088388346, %v5388_v10  ;;  %v6909_v3 = vpop.f32.mrb[81].mxu0  ;;  %v5513_v10 = vld [vmem:[%s10186_s0 + $0x118] sm:$0xff] }
0x1032   : > { %v7725_v3 = vpack.c.bf16 %v5513_v10, %v5511_v46 }
0x1033   : > { %v5393_v34 = vsel %vm5165_vm8, %v5392_v40, -1e+30  ;;  %v7723_v40 = vpack.c.bf16 %v5508_v27, %v5506_v22  ;;  %v8333_v27 = vld [vmem:[#allocation2 + $0x8] sm:$0xff] }
0x1034   : > { %v5394_v26 = vsel %vm12399_vm15, %v5393_v34, -inf }
0x1035   : > { %5395 = vmax.xlane.f32.xlu1 %v5394_v26  ;;  %v5512_v26 = vld [vmem:[%s10186_s0 + $0x110] sm:$0xff] }
0x10c2   : > { %v5396_v47 = vpop.xlane.xlu1 %5395 }
0x10c3   : > { %v5397_v61 = vsub.f32 %v5393_v34, %v5396_v47  ;;  %v5510_v34 = vld [vmem:[%s10186_s0 + $0x100] sm:$0xff]  ;;  %v5515_v47 = vld [vmem:[%s10186_s0 + $0x128] sm:$0xff] }
0x10c5   : > { %v5398_v43 = vmul.f32 1.442695, %v5397_v61  ;;  %v5517_v61 = vld [vmem:[%s10186_s0 + $0x138] sm:$0xff] }
0x10c7   : > { %8328 = vpow2.f32 %v5398_v43  ;;  %v7727_v43 = vpack.c.bf16 %v5512_v26, %v5510_v34 }
0x10d1   : > { %v8329_v24 = vpop.eup %8328 }
0x10d2   : > { %v5400_v5 = vsel %vm12400_vm0, %v8329_v24, 0.0 }
0x10d3   : > { %5401 = vadd.xlane.f32.xlu0 %v5400_v5  ;;  %v5514_v5 = vld [vmem:[%s10186_s0 + $0x120] sm:$0xff] }
0x1160   : > { %v5402_v29 = vpop.xlane.xlu0 %5401 }
0x1161   : > { %8330 = vrcp.f32 %v5402_v29  ;;  %v7731_v29 = vpack.c.bf16 %v5516_v57, %v5514_v5  ;;  %v5639_v57 = vld [vmem:[#allocation29] sm:$0x3] (!%p6804_p10) }
0x116b   : > { %v8331_v52 = vpop.eup %8330 }
0x116c   : > { %v5404_v44 = vmul.f32 %v8331_v52, %v8329_v24  ;;  %v7729_v24 = vpack.c.bf16 %v5517_v61, %v5515_v47  ;;  %v5525_v52 = vld [vmem:[%s10186_s0 + $0x178] sm:$0xff] }
0x116e   : > { %6913 = vmatmul.mubr.msk.f32.vlgmr.msra.gmra.mrb[82].mxu0 %vm12401_vm9, %v5404_v44  ;;  %v7737_v44 = vpack.c.bf16 %v5525_v52, %v5523_v28  ;;  %v5684_v28 = vld [vmem:[#allocation32] sm:$0x3] (!%p6804_p10) }
0x116f   : > { %7696 = vmatpush1.bf16.msra.mxu0 %v7695_v60  ;;  %v7735_v60 = vpack.c.bf16 %v5520_v49, %v5518_v18 }
0x1170   : > { %7698 = vmatprep.subr.bf16.mxu0 %v7697_v12  ;;  %v5522_v12 = vld [vmem:[%s10186_s0 + $0x160] sm:$0xff] }
0x1171   : > { %v7739_v39 = vpack.c.bf16 %v5524_v17, %v5522_v12 }
0x1173   : > { %7700 = vmatpush1.bf16.msra.mxu0 %v7699_v9  ;;  %v7741_v9 = vpack.c.bf16 %v5529_v23, %v5527_v30  ;;  %v5689_v23 = vrot.slane (!%p6804_p10), %v5684_v28, %v12402_v56 }
0x1174   : > { %7702 = vmatprep.subr.bf16.mxu0 %v7701_v45  ;;  %v5526_v45 = vld [vmem:[%s10186_s0 + $0x180] sm:$0xff] }
0x1175   : > { %v7743_v0 = vpack.c.bf16 %v5528_v35, %v5526_v45 }
0x1177   : > { %7704 = vmatpush1.bf16.msra.mxu0 %v7703_v13  ;;  %v7745_v13 = vpack.c.bf16 %v5533_v55, %v5531_v51 }
0x1178   : > { %7706 = vmatprep.subr.bf16.mxu0 %v7705_v59  ;;  %v5530_v59 = vld [vmem:[%s10186_s0 + $0x1a0] sm:$0xff] }
0x1179   : > { %v7747_v8 = vpack.c.bf16 %v5532_v14, %v5530_v59  ;;  %v5766_v59 = vld [vmem:[#allocation34 + $0x88] sm:$0xff] (!%p6804_p10)  ;;  %v5749_v14 = vld [vmem:[#allocation34] sm:$0xff] (!%p6804_p10) }
0x117b   : > { %7708 = vmatpush1.bf16.msra.mxu0 %v7707_v50  ;;  %v7749_v50 = vpack.c.bf16 %v5537_v54, %v5535_v62  ;;  %v5750_v54 = vld [vmem:[#allocation34 + $0x8] sm:$0xff] (!%p6804_p10) }
0x117c   : > { %7710 = vmatprep.subr.bf16.mxu0 %v7709_v25  ;;  %v5534_v25 = vld [vmem:[%s10186_s0 + $0x1c0] sm:$0xff] }
0x117d   : > { %v7751_v1 = vpack.c.bf16 %v5536_v53, %v5534_v25  ;;  %v7759_v25 = vpack.c.bf16 (!%p6804_p10), %v5750_v54, %v5749_v14  ;;  %v5779_v14 = vld [vmem:[#allocation34 + $0xf0] sm:$0xff] (!%p6804_p10) }
0x117e   : > { %v5763_v54 = vld [vmem:[#allocation34 + $0x70] sm:$0xff] (!%p6804_p10) }
0x117f   : > { %7712 = vmatpush1.bf16.msra.mxu0 %v7711_v63  ;;  %v7753_v63 = vpack.c.bf16 %v5541_v16, %v5539_v11  ;;  %v5751_v11 = vld [vmem:[#allocation34 + $0x10] sm:$0xff] (!%p6804_p10)  ;;  %v5752_v16 = vld [vmem:[#allocation34 + $0x18] sm:$0xff] (!%p6804_p10) }
0x1180   : > { %7714 = vmatprep.subr.bf16.mxu0 %v7713_v32  ;;  %v5538_v32 = vld [vmem:[%s10186_s0 + $0x1e0] sm:$0xff] }
0x1181   : > { %v7755_v7 = vpack.c.bf16 %v5540_v58, %v5538_v32  ;;  %v7763_v32 = vpack.c.bf16 (!%p6804_p10), %v5752_v16, %v5751_v11 }
0x1183   : > { %7716 = vmatpush1.bf16.msra.mxu0 %v7715_v42  ;;  %v5542_v42 = vld [vmem:[%s10192_s28] sm:$0x3] }
0x1184   : > { %7718 = vmatprep.subr.bf16.mxu0 %v7717_v15  ;;  %v5547_v15 = vrot.slane %v5542_v42, %v12329_v33  ;;  %v5551_v19 = vrot.slane %v5542_v42, %v12392_v4  ;;  %v5772_v42 = vld [vmem:[#allocation34 + $0xb8] sm:$0xff] (!%p6804_p10) }
0x1187   : > { %7720 = vmatpush1.bf16.msra.mxu0 %v7719_v21 }
0x1188   : > { %7722 = vmatprep.subr.bf16.mxu0 %v7721_v41  ;;  %v8332_v41 = vld [vmem:[#allocation2] sm:$0xff] }
0x118b   : > { %7724 = vmatpush1.bf16.msra.mxu0 %v7723_v40 }
0x118c   : > { %7726 = vmatprep.subr.bf16.mxu0 %v7725_v3 }
0x118f   : > { %7728 = vmatpush1.bf16.msra.mxu0 %v7727_v43 }
0x1190   : > { %7730 = vmatprep.subr.bf16.mxu0 %v7729_v24 }
0x1193   : > { %7732 = vmatpush1.bf16.msra.mxu0 %v7731_v29  ;;  %v5662_v29 = vrot.slane (!%p6804_p10), %v5639_v57, %v12402_v56 }
0x1194   : > { %7734 = vmatprep.subr.bf16.mxu0 %v7733_v6  ;;  %v12403_v6 = vld [vmem:[#allocation105_spill] sm:$0xff] (!%p6804_p10) }
0x1195   : > { %v5666_v18 = vrot.slane (!%p6804_p10), %v5639_v57, %v12403_v6  ;;  %v5679_v12 = vrot.slane (!%p6804_p10), %v5640_v31, %v12403_v6 }
0x1197   : > { %7736 = vmatpush1.bf16.msra.mxu0 %v7735_v60 }
0x1198   : > { %7738 = vmatprep.subr.bf16.mxu0 %v7737_v44  ;;  %v5675_v44 = vrot.slane (!%p6804_p10), %v5640_v31, %v12402_v56 }
0x119b   : > { %7740 = vmatpush1.bf16.msra.mxu0 %v7739_v39  ;;  %v5693_v39 = vrot.slane (!%p6804_p10), %v5684_v28, %v12403_v6  ;;  %v5758_v28 = vld [vmem:[#allocation34 + $0x48] sm:$0xff] (!%p6804_p10) }
0x119c   : > { %7742 = vmatprep.subr.bf16.mxu0 %v7741_v9 }
0x119f   : > { %7744 = vmatpush1.bf16.msra.mxu0 %v7743_v0  ;;  %v9385_v0 = vmov (!%p6804_p10), 0  }
0x11a0   : > { %7746 = vmatprep.subr.bf16.mxu0 %v7745_v13  ;;  %8334 = vset.pattern.permute.xlu1 (!%p6804_p10), %v9385_v0  ;;  %v5765_v13 = vld [vmem:[#allocation34 + $0x80] sm:$0xff] (!%p6804_p10) }
0x11a1   : > { %8335 = vset.pattern.permute.xlu0 (!%p6804_p10), %v9385_v0  ;;  %v7757_v62 = vpack.c.bf16 (!%p6804_p10), %v5766_v59, %v5765_v13  ;;  %v5761_v0 = vld [vmem:[#allocation34 + $0x60] sm:$0xff] (!%p6804_p10)  ;;  %v5762_v13 = vld [vmem:[#allocation34 + $0x68] sm:$0xff] (!%p6804_p10) }
0x11a2   : > { %v7783_v59 = vpack.c.bf16 (!%p6804_p10), %v5762_v13, %v5761_v0  ;;  %v5852_v13 = vld [vmem:[#allocation37] sm:$0x1] (!%p6804_p10) }
0x11a3   : > { %7748 = vmatpush1.bf16.msra.mxu0 %v7747_v8  ;;  %v5767_v8 = vld [vmem:[#allocation34 + $0x90] sm:$0xff] (!%p6804_p10) }
0x11a4   : > { %7750 = vmatprep.subr.bf16.mxu0 %v7749_v50  ;;  %v5768_v50 = vld [vmem:[#allocation34 + $0x98] sm:$0xff] (!%p6804_p10) }
0x11a5   : > { %v7761_v53 = vpack.c.bf16 (!%p6804_p10), %v5768_v50, %v5767_v8  ;;  %v5764_v50 = vld [vmem:[#allocation34 + $0x78] sm:$0xff] (!%p6804_p10) }
0x11a7   : > { %7752 = vmatpush1.bf16.msra.mxu0 %v7751_v1  ;;  %v5769_v1 = vld [vmem:[#allocation34 + $0xa0] sm:$0xff] (!%p6804_p10) }
0x11a8   : > { %7754 = vmatprep.subr.bf16.mxu0 %v7753_v63  ;;  %v5770_v63 = vld [vmem:[#allocation34 + $0xa8] sm:$0xff] (!%p6804_p10) }
0x11a9   : > { %v7765_v58 = vpack.c.bf16 (!%p6804_p10), %v5770_v63, %v5769_v1 }
0x11ab   : > { %7756 = vmatpush1.bf16.msra.mxu0 %v7755_v7  ;;  %v5753_v7 = vld [vmem:[#allocation34 + $0x20] sm:$0xff] (!%p6804_p10) }
0x11ac   : > { %7758 = vmatprep.subr.bf16.mxu0 (!%p6804_p10), %v7757_v62  ;;  %v5780_v62 = vld [vmem:[#allocation34 + $0xf8] sm:$0xff] (!%p6804_p10) }
0x11ad   : > { %v7785_v8 = vpack.c.bf16 (!%p6804_p10), %v5780_v62, %v5779_v14  ;;  %v5853_v14 = vld [vmem:[#allocation38] sm:$0x1] (!%p6804_p10) }
0x1241   : > { %v5474_v2 = vpop.f32.mrb[82].mxu0 }
0x1242   : > { %v6914_v20 = vpop.f32.mrb[83].mxu0  ;;  %5618 = vmatprep.mubr.f32.mxu0 %v5474_v2  ;;  %v5754_v2 = vld [vmem:[#allocation34 + $0x28] sm:$0xff] (!%p6804_p10) }
0x1243   : > { %5619 = vmatmul.mubr.f32.vlgmr.msra.gmra.mrb[84].mxu0 %v11855_v38  ;;  %v5771_v20 = vld [vmem:[#allocation34 + $0xb0] sm:$0xff] (!%p6804_p10) }
0x1244   : > { %7760 = vmatpush3.bf16.msra.mxu0 (!%p6804_p10), %v7759_v25  ;;  %v7787_v25 = vpack.c.bf16 (!%p6804_p10), %v5764_v50, %v5763_v54 }
0x1245   : > { %7762 = vmatprep.subr.bf16.mxu0 (!%p6804_p10), %v7761_v53 }
0x1248   : > { %7764 = vmatpush3.bf16.msra.mxu0 (!%p6804_p10), %v7763_v32 }
0x1249   : > { %7766 = vmatprep.subr.bf16.mxu0 (!%p6804_p10), %v7765_v58 }
0x1316   : > { %v5620_v36 = vpop.f32.mrb[84].mxu0  ;;  %5636 = sbr.rel (%p6804_p10) target bundleno = 7075 (0x1ba3), region = 288 }
0x1317   : > { %v5621_v48 = vadd.f32 %v5620_v36, %v5547_v15  ;;  %v5622_v37 = vpop.f32.mrb[85].mxu0  ;;  %v7767_v15 = vpack.c.bf16 (!%p6804_p10), %v5754_v2, %v5753_v7  ;;  %v5755_v36 = vld [vmem:[#allocation34 + $0x30] sm:$0xff] (!%p6804_p10) }
0x1318   : > { %v5623_v21 = vadd.f32 %v5622_v37, %v5551_v19  ;;  %v7769_v19 = vpack.c.bf16 (!%p6804_p10), %v5772_v42, %v5771_v20  ;;  %v5773_v37 = vld [vmem:[#allocation34 + $0xc0] sm:$0xff] (!%p6804_p10) }
0x1319   : > { %v5625_v22 = vadd.f32 %v8332_v41, %v5621_v48  ;;  %v5756_v48 = vld [vmem:[#allocation34 + $0x38] sm:$0xff] (!%p6804_p10)  ;;  %7768 = vmatpush3.bf16.msra.mxu0 (!%p6804_p10), %v7767_v15 }
0x131a   : > { %v5626_v46 = vadd.f32 %v8333_v27, %v5623_v21  ;;  %v5774_v21 = vld [vmem:[#allocation34 + $0xc8] sm:$0xff] (!%p6804_p10)  ;;  %v7771_v41 = vpack.c.bf16 (!%p6804_p10), %v5756_v48, %v5755_v36  ;;  %7770 = vmatprep.subr.bf16.mxu0 (!%p6804_p10), %v7769_v19  ;;  %v6805_v27 = vld [vmem:[#allocation3] ss:$0 sm:$0xff] (!%p6804_p10) }
0x131b   : > { %5631 = vst [vmem:[#allocation2] sm:$0xff] %v5625_v22  ;;  %v7773_v22 = vpack.c.bf16 (!%p6804_p10), %v5774_v21, %v5773_v37 }
0x131c   : > { %5632 = vst [vmem:[#allocation2 + $0x8] sm:$0xff] %v5626_v46 }
0x131d   : > { %7772 = vmatpush3.bf16.msra.mxu0 %v7771_v41  ;;  %v5781_v41 = vld [vmem:[#allocation35] sm:$0x1] }
0x131e   : > { %7774 = vmatprep.subr.bf16.mxu0 %v7773_v22 }
0x1322   : > { %v5637_v10 = vld [vmem:[#allocation2] sm:$0xff] }
0x1323   : > { %v5638_v38 = vld [vmem:[#allocation2 + $0x8] sm:$0xff] }
0x1324   : > { %v5641_v40 = vadd.f32 %v5638_v38, %v5637_v10 }
0x1326   : > { %5642 = vadd.xlane.f32.xlu0 %v5641_v40 }
0x13b3   : > { %v5643_v33 = vpop.xlane.xlu0 %5642 }
0x13b4   : > { %v5645_v3 = vmul.f32 0.00390625, %v5643_v33 }
0x13b6   : > { %v5646_v4 = vsub.f32 %v5637_v10, %v5645_v3  ;;  %v5647_v34 = vsub.f32 %v5638_v38, %v5645_v3 }
0x13b8   : > { %v5648_v26 = vmul.f32 %v5646_v4, %v5646_v4  ;;  %v5649_v47 = vmul.f32 %v5647_v34, %v5647_v34 }
0x13ba   : > { %v5650_v61 = vadd.f32 %v5649_v47, %v5648_v26 }
0x13bc   : > { %5651 = vadd.xlane.f32.xlu0 %v5650_v61 }
0x1449   : > { %v5652_v43 = vpop.xlane.xlu0 %5651 }
0x144a   : > { %v5653_v24 = vmul.f32 0.00390625, %v5652_v43 }
0x144c   : > { %v5654_v5 = vadd.f32 1e-05, %v5653_v24 }
0x144e   : > { %8336 = vrsqrt.f32 %v5654_v5 }
0x1458   : > { %v8337_v49 = vpop.eup %8336 }
0x1459   : > { %v5656_v52 = vmul.f32 %v8337_v49, %v5646_v4  ;;  %v5657_v60 = vmul.f32 %v8337_v49, %v5647_v34  ;;  %v5757_v49 = vld [vmem:[#allocation34 + $0x40] sm:$0xff] }
0x145b   : > { %v5669_v17 = vmul.f32 %v5662_v29, %v5656_v52  ;;  %v5670_v30 = vmul.f32 %v5666_v18, %v5657_v60  ;;  %v7775_v60 = vpack.c.bf16 %v5758_v28, %v5757_v49  ;;  %v5908_v28 = vld [vmem:[#allocation40 + $0x50] sm:$0xff] }
0x145d   : > { %v11937_v9 = vadd.f32 %v5675_v44, %v5669_v17  ;;  %v11939_v45 = vadd.f32 %v5679_v12, %v5670_v30  ;;  %7776 = vmatpush3.bf16.msra.mxu0 %v7775_v60  ;;  %v5775_v44 = vld [vmem:[#allocation34 + $0xd0] sm:$0xff]  ;;  %v5776_v12 = vld [vmem:[#allocation34 + $0xd8] sm:$0xff] }
0x145e   : > { %v7777_v17 = vpack.c.bf16 %v5776_v12, %v5775_v44  ;;  %v5759_v30 = vld [vmem:[#allocation34 + $0x50] sm:$0xff]  ;;  %v5910_v44 = vld [vmem:[#allocation40 + $0x60] sm:$0xff] }
0x145f   : > { %v5696_v35 = vmul.f32 %v5689_v23, %v11937_v9  ;;  %v5697_v51 = vmul.f32 %v5693_v39, %v11939_v45  ;;  %v5760_v23 = vld [vmem:[#allocation34 + $0x58] sm:$0xff]  ;;  %v5911_v12 = vld [vmem:[#allocation40 + $0x68] sm:$0xff] }
0x1460   : > { %v7779_v39 = vpack.c.bf16 %v5760_v23, %v5759_v30  ;;  %7778 = vmatprep.subr.bf16.mxu0 %v7777_v17  ;;  %v7808_v17 = vpack.c.bf16 %v5911_v12, %v5910_v44  ;;  %v5912_v30 = vld [vmem:[#allocation40 + $0x70] sm:$0xff]  ;;  %v5913_v23 = vld [vmem:[#allocation40 + $0x78] sm:$0xff]  ;;  %v6037_v44 = vld [vmem:[#allocation46 + $0x40] sm:$0xff] }
0x1461   : > { %v5698_v55 = vadd.f32 %v5697_v51, %v5696_v35  ;;  %v5777_v35 = vld [vmem:[#allocation34 + $0xe0] sm:$0xff]  ;;  %v5778_v51 = vld [vmem:[#allocation34 + $0xe8] sm:$0xff]  ;;  %v6038_v12 = vld [vmem:[#allocation46 + $0x48] sm:$0xff] }
0x1462   : > { %7780 = vmatpush3.bf16.msra.mxu0 %v7779_v39  ;;  %v7811_v39 = vpack.c.bf16 %v5913_v23, %v5912_v30  ;;  %v6039_v30 = vld [vmem:[#allocation46 + $0x50] sm:$0xff]  ;;  %v6040_v23 = vld [vmem:[#allocation46 + $0x58] sm:$0xff] }
0x1463   : > { %5699 = vadd.xlane.f32.xlu1 %v5698_v55  ;;  %v7781_v55 = vpack.c.bf16 %v5778_v51, %v5777_v35 }
0x1465   : > { %7782 = vmatprep.subr.bf16.mxu0 %v7781_v55 }
0x1466   : > { %7784 = vmatpush3.bf16.msra.mxu0 %v7783_v59 }
0x1467   : > { %7786 = vmatprep.subr.bf16.mxu0 %v7785_v8 }
0x146a   : > { %7788 = vmatpush3.bf16.msra.mxu0 %v7787_v25 }
0x14f0   : > { %v5700_v46 = vpop.xlane.xlu1 %5699 }
0x14f1   : > { %v5708_v10 = vadd.f32 %v6805_v27, %v5700_v46 }
0x14f3   : > { %v5711_v38 = vsel %vm5710_vm12, %v5708_v10, -inf }
0x14f4   : > { %v5712_v40 = vrot.slane %v5711_v38, 4 }
0x14f6   : > { %v5713_v33 = vmax.f32 %v5711_v38, %v5712_v40 }
0x14f8   : > { %v5714_v3 = vrot.slane %v5713_v33, 2 }
0x14fa   : > { %v5715_v4 = vmax.f32 %v5713_v33, %v5714_v3  ;;  %v5898_v33 = vld [vmem:[#allocation40] sm:$0xff]  ;;  %v5899_v3 = vld [vmem:[#allocation40 + $0x8] sm:$0xff] }
0x14fc   : > { %v5716_v34 = vrot.slane %v5715_v4, 1 }
0x14fe   : > { %v5717_v26 = vmax.f32 %v5715_v4, %v5716_v34  ;;  %v5900_v4 = vld [vmem:[#allocation40 + $0x10] sm:$0xff]  ;;  %v9386_v34 = vmov 0.0|0.0  }
0x14ff   : > { %7789 = vmatprep.subr.bf16.mxu1 %v9386_v34  ;;  %7813 = vmatprep.subr.bf16.mxu0 %v9386_v34 }
0x1500   : > { %v5718_v47 = vsub.f32 %v5708_v10, %v5717_v26  ;;  %v7790_v26 = vpack.c.bf16 %v5899_v3, %v5898_v33 }
0x1502   : > { %v5719_v61 = vmul.f32 1.442695, %v5718_v47  ;;  %v5901_v47 = vld [vmem:[#allocation40 + $0x18] sm:$0xff]  ;;  %7791 = vmatpush3.bf16.msra.mxu1 %v7790_v26 }
0x1503   : > { %7792 = vmatprep.subr.bf16.mxu1 %v9386_v34 }
0x1504   : > { %8338 = vpow2.f32 %v5719_v61  ;;  %v9388_v61 = vmov 0.0  }
0x1505   : > { %6947 = vmatprep.mubr.msk.f32.mxu1 %vm9387_vm14, %v9388_v61 }
0x150e   : > { %v8339_v43 = vpop.eup %8338 }
0x150f   : > { %v5721_v24 = vsel %vm5710_vm12, %v8339_v43, 0.0 }
0x1510   : > { %v5722_v5 = vrot.slane %v5721_v24, 4 }
0x1512   : > { %v5723_v57 = vadd.f32 %v5722_v5, %v5721_v24  ;;  %v5902_v24 = vld [vmem:[#allocation40 + $0x20] sm:$0xff]  ;;  %v5903_v5 = vld [vmem:[#allocation40 + $0x28] sm:$0xff] }
0x1514   : > { %v5724_v31 = vrot.slane %v5723_v57, 2 }
0x1516   : > { %v5725_v56 = vadd.f32 %v5724_v31, %v5723_v57  ;;  %v7796_v57 = vpack.c.bf16 %v5903_v5, %v5902_v24  ;;  %v5904_v31 = vld [vmem:[#allocation40 + $0x30] sm:$0xff]  ;;  %v6029_v24 = vld [vmem:[#allocation46] sm:$0xff] }
0x1517   : > { %v6030_v5 = vld [vmem:[#allocation46 + $0x8] sm:$0xff] }
0x1518   : > { %v5726_v29 = vrot.slane %v5725_v56, 1 }
0x151a   : > { %v5727_v6 = vadd.f32 %v5726_v29, %v5725_v56  ;;  %v5905_v56 = vld [vmem:[#allocation40 + $0x38] sm:$0xff] }
0x151b   : > { %v7799_v29 = vpack.c.bf16 %v5905_v56, %v5904_v31  ;;  %v7814_v31 = vpack.c.bf16 %v6030_v5, %v6029_v24  ;;  %v6032_v56 = vld [vmem:[#allocation46 + $0x18] sm:$0xff]  ;;  %v6117_v24 = vld [vmem:[#allocation49] sm:$0x1] }
0x151c   : > { %8340 = vrcp.f32 %v5727_v6  ;;  %v5906_v6 = vld [vmem:[#allocation40 + $0x40] sm:$0xff] }
0x1526   : > { %v8341_v18 = vpop.eup %8340 }
0x1527   : > { %v5729_v52 = vmul.f32 %v8341_v18, %v8339_v43  ;;  %v7793_v43 = vpack.c.bf16 %v5901_v47, %v5900_v4  ;;  %v5907_v18 = vld [vmem:[#allocation40 + $0x48] sm:$0xff] }
0x1528   : > { %v7802_v49 = vpack.c.bf16 %v5907_v18, %v5906_v6  ;;  %v6033_v6 = vld [vmem:[#allocation46 + $0x20] sm:$0xff]  ;;  %v6034_v18 = vld [vmem:[#allocation46 + $0x28] sm:$0xff] }
0x1529   : > { %5732 = vperm.xlu1 %8334, %v5729_v52   ;;  %7794 = vmatpush3.bf16.msra.mxu1 %v7793_v43  ;;  %v5909_v52 = vld [vmem:[#allocation40 + $0x58] sm:$0xff] }
0x152a   : > { %7795 = vmatprep.subr.bf16.mxu1 %v9386_v34  ;;  %v7805_v60 = vpack.c.bf16 %v5909_v52, %v5908_v28  ;;  %v6035_v28 = vld [vmem:[#allocation46 + $0x30] sm:$0xff]  ;;  %v6036_v52 = vld [vmem:[#allocation46 + $0x38] sm:$0xff] }
0x152d   : > { %7797 = vmatpush3.bf16.msra.mxu1 %v7796_v57  ;;  %v6031_v57 = vld [vmem:[#allocation46 + $0x10] sm:$0xff] }
0x152e   : > { %7798 = vmatprep.subr.bf16.mxu1 %v9386_v34 }
0x1531   : > { %7800 = vmatpush3.bf16.msra.mxu1 %v7799_v29  ;;  %v7817_v29 = vpack.c.bf16 %v6032_v56, %v6031_v57  ;;  %v6122_v56 = vld [vmem:[#allocation4] sm:$0x1] }
0x1532   : > { %7801 = vmatprep.subr.bf16.mxu1 %v9386_v34 }
0x1535   : > { %7803 = vmatpush3.bf16.msra.mxu1 %v7802_v49  ;;  %v7820_v49 = vpack.c.bf16 %v6034_v18, %v6033_v6 }
0x1536   : > { %7804 = vmatprep.subr.bf16.mxu1 %v9386_v34 }
0x1539   : > { %7806 = vmatpush3.bf16.msra.mxu1 %v7805_v60  ;;  %v7823_v60 = vpack.c.bf16 %v6036_v52, %v6035_v28 }
0x153a   : > { %7807 = vmatprep.subr.bf16.mxu1 %v9386_v34 }
0x153d   : > { %7809 = vmatpush3.bf16.msra.mxu1 %v7808_v17  ;;  %v7826_v17 = vpack.c.bf16 %v6038_v12, %v6037_v44 }
0x153e   : > { %7810 = vmatprep.subr.bf16.mxu1 %v9386_v34 }
0x1541   : > { %7812 = vmatpush3.bf16.msra.mxu1 %v7811_v39  ;;  %v7829_v39 = vpack.c.bf16 %v6040_v23, %v6039_v30 }
0x15a8   : > { %v5733_v53 = vpop.permute.xlu1 %5732 }
0x15a9   : > { %v5735_v11 = vmul.f32 %v5733_v53, %v11937_v9  ;;  %v5736_v16 = vmul.f32 %v5733_v53, %v11939_v45 }
0x15ab   : > { %v5737_v1 = vrot.slane %v5735_v11, 4  ;;  %v5743_v63 = vrot.slane %v5736_v16, 4 }
0x15ad   : > { %v5738_v32 = vadd.f32 %v5737_v1, %v5735_v11  ;;  %v5744_v58 = vadd.f32 %v5743_v63, %v5736_v16 }
0x15af   : > { %v5739_v7 = vrot.slane %v5738_v32, 2  ;;  %v5745_v2 = vrot.slane %v5744_v58, 2 }
0x15b1   : > { %v5740_v20 = vadd.f32 %v5739_v7, %v5738_v32  ;;  %v5746_v42 = vadd.f32 %v5745_v2, %v5744_v58 }
0x15b3   : > { %v5747_v15 = vrot.slane %v5746_v42, 1  ;;  %v5741_v19 = vrot.slane %v5740_v20, 1 }
0x15b5   : > { %v5748_v36 = vadd.f32 %v5747_v15, %v5746_v42  ;;  %v5742_v48 = vadd.f32 %v5741_v19, %v5740_v20 }
0x15b7   : > { %5846 = vmatprep.mubr.f32.mxu0 %v5748_v36 }
0x15b8   : > { %5847 = vmatmul.mubr.f32.vlgmr.msra.gmra.mrb[0].mxu0 %v5742_v48 }
0x15b9   : > { %6982 = vmatprep.mubr.msk.f32.mxu0 %vm9387_vm14, %v9388_v61  ;;  %7815 = vmatpush3.bf16.msra.mxu0 %v7814_v31 }
0x15ba   : > { %7816 = vmatprep.subr.bf16.mxu0 %v9386_v34 }
0x15bd   : > { %7818 = vmatpush3.bf16.msra.mxu0 %v7817_v29 }
0x15be   : > { %7819 = vmatprep.subr.bf16.mxu0 %v9386_v34 }
0x15c1   : > { %7821 = vmatpush3.bf16.msra.mxu0 %v7820_v49 }
0x15c2   : > { %7822 = vmatprep.subr.bf16.mxu0 %v9386_v34 }
0x15c5   : > { %7824 = vmatpush3.bf16.msra.mxu0 %v7823_v60 }
0x15c6   : > { %7825 = vmatprep.subr.bf16.mxu0 %v9386_v34 }
0x15c9   : > { %7827 = vmatpush3.bf16.msra.mxu0 %v7826_v17 }
0x15ca   : > { %7828 = vmatprep.subr.bf16.mxu0 %v9386_v34 }
0x15cd   : > { %7830 = vmatpush3.bf16.msra.mxu0 %v7829_v39 }
0x15ce   : > { %7831 = vmatprep.subr.bf16.mxu0 %v9386_v34 }
0x168b   : > { %v6858_v37 = vpop.f32.mrb[0].mxu0 }
0x168c   : > { %v6859_v21 = vpop.f32.mrb[1].mxu0 }
0x168d   : > { %v6860_v9 = vadd.f32 %v6859_v21, %v6858_v37 }
0x168f   : > { %v5849_v45 = vadd.f32 %v6860_v9, %v5781_v41  ;;  %v9389_v41 = vmov -1.0  }
0x1691   : > { %v5855_v22 = vsel %vm5854_vm1, %v5849_v45, 0.0 }
0x1692   : > { %5856 = vadd.xlane.f32.xlu0 %v5855_v22 }
0x171f   : > { %v5857_v27 = vpop.xlane.xlu0 %5856 }
0x1720   : > { %v5859_v46 = vmul.f32 0.0078125, %v5857_v27 }
0x1722   : > { %v5860_v10 = vsub.f32 %v5849_v45, %v5859_v46 }
0x1724   : > { %v5861_v38 = vmul.f32 %v5860_v10, %v5860_v10 }
0x1726   : > { %v5862_v40 = vsel %vm5854_vm1, %v5861_v38, 0.0 }
0x1727   : > { %5863 = vadd.xlane.f32.xlu0 %v5862_v40 }
0x17b4   : > { %v5864_v35 = vpop.xlane.xlu0 %5863 }
0x17b5   : > { %v5865_v51 = vmul.f32 0.0078125, %v5864_v35  ;;  %v6041_v35 = vld [vmem:[#allocation46 + $0x60] sm:$0xff] }
0x17b7   : > { %v5866_v55 = vadd.f32 1e-05, %v5865_v51  ;;  %v6042_v51 = vld [vmem:[#allocation46 + $0x68] sm:$0xff] }
0x17b9   : > { %8342 = vrsqrt.f32 %v5866_v55  ;;  %v7832_v55 = vpack.c.bf16 %v6042_v51, %v6041_v35 }
0x17bb   : > { %7833 = vmatpush3.bf16.msra.mxu0 %v7832_v55 }
0x17bc   : > { %7834 = vmatprep.subr.bf16.mxu0 %v9386_v34 }
0x17c3   : > { %v8343_v0 = vpop.eup %8342 }
0x17c4   : > { %v5868_v59 = vmul.f32 %v8343_v0, %v5860_v10  ;;  %v5914_v10 = vld [vmem:[#allocation41] sm:$0x1]  ;;  %v6043_v0 = vld [vmem:[#allocation46 + $0x70] sm:$0xff] }
0x17c6   : > { %v5869_v62 = vmul.f32 %v5868_v59, %v5852_v13  ;;  %v6044_v13 = vld [vmem:[#allocation46 + $0x78] sm:$0xff] }
0x17c7   : > { %v7835_v59 = vpack.c.bf16 %v6044_v13, %v6043_v0 }
0x17c8   : > { %v5870_v54 = vadd.f32 %v5869_v62, %v5853_v14 }
0x17c9   : > { %7836 = vmatpush3.bf16.msra.mxu0 %v7835_v59 }
0x17ca   : > { %v5872_v8 = vmul.f32 0.70710677, %v5870_v54  ;;  %v5871_v22 = vmul.f32 0.5, %v5870_v54 }
0x17cc   : > { %v5875_v50 = vand.u32 2147483647, %v5872_v8  ;;  %vm5873_vm2 = vcmp.ge.f32.partialorder %v5872_v8, 0.0 }
0x17cd   : > { %v5874_v9 = vsel %vm5873_vm2, 1.0, %v9389_v41 }
0x17ce   : > { %v5876_v25 = vmul.f32 0.3275911, %v5875_v50  ;;  %v5889_v11 = vsub.f32 0.0, %v5875_v50 }
0x17d0   : > { %v5877_v53 = vadd.f32 1.0, %v5876_v25  ;;  %v5890_v1 = vmul.f32 %v5889_v11, %v5875_v50  ;;  %v5985_v50 = vld [vmem:[#allocation43] sm:$0x1] }
0x17d2   : > { %8344 = vrcp.f32 %v5877_v53  ;;  %v5891_v58 = vmul.f32 1.442695, %v5890_v1  ;;  %v5986_v53 = vld [vmem:[#allocation44] sm:$0x1] }
0x17d4   : > { %8346 = vpow2.f32 %v5891_v58 }
0x17dc   : > { %v8345_v16 = vpop.eup %8344 }
0x17dd   : > { %v5880_v63 = vmul.f32 1.0614054, %v8345_v16 }
0x17de   : > { %v8347_v48 = vpop.eup %8346 }
0x17df   : > { %v5881_v32 = vadd.f32 -1.4531521, %v5880_v63 }
0x17e1   : > { %v5882_v7 = vmul.f32 %v8345_v16, %v5881_v32 }
0x17e3   : > { %v5883_v2 = vadd.f32 1.4214138, %v5882_v7 }
0x17e5   : > { %v5884_v20 = vmul.f32 %v8345_v16, %v5883_v2 }
0x17e7   : > { %v5885_v42 = vadd.f32 -0.28449672, %v5884_v20 }
0x17e9   : > { %v5886_v15 = vmul.f32 %v8345_v16, %v5885_v42 }
0x17eb   : > { %v5887_v19 = vadd.f32 0.2548296, %v5886_v15 }
0x17ed   : > { %v5888_v36 = vmul.f32 %v8345_v16, %v5887_v19 }
0x17ef   : > { %v5893_v37 = vmul.f32 %v8347_v48, %v5888_v36 }
0x17f1   : > { %v5894_v21 = vsub.f32 1.0, %v5893_v37 }
0x17f3   : > { %v5895_v45 = vmul.f32 %v5894_v21, %v5874_v9 }
0x17f5   : > { %v5896_v27 = vadd.f32 1.0, %v5895_v45 }
0x17f7   : > { %v11957_v46 = vmul.f32 %v5896_v27, %v5871_v22 }
0x17f9   : > { %6948 = vmatmul.mubr.f32.vlgmr.msra.gmra.mrb[0].mxu1 %v11957_v46 }
0x18cc   : > { %v5981_v38 = vpop.f32.mrb[0].mxu1 }
0x18cd   : > { %v5982_v40 = vadd.f32 %v5981_v38, %v5914_v10  ;;  %v6949_v33 = vpop.f32.mrb[1].mxu1 }
0x18cf   : > { %v5987_v3 = vsel %vm5854_vm1, %v5982_v40, 0.0 }
0x18d0   : > { %5988 = vadd.xlane.f32.xlu0 %v5987_v3 }
0x195d   : > { %v5989_v4 = vpop.xlane.xlu0 %5988 }
0x195e   : > { %v5990_v26 = vmul.f32 0.0078125, %v5989_v4 }
0x1960   : > { %v5991_v47 = vsub.f32 %v5982_v40, %v5990_v26  ;;  %v6045_v26 = vld [vmem:[#allocation47] sm:$0x1] }
0x1962   : > { %v5992_v61 = vmul.f32 %v5991_v47, %v5991_v47 }
0x1964   : > { %v5993_v43 = vsel %vm5854_vm1, %v5992_v61, 0.0 }
0x1965   : > { %5994 = vadd.xlane.f32.xlu0 %v5993_v43 }
0x19f2   : > { %v5995_v14 = vpop.xlane.xlu0 %5994 }
0x19f3   : > { %v5996_v62 = vmul.f32 0.0078125, %v5995_v14 }
0x19f5   : > { %v5997_v54 = vadd.f32 1e-05, %v5996_v62 }
0x19f7   : > { %8348 = vrsqrt.f32 %v5997_v54 }
0x1a01   : > { %v8349_v8 = vpop.eup %8348 }
0x1a02   : > { %v5999_v25 = vmul.f32 %v8349_v8, %v5991_v47 }
0x1a04   : > { %v6000_v11 = vmul.f32 %v5999_v25, %v5985_v50 }
0x1a06   : > { %v6001_v16 = vadd.f32 %v6000_v11, %v5986_v53 }
0x1a08   : > { %v6003_v1 = vmul.f32 0.70710677, %v6001_v16  ;;  %v6002_v33 = vmul.f32 0.5, %v6001_v16 }
0x1a0a   : > { %v6006_v63 = vand.u32 2147483647, %v6003_v1  ;;  %vm6004_vm3 = vcmp.ge.f32.partialorder %v6003_v1, 0.0 }
0x1a0b   : > { %v6005_v38 = vsel %vm6004_vm3, 1.0, %v9389_v41 }
0x1a0c   : > { %v6007_v32 = vmul.f32 0.3275911, %v6006_v63  ;;  %v6020_v7 = vsub.f32 0.0, %v6006_v63 }
0x1a0e   : > { %v6008_v58 = vadd.f32 1.0, %v6007_v32  ;;  %v6021_v20 = vmul.f32 %v6020_v7, %v6006_v63 }
0x1a10   : > { %8350 = vrcp.f32 %v6008_v58  ;;  %v6022_v15 = vmul.f32 1.442695, %v6021_v20 }
0x1a12   : > { %8352 = vpow2.f32 %v6022_v15 }
0x1a1a   : > { %v8351_v2 = vpop.eup %8350 }
0x1a1b   : > { %v6011_v34 = vmul.f32 1.0614054, %v8351_v2 }
0x1a1c   : > { %v8353_v22 = vpop.eup %8352 }
0x1a1d   : > { %v6012_v42 = vadd.f32 -1.4531521, %v6011_v34 }
0x1a1f   : > { %v6013_v19 = vmul.f32 %v8351_v2, %v6012_v42 }
0x1a21   : > { %v6014_v36 = vadd.f32 1.4214138, %v6013_v19 }
0x1a23   : > { %v6015_v48 = vmul.f32 %v8351_v2, %v6014_v36 }
0x1a25   : > { %v6016_v37 = vadd.f32 -0.28449672, %v6015_v48 }
0x1a27   : > { %v6017_v21 = vmul.f32 %v8351_v2, %v6016_v37 }
0x1a29   : > { %v6018_v9 = vadd.f32 0.2548296, %v6017_v21 }
0x1a2b   : > { %v6019_v45 = vmul.f32 %v8351_v2, %v6018_v9 }
0x1a2d   : > { %v6024_v27 = vmul.f32 %v8353_v22, %v6019_v45 }
0x1a2f   : > { %v6025_v10 = vsub.f32 1.0, %v6024_v27 }
0x1a31   : > { %v6026_v40 = vmul.f32 %v6025_v10, %v6005_v38 }
0x1a33   : > { %v6027_v3 = vadd.f32 1.0, %v6026_v40 }
0x1a35   : > { %v6028_v4 = vmul.f32 %v6027_v3, %v6002_v33 }
0x1a37   : > { %6983 = vmatmul.mubr.f32.vlgmr.msra.gmra.mrb[2].mxu0 %v6028_v4 }
0x1b0a   : > { %v6112_v47 = vpop.f32.mrb[2].mxu0 }
0x1b0b   : > { %v6113_v61 = vadd.f32 %v6112_v47, %v6045_v26  ;;  %v6984_v43 = vpop.f32.mrb[3].mxu0 }
0x1b0d   : > { %v6116_v5 = vadd.f32 %v6113_v61, %v11957_v46 }
0x1b0f   : > { %v6118_v57 = vmul.f32 %v6117_v24, %v6116_v5 }
0x1b11   : > { %v6119_v31 = vsel %vm5854_vm1, %v6118_v57, 0.0 }
0x1b12   : > { %6120 = vadd.xlane.f32.xlu1 %v6119_v31 }
0x1b9f   : > { %v6121_v29 = vpop.xlane.xlu1 %6120 }
0x1ba0   : > { %v6123_v41 = vadd.f32 %v6122_v56, %v6121_v29 }
0x1ba2   : > { %6125 = vst.msk [vmem:[#allocation50] sm:$0x1] %vm6124_vm4, %v6123_v41 }
0x1ba3 PF: > { %p8205_p13 = scmp.eq.s32.totalorder %s9598_s10, 1  ;;  %s9390_s3 = smov [#allocation50]  }
0x1ba4   : > { %s6133_s20 = sshll.u32 %s9390_s3, 4  ;;  %s6134_s20 = int_to_ptr.vmem [resolvable:$true] %s6133_s20 }
0x1ba5   : > { %s9186_s27 = scalar_lea.vmem %s6134_s20, 16  ;;  %s9192_s1 = scalar_lea.vmem %s6134_s20, 32 }
0x1ba6   : > { %p9187_p2 = scmp.ne.s32.totalorder %s6134_s20, %s9186_s27  ;;  %p9193_p12 = scmp.lt.s32.totalorder %s6134_s20, %s6134_s20 }
0x1ba7   : > { %p9194_p8 = scmp.lt.s32.totalorder %s9192_s1, %s9186_s27 }
0x1ba8   : > { %p9188_p6 = pnand %p9187_p2, %p8205_p13 }
0x1ba9   : > { %p9195_p1 = por %p9194_p8, %p9193_p12 }
0x1baa   : > { %p9189_p0 = pneg %p9188_p6 }
0x1bac   : > { %p9196_p9 = pnand %p9195_p1, %p9189_p0 }
0x1bae   : > { %9199 = shalt.err (!%p9196_p9)
}
0x1baf   : > { %s12404_s17 = sld [smem:[#allocation100_spill]] }
0x1bb5   : > { %s9200_s12 = scalar_lea.hbm %s12404_s17, 16 }
0x1bb6   : > { %p9201_p3 = scmp.ne.s32.totalorder %s12404_s17, %s9200_s12  ;;  %p9206_p5 = scmp.lt.u32.totalorder %s9200_s12, %s12404_s17 }
0x1bb8   : > { %p9202_p4 = pnand %p9201_p3, %p8205_p13 }
0x1bba   : > { %p9203_p11 = pneg %p9202_p4 }
0x1bbc   : > { %p9208_p7 = pnand %p9206_p5, %p9203_p11 }
0x1bbe   : > { %9211 = shalt.err (!%p9208_p7)
}
0x1bbf   : > { %8074 = dma.vmem_to_hbm [thread:$0]  (%p8205_p13), %s6134_s20, 16, %s12404_s17, [#allocation7]  }
0x1bc0   : > { %9289 = dma.done.wait (%p8205_p13), [#allocation7], 16  }
0x1bc1   : > { %9291 = vsyncadd (%p8205_p13), [#allocation7], 4294967280 }
0x1bc2 PF: > { %s12405_s14 = sld [smem:[#allocation101_spill]]  ;;  %s12406_s1 = sld [smem:[#allocation102_spill]] }
0x1bc3   : > { %p110_p10 = scmp.ge.s32.totalorder %s9737_s2, 4   ;;  %s12407_s0 = smov %s9298_s15 }
0x1bc4   : > { %s12409_s4 = smov %s9737_s2 }
0x1bc5   :  { %112 = sbr.rel (!%p110_p10) target bundleno = 102 (0x66), region = 429 }
0x1bc8   : > { %s12408_s15 = smov %s12405_s14 }
0x1bcc   :  { %6146 = vsyncpa [#allocation6], 1 }
0x1bcd   :  { %6148 = vsyncpa [#allocation6 + $0x1], 1 }
0x1bce   :  { %6149 = vsyncpa [#allocation9], 1 }
0x1bcf   :  { %6150 = vsyncpa [#allocation12], 1 }
0x1bd0   :  { %6151 = vsyncpa [#allocation15], 1 }
0x1bd1   :  { %6153 = vsyncpa [#allocation15 + $0x1], 1 }
0x1bd2   :  { %6154 = vsyncpa [#allocation18], 1 }
0x1bd3   :  { %6156 = vsyncpa [#allocation18 + $0x1], 1 }
0x1bd4   :  { %6157 = vsyncpa [#allocation21], 1 }
0x1bd5   :  { %6159 = vsyncpa [#allocation21 + $0x1], 1 }
0x1bd6   :  { %6160 = vsyncpa [#allocation24], 1 }
0x1bd7   :  { %6162 = vsyncpa [#allocation24 + $0x1], 1 }
0x1bd8   :  { %6163 = vsyncpa [#allocation27], 1 }
0x1bd9   :  { %6165 = vsyncpa [#allocation27 + $0x1], 1 }
0x1bda   :  { %6166 = vsyncpa [#allocation30], 1 }
0x1bdb   :  { %6167 = vsyncpa [#allocation33], 1 }
0x1bdc   :  { %6168 = vsyncpa [#allocation36], 1 }
0x1bdd   :  { %6169 = vsyncpa [#allocation39], 1 }
0x1bde   :  { %6170 = vsyncpa [#allocation42], 1 }
0x1bdf   :  { %6171 = vsyncpa [#allocation45], 1 }
0x1be0   :  { %6172 = vsyncpa [#allocation48], 1 }
0x1be1   :  { %6173 = vsyncpa [#allocation7], 1 }
0x1be2   :  { %6175 = vsyncpa [#allocation7 + $0x1], 1 }

</bundles_post_ra>
